<compile_context>
chip_gen: v7x
topology: tpu7x:2x2x1
jax: 0.10.0
libtpu: 0.0.40
codegen_flags: <defaults>
</compile_context>

<pallas_src>
import jax
import jax.numpy as jnp
from jax.experimental import pallas as pl
from jax.experimental.pallas import tpu as pltpu

# ----------------------------- config (small, synthetic ViT) -----------------
IMG = 16          # input spatial size (already "pre-resized")
CH = 3            # RGB
PATCH = 8         # patch size -> 2x2 = 4 patches
N_PATCH = (IMG // PATCH) ** 2
SEQ = N_PATCH + 1                 # + CLS token (= 5)
SEQ_PAD = 8                       # tokens padded to a full sublane tile
DIM = 32                          # transformer width
HEADS = 2
HEAD_DIM = DIM // HEADS
MLP = 4 * DIM                     # 128 -> lane-dense
LAYERS = 2
EMBED = 64                        # output embedding dim
EMBED_PAD = 128                   # lane-dense output slab; sliced to EMBED in wrapper
PD = PATCH * PATCH * CH           # flattened patch dim (192)
LN_EPS = 1e-5

# Images per grid step. M = BT*SEQ_PAD = 128 token rows fills a 128-row MXU tile (v5e) and is a
# clean half-tile on v6e/v7x; set BT=32 (M=256) on v6e/v7x for full 256-row tiles.
BT = 16

# Packed small-vector slab layout: 4 global rows + 6 rows per layer, all DIM lanes wide.
N_VEC = 4 + 6 * LAYERS            # = 16 -> multiple of 8 sublanes

CLIP_MEAN = (0.48145466, 0.4578275, 0.40821073)
CLIP_STD = (0.26862954, 0.26130258, 0.27577711)


def _invariant_spec(shape):
    """Whole-array block that does not change with the batch grid index
    (Pallas keeps it resident; no re-DMA across grid steps)."""
    nd = len(shape)
    return pl.BlockSpec(tuple(shape), lambda i, _nd=nd: (0,) * _nd)


# ----------------------------- fused kernel: preprocess + ViT + head ---------
def _clip_vit_kernel(patch_ref, pw_ref, bias_ref, vecs_ref,
                     qkv_w_ref, qkv_b_ref, attn_w_ref,
                     fc1_w_ref, fc1_b_ref, fc2_w_ref,
                     proj_ref, out_ref):
    bf16 = jnp.bfloat16
    f32 = jnp.float32
    bt = patch_ref.shape[0]
    m_rows = bt * SEQ_PAD

    def ln(v, w, b):
        mu = jnp.mean(v, axis=-1, keepdims=True)
        vc = v - mu
        var = jnp.mean(vc * vc, axis=-1, keepdims=True)
        return vc * jax.lax.rsqrt(var + LN_EPS) * w + b

    def mm(a, w):
        # bf16 operands, f32 accumulation (MXU-native on v6e/v7x)
        return jnp.dot(a.astype(bf16), w.astype(bf16), preferred_element_type=f32)

    # ---- patch embed + token assembly (BT images flattened to M=BT*SEQ_PAD rows) ----
    # patch block: (BT, SEQ_PAD, PD); CLS slot (row 0) and pad rows are zero, so the matmul
    # leaves them zero.  CLIP mean/std is folded into pw_ref; the constant shift + CLS +
    # positional embedding live in bias_ref (built once in fold_params).
    patches = patch_ref[...].reshape(m_rows, PD)             # (M, PD) f32
    tok = mm(patches, pw_ref[...])                           # (M, DIM) f32
    tok = (tok.reshape(bt, SEQ_PAD, DIM) + bias_ref[...]).reshape(m_rows, DIM)

    # Packed small vectors: rows 0-3 = lnpre_w, lnpre_b, lnpost_w, lnpost_b;
    # rows 4+6l .. 9+6l = ln1_w, ln1_b, ln2_w, ln2_b, attn_b, fc2_b of layer l.
    vecs = vecs_ref[...]                                     # (N_VEC, DIM) f32

    x = ln(tok, vecs[0:1], vecs[1:2])                        # ln_pre

    # Key-padding mask: padded token rows (>= SEQ) must not act as attention keys.
    kmask = (jax.lax.broadcasted_iota(jnp.int32, (SEQ_PAD, SEQ_PAD), 1) < SEQ)[None]

    # TODO(synk): at real CLIP depth (12-24 layers, DIM>=768), stream layers via a grid axis
    #             marked "arbitrary" with per-layer weight BlockSpecs + pl.Buffered(2) and a
    #             raised vmem_limit_bytes (v7x has only 64 MiB VMEM) instead of keeping all
    #             layer weights resident as done here at toy size.
    for l in range(LAYERS):
        base = 4 + 6 * l
        ln1_w, ln1_b = vecs[base:base + 1], vecs[base + 1:base + 2]
        ln2_w, ln2_b = vecs[base + 2:base + 3], vecs[base + 3:base + 4]
        attn_b = vecs[base + 4:base + 5]
        fc2_b = vecs[base + 5:base + 6]

        # ---- pre-LN multi-head self-attention ----
        h = ln(x, ln1_w, ln1_b)
        qkv = mm(h, qkv_w_ref[l]) + qkv_b_ref[l]             # (M, 3*DIM); Q pre-scaled
        qkv3 = qkv.reshape(bt, SEQ_PAD, 3 * DIM)             # per-image view
        aw = attn_w_ref[l]                                   # (DIM, DIM) bf16
        a = None
        # HEADS == 2: static unroll; head-concat is folded into the output projection via
        # per-head weight-row slices, so no concatenate / scratch needed.
        # TODO(synk): at real HEAD_DIM=64 permute qkv_w columns at fold time so each head's
        #             q/k/v occupy contiguous vreg-aligned lane groups (lane slicing at
        #             HEAD_DIM=16 is cheap, so it is left as-is here).
        for hh in range(HEADS):
            c0 = hh * HEAD_DIM
            qh = qkv3[:, :, c0:c0 + HEAD_DIM]
            kh = qkv3[:, :, DIM + c0:DIM + c0 + HEAD_DIM]
            vh = qkv3[:, :, 2 * DIM + c0:2 * DIM + c0 + HEAD_DIM]
            s = jnp.einsum('bqd,bkd->bqk', qh.astype(bf16), kh.astype(bf16),
                           preferred_element_type=f32)       # (BT, SEQ_PAD, SEQ_PAD)
            s = jnp.where(kmask, s, -1e30)
            s = s - jnp.max(s, axis=-1, keepdims=True)
            p = jnp.exp(s)
            p = p * pl.reciprocal(jnp.sum(p, axis=-1, keepdims=True), approx=True)
            o_h = jnp.einsum('bqk,bkd->bqd', p.astype(bf16), vh.astype(bf16),
                             preferred_element_type=f32)     # (BT, SEQ_PAD, HEAD_DIM)
            # o @ W_o == sum_h o_h @ W_o[h*HEAD_DIM:(h+1)*HEAD_DIM, :]
            contrib = mm(o_h.reshape(m_rows, HEAD_DIM), aw[c0:c0 + HEAD_DIM, :])
            a = contrib if a is None else a + contrib
        x = x + a + attn_b                                   # bias added once (hoisted)

        # ---- pre-LN MLP with QuickGELU (OpenAI CLIP); MLP=128 is lane-dense ----
        h2 = ln(x, ln2_w, ln2_b)
        mh = mm(h2, fc1_w_ref[l]) + fc1_b_ref[l]
        mh = mh * jax.nn.sigmoid(1.702 * mh)
        x = x + mm(mh, fc2_w_ref[l]) + fc2_b

    # ---- head on the CLS rows only: ln_post, projection (padded to 128 lanes), L2 norm ----
    cls = x.reshape(bt, SEQ_PAD, DIM)[:, 0, :]               # (BT, DIM)
    y = ln(cls, vecs[2:3], vecs[3:4])
    emb = mm(y, proj_ref[...])                               # (BT, EMBED_PAD)
    emb = emb * jax.lax.rsqrt(jnp.sum(emb * emb, axis=-1, keepdims=True) + 1e-12)
    out_ref[...] = emb.astype(out_ref.dtype)                 # one lane-dense (BT, 128) store


# ----------------------------- parameters (deterministic, synthetic) ---------
def init_params(key):
    ks = jax.random.split(key, 8)

    def nrm(k, shape, s=0.02):
        return s * jax.random.normal(k, shape, jnp.float32)

    return dict(
        # flattened conv1 kernel, columns ordered (ph, pw, c); bias-free like CLIP
        patch_w=nrm(ks[0], (PD, DIM)),
        cls=nrm(ks[1], (1, DIM)),
        pos=nrm(ks[2], (SEQ, DIM)),
        lnpre_w=jnp.ones((1, DIM), jnp.float32),
        lnpre_b=jnp.zeros((1, DIM), jnp.float32),
        ln1_w=jnp.ones((LAYERS, 1, DIM), jnp.float32),
        ln1_b=jnp.zeros((LAYERS, 1, DIM), jnp.float32),
        qkv_w=nrm(ks[3], (LAYERS, DIM, 3 * DIM)),
        qkv_b=jnp.zeros((LAYERS, 1, 3 * DIM), jnp.float32),
        attn_w=nrm(ks[4], (LAYERS, DIM, DIM)),
        attn_b=jnp.zeros((LAYERS, 1, DIM), jnp.float32),
        ln2_w=jnp.ones((LAYERS, 1, DIM), jnp.float32),
        ln2_b=jnp.zeros((LAYERS, 1, DIM), jnp.float32),
        fc1_w=nrm(ks[5], (LAYERS, DIM, MLP)),
        fc1_b=jnp.zeros((LAYERS, 1, MLP), jnp.float32),
        fc2_w=nrm(ks[6], (LAYERS, MLP, DIM)),
        fc2_b=jnp.zeros((LAYERS, 1, DIM), jnp.float32),
        lnpost_w=jnp.ones((1, DIM), jnp.float32),
        lnpost_b=jnp.zeros((1, DIM), jnp.float32),
        proj=nrm(ks[7], (DIM, EMBED)),
    )


# ----------------------------- one-time parameter folding --------------------
def fold_params(params):
    """Fold the CLIP transform and attention scale into the weights, cast matmul weights to
    bf16, pad the projection to 128 lanes and pack all small per-layer vectors.  Call ONCE
    (e.g. at load time); the result is reused by every clip_embed_forward call."""
    mean = jnp.asarray(CLIP_MEAN, jnp.float32)
    std = jnp.asarray(CLIP_STD, jnp.float32)

    # Fold (x - mean)/std into the patch-embed weights (the /255 for uint8 inputs is applied
    # in the wrapper, matching the PyTorch `imgs.float()/255` branch): weight rows scaled by
    # 1/std; the constant -mean/std becomes a bias row through the ORIGINAL weights.
    pw = params["patch_w"]
    col_scale = jnp.tile(1.0 / std, PATCH * PATCH)                 # (PD,), (ph,pw,c) order
    col_shift = jnp.tile(-mean / std, PATCH * PATCH).reshape(1, PD)
    pw_eff = (pw * col_scale[:, None]).astype(jnp.bfloat16)        # (PD, DIM)
    patch_bias = col_shift @ pw                                    # (1, DIM)

    # Token bias slab: row0 = CLS + pos[0]; rows 1..N_PATCH = pos + shift-bias; pad rows = 0.
    tok_bias = jnp.zeros((SEQ_PAD, DIM), jnp.float32)
    tok_bias = tok_bias.at[0].set(params["cls"][0] + params["pos"][0])
    tok_bias = tok_bias.at[1:SEQ].set(params["pos"][1:SEQ] + patch_bias)

    # Fold 1/sqrt(head_dim) into the Q projection; cast matmul weights to bf16.
    scale = 1.0 / (HEAD_DIM ** 0.5)
    qkv_w = params["qkv_w"].at[:, :, :DIM].multiply(scale).astype(jnp.bfloat16)
    qkv_b = params["qkv_b"].at[:, :, :DIM].multiply(scale)

    # Pad the output projection to a lane-dense 128-wide slab (zero columns add nothing to
    # the L2 norm).
    proj_pad = jnp.zeros((DIM, EMBED_PAD), jnp.float32).at[:, :EMBED].set(params["proj"])
    proj_pad = proj_pad.astype(jnp.bfloat16)

    # Pack all DIM-wide vectors into a single (N_VEC, DIM) slab -> one invariant BlockSpec.
    rows = [params["lnpre_w"], params["lnpre_b"], params["lnpost_w"], params["lnpost_b"]]
    for l in range(LAYERS):
        rows += [params["ln1_w"][l], params["ln1_b"][l],
                 params["ln2_w"][l], params["ln2_b"][l],
                 params["attn_b"][l], params["fc2_b"][l]]
    vecs = jnp.concatenate(rows, axis=0)                           # (N_VEC, DIM)
    assert vecs.shape == (N_VEC, DIM)

    return dict(
        pw=pw_eff, tok_bias=tok_bias, vecs=vecs,
        qkv_w=qkv_w, qkv_b=qkv_b,
        attn_w=params["attn_w"].astype(jnp.bfloat16),
        fc1_w=params["fc1_w"].astype(jnp.bfloat16), fc1_b=params["fc1_b"],
        fc2_w=params["fc2_w"].astype(jnp.bfloat16),
        proj=proj_pad,
    )


# ----------------------------- CLIPEmbed.forward equivalent ------------------
def clip_embed_forward(imgs, folded, bt=BT):
    # 1) uint8 -> float/255 (same branch as the PyTorch reference)
    if imgs.dtype == jnp.uint8:
        imgs = imgs.astype(jnp.float32) * (1.0 / 255.0)
    imgs = imgs.astype(jnp.float32)

    # 2) channel canonicalization: kernel layout is NHWC; convert NCHW -> NHWC if needed.
    # TODO(synk): 'shape[-1] != CH' is ambiguous if H or W happens to equal 3; a real API
    #             should take an explicit layout flag.
    if imgs.shape[-1] != CH:
        imgs = jnp.transpose(imgs, (0, 2, 3, 1))
    b, h, w, c = imgs.shape
    hp, wp = h // PATCH, w // PATCH
    assert hp * wp == N_PATCH and c == CH, (imgs.shape,)

    # 3) patchify (glue): NHWC -> (b_pad, SEQ_PAD, P*P*C); CLS row, pad rows and pad images
    #    are zero.  Batch is padded up to a multiple of BT so every grid step is full.
    # TODO(synk): at real 224x224 resolution move this rearrangement into the kernel
    #             (raw-image BlockSpec) to avoid an extra HBM pass over all pixels.
    b_pad = ((b + bt - 1) // bt) * bt
    patches = imgs.reshape(b, hp, PATCH, wp, PATCH, c).transpose(0, 1, 3, 2, 4, 5)
    patches = patches.reshape(b, hp * wp, PD)
    patches_padded = (jnp.zeros((b_pad, SEQ_PAD, PD), jnp.float32)
                      .at[:b, 1:1 + N_PATCH].set(patches))

    weight_inputs = (folded["pw"], folded["tok_bias"], folded["vecs"],
                     folded["qkv_w"], folded["qkv_b"], folded["attn_w"],
                     folded["fc1_w"], folded["fc1_b"], folded["fc2_w"],
                     folded["proj"])

    in_specs = [pl.BlockSpec((bt, SEQ_PAD, PD), lambda i: (i, 0, 0))]
    in_specs += [_invariant_spec(a.shape) for a in weight_inputs]

    out = pl.pallas_call(
        _clip_vit_kernel,
        out_shape=jax.ShapeDtypeStruct((b_pad, EMBED_PAD), jnp.float32),
        grid=(b_pad // bt,),
        in_specs=in_specs,
        out_specs=pl.BlockSpec((bt, EMBED_PAD), lambda i: (i, 0)),
        compiler_params=pltpu.CompilerParams(
            dimension_semantics=("parallel",)),   # v7x: shard batch blocks across both TCs
    )(patches_padded, *weight_inputs)

    # each row is a CLS embedding; drop batch padding and lane padding
    return out[:b, :EMBED]


if __name__ == "__main__":
    key = jax.random.PRNGKey(0)
    pkey, ikey = jax.random.split(key)
    params = init_params(pkey)
    folded = fold_params(params)          # fold/cast/pack ONCE; reused by every forward call

    # NHWC uint8 image batch: 32 images -> 2 grid steps of BT=16 (even work for v7x's 2 TCs).
    B = 32
    imgs = jax.random.randint(ikey, (B, IMG, IMG, CH), 0, 256, dtype=jnp.int32)
    imgs = imgs.astype(jnp.uint8)

    out = clip_embed_forward(imgs, folded)
    out = jax.block_until_ready(out)

    assert out.shape == (B, EMBED), out.shape
    norms = jnp.linalg.norm(out, axis=-1)
    assert bool(jnp.all(jnp.abs(norms - 1.0) < 1e-3)), norms
    assert bool(jnp.all(jnp.isfinite(out)))
    print("KERNEL_OK")
</pallas_src>

<mosaic_0001>
module attributes {stable_mosaic.version = 11 : i64} {
  func.func @_clip_vit_kernel(%arg0: i32, %arg1: memref<16x8x192xf32, #tpu.memory_space<vmem>>, %arg2: memref<192x32xbf16, #tpu.memory_space<vmem>>, %arg3: memref<8x32xf32, #tpu.memory_space<vmem>>, %arg4: memref<16x32xf32, #tpu.memory_space<vmem>>, %arg5: memref<2x32x96xbf16, #tpu.memory_space<vmem>>, %arg6: memref<2x1x96xf32, #tpu.memory_space<vmem>>, %arg7: memref<2x32x32xbf16, #tpu.memory_space<vmem>>, %arg8: memref<2x32x128xbf16, #tpu.memory_space<vmem>>, %arg9: memref<2x1x128xf32, #tpu.memory_space<vmem>>, %arg10: memref<2x128x32xbf16, #tpu.memory_space<vmem>>, %arg11: memref<32x128xbf16, #tpu.memory_space<vmem>>, %arg12: memref<16x128xf32, #tpu.memory_space<vmem>>) attributes {dimension_semantics = [#tpu.dimension_semantics<parallel>], iteration_bounds = array<i64: 2>, scalar_prefetch = 0 : i64, scratch_operands = 0 : i64, tpu.core_type = #tpu.core_type<tc>, window_params = [{transform_indices = @transform_0, window_bounds = array<i64: 16, 8, 192>}, {pipeline_mode = #tpu.pipeline_mode<synchronous>, transform_indices = @transform_1, window_bounds = array<i64: 192, 32>}, {pipeline_mode = #tpu.pipeline_mode<synchronous>, transform_indices = @transform_2, window_bounds = array<i64: 8, 32>}, {pipeline_mode = #tpu.pipeline_mode<synchronous>, transform_indices = @transform_3, window_bounds = array<i64: 16, 32>}, {pipeline_mode = #tpu.pipeline_mode<synchronous>, transform_indices = @transform_4, window_bounds = array<i64: 2, 32, 96>}, {pipeline_mode = #tpu.pipeline_mode<synchronous>, transform_indices = @transform_5, window_bounds = array<i64: 2, 1, 96>}, {pipeline_mode = #tpu.pipeline_mode<synchronous>, transform_indices = @transform_6, window_bounds = array<i64: 2, 32, 32>}, {pipeline_mode = #tpu.pipeline_mode<synchronous>, transform_indices = @transform_7, window_bounds = array<i64: 2, 32, 128>}, {pipeline_mode = #tpu.pipeline_mode<synchronous>, transform_indices = @transform_8, window_bounds = array<i64: 2, 1, 128>}, {pipeline_mode = #tpu.pipeline_mode<synchronous>, transform_indices = @transform_9, window_bounds = array<i64: 2, 128, 32>}, {pipeline_mode = #tpu.pipeline_mode<synchronous>, transform_indices = @transform_10, window_bounds = array<i64: 32, 128>}, {transform_indices = @transform_11, window_bounds = array<i64: 16, 128>}]} {
    %c0 = arith.constant 0 : index
    %c0_0 = arith.constant 0 : index
    %c0_1 = arith.constant 0 : index
    %0 = vector.load %arg1[%c0, %c0_0, %c0_1] : memref<16x8x192xf32, #tpu.memory_space<vmem>>, vector<16x8x192xf32>
    %1 = vector.shape_cast %0 : vector<16x8x192xf32> to vector<128x192xf32>
    %c0_2 = arith.constant 0 : index
    %c0_3 = arith.constant 0 : index
    %2 = vector.load %arg2[%c0_2, %c0_3] : memref<192x32xbf16, #tpu.memory_space<vmem>>, vector<192x32xbf16>
    %3 = arith.truncf %1 : vector<128x192xf32> to vector<128x192xbf16>
    %cst = arith.constant dense<0.000000e+00> : vector<128x32xf32>
    %4 = tpu.matmul %3, %2, %cst {dimension_numbers = #tpu.dot_dimension_numbers<[1], [0], [0], [1], [0, 0, 1, 1], [], []>} : vector<128x192xbf16>, vector<192x32xbf16>, vector<128x32xf32> -> vector<128x32xf32>
    %5 = vector.shape_cast %4 : vector<128x32xf32> to vector<16x8x32xf32>
    %c0_4 = arith.constant 0 : index
    %c0_5 = arith.constant 0 : index
    %6 = vector.load %arg3[%c0_4, %c0_5] : memref<8x32xf32, #tpu.memory_space<vmem>>, vector<8x32xf32>
    %7 = vector.shape_cast %6 : vector<8x32xf32> to vector<1x8x32xf32>
    %8 = vector.broadcast %7 : vector<1x8x32xf32> to vector<16x8x32xf32>
    %9 = arith.addf %5, %8 : vector<16x8x32xf32>
    %10 = vector.shape_cast %9 : vector<16x8x32xf32> to vector<128x32xf32>
    %c0_6 = arith.constant 0 : index
    %c0_7 = arith.constant 0 : index
    %11 = vector.load %arg4[%c0_6, %c0_7] : memref<16x32xf32, #tpu.memory_space<vmem>>, vector<16x32xf32>
    %12 = vector.extract_strided_slice %11 {offsets = [0, 0], sizes = [1, 32], strides = [1, 1]} : vector<16x32xf32> to vector<1x32xf32>
    %13 = vector.extract_strided_slice %11 {offsets = [1, 0], sizes = [1, 32], strides = [1, 1]} : vector<16x32xf32> to vector<1x32xf32>
    %cst_8 = arith.constant dense<0.000000e+00> : vector<128xf32>
    %14 = vector.multi_reduction <add>, %10, %cst_8 [1] : vector<128x32xf32> to vector<128xf32>
    %15 = vector.shape_cast %14 : vector<128xf32> to vector<128x1xf32>
    %cst_9 = arith.constant 3.200000e+01 : f32
    %16 = vector.broadcast %cst_9 : f32 to vector<128x1xf32>
    %17 = arith.divf %15, %16 : vector<128x1xf32>
    %18 = vector.broadcast %17 : vector<128x1xf32> to vector<128x32xf32>
    %19 = arith.subf %10, %18 : vector<128x32xf32>
    %20 = arith.mulf %19, %19 : vector<128x32xf32>
    %cst_10 = arith.constant dense<0.000000e+00> : vector<128xf32>
    %21 = vector.multi_reduction <add>, %20, %cst_10 [1] : vector<128x32xf32> to vector<128xf32>
    %22 = vector.shape_cast %21 : vector<128xf32> to vector<128x1xf32>
    %cst_11 = arith.constant 3.200000e+01 : f32
    %23 = vector.broadcast %cst_11 : f32 to vector<128x1xf32>
    %24 = arith.divf %22, %23 : vector<128x1xf32>
    %cst_12 = arith.constant 9.99999974E-6 : f32
    %25 = vector.broadcast %cst_12 : f32 to vector<128x1xf32>
    %26 = arith.addf %24, %25 : vector<128x1xf32>
    %27 = math.rsqrt %26 : vector<128x1xf32>
    %28 = vector.broadcast %27 : vector<128x1xf32> to vector<128x32xf32>
    %29 = arith.mulf %19, %28 : vector<128x32xf32>
    %30 = vector.broadcast %12 : vector<1x32xf32> to vector<128x32xf32>
    %31 = arith.mulf %29, %30 : vector<128x32xf32>
    %32 = vector.broadcast %13 : vector<1x32xf32> to vector<128x32xf32>
    %33 = arith.addf %31, %32 : vector<128x32xf32>
    %34 = tpu.iota {dimensions = array<i32: 1>} : vector<8x8xi32>
    %c5_i32 = arith.constant 5 : i32
    %35 = vector.broadcast %c5_i32 : i32 to vector<8x8xi32>
    %36 = arith.cmpi slt, %34, %35 : vector<8x8xi32>
    %37 = vector.shape_cast %36 : vector<8x8xi1> to vector<1x8x8xi1>
    %38 = vector.extract_strided_slice %11 {offsets = [4, 0], sizes = [1, 32], strides = [1, 1]} : vector<16x32xf32> to vector<1x32xf32>
    %39 = vector.extract_strided_slice %11 {offsets = [5, 0], sizes = [1, 32], strides = [1, 1]} : vector<16x32xf32> to vector<1x32xf32>
    %40 = vector.extract_strided_slice %11 {offsets = [6, 0], sizes = [1, 32], strides = [1, 1]} : vector<16x32xf32> to vector<1x32xf32>
    %41 = vector.extract_strided_slice %11 {offsets = [7, 0], sizes = [1, 32], strides = [1, 1]} : vector<16x32xf32> to vector<1x32xf32>
    %42 = vector.extract_strided_slice %11 {offsets = [8, 0], sizes = [1, 32], strides = [1, 1]} : vector<16x32xf32> to vector<1x32xf32>
    %43 = vector.extract_strided_slice %11 {offsets = [9, 0], sizes = [1, 32], strides = [1, 1]} : vector<16x32xf32> to vector<1x32xf32>
    %cst_13 = arith.constant dense<0.000000e+00> : vector<128xf32>
    %44 = vector.multi_reduction <add>, %33, %cst_13 [1] : vector<128x32xf32> to vector<128xf32>
    %45 = vector.shape_cast %44 : vector<128xf32> to vector<128x1xf32>
    %cst_14 = arith.constant 3.200000e+01 : f32
    %46 = vector.broadcast %cst_14 : f32 to vector<128x1xf32>
    %47 = arith.divf %45, %46 : vector<128x1xf32>
    %48 = vector.broadcast %47 : vector<128x1xf32> to vector<128x32xf32>
    %49 = arith.subf %33, %48 : vector<128x32xf32>
    %50 = arith.mulf %49, %49 : vector<128x32xf32>
    %cst_15 = arith.constant dense<0.000000e+00> : vector<128xf32>
    %51 = vector.multi_reduction <add>, %50, %cst_15 [1] : vector<128x32xf32> to vector<128xf32>
    %52 = vector.shape_cast %51 : vector<128xf32> to vector<128x1xf32>
    %cst_16 = arith.constant 3.200000e+01 : f32
    %53 = vector.broadcast %cst_16 : f32 to vector<128x1xf32>
    %54 = arith.divf %52, %53 : vector<128x1xf32>
    %cst_17 = arith.constant 9.99999974E-6 : f32
    %55 = vector.broadcast %cst_17 : f32 to vector<128x1xf32>
    %56 = arith.addf %54, %55 : vector<128x1xf32>
    %57 = math.rsqrt %56 : vector<128x1xf32>
    %58 = vector.broadcast %57 : vector<128x1xf32> to vector<128x32xf32>
    %59 = arith.mulf %49, %58 : vector<128x32xf32>
    %60 = vector.broadcast %38 : vector<1x32xf32> to vector<128x32xf32>
    %61 = arith.mulf %59, %60 : vector<128x32xf32>
    %62 = vector.broadcast %39 : vector<1x32xf32> to vector<128x32xf32>
    %63 = arith.addf %61, %62 : vector<128x32xf32>
    %c0_18 = arith.constant 0 : index
    %c0_19 = arith.constant 0 : index
    %c0_20 = arith.constant 0 : index
    %64 = vector.load %arg5[%c0_18, %c0_19, %c0_20] : memref<2x32x96xbf16, #tpu.memory_space<vmem>>, vector<1x32x96xbf16>
    %65 = vector.shape_cast %64 : vector<1x32x96xbf16> to vector<32x96xbf16>
    %66 = arith.truncf %63 : vector<128x32xf32> to vector<128x32xbf16>
    %cst_21 = arith.constant dense<0.000000e+00> : vector<128x96xf32>
    %67 = tpu.matmul %66, %65, %cst_21 {dimension_numbers = #tpu.dot_dimension_numbers<[1], [0], [0], [1], [0, 0, 1, 1], [], []>} : vector<128x32xbf16>, vector<32x96xbf16>, vector<128x96xf32> -> vector<128x96xf32>
    %c0_22 = arith.constant 0 : index
    %c0_23 = arith.constant 0 : index
    %c0_24 = arith.constant 0 : index
    %68 = vector.load %arg6[%c0_22, %c0_23, %c0_24] : memref<2x1x96xf32, #tpu.memory_space<vmem>>, vector<1x1x96xf32>
    %69 = vector.shape_cast %68 : vector<1x1x96xf32> to vector<1x96xf32>
    %70 = vector.broadcast %69 : vector<1x96xf32> to vector<128x96xf32>
    %71 = arith.addf %67, %70 : vector<128x96xf32>
    %72 = vector.shape_cast %71 : vector<128x96xf32> to vector<16x8x96xf32>
    %c0_25 = arith.constant 0 : index
    %c0_26 = arith.constant 0 : index
    %c0_27 = arith.constant 0 : index
    %73 = vector.load %arg7[%c0_25, %c0_26, %c0_27] : memref<2x32x32xbf16, #tpu.memory_space<vmem>>, vector<1x32x32xbf16>
    %74 = vector.shape_cast %73 : vector<1x32x32xbf16> to vector<32x32xbf16>
    %75 = vector.extract_strided_slice %72 {offsets = [0, 0, 0], sizes = [16, 8, 16], strides = [1, 1, 1]} : vector<16x8x96xf32> to vector<16x8x16xf32>
    %76 = vector.extract_strided_slice %72 {offsets = [0, 0, 32], sizes = [16, 8, 16], strides = [1, 1, 1]} : vector<16x8x96xf32> to vector<16x8x16xf32>
    %77 = vector.extract_strided_slice %72 {offsets = [0, 0, 64], sizes = [16, 8, 16], strides = [1, 1, 1]} : vector<16x8x96xf32> to vector<16x8x16xf32>
    %78 = arith.truncf %75 : vector<16x8x16xf32> to vector<16x8x16xbf16>
    %79 = arith.truncf %76 : vector<16x8x16xf32> to vector<16x8x16xbf16>
    "tpu.trace_start"() <{level = 10 : i32, message = "bqd,bkd->bqk"}> : () -> ()
    %cst_28 = arith.constant dense<0.000000e+00> : vector<16x8x8xf32>
    %80 = tpu.matmul %78, %79, %cst_28 {dimension_numbers = #tpu.dot_dimension_numbers<[2], [2], [1], [1], [0, 0, 0, 1, 1, 1], [0], [0]>} : vector<16x8x16xbf16>, vector<16x8x16xbf16>, vector<16x8x8xf32> -> vector<16x8x8xf32>
    %cst_29 = arith.constant -1.000000e+30 : f32
    "tpu.trace_stop"() : () -> ()
    %81 = vector.shape_cast %37 : vector<1x8x8xi1> to vector<1x8x8xi1>
    %82 = vector.broadcast %81 : vector<1x8x8xi1> to vector<16x8x8xi1>
    %83 = vector.broadcast %cst_29 : f32 to vector<16x8x8xf32>
    %84 = arith.select %82, %80, %83 : vector<16x8x8xi1>, vector<16x8x8xf32>
    %cst_30 = arith.constant dense<0xFF800000> : vector<16x8xf32>
    %85 = vector.multi_reduction <maximumf>, %84, %cst_30 [2] : vector<16x8x8xf32> to vector<16x8xf32>
    %86 = vector.shape_cast %85 : vector<16x8xf32> to vector<16x8x1xf32>
    %87 = vector.broadcast %86 : vector<16x8x1xf32> to vector<16x8x8xf32>
    %88 = arith.subf %84, %87 : vector<16x8x8xf32>
    %89 = math.exp %88 : vector<16x8x8xf32>
    %cst_31 = arith.constant dense<0.000000e+00> : vector<16x8xf32>
    %90 = vector.multi_reduction <add>, %89, %cst_31 [2] : vector<16x8x8xf32> to vector<16x8xf32>
    %91 = vector.shape_cast %90 : vector<16x8xf32> to vector<16x8x1xf32>
    %92 = tpu.reciprocal %91 {approx = true} : vector<16x8x1xf32> -> vector<16x8x1xf32>
    %93 = vector.broadcast %92 : vector<16x8x1xf32> to vector<16x8x8xf32>
    %94 = arith.mulf %89, %93 : vector<16x8x8xf32>
    %95 = arith.truncf %94 : vector<16x8x8xf32> to vector<16x8x8xbf16>
    %96 = arith.truncf %77 : vector<16x8x16xf32> to vector<16x8x16xbf16>
    "tpu.trace_start"() <{level = 10 : i32, message = "bqk,bkd->bqd"}> : () -> ()
    %cst_32 = arith.constant dense<0.000000e+00> : vector<16x8x16xf32>
    %97 = tpu.matmul %95, %96, %cst_32 {dimension_numbers = #tpu.dot_dimension_numbers<[2], [1], [1], [2], [0, 0, 0, 1, 1, 2], [0], [0]>} : vector<16x8x8xbf16>, vector<16x8x16xbf16>, vector<16x8x16xf32> -> vector<16x8x16xf32>
    "tpu.trace_stop"() : () -> ()
    %98 = vector.shape_cast %97 : vector<16x8x16xf32> to vector<128x16xf32>
    %99 = vector.extract_strided_slice %74 {offsets = [0, 0], sizes = [16, 32], strides = [1, 1]} : vector<32x32xbf16> to vector<16x32xbf16>
    %100 = arith.truncf %98 : vector<128x16xf32> to vector<128x16xbf16>
    %cst_33 = arith.constant dense<0.000000e+00> : vector<128x32xf32>
    %101 = tpu.matmul %100, %99, %cst_33 {dimension_numbers = #tpu.dot_dimension_numbers<[1], [0], [0], [1], [0, 0, 1, 1], [], []>} : vector<128x16xbf16>, vector<16x32xbf16>, vector<128x32xf32> -> vector<128x32xf32>
    %102 = vector.extract_strided_slice %72 {offsets = [0, 0, 16], sizes = [16, 8, 16], strides = [1, 1, 1]} : vector<16x8x96xf32> to vector<16x8x16xf32>
    %103 = vector.extract_strided_slice %72 {offsets = [0, 0, 48], sizes = [16, 8, 16], strides = [1, 1, 1]} : vector<16x8x96xf32> to vector<16x8x16xf32>
    %104 = vector.extract_strided_slice %72 {offsets = [0, 0, 80], sizes = [16, 8, 16], strides = [1, 1, 1]} : vector<16x8x96xf32> to vector<16x8x16xf32>
    %105 = arith.truncf %102 : vector<16x8x16xf32> to vector<16x8x16xbf16>
    %106 = arith.truncf %103 : vector<16x8x16xf32> to vector<16x8x16xbf16>
    "tpu.trace_start"() <{level = 10 : i32, message = "bqd,bkd->bqk"}> : () -> ()
    %cst_34 = arith.constant dense<0.000000e+00> : vector<16x8x8xf32>
    %107 = tpu.matmul %105, %106, %cst_34 {dimension_numbers = #tpu.dot_dimension_numbers<[2], [2], [1], [1], [0, 0, 0, 1, 1, 1], [0], [0]>} : vector<16x8x16xbf16>, vector<16x8x16xbf16>, vector<16x8x8xf32> -> vector<16x8x8xf32>
    %cst_35 = arith.constant -1.000000e+30 : f32
    "tpu.trace_stop"() : () -> ()
    %108 = vector.shape_cast %37 : vector<1x8x8xi1> to vector<1x8x8xi1>
    %109 = vector.broadcast %108 : vector<1x8x8xi1> to vector<16x8x8xi1>
    %110 = vector.broadcast %cst_35 : f32 to vector<16x8x8xf32>
    %111 = arith.select %109, %107, %110 : vector<16x8x8xi1>, vector<16x8x8xf32>
    %cst_36 = arith.constant dense<0xFF800000> : vector<16x8xf32>
    %112 = vector.multi_reduction <maximumf>, %111, %cst_36 [2] : vector<16x8x8xf32> to vector<16x8xf32>
    %113 = vector.shape_cast %112 : vector<16x8xf32> to vector<16x8x1xf32>
    %114 = vector.broadcast %113 : vector<16x8x1xf32> to vector<16x8x8xf32>
    %115 = arith.subf %111, %114 : vector<16x8x8xf32>
    %116 = math.exp %115 : vector<16x8x8xf32>
    %cst_37 = arith.constant dense<0.000000e+00> : vector<16x8xf32>
    %117 = vector.multi_reduction <add>, %116, %cst_37 [2] : vector<16x8x8xf32> to vector<16x8xf32>
    %118 = vector.shape_cast %117 : vector<16x8xf32> to vector<16x8x1xf32>
    %119 = tpu.reciprocal %118 {approx = true} : vector<16x8x1xf32> -> vector<16x8x1xf32>
    %120 = vector.broadcast %119 : vector<16x8x1xf32> to vector<16x8x8xf32>
    %121 = arith.mulf %116, %120 : vector<16x8x8xf32>
    %122 = arith.truncf %121 : vector<16x8x8xf32> to vector<16x8x8xbf16>
    %123 = arith.truncf %104 : vector<16x8x16xf32> to vector<16x8x16xbf16>
    "tpu.trace_start"() <{level = 10 : i32, message = "bqk,bkd->bqd"}> : () -> ()
    %cst_38 = arith.constant dense<0.000000e+00> : vector<16x8x16xf32>
    %124 = tpu.matmul %122, %123, %cst_38 {dimension_numbers = #tpu.dot_dimension_numbers<[2], [1], [1], [2], [0, 0, 0, 1, 1, 2], [0], [0]>} : vector<16x8x8xbf16>, vector<16x8x16xbf16>, vector<16x8x16xf32> -> vector<16x8x16xf32>
    "tpu.trace_stop"() : () -> ()
    %125 = vector.shape_cast %124 : vector<16x8x16xf32> to vector<128x16xf32>
    %126 = vector.extract_strided_slice %74 {offsets = [16, 0], sizes = [16, 32], strides = [1, 1]} : vector<32x32xbf16> to vector<16x32xbf16>
    %127 = arith.truncf %125 : vector<128x16xf32> to vector<128x16xbf16>
    %cst_39 = arith.constant dense<0.000000e+00> : vector<128x32xf32>
    %128 = tpu.matmul %127, %126, %cst_39 {dimension_numbers = #tpu.dot_dimension_numbers<[1], [0], [0], [1], [0, 0, 1, 1], [], []>} : vector<128x16xbf16>, vector<16x32xbf16>, vector<128x32xf32> -> vector<128x32xf32>
    %129 = arith.addf %101, %128 : vector<128x32xf32>
    %130 = arith.addf %33, %129 : vector<128x32xf32>
    %131 = vector.broadcast %42 : vector<1x32xf32> to vector<128x32xf32>
    %132 = arith.addf %130, %131 : vector<128x32xf32>
    %cst_40 = arith.constant dense<0.000000e+00> : vector<128xf32>
    %133 = vector.multi_reduction <add>, %132, %cst_40 [1] : vector<128x32xf32> to vector<128xf32>
    %134 = vector.shape_cast %133 : vector<128xf32> to vector<128x1xf32>
    %cst_41 = arith.constant 3.200000e+01 : f32
    %135 = vector.broadcast %cst_41 : f32 to vector<128x1xf32>
    %136 = arith.divf %134, %135 : vector<128x1xf32>
    %137 = vector.broadcast %136 : vector<128x1xf32> to vector<128x32xf32>
    %138 = arith.subf %132, %137 : vector<128x32xf32>
    %139 = arith.mulf %138, %138 : vector<128x32xf32>
    %cst_42 = arith.constant dense<0.000000e+00> : vector<128xf32>
    %140 = vector.multi_reduction <add>, %139, %cst_42 [1] : vector<128x32xf32> to vector<128xf32>
    %141 = vector.shape_cast %140 : vector<128xf32> to vector<128x1xf32>
    %cst_43 = arith.constant 3.200000e+01 : f32
    %142 = vector.broadcast %cst_43 : f32 to vector<128x1xf32>
    %143 = arith.divf %141, %142 : vector<128x1xf32>
    %cst_44 = arith.constant 9.99999974E-6 : f32
    %144 = vector.broadcast %cst_44 : f32 to vector<128x1xf32>
    %145 = arith.addf %143, %144 : vector<128x1xf32>
    %146 = math.rsqrt %145 : vector<128x1xf32>
    %147 = vector.broadcast %146 : vector<128x1xf32> to vector<128x32xf32>
    %148 = arith.mulf %138, %147 : vector<128x32xf32>
    %149 = vector.broadcast %40 : vector<1x32xf32> to vector<128x32xf32>
    %150 = arith.mulf %148, %149 : vector<128x32xf32>
    %151 = vector.broadcast %41 : vector<1x32xf32> to vector<128x32xf32>
    %152 = arith.addf %150, %151 : vector<128x32xf32>
    %c0_45 = arith.constant 0 : index
    %c0_46 = arith.constant 0 : index
    %c0_47 = arith.constant 0 : index
    %153 = vector.load %arg8[%c0_45, %c0_46, %c0_47] : memref<2x32x128xbf16, #tpu.memory_space<vmem>>, vector<1x32x128xbf16>
    %154 = vector.shape_cast %153 : vector<1x32x128xbf16> to vector<32x128xbf16>
    %155 = arith.truncf %152 : vector<128x32xf32> to vector<128x32xbf16>
    %cst_48 = arith.constant dense<0.000000e+00> : vector<128x128xf32>
    %156 = tpu.matmul %155, %154, %cst_48 {dimension_numbers = #tpu.dot_dimension_numbers<[1], [0], [0], [1], [0, 0, 1, 1], [], []>} : vector<128x32xbf16>, vector<32x128xbf16>, vector<128x128xf32> -> vector<128x128xf32>
    %c0_49 = arith.constant 0 : index
    %c0_50 = arith.constant 0 : index
    %c0_51 = arith.constant 0 : index
    %157 = vector.load %arg9[%c0_49, %c0_50, %c0_51] : memref<2x1x128xf32, #tpu.memory_space<vmem>>, vector<1x1x128xf32>
    %158 = vector.shape_cast %157 : vector<1x1x128xf32> to vector<1x128xf32>
    %159 = vector.broadcast %158 : vector<1x128xf32> to vector<128x128xf32>
    %160 = arith.addf %156, %159 : vector<128x128xf32>
    %cst_52 = arith.constant 1.702000e+00 : f32
    %161 = vector.broadcast %cst_52 : f32 to vector<128x128xf32>
    %162 = arith.mulf %161, %160 : vector<128x128xf32>
    %163 = arith.negf %162 : vector<128x128xf32>
    %164 = math.exp %163 : vector<128x128xf32>
    %cst_53 = arith.constant 1.000000e+00 : f32
    %165 = vector.broadcast %cst_53 : f32 to vector<128x128xf32>
    %166 = arith.addf %165, %164 : vector<128x128xf32>
    %167 = arith.divf %165, %166 : vector<128x128xf32>
    %168 = arith.mulf %160, %167 : vector<128x128xf32>
    %c0_54 = arith.constant 0 : index
    %c0_55 = arith.constant 0 : index
    %c0_56 = arith.constant 0 : index
    %169 = vector.load %arg10[%c0_54, %c0_55, %c0_56] : memref<2x128x32xbf16, #tpu.memory_space<vmem>>, vector<1x128x32xbf16>
    %170 = vector.shape_cast %169 : vector<1x128x32xbf16> to vector<128x32xbf16>
    %171 = arith.truncf %168 : vector<128x128xf32> to vector<128x128xbf16>
    %cst_57 = arith.constant dense<0.000000e+00> : vector<128x32xf32>
    %172 = tpu.matmul %171, %170, %cst_57 {dimension_numbers = #tpu.dot_dimension_numbers<[1], [0], [0], [1], [0, 0, 1, 1], [], []>} : vector<128x128xbf16>, vector<128x32xbf16>, vector<128x32xf32> -> vector<128x32xf32>
    %173 = arith.addf %132, %172 : vector<128x32xf32>
    %174 = vector.broadcast %43 : vector<1x32xf32> to vector<128x32xf32>
    %175 = arith.addf %173, %174 : vector<128x32xf32>
    %176 = vector.extract_strided_slice %11 {offsets = [10, 0], sizes = [1, 32], strides = [1, 1]} : vector<16x32xf32> to vector<1x32xf32>
    %177 = vector.extract_strided_slice %11 {offsets = [11, 0], sizes = [1, 32], strides = [1, 1]} : vector<16x32xf32> to vector<1x32xf32>
    %178 = vector.extract_strided_slice %11 {offsets = [12, 0], sizes = [1, 32], strides = [1, 1]} : vector<16x32xf32> to vector<1x32xf32>
    %179 = vector.extract_strided_slice %11 {offsets = [13, 0], sizes = [1, 32], strides = [1, 1]} : vector<16x32xf32> to vector<1x32xf32>
    %180 = vector.extract_strided_slice %11 {offsets = [14, 0], sizes = [1, 32], strides = [1, 1]} : vector<16x32xf32> to vector<1x32xf32>
    %181 = vector.extract_strided_slice %11 {offsets = [15, 0], sizes = [1, 32], strides = [1, 1]} : vector<16x32xf32> to vector<1x32xf32>
    %cst_58 = arith.constant dense<0.000000e+00> : vector<128xf32>
    %182 = vector.multi_reduction <add>, %175, %cst_58 [1] : vector<128x32xf32> to vector<128xf32>
    %183 = vector.shape_cast %182 : vector<128xf32> to vector<128x1xf32>
    %cst_59 = arith.constant 3.200000e+01 : f32
    %184 = vector.broadcast %cst_59 : f32 to vector<128x1xf32>
    %185 = arith.divf %183, %184 : vector<128x1xf32>
    %186 = vector.broadcast %185 : vector<128x1xf32> to vector<128x32xf32>
    %187 = arith.subf %175, %186 : vector<128x32xf32>
    %188 = arith.mulf %187, %187 : vector<128x32xf32>
    %cst_60 = arith.constant dense<0.000000e+00> : vector<128xf32>
    %189 = vector.multi_reduction <add>, %188, %cst_60 [1] : vector<128x32xf32> to vector<128xf32>
    %190 = vector.shape_cast %189 : vector<128xf32> to vector<128x1xf32>
    %cst_61 = arith.constant 3.200000e+01 : f32
    %191 = vector.broadcast %cst_61 : f32 to vector<128x1xf32>
    %192 = arith.divf %190, %191 : vector<128x1xf32>
    %cst_62 = arith.constant 9.99999974E-6 : f32
    %193 = vector.broadcast %cst_62 : f32 to vector<128x1xf32>
    %194 = arith.addf %192, %193 : vector<128x1xf32>
    %195 = math.rsqrt %194 : vector<128x1xf32>
    %196 = vector.broadcast %195 : vector<128x1xf32> to vector<128x32xf32>
    %197 = arith.mulf %187, %196 : vector<128x32xf32>
    %198 = vector.broadcast %176 : vector<1x32xf32> to vector<128x32xf32>
    %199 = arith.mulf %197, %198 : vector<128x32xf32>
    %200 = vector.broadcast %177 : vector<1x32xf32> to vector<128x32xf32>
    %201 = arith.addf %199, %200 : vector<128x32xf32>
    %c1 = arith.constant 1 : index
    %c0_63 = arith.constant 0 : index
    %c0_64 = arith.constant 0 : index
    %202 = vector.load %arg5[%c1, %c0_63, %c0_64] : memref<2x32x96xbf16, #tpu.memory_space<vmem>>, vector<1x32x96xbf16>
    %203 = vector.shape_cast %202 : vector<1x32x96xbf16> to vector<32x96xbf16>
    %204 = arith.truncf %201 : vector<128x32xf32> to vector<128x32xbf16>
    %cst_65 = arith.constant dense<0.000000e+00> : vector<128x96xf32>
    %205 = tpu.matmul %204, %203, %cst_65 {dimension_numbers = #tpu.dot_dimension_numbers<[1], [0], [0], [1], [0, 0, 1, 1], [], []>} : vector<128x32xbf16>, vector<32x96xbf16>, vector<128x96xf32> -> vector<128x96xf32>
    %c1_66 = arith.constant 1 : index
    %c0_67 = arith.constant 0 : index
    %c0_68 = arith.constant 0 : index
    %206 = vector.load %arg6[%c1_66, %c0_67, %c0_68] : memref<2x1x96xf32, #tpu.memory_space<vmem>>, vector<1x1x96xf32>
    %207 = vector.shape_cast %206 : vector<1x1x96xf32> to vector<1x96xf32>
    %208 = vector.broadcast %207 : vector<1x96xf32> to vector<128x96xf32>
    %209 = arith.addf %205, %208 : vector<128x96xf32>
    %210 = vector.shape_cast %209 : vector<128x96xf32> to vector<16x8x96xf32>
    %c1_69 = arith.constant 1 : index
    %c0_70 = arith.constant 0 : index
    %c0_71 = arith.constant 0 : index
    %211 = vector.load %arg7[%c1_69, %c0_70, %c0_71] : memref<2x32x32xbf16, #tpu.memory_space<vmem>>, vector<1x32x32xbf16>
    %212 = vector.shape_cast %211 : vector<1x32x32xbf16> to vector<32x32xbf16>
    %213 = vector.extract_strided_slice %210 {offsets = [0, 0, 0], sizes = [16, 8, 16], strides = [1, 1, 1]} : vector<16x8x96xf32> to vector<16x8x16xf32>
    %214 = vector.extract_strided_slice %210 {offsets = [0, 0, 32], sizes = [16, 8, 16], strides = [1, 1, 1]} : vector<16x8x96xf32> to vector<16x8x16xf32>
    %215 = vector.extract_strided_slice %210 {offsets = [0, 0, 64], sizes = [16, 8, 16], strides = [1, 1, 1]} : vector<16x8x96xf32> to vector<16x8x16xf32>
    %216 = arith.truncf %213 : vector<16x8x16xf32> to vector<16x8x16xbf16>
    %217 = arith.truncf %214 : vector<16x8x16xf32> to vector<16x8x16xbf16>
    "tpu.trace_start"() <{level = 10 : i32, message = "bqd,bkd->bqk"}> : () -> ()
    %cst_72 = arith.constant dense<0.000000e+00> : vector<16x8x8xf32>
    %218 = tpu.matmul %216, %217, %cst_72 {dimension_numbers = #tpu.dot_dimension_numbers<[2], [2], [1], [1], [0, 0, 0, 1, 1, 1], [0], [0]>} : vector<16x8x16xbf16>, vector<16x8x16xbf16>, vector<16x8x8xf32> -> vector<16x8x8xf32>
    %cst_73 = arith.constant -1.000000e+30 : f32
    "tpu.trace_stop"() : () -> ()
    %219 = vector.shape_cast %37 : vector<1x8x8xi1> to vector<1x8x8xi1>
    %220 = vector.broadcast %219 : vector<1x8x8xi1> to vector<16x8x8xi1>
    %221 = vector.broadcast %cst_73 : f32 to vector<16x8x8xf32>
    %222 = arith.select %220, %218, %221 : vector<16x8x8xi1>, vector<16x8x8xf32>
    %cst_74 = arith.constant dense<0xFF800000> : vector<16x8xf32>
    %223 = vector.multi_reduction <maximumf>, %222, %cst_74 [2] : vector<16x8x8xf32> to vector<16x8xf32>
    %224 = vector.shape_cast %223 : vector<16x8xf32> to vector<16x8x1xf32>
    %225 = vector.broadcast %224 : vector<16x8x1xf32> to vector<16x8x8xf32>
    %226 = arith.subf %222, %225 : vector<16x8x8xf32>
    %227 = math.exp %226 : vector<16x8x8xf32>
    %cst_75 = arith.constant dense<0.000000e+00> : vector<16x8xf32>
    %228 = vector.multi_reduction <add>, %227, %cst_75 [2] : vector<16x8x8xf32> to vector<16x8xf32>
    %229 = vector.shape_cast %228 : vector<16x8xf32> to vector<16x8x1xf32>
    %230 = tpu.reciprocal %229 {approx = true} : vector<16x8x1xf32> -> vector<16x8x1xf32>
    %231 = vector.broadcast %230 : vector<16x8x1xf32> to vector<16x8x8xf32>
    %232 = arith.mulf %227, %231 : vector<16x8x8xf32>
    %233 = arith.truncf %232 : vector<16x8x8xf32> to vector<16x8x8xbf16>
    %234 = arith.truncf %215 : vector<16x8x16xf32> to vector<16x8x16xbf16>
    "tpu.trace_start"() <{level = 10 : i32, message = "bqk,bkd->bqd"}> : () -> ()
    %cst_76 = arith.constant dense<0.000000e+00> : vector<16x8x16xf32>
    %235 = tpu.matmul %233, %234, %cst_76 {dimension_numbers = #tpu.dot_dimension_numbers<[2], [1], [1], [2], [0, 0, 0, 1, 1, 2], [0], [0]>} : vector<16x8x8xbf16>, vector<16x8x16xbf16>, vector<16x8x16xf32> -> vector<16x8x16xf32>
    "tpu.trace_stop"() : () -> ()
    %236 = vector.shape_cast %235 : vector<16x8x16xf32> to vector<128x16xf32>
    %237 = vector.extract_strided_slice %212 {offsets = [0, 0], sizes = [16, 32], strides = [1, 1]} : vector<32x32xbf16> to vector<16x32xbf16>
    %238 = arith.truncf %236 : vector<128x16xf32> to vector<128x16xbf16>
    %cst_77 = arith.constant dense<0.000000e+00> : vector<128x32xf32>
    %239 = tpu.matmul %238, %237, %cst_77 {dimension_numbers = #tpu.dot_dimension_numbers<[1], [0], [0], [1], [0, 0, 1, 1], [], []>} : vector<128x16xbf16>, vector<16x32xbf16>, vector<128x32xf32> -> vector<128x32xf32>
    %240 = vector.extract_strided_slice %210 {offsets = [0, 0, 16], sizes = [16, 8, 16], strides = [1, 1, 1]} : vector<16x8x96xf32> to vector<16x8x16xf32>
    %241 = vector.extract_strided_slice %210 {offsets = [0, 0, 48], sizes = [16, 8, 16], strides = [1, 1, 1]} : vector<16x8x96xf32> to vector<16x8x16xf32>
    %242 = vector.extract_strided_slice %210 {offsets = [0, 0, 80], sizes = [16, 8, 16], strides = [1, 1, 1]} : vector<16x8x96xf32> to vector<16x8x16xf32>
    %243 = arith.truncf %240 : vector<16x8x16xf32> to vector<16x8x16xbf16>
    %244 = arith.truncf %241 : vector<16x8x16xf32> to vector<16x8x16xbf16>
    "tpu.trace_start"() <{level = 10 : i32, message = "bqd,bkd->bqk"}> : () -> ()
    %cst_78 = arith.constant dense<0.000000e+00> : vector<16x8x8xf32>
    %245 = tpu.matmul %243, %244, %cst_78 {dimension_numbers = #tpu.dot_dimension_numbers<[2], [2], [1], [1], [0, 0, 0, 1, 1, 1], [0], [0]>} : vector<16x8x16xbf16>, vector<16x8x16xbf16>, vector<16x8x8xf32> -> vector<16x8x8xf32>
    %cst_79 = arith.constant -1.000000e+30 : f32
    "tpu.trace_stop"() : () -> ()
    %246 = vector.shape_cast %37 : vector<1x8x8xi1> to vector<1x8x8xi1>
    %247 = vector.broadcast %246 : vector<1x8x8xi1> to vector<16x8x8xi1>
    %248 = vector.broadcast %cst_79 : f32 to vector<16x8x8xf32>
    %249 = arith.select %247, %245, %248 : vector<16x8x8xi1>, vector<16x8x8xf32>
    %cst_80 = arith.constant dense<0xFF800000> : vector<16x8xf32>
    %250 = vector.multi_reduction <maximumf>, %249, %cst_80 [2] : vector<16x8x8xf32> to vector<16x8xf32>
    %251 = vector.shape_cast %250 : vector<16x8xf32> to vector<16x8x1xf32>
    %252 = vector.broadcast %251 : vector<16x8x1xf32> to vector<16x8x8xf32>
    %253 = arith.subf %249, %252 : vector<16x8x8xf32>
    %254 = math.exp %253 : vector<16x8x8xf32>
    %cst_81 = arith.constant dense<0.000000e+00> : vector<16x8xf32>
    %255 = vector.multi_reduction <add>, %254, %cst_81 [2] : vector<16x8x8xf32> to vector<16x8xf32>
    %256 = vector.shape_cast %255 : vector<16x8xf32> to vector<16x8x1xf32>
    %257 = tpu.reciprocal %256 {approx = true} : vector<16x8x1xf32> -> vector<16x8x1xf32>
    %258 = vector.broadcast %257 : vector<16x8x1xf32> to vector<16x8x8xf32>
    %259 = arith.mulf %254, %258 : vector<16x8x8xf32>
    %260 = arith.truncf %259 : vector<16x8x8xf32> to vector<16x8x8xbf16>
    %261 = arith.truncf %242 : vector<16x8x16xf32> to vector<16x8x16xbf16>
    "tpu.trace_start"() <{level = 10 : i32, message = "bqk,bkd->bqd"}> : () -> ()
    %cst_82 = arith.constant dense<0.000000e+00> : vector<16x8x16xf32>
    %262 = tpu.matmul %260, %261, %cst_82 {dimension_numbers = #tpu.dot_dimension_numbers<[2], [1], [1], [2], [0, 0, 0, 1, 1, 2], [0], [0]>} : vector<16x8x8xbf16>, vector<16x8x16xbf16>, vector<16x8x16xf32> -> vector<16x8x16xf32>
    "tpu.trace_stop"() : () -> ()
    %263 = vector.shape_cast %262 : vector<16x8x16xf32> to vector<128x16xf32>
    %264 = vector.extract_strided_slice %212 {offsets = [16, 0], sizes = [16, 32], strides = [1, 1]} : vector<32x32xbf16> to vector<16x32xbf16>
    %265 = arith.truncf %263 : vector<128x16xf32> to vector<128x16xbf16>
    %cst_83 = arith.constant dense<0.000000e+00> : vector<128x32xf32>
    %266 = tpu.matmul %265, %264, %cst_83 {dimension_numbers = #tpu.dot_dimension_numbers<[1], [0], [0], [1], [0, 0, 1, 1], [], []>} : vector<128x16xbf16>, vector<16x32xbf16>, vector<128x32xf32> -> vector<128x32xf32>
    %267 = arith.addf %239, %266 : vector<128x32xf32>
    %268 = arith.addf %175, %267 : vector<128x32xf32>
    %269 = vector.broadcast %180 : vector<1x32xf32> to vector<128x32xf32>
    %270 = arith.addf %268, %269 : vector<128x32xf32>
    %cst_84 = arith.constant dense<0.000000e+00> : vector<128xf32>
    %271 = vector.multi_reduction <add>, %270, %cst_84 [1] : vector<128x32xf32> to vector<128xf32>
    %272 = vector.shape_cast %271 : vector<128xf32> to vector<128x1xf32>
    %cst_85 = arith.constant 3.200000e+01 : f32
    %273 = vector.broadcast %cst_85 : f32 to vector<128x1xf32>
    %274 = arith.divf %272, %273 : vector<128x1xf32>
    %275 = vector.broadcast %274 : vector<128x1xf32> to vector<128x32xf32>
    %276 = arith.subf %270, %275 : vector<128x32xf32>
    %277 = arith.mulf %276, %276 : vector<128x32xf32>
    %cst_86 = arith.constant dense<0.000000e+00> : vector<128xf32>
    %278 = vector.multi_reduction <add>, %277, %cst_86 [1] : vector<128x32xf32> to vector<128xf32>
    %279 = vector.shape_cast %278 : vector<128xf32> to vector<128x1xf32>
    %cst_87 = arith.constant 3.200000e+01 : f32
    %280 = vector.broadcast %cst_87 : f32 to vector<128x1xf32>
    %281 = arith.divf %279, %280 : vector<128x1xf32>
    %cst_88 = arith.constant 9.99999974E-6 : f32
    %282 = vector.broadcast %cst_88 : f32 to vector<128x1xf32>
    %283 = arith.addf %281, %282 : vector<128x1xf32>
    %284 = math.rsqrt %283 : vector<128x1xf32>
    %285 = vector.broadcast %284 : vector<128x1xf32> to vector<128x32xf32>
    %286 = arith.mulf %276, %285 : vector<128x32xf32>
    %287 = vector.broadcast %178 : vector<1x32xf32> to vector<128x32xf32>
    %288 = arith.mulf %286, %287 : vector<128x32xf32>
    %289 = vector.broadcast %179 : vector<1x32xf32> to vector<128x32xf32>
    %290 = arith.addf %288, %289 : vector<128x32xf32>
    %c1_89 = arith.constant 1 : index
    %c0_90 = arith.constant 0 : index
    %c0_91 = arith.constant 0 : index
    %291 = vector.load %arg8[%c1_89, %c0_90, %c0_91] : memref<2x32x128xbf16, #tpu.memory_space<vmem>>, vector<1x32x128xbf16>
    %292 = vector.shape_cast %291 : vector<1x32x128xbf16> to vector<32x128xbf16>
    %293 = arith.truncf %290 : vector<128x32xf32> to vector<128x32xbf16>
    %cst_92 = arith.constant dense<0.000000e+00> : vector<128x128xf32>
    %294 = tpu.matmul %293, %292, %cst_92 {dimension_numbers = #tpu.dot_dimension_numbers<[1], [0], [0], [1], [0, 0, 1, 1], [], []>} : vector<128x32xbf16>, vector<32x128xbf16>, vector<128x128xf32> -> vector<128x128xf32>
    %c1_93 = arith.constant 1 : index
    %c0_94 = arith.constant 0 : index
    %c0_95 = arith.constant 0 : index
    %295 = vector.load %arg9[%c1_93, %c0_94, %c0_95] : memref<2x1x128xf32, #tpu.memory_space<vmem>>, vector<1x1x128xf32>
    %296 = vector.shape_cast %295 : vector<1x1x128xf32> to vector<1x128xf32>
    %297 = vector.broadcast %296 : vector<1x128xf32> to vector<128x128xf32>
    %298 = arith.addf %294, %297 : vector<128x128xf32>
    %cst_96 = arith.constant 1.702000e+00 : f32
    %299 = vector.broadcast %cst_96 : f32 to vector<128x128xf32>
    %300 = arith.mulf %299, %298 : vector<128x128xf32>
    %301 = arith.negf %300 : vector<128x128xf32>
    %302 = math.exp %301 : vector<128x128xf32>
    %cst_97 = arith.constant 1.000000e+00 : f32
    %303 = vector.broadcast %cst_97 : f32 to vector<128x128xf32>
    %304 = arith.addf %303, %302 : vector<128x128xf32>
    %305 = arith.divf %303, %304 : vector<128x128xf32>
    %306 = arith.mulf %298, %305 : vector<128x128xf32>
    %c1_98 = arith.constant 1 : index
    %c0_99 = arith.constant 0 : index
    %c0_100 = arith.constant 0 : index
    %307 = vector.load %arg10[%c1_98, %c0_99, %c0_100] : memref<2x128x32xbf16, #tpu.memory_space<vmem>>, vector<1x128x32xbf16>
    %308 = vector.shape_cast %307 : vector<1x128x32xbf16> to vector<128x32xbf16>
    %309 = arith.truncf %306 : vector<128x128xf32> to vector<128x128xbf16>
    %cst_101 = arith.constant dense<0.000000e+00> : vector<128x32xf32>
    %310 = tpu.matmul %309, %308, %cst_101 {dimension_numbers = #tpu.dot_dimension_numbers<[1], [0], [0], [1], [0, 0, 1, 1], [], []>} : vector<128x128xbf16>, vector<128x32xbf16>, vector<128x32xf32> -> vector<128x32xf32>
    %311 = arith.addf %270, %310 : vector<128x32xf32>
    %312 = vector.broadcast %181 : vector<1x32xf32> to vector<128x32xf32>
    %313 = arith.addf %311, %312 : vector<128x32xf32>
    %314 = vector.shape_cast %313 : vector<128x32xf32> to vector<16x8x32xf32>
    %315 = vector.extract_strided_slice %314 {offsets = [0, 0, 0], sizes = [16, 1, 32], strides = [1, 1, 1]} : vector<16x8x32xf32> to vector<16x1x32xf32>
    %316 = vector.shape_cast %315 : vector<16x1x32xf32> to vector<16x32xf32>
    %317 = vector.extract_strided_slice %11 {offsets = [2, 0], sizes = [1, 32], strides = [1, 1]} : vector<16x32xf32> to vector<1x32xf32>
    %318 = vector.extract_strided_slice %11 {offsets = [3, 0], sizes = [1, 32], strides = [1, 1]} : vector<16x32xf32> to vector<1x32xf32>
    %cst_102 = arith.constant dense<0.000000e+00> : vector<16xf32>
    %319 = vector.multi_reduction <add>, %316, %cst_102 [1] : vector<16x32xf32> to vector<16xf32>
    %320 = vector.shape_cast %319 : vector<16xf32> to vector<16x1xf32>
    %cst_103 = arith.constant 3.200000e+01 : f32
    %321 = vector.broadcast %cst_103 : f32 to vector<16x1xf32>
    %322 = arith.divf %320, %321 : vector<16x1xf32>
    %323 = vector.broadcast %322 : vector<16x1xf32> to vector<16x32xf32>
    %324 = arith.subf %316, %323 : vector<16x32xf32>
    %325 = arith.mulf %324, %324 : vector<16x32xf32>
    %cst_104 = arith.constant dense<0.000000e+00> : vector<16xf32>
    %326 = vector.multi_reduction <add>, %325, %cst_104 [1] : vector<16x32xf32> to vector<16xf32>
    %327 = vector.shape_cast %326 : vector<16xf32> to vector<16x1xf32>
    %cst_105 = arith.constant 3.200000e+01 : f32
    %328 = vector.broadcast %cst_105 : f32 to vector<16x1xf32>
    %329 = arith.divf %327, %328 : vector<16x1xf32>
    %cst_106 = arith.constant 9.99999974E-6 : f32
    %330 = vector.broadcast %cst_106 : f32 to vector<16x1xf32>
    %331 = arith.addf %329, %330 : vector<16x1xf32>
    %332 = math.rsqrt %331 : vector<16x1xf32>
    %333 = vector.broadcast %332 : vector<16x1xf32> to vector<16x32xf32>
    %334 = arith.mulf %324, %333 : vector<16x32xf32>
    %335 = vector.broadcast %317 : vector<1x32xf32> to vector<16x32xf32>
    %336 = arith.mulf %334, %335 : vector<16x32xf32>
    %337 = vector.broadcast %318 : vector<1x32xf32> to vector<16x32xf32>
    %338 = arith.addf %336, %337 : vector<16x32xf32>
    %c0_107 = arith.constant 0 : index
    %c0_108 = arith.constant 0 : index
    %339 = vector.load %arg11[%c0_107, %c0_108] : memref<32x128xbf16, #tpu.memory_space<vmem>>, vector<32x128xbf16>
    %340 = arith.truncf %338 : vector<16x32xf32> to vector<16x32xbf16>
    %cst_109 = arith.constant dense<0.000000e+00> : vector<16x128xf32>
    %341 = tpu.matmul %340, %339, %cst_109 {dimension_numbers = #tpu.dot_dimension_numbers<[1], [0], [0], [1], [0, 0, 1, 1], [], []>} : vector<16x32xbf16>, vector<32x128xbf16>, vector<16x128xf32> -> vector<16x128xf32>
    %342 = arith.mulf %341, %341 : vector<16x128xf32>
    %cst_110 = arith.constant dense<0.000000e+00> : vector<16xf32>
    %343 = vector.multi_reduction <add>, %342, %cst_110 [1] : vector<16x128xf32> to vector<16xf32>
    %344 = vector.shape_cast %343 : vector<16xf32> to vector<16x1xf32>
    %cst_111 = arith.constant 9.99999996E-13 : f32
    %345 = vector.broadcast %cst_111 : f32 to vector<16x1xf32>
    %346 = arith.addf %344, %345 : vector<16x1xf32>
    %347 = math.rsqrt %346 : vector<16x1xf32>
    %348 = vector.broadcast %347 : vector<16x1xf32> to vector<16x128xf32>
    %349 = arith.mulf %341, %348 : vector<16x128xf32>
    %c0_112 = arith.constant 0 : index
    %c0_113 = arith.constant 0 : index
    %350 = vector.load %arg12[%c0_112, %c0_113] : memref<16x128xf32, #tpu.memory_space<vmem>>, vector<16x128xf32>
    tpu.vector_store %arg12[%c0_112, %c0_113], %349 {strides = array<i32>} : memref<16x128xf32, #tpu.memory_space<vmem>>, vector<16x128xf32>,
    return
  }
  func.func @transform_0(%arg0: i32) -> (i32, i32, i32) {
    %c0_i32 = arith.constant 0 : i32
    %c0_i32_0 = arith.constant 0 : i32
    %c0_i32_1 = arith.constant 0 : i32
    return %arg0, %c0_i32, %c0_i32_0 : i32, i32, i32
  }
  func.func @transform_1(%arg0: i32) -> (i32, i32) {
    %c0_i32 = arith.constant 0 : i32
    %c0_i32_0 = arith.constant 0 : i32
    %c0_i32_1 = arith.constant 0 : i32
    return %c0_i32, %c0_i32_0 : i32, i32
  }
  func.func @transform_2(%arg0: i32) -> (i32, i32) {
    %c0_i32 = arith.constant 0 : i32
    %c0_i32_0 = arith.constant 0 : i32
    %c0_i32_1 = arith.constant 0 : i32
    return %c0_i32, %c0_i32_0 : i32, i32
  }
  func.func @transform_3(%arg0: i32) -> (i32, i32) {
    %c0_i32 = arith.constant 0 : i32
    %c0_i32_0 = arith.constant 0 : i32
    %c0_i32_1 = arith.constant 0 : i32
    return %c0_i32, %c0_i32_0 : i32, i32
  }
  func.func @transform_4(%arg0: i32) -> (i32, i32, i32) {
    %c0_i32 = arith.constant 0 : i32
    %c0_i32_0 = arith.constant 0 : i32
    %c0_i32_1 = arith.constant 0 : i32
    %c0_i32_2 = arith.constant 0 : i32
    return %c0_i32, %c0_i32_0, %c0_i32_1 : i32, i32, i32
  }
  func.func @transform_5(%arg0: i32) -> (i32, i32, i32) {
    %c0_i32 = arith.constant 0 : i32
    %c0_i32_0 = arith.constant 0 : i32
    %c0_i32_1 = arith.constant 0 : i32
    %c0_i32_2 = arith.constant 0 : i32
    return %c0_i32, %c0_i32_0, %c0_i32_1 : i32, i32, i32
  }
  func.func @transform_6(%arg0: i32) -> (i32, i32, i32) {
    %c0_i32 = arith.constant 0 : i32
    %c0_i32_0 = arith.constant 0 : i32
    %c0_i32_1 = arith.constant 0 : i32
    %c0_i32_2 = arith.constant 0 : i32
    return %c0_i32, %c0_i32_0, %c0_i32_1 : i32, i32, i32
  }
  func.func @transform_7(%arg0: i32) -> (i32, i32, i32) {
    %c0_i32 = arith.constant 0 : i32
    %c0_i32_0 = arith.constant 0 : i32
    %c0_i32_1 = arith.constant 0 : i32
    %c0_i32_2 = arith.constant 0 : i32
    return %c0_i32, %c0_i32_0, %c0_i32_1 : i32, i32, i32
  }
  func.func @transform_8(%arg0: i32) -> (i32, i32, i32) {
    %c0_i32 = arith.constant 0 : i32
    %c0_i32_0 = arith.constant 0 : i32
    %c0_i32_1 = arith.constant 0 : i32
    %c0_i32_2 = arith.constant 0 : i32
    return %c0_i32, %c0_i32_0, %c0_i32_1 : i32, i32, i32
  }
  func.func @transform_9(%arg0: i32) -> (i32, i32, i32) {
    %c0_i32 = arith.constant 0 : i32
    %c0_i32_0 = arith.constant 0 : i32
    %c0_i32_1 = arith.constant 0 : i32
    %c0_i32_2 = arith.constant 0 : i32
    return %c0_i32, %c0_i32_0, %c0_i32_1 : i32, i32, i32
  }
  func.func @transform_10(%arg0: i32) -> (i32, i32) {
    %c0_i32 = arith.constant 0 : i32
    %c0_i32_0 = arith.constant 0 : i32
    %c0_i32_1 = arith.constant 0 : i32
    return %c0_i32, %c0_i32_0 : i32, i32
  }
  func.func @transform_11(%arg0: i32) -> (i32, i32) {
    %c0_i32 = arith.constant 0 : i32
    %c0_i32_0 = arith.constant 0 : i32
    return %arg0, %c0_i32 : i32, i32
  }
}

</mosaic_0001>

<bundles_post_ra>
// kernel: tpu_custom_call.1
= control target key start
LH: loop header
LB: loop body
LE: loop exit
PB: predicated region body
PF: predicated region fallthrough
CT: control target
= control target key end

     0   :  { %16 = vsyncpa [#allocation3], 0  ;;  %s18207_s0 = inlined_call_operand.hbm [shape: f32[32,8,192], index: 0, kind: input, shape index: {}]   ;;  %s18208_s1 = inlined_call_operand.vmem [shape: bf16[192,32], index: 1, kind: input, shape index: {}]   ;;  %s18209_s2 = inlined_call_operand.vmem [shape: f32[8,32], index: 2, kind: input, shape index: {}]   ;;  %s18210_s3 = inlined_call_operand.vmem [shape: f32[16,32], index: 3, kind: input, shape index: {}]   ;;  %s18211_s4 = inlined_call_operand.vmem [shape: bf16[2,32,96], index: 4, kind: input, shape index: {}]   ;;  %s18212_s5 = inlined_call_operand.vmem [shape: f32[2,1,96], index: 5, kind: input, shape index: {}]   ;;  %s18213_s6 = inlined_call_operand.vmem [shape: bf16[2,32,32], index: 6, kind: input, shape index: {}]   ;;  %s18214_s7 = inlined_call_operand.vmem [shape: bf16[2,32,128], index: 7, kind: input, shape index: {}]   ;;  %s18215_s8 = inlined_call_operand.vmem [shape: f32[2,1,128], index: 8, kind: input, shape index: {}]   ;;  %s18216_s9 = inlined_call_operand.vmem [shape: bf16[2,128,32], index: 9, kind: input, shape index: {}]   ;;  %s18217_s10 = inlined_call_operand.vmem [shape: bf16[32,128], index: 10, kind: input, shape index: {}]   ;;  %s18218_s11 = inlined_call_operand.hbm [shape: f32[32,128], index: 11, kind: output, shape index: {}]  }
   0x1   :  { %18 = vsyncpa [#allocation3 + $0x1], 0 }
   0x2   :  { %19 = vsyncpa [#allocation4], 0 }
   0x3   :  { %21 = vsyncpa [#allocation4 + $0x1], 0  ;;  %s14004_s17 = smov 0   ;;  %s14006_s18 = smov 0  }
   0x4   :  { %s14008_s19 = smov 0   ;;  %s14010_s20 = smov 0  }
   0x5 LB: > { %18256 = sst [smem:[#allocation8_spill]] %s13924_s19  ;;  %s14025_s21 = sadd.s32 4294967295, %s13928_s20   ;;  %s13928_s20 = sphi %s14010_s20, %s18335_s20   ;;  %s13924_s19 = sphi %s14008_s19, %s18332_s19   ;;  %s13920_s18 = sphi %s14006_s18, %s18334_s18   ;;  %s13916_s17 = sphi %s14004_s17, %s18333_s17  }
   0x6   : > { %s11457_s22 = sadd.s32 4294967294, %s13928_s20   ;;  %s14029_s23 = sadd.s32 1, %s13928_s20  }
   0x7   : > { %s34_s24 = sadd.s32 1, %s13924_s19  ;;  %s31_s25 = ssub.s32 %s13928_s20, %s14029_s23 }
   0x8   : > { %p41_p0 = scmp.ne.s32.totalorder %s13924_s19, %s13920_s18  ;;  %p32_p1 = scmp.eq.s32.totalorder %s31_s25, 0 }
   0x9   : > { %p42_p2 = scmp.eq.s32.totalorder %s13928_s20, 0  ;;  %p47_p3 = scmp.ne.s32.totalorder %s13920_s18, %s13916_s17 }
   0xa   : > { %p48_p4 = scmp.eq.s32.totalorder %s14025_s21, 0  ;;  %p281_p7 = scmp.eq.s32.totalorder %s14025_s21, 1 }
   0xb   : > { %s14041_s26 = scalar_select %p32_p1, %s13924_s19, %s34_s24  }
   0xc   : > { %p14043_p5 = por %p42_p2, %p41_p0  ;;  %p14047_p6 = por %p48_p4, %p47_p3 }
   0xd   : > { %18257 = sst [smem:[#allocation9_spill]] %s14041_s26  ;;  %p287_p8 = scmp.eq.s32.totalorder %s11457_s22, 1 }
   0xe   : > { %p13187_p10 = scmp.lt.s32.totalorder %s13928_s20, 2  ;;  %p14054_p11 = por %p281_p7, %p41_p0 }
   0xf   : > { %p14058_p12 = por %p287_p8, %p47_p3  ;;  %s337_s12 = sand.u32 1, %s13924_s19  }
  0x10   : > { %s18260_s29 = scalar_select %p14054_p11, 1, 0 }
  0x11   : > { %s18261_s30 = scalar_select %p14058_p12, 1, 0 }
  0x12   : > { %s11782_s13 = sshll.u32 %s13928_s20, 12  ;;  %s11460_s14 = sshll.u32 %s337_s12, 8 }
  0x13   : > { %s14067_s24 = scalar_lea.hbm %s18207_s0, %s11782_s13  ;;  %s341_s22 = scalar_lea.vmem [#allocation2], %s11460_s14 }
  0x14   : > { %s349_s25 = sshll.u32 %s341_s22, 4  ;;  %p14071_p13 = pnand %p13187_p10, %p14043_p5  ;;  %s14075_s25 = int_to_ptr.vmem [resolvable:$true] %s349_s25 }
  0x15   : > { %s14077_s19 = scalar_lea.sflag [#allocation3], %s337_s12  ;;  %s13832_s15 = scalar_lea.hbm %s14067_s24, 4096 }
  0x16   : > { %p13833_p0 = scmp.ne.s32.totalorder %s14067_s24, %s13832_s15  ;;  %p13834_p1 = pneg %p14071_p13 }
  0x17   : > { %s13837_s14 = scalar_lea.hbm %s18207_s0, 8192  ;;  %p13838_p4 = scmp.lt.u32.totalorder %s14067_s24, %s18207_s0 }
  0x18   : > { %p13835_p2 = pnand %p13834_p1, %p13833_p0  ;;  %p13839_p5 = scmp.lt.u32.totalorder %s13837_s14, %s13832_s15 }
  0x19   : > { %p13841_p8 = scmp.lt.u32.totalorder %s13832_s15, %s14067_s24 }
  0x1a   : > { %p13836_p3 = pneg %p13835_p2  ;;  %p13840_p7 = por %p13839_p5, %p13838_p4 }
  0x1c   : > { %p13842_p10 = por %p13841_p8, %p13840_p7 }
  0x1e   : > { %p13843_p9 = pnand %p13842_p10, %p13836_p3 }
  0x20   : > { %13846 = shalt.err (!%p13843_p9)
}
  0x21   : > { %s13847_s12 = scalar_lea.vmem %s14075_s25, 4096  ;;  %s13930_s13 = smov [#allocation2]  }
  0x22   : > { %p13848_p0 = scmp.ne.s32.totalorder %s14075_s25, %s13847_s12  ;;  %s13852_s27 = sshll.u32 %s13930_s13, 4  ;;  %s13853_s27 = int_to_ptr.vmem [resolvable:$false] %s13852_s27 }
  0x23   : > { %s13854_s16 = scalar_lea.vmem %s13853_s27, 8192  ;;  %p13855_p11 = scmp.lt.s32.totalorder %s14075_s25, %s13853_s27 }
  0x24   : > { %p13850_p2 = pnand %p13848_p0, %p13834_p1  ;;  %p13856_p4 = scmp.lt.s32.totalorder %s13854_s16, %s13847_s12 }
  0x26   : > { %p13851_p12 = pneg %p13850_p2  ;;  %p13857_p5 = por %p13856_p4, %p13855_p11 }
  0x28   : > { %p13858_p7 = pnand %p13857_p5, %p13851_p12 }
  0x2a   : > { %13861 = shalt.err (!%p13858_p7)
}
  0x2b   : > { %s13931_s15 = smov 256   ;;  %s13932_s14 = smov 16  }
  0x2c   : > { %13182 = dma.hbm_to_vmem [thread:$0]  (!%p14071_p13), %s14067_s24, 4096, %s14075_s25, %s14077_s19, %s13931_s15, %s13931_s15, %s13932_s14  }
  0x2d   : > { %p11464_p9 = scmp.ge.s32.totalorder %s13928_s20, 1  ;;  %p357_p1 = scmp.lt.s32.totalorder %s13928_s20, 3 }
  0x2f   : > { %p358_p3 = pnand %p11464_p9, %p357_p1 }
  0x31   : > { %361 = sbr.rel (%p358_p3) target bundleno = 7842 (0x1ea2), region = 64 }
  0x38   : > { %s14108_s22 = sand.u32 1, %s13920_s18  }
  0x39   : > { %s11465_s12 = sshll.u32 %s14108_s22, 8  ;;  %s364_s13 = scalar_lea.sflag [#allocation3], %s14108_s22 }
  0x3a   : > { %s14112_s27 = scalar_lea.vmem [#allocation2], %s11465_s12 }
  0x3b   : > { %13907 = dma.done.wait (%p14047_p6), %s364_s13, 4096  }
  0x3c   : > { %13909 = vsyncadd (%p14047_p6), %s364_s13, 4294963200  ;;  %v13933_v0 = vmov 0   ;;  %v13233_v1 = vld [vmem:[%s18208_s1] sm:$0xff]   ;;  %v13234_v2 = vld [vmem:[%s18208_s1 + $0x8] sm:$0xff]   ;;  %vm553_vm0 = vcmask 523264   ;;  %vm694_vm1 = vcmask 261120  }
  0x3d   : > { %578 = vmatprep.subr.bf16.mxu0 %v13933_v0  ;;  %v13235_v3 = vld [vmem:[%s18208_s1 + $0x10] sm:$0xff]   ;;  %v13236_v4 = vld [vmem:[%s18208_s1 + $0x18] sm:$0xff]   ;;  %v410_v5 = vld [vmem:[%s14112_s27 + $0x8] sm:$0xff]  ;;  %vm13935_vm2 = vmmov 0   ;;  %s13936_s25 = smov 96   ;;  %s13937_s16 = smov 64  }
  0x3e   : > { %579 = vmatpush1.bf16.msra.mxu0 %v13233_v1  ;;  %v412_v6 = vld [vmem:[%s14112_s27 + $0x18] sm:$0xff]  ;;  %v13237_v8 = vld [vmem:[%s18208_s1 + $0x20] sm:$0xff]   ;;  %v13238_v9 = vld [vmem:[%s18208_s1 + $0x28] sm:$0xff]   ;;  %vm1370_vm3 = vcmask 130048   ;;  %vm2368_vm4 = vcmask 1043456   ;;  %vm2170_vm6 = vcmask 64512  }
  0x3f   : > { %580 = vmatprep.subr.bf16.mxu0 %v13933_v0  ;;  %v466_v7 = vpack.c.bf16 %v412_v6, %v410_v5  ;;  %v13239_v10 = vld [vmem:[%s18208_s1 + $0x30] sm:$0xff]   ;;  %v13240_v11 = vld [vmem:[%s18208_s1 + $0x38] sm:$0xff]   ;;  %v13241_v12 = vld [vmem:[%s18208_s1 + $0x40] sm:$0xff]   ;;  %s13938_s15 = smov 80   ;;  %s18239_s28 = smov 48   ;;  %vm10965_vm7 = vcmask 1041409  }
  0x40   : > { %v13242_v13 = vld [vmem:[%s18208_s1 + $0x48] sm:$0xff]   ;;  %v13243_v14 = vld [vmem:[%s18208_s1 + $0x50] sm:$0xff]   ;;  %v13244_v15 = vld [vmem:[%s18208_s1 + $0x58] sm:$0xff]   ;;  %vm10968_vm8 = vcmask 1042434   ;;  %vm10971_vm9 = vcmask 1043459   ;;  %vm10974_vm10 = vcmask 1044484  }
  0x41   : > { %11479 = vmatprep.mubr.msk.bf16.mxu0 %vm553_vm0, %v466_v7  ;;  %v409_v16 = vld [vmem:[%s14112_s27] sm:$0xff]  ;;  %v411_v17 = vld [vmem:[%s14112_s27 + $0x10] sm:$0xff]  ;;  %v414_v18 = vld [vmem:[%s14112_s27 + $0x28] sm:$0xff]  ;;  %vm10977_vm11 = vcmask 1045509   ;;  %vm10980_vm12 = vcmask 1046534   ;;  %vm10983_vm13 = vcmask 1047559  }
  0x42   : > { %581 = vmatpush1.bf16.msra.mxu0 %v13234_v2  ;;  %v416_v19 = vld [vmem:[%s14112_s27 + $0x38] sm:$0xff]  ;;  %v465_v20 = vpack.c.bf16 %v411_v17, %v409_v16  ;;  %v413_v22 = vld [vmem:[%s14112_s27 + $0x20] sm:$0xff]  ;;  %v415_v23 = vld [vmem:[%s14112_s27 + $0x30] sm:$0xff]  ;;  %s11466_s26 = sshll.u32 %s14108_s22, 4  ;;  %s11783_s24 = sshll.u32 %s14025_s21, 8 }
  0x43   : > { %582 = vmatprep.subr.bf16.mxu0 %v13933_v0  ;;  %v468_v21 = vpack.c.bf16 %v416_v19, %v414_v18  ;;  %v418_v24 = vld [vmem:[%s14112_s27 + $0x48] sm:$0xff]  ;;  %v420_v25 = vld [vmem:[%s14112_s27 + $0x58] sm:$0xff]  ;;  %v467_v26 = vpack.c.bf16 %v415_v23, %v413_v22  ;;  %v417_v28 = vld [vmem:[%s14112_s27 + $0x40] sm:$0xff]  ;;  %p18328_p11 = scmp.ne.s32.totalorder %s18260_s29, 0 }
  0x44   : > { %v470_v27 = vpack.c.bf16 %v420_v25, %v418_v24  ;;  %v419_v29 = vld [vmem:[%s14112_s27 + $0x50] sm:$0xff]  ;;  %v422_v30 = vld [vmem:[%s14112_s27 + $0x68] sm:$0xff]  ;;  %v424_v31 = vld [vmem:[%s14112_s27 + $0x78] sm:$0xff] }
  0x45   : > { %v469_v32 = vpack.c.bf16 %v419_v29, %v417_v28  ;;  %v472_v33 = vpack.c.bf16 %v424_v31, %v422_v30  ;;  %v421_v34 = vld [vmem:[%s14112_s27 + $0x60] sm:$0xff]  ;;  %v423_v35 = vld [vmem:[%s14112_s27 + $0x70] sm:$0xff]  ;;  %v426_v36 = vld [vmem:[%s14112_s27 + $0x88] sm:$0xff] }
  0x46   : > { %583 = vmatpush1.bf16.msra.mxu0 %v13235_v3  ;;  %v428_v37 = vld [vmem:[%s14112_s27 + $0x98] sm:$0xff]  ;;  %v471_v38 = vpack.c.bf16 %v423_v35, %v421_v34  ;;  %v425_v40 = vld [vmem:[%s14112_s27 + $0x80] sm:$0xff]  ;;  %v427_v41 = vld [vmem:[%s14112_s27 + $0x90] sm:$0xff] }
  0x47   : > { %584 = vmatprep.subr.bf16.mxu0 %v13933_v0  ;;  %v474_v39 = vpack.c.bf16 %v428_v37, %v426_v36  ;;  %v430_v42 = vld [vmem:[%s14112_s27 + $0xa8] sm:$0xff]  ;;  %v432_v43 = vld [vmem:[%s14112_s27 + $0xb8] sm:$0xff]  ;;  %v473_v44 = vpack.c.bf16 %v427_v41, %v425_v40  ;;  %v429_v46 = vld [vmem:[%s14112_s27 + $0xa0] sm:$0xff] }
  0x48   : > { %v476_v45 = vpack.c.bf16 %v432_v43, %v430_v42  ;;  %v431_v47 = vld [vmem:[%s14112_s27 + $0xb0] sm:$0xff]  ;;  %v434_v48 = vld [vmem:[%s14112_s27 + $0xc8] sm:$0xff]  ;;  %v436_v49 = vld [vmem:[%s14112_s27 + $0xd8] sm:$0xff] }
  0x49   : > { %v475_v50 = vpack.c.bf16 %v431_v47, %v429_v46  ;;  %v478_v51 = vpack.c.bf16 %v436_v49, %v434_v48  ;;  %v433_v52 = vld [vmem:[%s14112_s27 + $0xc0] sm:$0xff]  ;;  %v435_v53 = vld [vmem:[%s14112_s27 + $0xd0] sm:$0xff]  ;;  %v438_v54 = vld [vmem:[%s14112_s27 + $0xe8] sm:$0xff] }
  0x4a   : > { %585 = vmatpush1.bf16.msra.mxu0 %v13236_v4  ;;  %v440_v55 = vld [vmem:[%s14112_s27 + $0xf8] sm:$0xff]  ;;  %v477_v56 = vpack.c.bf16 %v435_v53, %v433_v52  ;;  %v437_v58 = vld [vmem:[%s14112_s27 + $0xe0] sm:$0xff]  ;;  %v439_v59 = vld [vmem:[%s14112_s27 + $0xf0] sm:$0xff]  ;;  %s18241_s27 = smov 112  }
  0x4b   : > { %586 = vmatprep.subr.bf16.mxu0 %v13933_v0  ;;  %v480_v57 = vpack.c.bf16 %v440_v55, %v438_v54  ;;  %v479_v60 = vpack.c.bf16 %v439_v59, %v437_v58  ;;  %v14197_v61 = vld [vmem:[%s18209_s2] sm:$0xff] }
  0x4e   : > { %587 = vmatpush1.bf16.msra.mxu0 %v13237_v8 }
  0x4f   : > { %588 = vmatprep.subr.bf16.mxu0 %v13933_v0 }
  0x52   : > { %589 = vmatpush1.bf16.msra.mxu0 %v13238_v9 }
  0x53   : > { %590 = vmatprep.subr.bf16.mxu0 %v13933_v0 }
  0x56   : > { %591 = vmatpush1.bf16.msra.mxu0 %v13239_v10 }
  0x57   : > { %592 = vmatprep.subr.bf16.mxu0 %v13933_v0 }
  0x5a   : > { %593 = vmatpush1.bf16.msra.mxu0 %v13240_v11 }
  0x5b   : > { %594 = vmatprep.subr.bf16.mxu0 %v13933_v0 }
  0x5e   : > { %595 = vmatpush1.bf16.msra.mxu0 %v13241_v12 }
  0x5f   : > { %596 = vmatprep.subr.bf16.mxu0 %v13933_v0 }
  0x62   : > { %597 = vmatpush1.bf16.msra.mxu0 %v13242_v13 }
  0x63   : > { %598 = vmatprep.subr.bf16.mxu0 %v13933_v0 }
  0x66   : > { %599 = vmatpush1.bf16.msra.mxu0 %v13243_v14 }
  0x67   : > { %600 = vmatprep.subr.bf16.mxu0 %v13933_v0 }
  0x6a   : > { %601 = vmatpush1.bf16.msra.mxu0 %v13244_v15 }
  0x6d   : > { %611 = vmatmul.mubr.bf16.vlgmr.msra.gmra.mrb[0].mxu0 %v465_v20 }
  0x6e   : > { %11480 = vmatprep.mubr.msk.bf16.mxu0 %vm553_vm0, %v468_v21 }
  0x75   : > { %619 = vmatmul.mubr.bf16.gmra.mrb[4].mxu0 %v467_v26 }
  0x76   : > { %11481 = vmatprep.mubr.msk.bf16.mxu0 %vm553_vm0, %v470_v27 }
  0x7d   : > { %627 = vmatmul.mubr.bf16.gmra.mrb[8].mxu0 %v469_v32 }
  0x7e   : > { %11482 = vmatprep.mubr.msk.bf16.mxu0 %vm553_vm0, %v472_v33 }
  0x85   : > { %635 = vmatmul.mubr.bf16.gmra.mrb[12].mxu0 %v471_v38 }
  0x86   : > { %11483 = vmatprep.mubr.msk.bf16.mxu0 %vm553_vm0, %v474_v39 }
  0x8d   : > { %643 = vmatmul.mubr.bf16.gmra.mrb[16].mxu0 %v473_v44 }
  0x8e   : > { %11484 = vmatprep.mubr.msk.bf16.mxu0 %vm553_vm0, %v476_v45 }
  0x95   : > { %651 = vmatmul.mubr.bf16.gmra.mrb[20].mxu0 %v475_v50 }
  0x96   : > { %11485 = vmatprep.mubr.msk.bf16.mxu0 %vm553_vm0, %v478_v51 }
  0x9d   : > { %659 = vmatmul.mubr.bf16.gmra.mrb[24].mxu0 %v477_v56 }
  0x9e   : > { %11486 = vmatprep.mubr.msk.bf16.mxu0 %vm553_vm0, %v480_v57 }
  0xa5   : > { %667 = vmatmul.mubr.bf16.gmra.mrb[28].mxu0 %v479_v60 }
 0x140   : > { %v612_v62 = vpop.f32.mrb[0].mxu0 }
 0x141   : > { %v614_v63 = vpop.f32.mrb[1].mxu0  ;;  %v14200_v0 = vadd.f32 %v14197_v61, %v612_v62 }
 0x142   : > { %v615_v1 = vpop.f32.mrb[2].mxu0 }
 0x143   : > { %v617_v2 = vpop.f32.mrb[3].mxu0  ;;  %v695_v3 = vsel %vm694_vm1, %v14200_v0, 0.0  ;;  %v14205_v4 = vadd.f32 %v14197_v61, %v615_v1 }
 0x144   : > { %696 = vadd.xlane.f32.xlu0 %v695_v3 }
 0x145   : > { %v698_v5 = vsel %vm694_vm1, %v14205_v4, 0.0 }
 0x148   : > { %699 = vadd.xlane.f32.xlu0 %v698_v5  ;;  %v620_v6 = vpop.f32.mrb[4].mxu0 }
 0x149   : > { %v622_v7 = vpop.f32.mrb[5].mxu0  ;;  %v14210_v8 = vadd.f32 %v14197_v61, %v620_v6 }
 0x14a   : > { %v623_v9 = vpop.f32.mrb[6].mxu0 }
 0x14b   : > { %v625_v10 = vpop.f32.mrb[7].mxu0  ;;  %v701_v11 = vsel %vm694_vm1, %v14210_v8, 0.0  ;;  %v14215_v12 = vadd.f32 %v14197_v61, %v623_v9 }
 0x14c   : > { %702 = vadd.xlane.f32.xlu1 %v701_v11 }
 0x14d   : > { %v704_v13 = vsel %vm694_vm1, %v14215_v12, 0.0 }
 0x150   : > { %705 = vadd.xlane.f32.xlu1 %v704_v13  ;;  %v628_v14 = vpop.f32.mrb[8].mxu0 }
 0x151   : > { %v630_v15 = vpop.f32.mrb[9].mxu0  ;;  %v14220_v16 = vadd.f32 %v14197_v61, %v628_v14 }
 0x152   : > { %v631_v17 = vpop.f32.mrb[10].mxu0 }
 0x153   : > { %v633_v18 = vpop.f32.mrb[11].mxu0  ;;  %v707_v19 = vsel %vm694_vm1, %v14220_v16, 0.0  ;;  %v14225_v20 = vadd.f32 %v14197_v61, %v631_v17 }
 0x154   : > { %708 = vadd.xlane.f32.xlu0 %v707_v19 }
 0x155   : > { %v710_v21 = vsel %vm694_vm1, %v14225_v20, 0.0 }
 0x156   : > { %711 = vadd.xlane.f32.xlu1 %v710_v21 }
 0x158   : > { %v636_v22 = vpop.f32.mrb[12].mxu0 }
 0x159   : > { %v638_v23 = vpop.f32.mrb[13].mxu0  ;;  %v14230_v24 = vadd.f32 %v14197_v61, %v636_v22 }
 0x15a   : > { %v639_v25 = vpop.f32.mrb[14].mxu0 }
 0x15b   : > { %v641_v26 = vpop.f32.mrb[15].mxu0  ;;  %v713_v27 = vsel %vm694_vm1, %v14230_v24, 0.0  ;;  %v14235_v28 = vadd.f32 %v14197_v61, %v639_v25 }
 0x15c   : > { %714 = vadd.xlane.f32.xlu0 %v713_v27 }
 0x15d   : > { %v716_v29 = vsel %vm694_vm1, %v14235_v28, 0.0 }
 0x15e   : > { %717 = vadd.xlane.f32.xlu1 %v716_v29 }
 0x160   : > { %v644_v30 = vpop.f32.mrb[16].mxu0 }
 0x161   : > { %v646_v31 = vpop.f32.mrb[17].mxu0  ;;  %v14240_v32 = vadd.f32 %v14197_v61, %v644_v30 }
 0x162   : > { %v647_v33 = vpop.f32.mrb[18].mxu0 }
 0x163   : > { %v649_v34 = vpop.f32.mrb[19].mxu0  ;;  %v719_v35 = vsel %vm694_vm1, %v14240_v32, 0.0  ;;  %v14245_v36 = vadd.f32 %v14197_v61, %v647_v33 }
 0x164   : > { %720 = vadd.xlane.f32.xlu0 %v719_v35 }
 0x165   : > { %v722_v37 = vsel %vm694_vm1, %v14245_v36, 0.0 }
 0x166   : > { %723 = vadd.xlane.f32.xlu1 %v722_v37 }
 0x168   : > { %v652_v38 = vpop.f32.mrb[20].mxu0 }
 0x169   : > { %v654_v39 = vpop.f32.mrb[21].mxu0  ;;  %v14250_v40 = vadd.f32 %v14197_v61, %v652_v38 }
 0x16a   : > { %v655_v41 = vpop.f32.mrb[22].mxu0 }
 0x16b   : > { %v657_v42 = vpop.f32.mrb[23].mxu0  ;;  %v725_v43 = vsel %vm694_vm1, %v14250_v40, 0.0  ;;  %v14255_v44 = vadd.f32 %v14197_v61, %v655_v41 }
 0x16c   : > { %726 = vadd.xlane.f32.xlu0 %v725_v43 }
 0x16d   : > { %v728_v45 = vsel %vm694_vm1, %v14255_v44, 0.0 }
 0x16e   : > { %729 = vadd.xlane.f32.xlu1 %v728_v45 }
 0x170   : > { %v660_v46 = vpop.f32.mrb[24].mxu0 }
 0x171   : > { %v662_v47 = vpop.f32.mrb[25].mxu0  ;;  %v14260_v48 = vadd.f32 %v14197_v61, %v660_v46 }
 0x172   : > { %v663_v49 = vpop.f32.mrb[26].mxu0 }
 0x173   : > { %v731_v50 = vsel %vm694_vm1, %v14260_v48, 0.0  ;;  %v14265_v51 = vadd.f32 %v14197_v61, %v663_v49  ;;  %v665_v52 = vpop.f32.mrb[27].mxu0 }
 0x174   : > { %732 = vadd.xlane.f32.xlu0 %v731_v50 }
 0x175   : > { %v734_v53 = vsel %vm694_vm1, %v14265_v51, 0.0 }
 0x176   : > { %735 = vadd.xlane.f32.xlu1 %v734_v53 }
 0x178   : > { %v668_v54 = vpop.f32.mrb[28].mxu0 }
 0x179   : > { %v670_v55 = vpop.f32.mrb[29].mxu0  ;;  %v14270_v56 = vadd.f32 %v14197_v61, %v668_v54 }
 0x17a   : > { %v671_v57 = vpop.f32.mrb[30].mxu0 }
 0x17b   : > { %v737_v58 = vsel %vm694_vm1, %v14270_v56, 0.0  ;;  %v14275_v59 = vadd.f32 %v14197_v61, %v671_v57  ;;  %v673_v60 = vpop.f32.mrb[31].mxu0 }
 0x17c   : > { %738 = vadd.xlane.f32.xlu0 %v737_v58 }
 0x17d   : > { %v740_v62 = vsel %vm694_vm1, %v14275_v59, 0.0 }
 0x17e   : > { %741 = vadd.xlane.f32.xlu1 %v740_v62 }
 0x1d1   : > { %v697_v63 = vpop.xlane.xlu0 %696 }
 0x1d2   : > { %v744_v1 = vmul.f32 0.03125, %v697_v63 }
 0x1d4   : > { %v14280_v2 = vsub.f32 %v14200_v0, %v744_v1 }
 0x1d5   : > { %v700_v3 = vpop.xlane.xlu0 %699 }
 0x1d6   : > { %v745_v5 = vmul.f32 0.03125, %v700_v3  ;;  %v776_v6 = vmul.f32 %v14280_v2, %v14280_v2 }
 0x1d8   : > { %v14285_v7 = vsub.f32 %v14205_v4, %v745_v5  ;;  %v792_v61 = vsel %vm694_vm1, %v776_v6, 0.0 }
 0x1d9   : > { %v703_v9 = vpop.xlane.xlu1 %702  ;;  %793 = vadd.xlane.f32.xlu0 %v792_v61 }
 0x1da   : > { %v746_v10 = vmul.f32 0.03125, %v703_v9  ;;  %v777_v11 = vmul.f32 %v14285_v7, %v14285_v7 }
 0x1dc   : > { %v14291_v13 = vsub.f32 %v14210_v8, %v746_v10  ;;  %v795_v0 = vsel %vm694_vm1, %v777_v11, 0.0 }
 0x1dd   : > { %v706_v14 = vpop.xlane.xlu1 %705  ;;  %796 = vadd.xlane.f32.xlu1 %v795_v0 }
 0x1de   : > { %v747_v15 = vmul.f32 0.03125, %v706_v14  ;;  %v778_v4 = vmul.f32 %v14291_v13, %v14291_v13 }
 0x1e0   : > { %v14297_v17 = vsub.f32 %v14215_v12, %v747_v15  ;;  %v798_v18 = vsel %vm694_vm1, %v778_v4, 0.0 }
 0x1e1   : > { %v709_v19 = vpop.xlane.xlu0 %708  ;;  %799 = vadd.xlane.f32.xlu0 %v798_v18 }
 0x1e2   : > { %v748_v21 = vmul.f32 0.03125, %v709_v19  ;;  %v779_v8 = vmul.f32 %v14297_v17, %v14297_v17 }
 0x1e3   : > { %v712_v22 = vpop.xlane.xlu1 %711 }
 0x1e4   : > { %v14303_v23 = vsub.f32 %v14220_v16, %v748_v21  ;;  %v749_v25 = vmul.f32 0.03125, %v712_v22  ;;  %v801_v26 = vsel %vm694_vm1, %v779_v8, 0.0 }
 0x1e5   : > { %802 = vadd.xlane.f32.xlu1 %v801_v26 }
 0x1e6   : > { %v14307_v27 = vsub.f32 %v14225_v20, %v749_v25  ;;  %v780_v12 = vmul.f32 %v14303_v23, %v14303_v23 }
 0x1e8   : > { %v804_v29 = vsel %vm694_vm1, %v780_v12, 0.0  ;;  %v781_v30 = vmul.f32 %v14307_v27, %v14307_v27 }
 0x1e9   : > { %v715_v31 = vpop.xlane.xlu0 %714  ;;  %805 = vadd.xlane.f32.xlu0 %v804_v29 }
 0x1ea   : > { %v750_v33 = vmul.f32 0.03125, %v715_v31  ;;  %v807_v16 = vsel %vm694_vm1, %v781_v30, 0.0 }
 0x1eb   : > { %v718_v34 = vpop.xlane.xlu1 %717  ;;  %808 = vadd.xlane.f32.xlu1 %v807_v16 }
 0x1ec   : > { %v14316_v35 = vsub.f32 %v14230_v24, %v750_v33  ;;  %v751_v20 = vmul.f32 0.03125, %v718_v34 }
 0x1ee   : > { %v14319_v37 = vsub.f32 %v14235_v28, %v751_v20  ;;  %v782_v38 = vmul.f32 %v14316_v35, %v14316_v35 }
 0x1f0   : > { %v810_v39 = vsel %vm694_vm1, %v782_v38, 0.0  ;;  %v783_v41 = vmul.f32 %v14319_v37, %v14319_v37  ;;  %v14382_v38 = vld [vmem:[%s18210_s3] sm:$0xff] }
 0x1f1   : > { %v721_v42 = vpop.xlane.xlu0 %720  ;;  %811 = vadd.xlane.f32.xlu0 %v810_v39 }
 0x1f2   : > { %v752_v43 = vmul.f32 0.03125, %v721_v42  ;;  %v813_v45 = vsel %vm694_vm1, %v783_v41, 0.0 }
 0x1f3   : > { %v724_v46 = vpop.xlane.xlu1 %723  ;;  %814 = vadd.xlane.f32.xlu1 %v813_v45 }
 0x1f4   : > { %v14328_v24 = vsub.f32 %v14240_v32, %v752_v43  ;;  %v753_v28 = vmul.f32 0.03125, %v724_v46 }
 0x1f6   : > { %v14331_v47 = vsub.f32 %v14245_v36, %v753_v28  ;;  %v784_v49 = vmul.f32 %v14328_v24, %v14328_v24 }
 0x1f8   : > { %v816_v50 = vsel %vm694_vm1, %v784_v49, 0.0  ;;  %v785_v52 = vmul.f32 %v14331_v47, %v14331_v47 }
 0x1f9   : > { %v727_v53 = vpop.xlane.xlu0 %726  ;;  %817 = vadd.xlane.f32.xlu0 %v816_v50 }
 0x1fa   : > { %v754_v54 = vmul.f32 0.03125, %v727_v53  ;;  %v819_v55 = vsel %vm694_vm1, %v785_v52, 0.0 }
 0x1fb   : > { %v730_v57 = vpop.xlane.xlu1 %729  ;;  %820 = vadd.xlane.f32.xlu1 %v819_v55 }
 0x1fc   : > { %v14340_v32 = vsub.f32 %v14250_v40, %v754_v54  ;;  %v755_v36 = vmul.f32 0.03125, %v730_v57 }
 0x1fe   : > { %v14343_v58 = vsub.f32 %v14255_v44, %v755_v36  ;;  %v786_v60 = vmul.f32 %v14340_v32, %v14340_v32 }
 0x200   : > { %v822_v62 = vsel %vm694_vm1, %v786_v60, 0.0  ;;  %v787_v63 = vmul.f32 %v14343_v58, %v14343_v58 }
 0x201   : > { %v733_v1 = vpop.xlane.xlu0 %732  ;;  %823 = vadd.xlane.f32.xlu0 %v822_v62 }
 0x202   : > { %v756_v3 = vmul.f32 0.03125, %v733_v1  ;;  %v825_v5 = vsel %vm694_vm1, %v787_v63, 0.0 }
 0x203   : > { %v736_v6 = vpop.xlane.xlu1 %735  ;;  %826 = vadd.xlane.f32.xlu1 %v825_v5 }
 0x204   : > { %v14352_v40 = vsub.f32 %v14260_v48, %v756_v3  ;;  %v757_v44 = vmul.f32 0.03125, %v736_v6 }
 0x206   : > { %v14355_v61 = vsub.f32 %v14265_v51, %v757_v44  ;;  %v788_v9 = vmul.f32 %v14352_v40, %v14352_v40 }
 0x208   : > { %v828_v10 = vsel %vm694_vm1, %v788_v9, 0.0  ;;  %v789_v11 = vmul.f32 %v14355_v61, %v14355_v61 }
 0x209   : > { %829 = vadd.xlane.f32.xlu0 %v828_v10  ;;  %v739_v0 = vpop.xlane.xlu0 %738 }
 0x20a   : > { %v758_v14 = vmul.f32 0.03125, %v739_v0  ;;  %v831_v15 = vsel %vm694_vm1, %v789_v11, 0.0 }
 0x20b   : > { %832 = vadd.xlane.f32.xlu1 %v831_v15  ;;  %v742_v48 = vpop.xlane.xlu1 %741 }
 0x20c   : > { %v14364_v4 = vsub.f32 %v14270_v56, %v758_v14  ;;  %v759_v51 = vmul.f32 0.03125, %v742_v48  ;;  %v904_v56 = vlaneseq }
 0x20e   : > { %v14367_v18 = vsub.f32 %v14275_v59, %v759_v51  ;;  %v790_v19 = vmul.f32 %v14364_v4, %v14364_v4  ;;  %v14376_v30 = vshrl.u32 %v904_v56, 7 }
 0x210   : > { %v834_v21 = vsel %vm694_vm1, %v790_v19, 0.0  ;;  %v791_v8 = vmul.f32 %v14367_v18, %v14367_v18  ;;  %v18224_v34 = vsub.s32 0, %v14376_v30  ;;  %v18223_v41 = vsub.s32 1, %v14376_v30 }
 0x211   : > { %835 = vadd.xlane.f32.xlu0 %v834_v21 }
 0x212   : > { %v837_v22 = vsel %vm694_vm1, %v791_v8, 0.0  ;;  %v14388_v43 = vrot.slane %v14382_v38, %v18224_v34  ;;  %v14394_v50 = vrot.slane %v14382_v38, %v18223_v41 }
 0x213   : > { %838 = vadd.xlane.f32.xlu1 %v837_v22 }
 0x266   : > { %v794_v25 = vpop.xlane.xlu0 %793 }
 0x267   : > { %v840_v26 = vmul.f32 0.03125, %v794_v25 }
 0x269   : > { %v856_v12 = vadd.f32 1e-05, %v840_v26 }
 0x26a   : > { %v797_v29 = vpop.xlane.xlu1 %796 }
 0x26b   : > { %13275 = vrsqrt.f32 %v856_v12  ;;  %v841_v59 = vmul.f32 0.03125, %v797_v29 }
 0x26d   : > { %v857_v31 = vadd.f32 1e-05, %v841_v59 }
 0x26e   : > { %v800_v33 = vpop.xlane.xlu0 %799 }
 0x26f   : > { %13277 = vrsqrt.f32 %v857_v31  ;;  %v842_v16 = vmul.f32 0.03125, %v800_v33 }
 0x271   : > { %v858_v20 = vadd.f32 1e-05, %v842_v16 }
 0x272   : > { %v803_v39 = vpop.xlane.xlu1 %802 }
 0x273   : > { %13279 = vrsqrt.f32 %v858_v20  ;;  %v843_v42 = vmul.f32 0.03125, %v803_v39 }
 0x275   : > { %v13276_v45 = vpop.eup %13275  ;;  %v859_v46 = vadd.f32 1e-05, %v843_v42 }
 0x276   : > { %v806_v28 = vpop.xlane.xlu0 %805  ;;  %v888_v49 = vmul.f32 %v13276_v45, %v14280_v2 }
 0x277   : > { %13281 = vrsqrt.f32 %v859_v46  ;;  %v844_v52 = vmul.f32 0.03125, %v806_v28 }
 0x278   : > { %v809_v53 = vpop.xlane.xlu1 %808  ;;  %v908_v54 = vmul.f32 %v14388_v43, %v888_v49 }
 0x279   : > { %v13278_v55 = vpop.eup %13277  ;;  %v860_v57 = vadd.f32 1e-05, %v844_v52  ;;  %v845_v36 = vmul.f32 0.03125, %v809_v53 }
 0x27a   : > { %v14398_v60 = vadd.f32 %v14394_v50, %v908_v54  ;;  %v889_v62 = vmul.f32 %v13278_v55, %v14285_v7 }
 0x27b   : > { %13283 = vrsqrt.f32 %v860_v57  ;;  %v861_v2 = vadd.f32 1e-05, %v845_v36 }
 0x27c   : > { %v947_v63 = vsel %vm694_vm1, %v14398_v60, 0.0  ;;  %v909_v1 = vmul.f32 %v14388_v43, %v889_v62 }
 0x27d   : > { %v13280_v3 = vpop.eup %13279  ;;  %13285 = vrsqrt.f32 %v861_v2  ;;  %948 = vadd.xlane.f32.xlu0 %v947_v63 }
 0x27e   : > { %v812_v5 = vpop.xlane.xlu0 %811  ;;  %v14405_v6 = vadd.f32 %v14394_v50, %v909_v1  ;;  %v890_v44 = vmul.f32 %v13280_v3, %v14291_v13 }
 0x27f   : > { %v846_v9 = vmul.f32 0.03125, %v812_v5 }
 0x280   : > { %v815_v10 = vpop.xlane.xlu1 %814  ;;  %v950_v7 = vsel %vm694_vm1, %v14405_v6, 0.0  ;;  %v910_v11 = vmul.f32 %v14388_v43, %v890_v44 }
 0x281   : > { %v13282_v0 = vpop.eup %13281  ;;  %v862_v14 = vadd.f32 1e-05, %v846_v9  ;;  %v847_v15 = vmul.f32 0.03125, %v815_v10  ;;  %951 = vadd.xlane.f32.xlu1 %v950_v7 }
 0x282   : > { %v14412_v48 = vadd.f32 %v14394_v50, %v910_v11  ;;  %v891_v51 = vmul.f32 %v13282_v0, %v14297_v17 }
 0x283   : > { %13287 = vrsqrt.f32 %v862_v14  ;;  %v863_v19 = vadd.f32 1e-05, %v847_v15 }
 0x284   : > { %v953_v13 = vsel %vm694_vm1, %v14412_v48, 0.0  ;;  %v911_v21 = vmul.f32 %v14388_v43, %v891_v51 }
 0x285   : > { %v13284_v8 = vpop.eup %13283  ;;  %13289 = vrsqrt.f32 %v863_v19  ;;  %954 = vadd.xlane.f32.xlu0 %v953_v13 }
 0x286   : > { %v818_v22 = vpop.xlane.xlu0 %817  ;;  %v14419_v25 = vadd.f32 %v14394_v50, %v911_v21  ;;  %v892_v26 = vmul.f32 %v13284_v8, %v14303_v23 }
 0x287   : > { %v13286_v12 = vpop.eup %13285  ;;  %v848_v29 = vmul.f32 0.03125, %v818_v22 }
 0x288   : > { %v821_v59 = vpop.xlane.xlu1 %820  ;;  %v956_v17 = vsel %vm694_vm1, %v14419_v25, 0.0  ;;  %v912_v31 = vmul.f32 %v14388_v43, %v892_v26  ;;  %v893_v33 = vmul.f32 %v13286_v12, %v14307_v27 }
 0x289   : > { %v864_v16 = vadd.f32 1e-05, %v848_v29  ;;  %v849_v20 = vmul.f32 0.03125, %v821_v59  ;;  %957 = vadd.xlane.f32.xlu1 %v956_v17 }
 0x28a   : > { %v14427_v39 = vadd.f32 %v14394_v50, %v912_v31  ;;  %v913_v42 = vmul.f32 %v14388_v43, %v893_v33 }
 0x28b   : > { %13291 = vrsqrt.f32 %v864_v16  ;;  %v865_v23 = vadd.f32 1e-05, %v849_v20 }
 0x28c   : > { %v959_v45 = vsel %vm694_vm1, %v14427_v39, 0.0  ;;  %v14433_v46 = vadd.f32 %v14394_v50, %v913_v42 }
 0x28d   : > { %v13288_v28 = vpop.eup %13287  ;;  %13293 = vrsqrt.f32 %v865_v23  ;;  %960 = vadd.xlane.f32.xlu0 %v959_v45 }
 0x28e   : > { %18263 = vst [vmem:[#allocation10_spill] sm:$0xff] %v14433_v46  ;;  %v824_v27 = vpop.xlane.xlu0 %823  ;;  %v962_v49 = vsel %vm694_vm1, %v14433_v46, 0.0  ;;  %v894_v52 = vmul.f32 %v13288_v28, %v14316_v35 }
 0x28f   : > { %v13290_v53 = vpop.eup %13289  ;;  %v850_v54 = vmul.f32 0.03125, %v824_v27  ;;  %963 = vadd.xlane.f32.xlu1 %v962_v49 }
 0x290   : > { %v827_v55 = vpop.xlane.xlu1 %826  ;;  %v914_v57 = vmul.f32 %v14388_v43, %v894_v52  ;;  %v895_v36 = vmul.f32 %v13290_v53, %v14319_v37 }
 0x291   : > { %v866_v62 = vadd.f32 1e-05, %v850_v54  ;;  %v851_v2 = vmul.f32 0.03125, %v827_v55 }
 0x292   : > { %v14441_v63 = vadd.f32 %v14394_v50, %v914_v57  ;;  %v915_v1 = vmul.f32 %v14388_v43, %v895_v36 }
 0x293   : > { %13295 = vrsqrt.f32 %v866_v62  ;;  %v867_v3 = vadd.f32 1e-05, %v851_v2 }
 0x294   : > { %18264 = vst [vmem:[#allocation11_spill] sm:$0xff] %v14441_v63  ;;  %v965_v35 = vsel %vm694_vm1, %v14441_v63, 0.0  ;;  %v14447_v5 = vadd.f32 %v14394_v50, %v915_v1 }
 0x295   : > { %v13292_v44 = vpop.eup %13291  ;;  %13297 = vrsqrt.f32 %v867_v3  ;;  %966 = vadd.xlane.f32.xlu0 %v965_v35 }
 0x296   : > { %v830_v9 = vpop.xlane.xlu0 %829  ;;  %v968_v37 = vsel %vm694_vm1, %v14447_v5, 0.0  ;;  %v896_v10 = vmul.f32 %v13292_v44, %v14328_v24 }
 0x297   : > { %v13294_v7 = vpop.eup %13293  ;;  %v852_v11 = vmul.f32 0.03125, %v830_v9  ;;  %969 = vadd.xlane.f32.xlu1 %v968_v37 }
 0x298   : > { %v833_v0 = vpop.xlane.xlu1 %832  ;;  %v916_v14 = vmul.f32 %v14388_v43, %v896_v10  ;;  %v897_v15 = vmul.f32 %v13294_v7, %v14331_v47 }
 0x299   : > { %v868_v51 = vadd.f32 1e-05, %v852_v11  ;;  %v853_v19 = vmul.f32 0.03125, %v833_v0 }
 0x29a   : > { %v14455_v13 = vadd.f32 %v14394_v50, %v916_v14  ;;  %v917_v21 = vmul.f32 %v14388_v43, %v897_v15 }
 0x29b   : > { %13299 = vrsqrt.f32 %v868_v51  ;;  %v869_v8 = vadd.f32 1e-05, %v853_v19 }
 0x29c   : > { %18265 = vst [vmem:[#allocation12_spill] sm:$0xff] %v14455_v13  ;;  %v971_v24 = vsel %vm694_vm1, %v14455_v13, 0.0  ;;  %v14461_v22 = vadd.f32 %v14394_v50, %v917_v21 }
 0x29d   : > { %v13296_v26 = vpop.eup %13295  ;;  %13301 = vrsqrt.f32 %v869_v8  ;;  %972 = vadd.xlane.f32.xlu0 %v971_v24 }
 0x29e   : > { %18266 = vst [vmem:[#allocation13_spill] sm:$0xff] %v14461_v22  ;;  %v836_v12 = vpop.xlane.xlu0 %835  ;;  %v974_v47 = vsel %vm694_vm1, %v14461_v22, 0.0  ;;  %v898_v29 = vmul.f32 %v13296_v26, %v14340_v32 }
 0x29f   : > { %v13298_v59 = vpop.eup %13297  ;;  %v854_v17 = vmul.f32 0.03125, %v836_v12  ;;  %975 = vadd.xlane.f32.xlu1 %v974_v47 }
 0x2a0   : > { %v839_v31 = vpop.xlane.xlu1 %838  ;;  %v918_v33 = vmul.f32 %v14388_v43, %v898_v29  ;;  %v899_v16 = vmul.f32 %v13298_v59, %v14343_v58 }
 0x2a1   : > { %v870_v20 = vadd.f32 1e-05, %v854_v17  ;;  %v855_v42 = vmul.f32 0.03125, %v839_v31 }
 0x2a2   : > { %v14469_v23 = vadd.f32 %v14394_v50, %v918_v33  ;;  %v919_v45 = vmul.f32 %v14388_v43, %v899_v16 }
 0x2a3   : > { %13303 = vrsqrt.f32 %v870_v20  ;;  %v871_v28 = vadd.f32 1e-05, %v855_v42 }
 0x2a4   : > { %18267 = vst [vmem:[#allocation14_spill] sm:$0xff] %v14469_v23  ;;  %v977_v32 = vsel %vm694_vm1, %v14469_v23, 0.0  ;;  %v14475_v27 = vadd.f32 %v14394_v50, %v919_v45 }
 0x2a5   : > { %v13300_v49 = vpop.eup %13299  ;;  %13305 = vrsqrt.f32 %v871_v28  ;;  %978 = vadd.xlane.f32.xlu0 %v977_v32 }
 0x2a6   : > { %18268 = vst [vmem:[#allocation15_spill] sm:$0xff] %v14475_v27  ;;  %v980_v58 = vsel %vm694_vm1, %v14475_v27, 0.0  ;;  %v900_v52 = vmul.f32 %v13300_v49, %v14352_v40 }
 0x2a7   : > { %v13302_v53 = vpop.eup %13301  ;;  %981 = vadd.xlane.f32.xlu1 %v980_v58 }
 0x2a8   : > { %v920_v54 = vmul.f32 %v14388_v43, %v900_v52  ;;  %v901_v55 = vmul.f32 %v13302_v53, %v14355_v61 }
 0x2aa   : > { %v14483_v57 = vadd.f32 %v14394_v50, %v920_v54  ;;  %v921_v36 = vmul.f32 %v14388_v43, %v901_v55 }
 0x2ac   : > { %18269 = vst [vmem:[#allocation16_spill] sm:$0xff] %v14483_v57  ;;  %v983_v62 = vsel %vm694_vm1, %v14483_v57, 0.0  ;;  %v14489_v2 = vadd.f32 %v14394_v50, %v921_v36 }
 0x2ad   : > { %v13304_v1 = vpop.eup %13303  ;;  %984 = vadd.xlane.f32.xlu0 %v983_v62 }
 0x2ae   : > { %18270 = vst [vmem:[#allocation17_spill] sm:$0xff] %v14489_v2  ;;  %v986_v40 = vsel %vm694_vm1, %v14489_v2, 0.0  ;;  %v902_v3 = vmul.f32 %v13304_v1, %v14364_v4 }
 0x2af   : > { %v13306_v35 = vpop.eup %13305  ;;  %987 = vadd.xlane.f32.xlu1 %v986_v40 }
 0x2b0   : > { %v922_v61 = vmul.f32 %v14388_v43, %v902_v3  ;;  %v903_v44 = vmul.f32 %v13306_v35, %v14367_v18 }
 0x2b2   : > { %v14497_v9 = vadd.f32 %v14394_v50, %v922_v61  ;;  %v923_v37 = vmul.f32 %v14388_v43, %v903_v44 }
 0x2b4   : > { %18271 = vst [vmem:[#allocation18_spill] sm:$0xff] %v14497_v9  ;;  %v989_v10 = vsel %vm694_vm1, %v14497_v9, 0.0  ;;  %v14503_v7 = vadd.f32 %v14394_v50, %v923_v37 }
 0x2b5   : > { %990 = vadd.xlane.f32.xlu0 %v989_v10 }
 0x2b6   : > { %18272 = vst [vmem:[#allocation19_spill] sm:$0xff] %v14503_v7  ;;  %v992_v4 = vsel %vm694_vm1, %v14503_v7, 0.0 }
 0x2b7   : > { %993 = vadd.xlane.f32.xlu1 %v992_v4 }
 0x30a   : > { %v949_v11 = vpop.xlane.xlu0 %948 }
 0x30b   : > { %v995_v0 = vmul.f32 0.03125, %v949_v11 }
 0x30d   : > { %v14508_v18 = vsub.f32 %v14398_v60, %v995_v0 }
 0x30e   : > { %v952_v14 = vpop.xlane.xlu1 %951 }
 0x30f   : > { %v996_v15 = vmul.f32 0.03125, %v952_v14  ;;  %v1027_v43 = vmul.f32 %v14508_v18, %v14508_v18 }
 0x311   : > { %v14513_v51 = vsub.f32 %v14405_v6, %v996_v15  ;;  %v1043_v50 = vsel %vm694_vm1, %v1027_v43, 0.0 }
 0x312   : > { %1044 = vadd.xlane.f32.xlu0 %v1043_v50  ;;  %v955_v19 = vpop.xlane.xlu0 %954 }
 0x313   : > { %v997_v21 = vmul.f32 0.03125, %v955_v19  ;;  %v1028_v8 = vmul.f32 %v14513_v51, %v14513_v51 }
 0x315   : > { %v14519_v24 = vsub.f32 %v14412_v48, %v997_v21  ;;  %v1046_v26 = vsel %vm694_vm1, %v1028_v8, 0.0 }
 0x316   : > { %1047 = vadd.xlane.f32.xlu1 %v1046_v26  ;;  %v958_v12 = vpop.xlane.xlu1 %957 }
 0x317   : > { %v998_v47 = vmul.f32 0.03125, %v958_v12  ;;  %v1029_v29 = vmul.f32 %v14519_v24, %v14519_v24 }
 0x319   : > { %v14525_v59 = vsub.f32 %v14419_v25, %v998_v47  ;;  %v1049_v17 = vsel %vm694_vm1, %v1029_v29, 0.0 }
 0x31a   : > { %1050 = vadd.xlane.f32.xlu0 %v1049_v17  ;;  %v961_v31 = vpop.xlane.xlu0 %960 }
 0x31b   : > { %v999_v33 = vmul.f32 0.03125, %v961_v31  ;;  %v1030_v16 = vmul.f32 %v14525_v59, %v14525_v59 }
 0x31c   : > { %v964_v20 = vpop.xlane.xlu1 %963 }
 0x31d   : > { %v14531_v42 = vsub.f32 %v14427_v39, %v999_v33  ;;  %v1000_v45 = vmul.f32 0.03125, %v964_v20  ;;  %v1052_v28 = vsel %vm694_vm1, %v1030_v16, 0.0  ;;  %v13245_v16 = vld [vmem:[%s18211_s4] sm:$0xff]  }
 0x31e   : > { %1053 = vadd.xlane.f32.xlu1 %v1052_v28  ;;  %12151 = vmatprep.subr.bf16.mxu1 %v13245_v16 }
 0x31f   : > { %v14535_v32 = vsub.f32 %v14433_v46, %v1000_v45  ;;  %v1031_v49 = vmul.f32 %v14531_v42, %v14531_v42  ;;  %12152 = vmatpush3.bf16.msra.mxu1 %v13245_v16 }
 0x321   : > { %v1055_v58 = vsel %vm694_vm1, %v1031_v49, 0.0  ;;  %v1032_v52 = vmul.f32 %v14535_v32, %v14535_v32 }
 0x322   : > { %1056 = vadd.xlane.f32.xlu0 %v1055_v58  ;;  %v967_v53 = vpop.xlane.xlu0 %966 }
 0x323   : > { %v1001_v54 = vmul.f32 0.03125, %v967_v53  ;;  %v1058_v55 = vsel %vm694_vm1, %v1032_v52, 0.0  ;;  %v13246_v53 = vld [vmem:[%s18211_s4 + $0x8] sm:$0xff]  }
 0x324   : > { %1059 = vadd.xlane.f32.xlu1 %v1058_v55  ;;  %v970_v36 = vpop.xlane.xlu1 %969  ;;  %12153 = vmatprep.subr.bf16.mxu1 %v13246_v53 }
 0x325   : > { %v14544_v62 = vsub.f32 %v14441_v63, %v1001_v54  ;;  %v1002_v1 = vmul.f32 0.03125, %v970_v36  ;;  %12154 = vmatpush3.bf16.msra.mxu1 %v13246_v53 }
 0x327   : > { %v14547_v40 = vsub.f32 %v14447_v5, %v1002_v1  ;;  %v1033_v3 = vmul.f32 %v14544_v62, %v14544_v62 }
 0x329   : > { %v1061_v35 = vsel %vm694_vm1, %v1033_v3, 0.0  ;;  %v1034_v61 = vmul.f32 %v14547_v40, %v14547_v40 }
 0x32a   : > { %1062 = vadd.xlane.f32.xlu0 %v1061_v35  ;;  %v973_v44 = vpop.xlane.xlu0 %972 }
 0x32b   : > { %v1003_v37 = vmul.f32 0.03125, %v973_v44  ;;  %v1064_v10 = vsel %vm694_vm1, %v1034_v61, 0.0 }
 0x32c   : > { %1065 = vadd.xlane.f32.xlu1 %v1064_v10  ;;  %v976_v4 = vpop.xlane.xlu1 %975 }
 0x32d   : > { %v14556_v11 = vsub.f32 %v14455_v13, %v1003_v37  ;;  %v1004_v0 = vmul.f32 0.03125, %v976_v4 }
 0x32f   : > { %v14559_v14 = vsub.f32 %v14461_v22, %v1004_v0  ;;  %v1035_v15 = vmul.f32 %v14556_v11, %v14556_v11 }
 0x331   : > { %v1067_v43 = vsel %vm694_vm1, %v1035_v15, 0.0  ;;  %v1036_v50 = vmul.f32 %v14559_v14, %v14559_v14 }
 0x332   : > { %1068 = vadd.xlane.f32.xlu0 %v1067_v43  ;;  %v979_v19 = vpop.xlane.xlu0 %978 }
 0x333   : > { %v1005_v21 = vmul.f32 0.03125, %v979_v19  ;;  %v1070_v8 = vsel %vm694_vm1, %v1036_v50, 0.0 }
 0x334   : > { %1071 = vadd.xlane.f32.xlu1 %v1070_v8  ;;  %v982_v26 = vpop.xlane.xlu1 %981 }
 0x335   : > { %v14568_v12 = vsub.f32 %v14469_v23, %v1005_v21  ;;  %v1006_v47 = vmul.f32 0.03125, %v982_v26 }
 0x337   : > { %v14571_v29 = vsub.f32 %v14475_v27, %v1006_v47  ;;  %v1037_v17 = vmul.f32 %v14568_v12, %v14568_v12 }
 0x339   : > { %v1073_v31 = vsel %vm694_vm1, %v1037_v17, 0.0  ;;  %v1038_v33 = vmul.f32 %v14571_v29, %v14571_v29 }
 0x33a   : > { %1074 = vadd.xlane.f32.xlu0 %v1073_v31  ;;  %v985_v20 = vpop.xlane.xlu0 %984 }
 0x33b   : > { %v1007_v45 = vmul.f32 0.03125, %v985_v20  ;;  %v1076_v28 = vsel %vm694_vm1, %v1038_v33, 0.0 }
 0x33c   : > { %1077 = vadd.xlane.f32.xlu1 %v1076_v28  ;;  %v988_v49 = vpop.xlane.xlu1 %987 }
 0x33d   : > { %v14583_v58 = vsub.f32 %v14483_v57, %v1007_v45  ;;  %v1008_v52 = vmul.f32 0.03125, %v988_v49  ;;  %v18222_v45 = vsub.s32 4, %v14376_v30 }
 0x33f   : > { %v14589_v54 = vsub.f32 %v14489_v2, %v1008_v52  ;;  %v1039_v55 = vmul.f32 %v14583_v58, %v14583_v58 }
 0x341   : > { %v1079_v36 = vsel %vm694_vm1, %v1039_v55, 0.0  ;;  %v1040_v1 = vmul.f32 %v14589_v54, %v14589_v54 }
 0x342   : > { %1080 = vadd.xlane.f32.xlu0 %v1079_v36  ;;  %v991_v3 = vpop.xlane.xlu0 %990  ;;  %v14614_v36 = vrot.slane %v14382_v38, %v18222_v45 }
 0x343   : > { %v1009_v35 = vmul.f32 0.03125, %v991_v3  ;;  %v1082_v61 = vsel %vm694_vm1, %v1040_v1, 0.0  ;;  %v18221_v1 = vsub.s32 5, %v14376_v30 }
 0x344   : > { %1083 = vadd.xlane.f32.xlu1 %v1082_v61  ;;  %v994_v44 = vpop.xlane.xlu1 %993 }
 0x345   : > { %v14598_v37 = vsub.f32 %v14497_v9, %v1009_v35  ;;  %v1010_v10 = vmul.f32 0.03125, %v994_v44 }
 0x347   : > { %v14601_v4 = vsub.f32 %v14503_v7, %v1010_v10  ;;  %v1041_v0 = vmul.f32 %v14598_v37, %v14598_v37 }
 0x349   : > { %v1085_v15 = vsel %vm694_vm1, %v1041_v0, 0.0  ;;  %v1042_v43 = vmul.f32 %v14601_v4, %v14601_v4 }
 0x34a   : > { %1086 = vadd.xlane.f32.xlu0 %v1085_v15 }
 0x34b   : > { %v1088_v50 = vsel %vm694_vm1, %v1042_v43, 0.0 }
 0x34c   : > { %1089 = vadd.xlane.f32.xlu1 %v1088_v50 }
 0x39f   : > { %v1045_v19 = vpop.xlane.xlu0 %1044 }
 0x3a0   : > { %v1091_v21 = vmul.f32 0.03125, %v1045_v19 }
 0x3a2   : > { %v1107_v8 = vadd.f32 1e-05, %v1091_v21 }
 0x3a3   : > { %v1048_v26 = vpop.xlane.xlu1 %1047 }
 0x3a4   : > { %13307 = vrsqrt.f32 %v1107_v8  ;;  %v1092_v47 = vmul.f32 0.03125, %v1048_v26 }
 0x3a6   : > { %v1108_v17 = vadd.f32 1e-05, %v1092_v47 }
 0x3a7   : > { %v1051_v31 = vpop.xlane.xlu0 %1050 }
 0x3a8   : > { %13309 = vrsqrt.f32 %v1108_v17  ;;  %v1093_v33 = vmul.f32 0.03125, %v1051_v31 }
 0x3aa   : > { %v1109_v16 = vadd.f32 1e-05, %v1093_v33 }
 0x3ab   : > { %v1054_v20 = vpop.xlane.xlu1 %1053 }
 0x3ac   : > { %13311 = vrsqrt.f32 %v1109_v16  ;;  %v1094_v28 = vmul.f32 0.03125, %v1054_v20 }
 0x3ae   : > { %v13308_v49 = vpop.eup %13307  ;;  %v1110_v52 = vadd.f32 1e-05, %v1094_v28 }
 0x3af   : > { %v1057_v53 = vpop.xlane.xlu0 %1056  ;;  %v1139_v55 = vmul.f32 %v13308_v49, %v14508_v18  ;;  %v14622_v18 = vrot.slane %v14382_v38, %v18221_v1 }
 0x3b0   : > { %13313 = vrsqrt.f32 %v1110_v52  ;;  %v1095_v3 = vmul.f32 0.03125, %v1057_v53 }
 0x3b1   : > { %v1060_v35 = vpop.xlane.xlu1 %1059  ;;  %v1159_v15 = vmul.f32 %v14614_v36, %v1139_v55 }
 0x3b2   : > { %v13310_v61 = vpop.eup %13309  ;;  %v1111_v44 = vadd.f32 1e-05, %v1095_v3  ;;  %v1096_v10 = vmul.f32 0.03125, %v1060_v35 }
 0x3b3   : > { %v1140_v0 = vmul.f32 %v13310_v61, %v14513_v51  ;;  %v1179_v8 = vadd.f32 %v14622_v18, %v1159_v15 }
 0x3b4   : > { %13315 = vrsqrt.f32 %v1111_v44  ;;  %v1112_v43 = vadd.f32 1e-05, %v1096_v10 }
 0x3b5   : > { %v1160_v50 = vmul.f32 %v14614_v36, %v1140_v0 }
 0x3b6   : > { %v13312_v19 = vpop.eup %13311  ;;  %13317 = vrsqrt.f32 %v1112_v43 }
 0x3b7   : > { %v1063_v21 = vpop.xlane.xlu0 %1062  ;;  %v1180_v26 = vadd.f32 %v14622_v18, %v1160_v50  ;;  %v1141_v51 = vmul.f32 %v13312_v19, %v14519_v24 }
 0x3b8   : > { %v1097_v47 = vmul.f32 0.03125, %v1063_v21 }
 0x3b9   : > { %v1066_v17 = vpop.xlane.xlu1 %1065  ;;  %v1199_v31 = vpack.c.bf16 %v1180_v26, %v1179_v8  ;;  %v1161_v28 = vmul.f32 %v14614_v36, %v1141_v51 }
 0x3ba   : > { %v13314_v33 = vpop.eup %13313  ;;  %v1113_v16 = vadd.f32 1e-05, %v1097_v47  ;;  %v1098_v38 = vmul.f32 0.03125, %v1066_v17 }
 0x3bb   : > { %12155 = vmatprep.mubr.msk.bf16.mxu1 %vm694_vm1, %v1199_v31  ;;  %v1142_v20 = vmul.f32 %v13314_v33, %v14525_v59  ;;  %v1181_v24 = vadd.f32 %v14622_v18, %v1161_v28 }
 0x3bc   : > { %13319 = vrsqrt.f32 %v1113_v16  ;;  %v1114_v49 = vadd.f32 1e-05, %v1098_v38 }
 0x3bd   : > { %v1162_v52 = vmul.f32 %v14614_v36, %v1142_v20 }
 0x3be   : > { %v13316_v53 = vpop.eup %13315  ;;  %13321 = vrsqrt.f32 %v1114_v49 }
 0x3bf   : > { %v1069_v55 = vpop.xlane.xlu0 %1068  ;;  %v1182_v3 = vadd.f32 %v14622_v18, %v1162_v52  ;;  %v1143_v35 = vmul.f32 %v13316_v53, %v14531_v42 }
 0x3c0   : > { %v13318_v61 = vpop.eup %13317  ;;  %v1099_v44 = vmul.f32 0.03125, %v1069_v55 }
 0x3c1   : > { %v1072_v10 = vpop.xlane.xlu1 %1071  ;;  %v1200_v0 = vpack.c.bf16 %v1182_v3, %v1181_v24  ;;  %v1144_v59 = vmul.f32 %v13318_v61, %v14535_v32  ;;  %v1163_v15 = vmul.f32 %v14614_v36, %v1143_v35 }
 0x3c2   : > { %v1115_v43 = vadd.f32 1e-05, %v1099_v44  ;;  %v1100_v50 = vmul.f32 0.03125, %v1072_v10 }
 0x3c3   : > { %12156 = vmatmul.mubr.msk.bf16.vlgmr.msra.gmra.mrb[0].mxu1 %vm694_vm1, %v1200_v0  ;;  %v1164_v19 = vmul.f32 %v14614_v36, %v1144_v59  ;;  %v1183_v8 = vadd.f32 %v14622_v18, %v1163_v15 }
 0x3c4   : > { %13323 = vrsqrt.f32 %v1115_v43  ;;  %v1116_v21 = vadd.f32 1e-05, %v1100_v50 }
 0x3c5   : > { %v1184_v42 = vadd.f32 %v14622_v18, %v1164_v19 }
 0x3c6   : > { %v13320_v26 = vpop.eup %13319  ;;  %13325 = vrsqrt.f32 %v1116_v21 }
 0x3c7   : > { %v1075_v51 = vpop.xlane.xlu0 %1074  ;;  %v1201_v47 = vpack.c.bf16 %v1184_v42, %v1183_v8  ;;  %v1145_v32 = vmul.f32 %v13320_v26, %v14544_v62 }
 0x3c8   : > { %v13322_v17 = vpop.eup %13321  ;;  %v1101_v31 = vmul.f32 0.03125, %v1075_v51 }
 0x3c9   : > { %12159 = vmatprep.mubr.msk.bf16.mxu1 %vm694_vm1, %v1201_v47  ;;  %v1078_v33 = vpop.xlane.xlu1 %1077  ;;  %v1146_v16 = vmul.f32 %v13322_v17, %v14547_v40  ;;  %v1165_v38 = vmul.f32 %v14614_v36, %v1145_v32 }
 0x3ca   : > { %v1117_v20 = vadd.f32 1e-05, %v1101_v31  ;;  %v1102_v28 = vmul.f32 0.03125, %v1078_v33 }
 0x3cb   : > { %v1166_v49 = vmul.f32 %v14614_v36, %v1146_v16  ;;  %v1185_v53 = vadd.f32 %v14622_v18, %v1165_v38 }
 0x3cc   : > { %13327 = vrsqrt.f32 %v1117_v20  ;;  %v1118_v52 = vadd.f32 1e-05, %v1102_v28 }
 0x3cd   : > { %v1186_v55 = vadd.f32 %v14622_v18, %v1166_v49 }
 0x3ce   : > { %v13324_v62 = vpop.eup %13323  ;;  %13329 = vrsqrt.f32 %v1118_v52 }
 0x3cf   : > { %v1081_v24 = vpop.xlane.xlu0 %1080  ;;  %v1202_v3 = vpack.c.bf16 %v1186_v55, %v1185_v53  ;;  %v1147_v35 = vmul.f32 %v13324_v62, %v14556_v11 }
 0x3d0   : > { %v13326_v61 = vpop.eup %13325  ;;  %v1103_v40 = vmul.f32 0.03125, %v1081_v24 }
 0x3d1   : > { %12160 = vmatmul.mubr.msk.bf16.gmra.mrb[4].mxu1 %vm694_vm1, %v1202_v3  ;;  %v1084_v44 = vpop.xlane.xlu1 %1083  ;;  %v1148_v10 = vmul.f32 %v13326_v61, %v14559_v14  ;;  %v1167_v0 = vmul.f32 %v14614_v36, %v1147_v35 }
 0x3d2   : > { %v1119_v59 = vadd.f32 1e-05, %v1103_v40  ;;  %v1104_v15 = vmul.f32 0.03125, %v1084_v44 }
 0x3d3   : > { %v1168_v43 = vmul.f32 %v14614_v36, %v1148_v10  ;;  %v1187_v19 = vadd.f32 %v14622_v18, %v1167_v0 }
 0x3d4   : > { %13331 = vrsqrt.f32 %v1119_v59  ;;  %v1120_v50 = vadd.f32 1e-05, %v1104_v15 }
 0x3d5   : > { %v1188_v21 = vadd.f32 %v14622_v18, %v1168_v43  ;;  %v18225_v43 = vmov 0.0  }
 0x3d6   : > { %v13328_v11 = vpop.eup %13327  ;;  %13333 = vrsqrt.f32 %v1120_v50  ;;  %12171 = vmatprep.subr.bf16.mxu1 %v18225_v43  ;;  %12225 = vmatprep.subr.bf16.mxu0 %v18225_v43 }
 0x3d7   : > { %v1087_v8 = vpop.xlane.xlu0 %1086  ;;  %v1203_v42 = vpack.c.bf16 %v1188_v21, %v1187_v19  ;;  %v1149_v26 = vmul.f32 %v13328_v11, %v14568_v12  ;;  %12227 = vmatprep.mubr.msk.bf16.mxu0 %vm13935_vm2, %v18225_v43 }
 0x3d8   : > { %v13330_v51 = vpop.eup %13329  ;;  %v1105_v14 = vmul.f32 0.03125, %v1087_v8 }
 0x3d9   : > { %12163 = vmatprep.mubr.msk.bf16.mxu1 %vm694_vm1, %v1203_v42  ;;  %v1090_v47 = vpop.xlane.xlu1 %1089  ;;  %v1150_v32 = vmul.f32 %v13330_v51, %v14571_v29  ;;  %v1169_v17 = vmul.f32 %v14614_v36, %v1149_v26 }
 0x3da   : > { %v1121_v31 = vadd.f32 1e-05, %v1105_v14  ;;  %v1106_v33 = vmul.f32 0.03125, %v1090_v47 }
 0x3db   : > { %v1170_v16 = vmul.f32 %v14614_v36, %v1150_v32  ;;  %v1189_v20 = vadd.f32 %v14622_v18, %v1169_v17 }
 0x3dc   : > { %13335 = vrsqrt.f32 %v1121_v31  ;;  %v1122_v38 = vadd.f32 1e-05, %v1106_v33 }
 0x3dd   : > { %v1190_v28 = vadd.f32 %v14622_v18, %v1170_v16 }
 0x3de   : > { %v13332_v12 = vpop.eup %13331  ;;  %13337 = vrsqrt.f32 %v1122_v38 }
 0x3df   : > { %v1204_v49 = vpack.c.bf16 %v1190_v28, %v1189_v20  ;;  %v1151_v52 = vmul.f32 %v13332_v12, %v14583_v58 }
 0x3e0   : > { %v13334_v53 = vpop.eup %13333 }
 0x3e1   : > { %12164 = vmatmul.mubr.msk.bf16.gmra.mrb[8].mxu1 %vm694_vm1, %v1204_v49  ;;  %v1152_v29 = vmul.f32 %v13334_v53, %v14589_v54  ;;  %v1171_v55 = vmul.f32 %v14614_v36, %v1151_v52 }
 0x3e3   : > { %v1172_v62 = vmul.f32 %v14614_v36, %v1152_v29  ;;  %v1191_v24 = vadd.f32 %v14622_v18, %v1171_v55 }
 0x3e5   : > { %v1192_v3 = vadd.f32 %v14622_v18, %v1172_v62 }
 0x3e6   : > { %v13336_v35 = vpop.eup %13335 }
 0x3e7   : > { %v1205_v61 = vpack.c.bf16 %v1192_v3, %v1191_v24  ;;  %v1153_v40 = vmul.f32 %v13336_v35, %v14598_v37  ;;  %v11487_v37 = vld [vmem:[%s18212_s5] ss:$0 sm:$0xff] }
 0x3e8   : > { %v13338_v44 = vpop.eup %13337 }
 0x3e9   : > { %12167 = vmatprep.mubr.msk.bf16.mxu1 %vm694_vm1, %v1205_v61  ;;  %v1154_v58 = vmul.f32 %v13338_v44, %v14601_v4  ;;  %v1173_v10 = vmul.f32 %v14614_v36, %v1153_v40 }
 0x3eb   : > { %v1174_v54 = vmul.f32 %v14614_v36, %v1154_v58  ;;  %v1193_v0 = vadd.f32 %v14622_v18, %v1173_v10 }
 0x3ed   : > { %v1194_v59 = vadd.f32 %v14622_v18, %v1174_v54 }
 0x3ef   : > { %v1206_v15 = vpack.c.bf16 %v1194_v59, %v1193_v0 }
 0x3f1   : > { %12168 = vmatmul.mubr.msk.bf16.gmra.mrb[12].mxu1 %vm694_vm1, %v1206_v15 }
 0x3f2   : > { %12173 = vmatprep.mubr.msk.bf16.mxu1 %vm13935_vm2, %v18225_v43 }
 0x496   : > { %v12157_v4 = vpop.f32.mrb[0].mxu1 }
 0x497   : > { %v1284_v36 = vpop.f32.mrb[1].mxu1  ;;  %v1293_v8 = vadd.f32 %v12157_v4, %v11487_v37 }
 0x498   : > { %v1285_v18 = vadd.f32 %v11487_v37, %v1284_v36  ;;  %v12158_v50 = vpop.f32.mrb[2].mxu1 }
 0x499   : > { %v1287_v19 = vpop.f32.mrb[3].mxu1  ;;  %v14694_v26 = vpack.c.bf16 %v1293_v8, %v1293_v8  ;;  %v1296_v51 = vadd.f32 %v12158_v50, %v11487_v37 }
 0x49a   : > { %v14686_v21 = vpack.c.bf16 %v1285_v18, %v1285_v18  ;;  %v1288_v11 = vadd.f32 %v11487_v37, %v1287_v19 }
 0x49b   : > { %v14698_v14 = vpack.c.bf16 %v1296_v51, %v1296_v51 }
 0x49c   : > { %v14688_v42 = vpack.c.bf16 %v1288_v11, %v1288_v11  ;;  %1368 = vrot.lane.b32.xlu0 %v14686_v21, %s13936_s25 }
 0x49e   : > { %1418 = vrot.lane.b32.xlu1 %v14688_v42, %s13936_s25 }
 0x4a2   : > { %1467 = vrot.lane.b32.xlu1 %v14694_v26, %s13936_s25 }
 0x4a4   : > { %v12161_v47 = vpop.f32.mrb[4].mxu1 }
 0x4a5   : > { %v1300_v32 = vpop.f32.mrb[5].mxu1  ;;  %v1309_v16 = vadd.f32 %v12161_v47, %v11487_v37 }
 0x4a6   : > { %v1301_v17 = vadd.f32 %v11487_v37, %v1300_v32  ;;  %1516 = vrot.lane.b32.xlu1 %v14698_v14, %s13936_s25  ;;  %v12162_v31 = vpop.f32.mrb[6].mxu1 }
 0x4a7   : > { %v1303_v33 = vpop.f32.mrb[7].mxu1  ;;  %v1312_v28 = vadd.f32 %v12162_v31, %v11487_v37  ;;  %v14708_v49 = vpack.c.bf16 %v1309_v16, %v1309_v16 }
 0x4a8   : > { %v14702_v38 = vpack.c.bf16 %v1301_v17, %v1301_v17  ;;  %v1304_v20 = vadd.f32 %v11487_v37, %v1303_v33 }
 0x4a9   : > { %v14712_v52 = vpack.c.bf16 %v1312_v28, %v1312_v28 }
 0x4aa   : > { %v14704_v12 = vpack.c.bf16 %v1304_v20, %v1304_v20  ;;  %1565 = vrot.lane.b32.xlu0 %v14702_v38, %s13936_s25 }
 0x4ac   : > { %1614 = vrot.lane.b32.xlu1 %v14704_v12, %s13936_s25 }
 0x4ae   : > { %1663 = vrot.lane.b32.xlu0 %v14708_v49, %s13936_s25 }
 0x4b0   : > { %1712 = vrot.lane.b32.xlu1 %v14712_v52, %s13936_s25 }
 0x4b4   : > { %v12165_v53 = vpop.f32.mrb[8].mxu1 }
 0x4b5   : > { %v1316_v29 = vpop.f32.mrb[9].mxu1  ;;  %v1325_v3 = vadd.f32 %v12165_v53, %v11487_v37 }
 0x4b6   : > { %v1317_v55 = vadd.f32 %v11487_v37, %v1316_v29  ;;  %v12166_v62 = vpop.f32.mrb[10].mxu1 }
 0x4b7   : > { %v1319_v24 = vpop.f32.mrb[11].mxu1  ;;  %v1328_v40 = vadd.f32 %v12166_v62, %v11487_v37  ;;  %v14724_v58 = vpack.c.bf16 %v1325_v3, %v1325_v3 }
 0x4b8   : > { %v14718_v35 = vpack.c.bf16 %v1317_v55, %v1317_v55  ;;  %v1320_v61 = vadd.f32 %v11487_v37, %v1319_v24 }
 0x4b9   : > { %v14728_v10 = vpack.c.bf16 %v1328_v40, %v1328_v40 }
 0x4ba   : > { %v14720_v44 = vpack.c.bf16 %v1320_v61, %v1320_v61  ;;  %1761 = vrot.lane.b32.xlu0 %v14718_v35, %s13936_s25 }
 0x4bc   : > { %1810 = vrot.lane.b32.xlu1 %v14720_v44, %s13936_s25 }
 0x4be   : > { %1859 = vrot.lane.b32.xlu0 %v14724_v58, %s13936_s25 }
 0x4c0   : > { %1908 = vrot.lane.b32.xlu1 %v14728_v10, %s13936_s25 }
 0x4c4   : > { %v12169_v54 = vpop.f32.mrb[12].mxu1 }
 0x4c5   : > { %v1332_v0 = vpop.f32.mrb[13].mxu1  ;;  %v1341_v36 = vadd.f32 %v12169_v54, %v11487_v37 }
 0x4c6   : > { %v1333_v59 = vadd.f32 %v11487_v37, %v1332_v0  ;;  %v12170_v15 = vpop.f32.mrb[14].mxu1 }
 0x4c7   : > { %v1335_v4 = vpop.f32.mrb[15].mxu1  ;;  %v1344_v19 = vadd.f32 %v12170_v15, %v11487_v37  ;;  %v14740_v8 = vpack.c.bf16 %v1341_v36, %v1341_v36 }
 0x4c8   : > { %v14734_v18 = vpack.c.bf16 %v1333_v59, %v1333_v59  ;;  %v1336_v50 = vadd.f32 %v11487_v37, %v1335_v4 }
 0x4c9   : > { %v14744_v51 = vpack.c.bf16 %v1344_v19, %v1344_v19 }
 0x4ca   : > { %v14736_v11 = vpack.c.bf16 %v1336_v50, %v1336_v50  ;;  %1957 = vrot.lane.b32.xlu0 %v14734_v18, %s13936_s25 }
 0x4cc   : > { %2006 = vrot.lane.b32.xlu1 %v14736_v11, %s13936_s25 }
 0x4ce   : > { %2055 = vrot.lane.b32.xlu0 %v14740_v8, %s13936_s25 }
 0x4d0   : > { %2104 = vrot.lane.b32.xlu1 %v14744_v51, %s13936_s25 }
 0x4d2   : > { %2363 = vrot.lane.b32.xlu0 %v14686_v21, %s13937_s16 }
 0x4d4   : > { %2412 = vrot.lane.b32.xlu1 %v14688_v42, %s13937_s16 }
 0x4d6   : > { %2460 = vrot.lane.b32.xlu0 %v14694_v26, %s13937_s16 }
 0x4d8   : > { %2508 = vrot.lane.b32.xlu1 %v14698_v14, %s13937_s16 }
 0x4da   : > { %2556 = vrot.lane.b32.xlu0 %v14702_v38, %s13937_s16 }
 0x4dc   : > { %2604 = vrot.lane.b32.xlu1 %v14704_v12, %s13937_s16 }
 0x4de   : > { %2652 = vrot.lane.b32.xlu0 %v14708_v49, %s13937_s16 }
 0x4e0   : > { %2700 = vrot.lane.b32.xlu1 %v14712_v52, %s13937_s16 }
 0x4e2   : > { %2748 = vrot.lane.b32.xlu0 %v14718_v35, %s13937_s16 }
 0x4e4   : > { %2796 = vrot.lane.b32.xlu1 %v14720_v44, %s13937_s16 }
 0x4e8   : > { %2844 = vrot.lane.b32.xlu1 %v14724_v58, %s13937_s16 }
 0x4ec   : > { %2892 = vrot.lane.b32.xlu1 %v14728_v10, %s13937_s16 }
 0x50e   : > { %v1369_v37 = vpop.permute.xlu0 %1368 }
 0x50f   : > { %v1375_v47 = vsel %vm1370_vm3, %v1369_v37, 0 }
 0x510   : > { %12172 = vmatpush3.bf16.xpose.msra.mxu1 %v1375_v47  ;;  %v1419_v32 = vpop.permute.xlu1 %1418 }
 0x511   : > { %12177 = vmatprep.subr.bf16.mxu1 %v18225_v43  ;;  %v1424_v17 = vsel %vm1370_vm3, %v1419_v32, 0 }
 0x514   : > { %v1468_v31 = vpop.permute.xlu1 %1467 }
 0x515   : > { %v1473_v33 = vsel %vm1370_vm3, %v1468_v31, 0 }
 0x517   : > { %12174 = vmatmul.mubr.msk.bf16.vlgmr.msra.gmra.mrb[16].mxu1 %vm1370_vm3, %v14686_v21 }
 0x518   : > { %12178 = vmatpush3.bf16.xpose.msra.mxu1 %v1424_v17  ;;  %12179 = vmatprep.mubr.msk.bf16.mxu1 %vm13935_vm2, %v18225_v43  ;;  %v1517_v16 = vpop.permute.xlu1 %1516 }
 0x519   : > { %12183 = vmatprep.subr.bf16.mxu1 %v18225_v43  ;;  %v1522_v28 = vsel %vm1370_vm3, %v1517_v16, 0 }
 0x51c   : > { %v1566_v29 = vpop.permute.xlu0 %1565 }
 0x51d   : > { %v1571_v62 = vsel %vm1370_vm3, %v1566_v29, 0 }
 0x51e   : > { %v1615_v20 = vpop.permute.xlu1 %1614 }
 0x51f   : > { %12180 = vmatmul.mubr.msk.bf16.vlgmr.msra.gmra.mrb[20].mxu1 %vm1370_vm3, %v14688_v42  ;;  %v1620_v61 = vsel %vm1370_vm3, %v1615_v20, 0 }
 0x520   : > { %12184 = vmatpush3.bf16.xpose.msra.mxu1 %v1473_v33  ;;  %12185 = vmatprep.mubr.msk.bf16.mxu1 %vm13935_vm2, %v18225_v43  ;;  %v1664_v54 = vpop.permute.xlu0 %1663 }
 0x521   : > { %12189 = vmatprep.subr.bf16.mxu1 %v18225_v43  ;;  %v1669_v59 = vsel %vm1370_vm3, %v1664_v54, 0 }
 0x522   : > { %v1713_v53 = vpop.permute.xlu1 %1712 }
 0x523   : > { %v1718_v36 = vsel %vm1370_vm3, %v1713_v53, 0 }
 0x527   : > { %12186 = vmatmul.mubr.msk.bf16.vlgmr.msra.gmra.mrb[24].mxu1 %vm1370_vm3, %v14694_v26 }
 0x528   : > { %12190 = vmatpush3.bf16.xpose.msra.mxu1 %v1522_v28  ;;  %12191 = vmatprep.mubr.msk.bf16.mxu1 %vm13935_vm2, %v18225_v43 }
 0x529   : > { %12195 = vmatprep.subr.bf16.mxu1 %v18225_v43 }
 0x52c   : > { %v1762_v19 = vpop.permute.xlu0 %1761 }
 0x52d   : > { %v1767_v47 = vsel %vm1370_vm3, %v1762_v19, 0 }
 0x52e   : > { %v1811_v55 = vpop.permute.xlu1 %1810 }
 0x52f   : > { %v1816_v24 = vsel %vm1370_vm3, %v1811_v55, 0  ;;  %12192 = vmatmul.mubr.msk.bf16.vlgmr.msra.gmra.mrb[28].mxu1 %vm1370_vm3, %v14698_v14  ;;  %v14875_v55 = vand.u32 127, %v904_v56 }
 0x530   : > { %12196 = vmatpush3.bf16.xpose.msra.mxu1 %v1571_v62  ;;  %12226 = vmatpush3.bf16.xpose.msra.mxu0 %v1816_v24  ;;  %v1860_v17 = vpop.permute.xlu0 %1859 }
 0x531   : > { %12197 = vmatprep.mubr.msk.bf16.mxu1 %vm13935_vm2, %v18225_v43  ;;  %12201 = vmatprep.subr.bf16.mxu1 %v18225_v43  ;;  %v1865_v31 = vsel %vm1370_vm3, %v1860_v17, 0  ;;  %18273 = vst [vmem:[#allocation20_spill] sm:$0xff] %v14875_v55  ;;  %vm946_vm5 = vcmp.lt.s32.totalorder %v14875_v55, 5 }
 0x532   : > { %12237 = vmatprep.subr.bf16.mxu0 %v18225_v43  ;;  %v1909_v3 = vpop.permute.xlu1 %1908 }
 0x533   : > { %v1914_v40 = vsel %vm1370_vm3, %v1909_v3, 0 }
 0x537   : > { %12198 = vmatmul.mubr.msk.bf16.vlgmr.msra.gmra.mrb[32].mxu1 %vm1370_vm3, %v14702_v38  ;;  %12228 = vmatmul.mubr.msk.bf16.vlgmr.msra.gmra.mrb[32].mxu0 %vm1370_vm3, %v14720_v44 }
 0x538   : > { %12202 = vmatpush3.bf16.xpose.msra.mxu1 %v1620_v61  ;;  %12238 = vmatpush3.bf16.xpose.msra.mxu0 %v1914_v40 }
 0x539   : > { %12203 = vmatprep.mubr.msk.bf16.mxu1 %vm13935_vm2, %v18225_v43  ;;  %12239 = vmatprep.mubr.msk.bf16.mxu0 %vm13935_vm2, %v18225_v43 }
 0x53a   : > { %12207 = vmatprep.subr.bf16.mxu1 %v18225_v43  ;;  %12249 = vmatprep.subr.bf16.mxu0 %v18225_v43 }
 0x53c   : > { %v1958_v33 = vpop.permute.xlu0 %1957 }
 0x53d   : > { %v1963_v16 = vsel %vm1370_vm3, %v1958_v33, 0 }
 0x53e   : > { %v2007_v0 = vpop.permute.xlu1 %2006 }
 0x53f   : > { %v2012_v15 = vsel %vm1370_vm3, %v2007_v0, 0  ;;  %12204 = vmatmul.mubr.msk.bf16.vlgmr.msra.gmra.mrb[36].mxu1 %vm1370_vm3, %v14704_v12  ;;  %12240 = vmatmul.mubr.msk.bf16.vlgmr.msra.gmra.mrb[36].mxu0 %vm1370_vm3, %v14728_v10 }
 0x540   : > { %12208 = vmatpush3.bf16.xpose.msra.mxu1 %v1669_v59  ;;  %12250 = vmatpush3.bf16.xpose.msra.mxu0 %v2012_v15  ;;  %v2056_v20 = vpop.permute.xlu0 %2055 }
 0x541   : > { %12209 = vmatprep.mubr.msk.bf16.mxu1 %vm13935_vm2, %v18225_v43  ;;  %12251 = vmatprep.mubr.msk.bf16.mxu0 %vm13935_vm2, %v18225_v43  ;;  %v2061_v28 = vsel %vm1370_vm3, %v2056_v20, 0 }
 0x542   : > { %12213 = vmatprep.subr.bf16.mxu1 %v18225_v43  ;;  %12261 = vmatprep.subr.bf16.mxu0 %v18225_v43  ;;  %v2105_v4 = vpop.permute.xlu1 %2104 }
 0x543   : > { %v2110_v50 = vsel %vm1370_vm3, %v2105_v4, 0 }
 0x544   : > { %v2364_v53 = vpop.permute.xlu0 %2363 }
 0x545   : > { %v2370_v29 = vsel %vm2368_vm4, %v2364_v53, 0 }
 0x546   : > { %v2413_v37 = vpop.permute.xlu1 %2412 }
 0x547   : > { %12210 = vmatmul.mubr.msk.bf16.vlgmr.msra.gmra.mrb[40].mxu1 %vm1370_vm3, %v14708_v49  ;;  %12252 = vmatmul.mubr.msk.bf16.vlgmr.msra.gmra.mrb[40].mxu0 %vm1370_vm3, %v14736_v11  ;;  %v2418_v32 = vsel %vm2368_vm4, %v2413_v37, 0 }
 0x548   : > { %12214 = vmatpush3.bf16.xpose.msra.mxu1 %v1718_v36  ;;  %12262 = vmatpush3.bf16.xpose.msra.mxu0 %v2110_v50 }
 0x549   : > { %12215 = vmatprep.mubr.msk.bf16.mxu1 %vm13935_vm2, %v18225_v43  ;;  %12263 = vmatprep.mubr.msk.bf16.mxu0 %vm13935_vm2, %v18225_v43 }
 0x54a   : > { %12219 = vmatprep.subr.bf16.mxu1 %v18225_v43  ;;  %12273 = vmatprep.subr.bf16.mxu0 %v18225_v43 }
 0x54f   : > { %12216 = vmatmul.mubr.msk.bf16.vlgmr.msra.gmra.mrb[44].mxu1 %vm1370_vm3, %v14712_v52  ;;  %12264 = vmatmul.mubr.msk.bf16.vlgmr.msra.gmra.mrb[44].mxu0 %vm1370_vm3, %v14744_v51 }
 0x550   : > { %12220 = vmatpush3.bf16.xpose.msra.mxu1 %v1767_v47  ;;  %12274 = vmatpush3.bf16.msra.mxu0 %v2418_v32 }
 0x551   : > { %12221 = vmatprep.mubr.msk.bf16.mxu1 %vm13935_vm2, %v18225_v43  ;;  %12231 = vmatprep.subr.bf16.mxu1 %v18225_v43 }
 0x552   : > { %12275 = vmatprep.mubr.msk.bf16.mxu0 %vm13935_vm2, %v18225_v43  ;;  %12285 = vmatprep.subr.bf16.mxu0 %v18225_v43 }
 0x557   : > { %12222 = vmatmul.mubr.msk.bf16.vlgmr.msra.gmra.mrb[48].mxu1 %vm1370_vm3, %v14718_v35 }
 0x558   : > { %12232 = vmatpush3.bf16.xpose.msra.mxu1 %v1865_v31  ;;  %12233 = vmatprep.mubr.msk.bf16.mxu1 %vm13935_vm2, %v18225_v43 }
 0x559   : > { %12243 = vmatprep.subr.bf16.mxu1 %v18225_v43 }
 0x55f   : > { %12234 = vmatmul.mubr.msk.bf16.vlgmr.msra.gmra.mrb[52].mxu1 %vm1370_vm3, %v14724_v58 }
 0x560   : > { %12244 = vmatpush3.bf16.xpose.msra.mxu1 %v1963_v16  ;;  %12245 = vmatprep.mubr.msk.bf16.mxu1 %vm13935_vm2, %v18225_v43 }
 0x561   : > { %12255 = vmatprep.subr.bf16.mxu1 %v18225_v43 }
 0x567   : > { %12246 = vmatmul.mubr.msk.bf16.vlgmr.msra.gmra.mrb[56].mxu1 %vm1370_vm3, %v14734_v18 }
 0x568   : > { %12256 = vmatpush3.bf16.xpose.msra.mxu1 %v2061_v28  ;;  %12257 = vmatprep.mubr.msk.bf16.mxu1 %vm13935_vm2, %v18225_v43 }
 0x569   : > { %12267 = vmatprep.subr.bf16.mxu1 %v18225_v43 }
 0x56f   : > { %12258 = vmatmul.mubr.msk.bf16.vlgmr.msra.gmra.mrb[60].mxu1 %vm1370_vm3, %v14740_v8 }
 0x570   : > { %12268 = vmatpush3.bf16.msra.mxu1 %v2370_v29  ;;  %12269 = vmatprep.mubr.msk.bf16.mxu1 %vm13935_vm2, %v18225_v43 }
 0x571   : > { %12279 = vmatprep.subr.bf16.mxu1 %v18225_v43 }
 0x5ea   : > { %v1411_v62 = vpop.f32.mrb[16].mxu1 }
 0x5eb   : > { %v12175_v24 = vpop.f32.mrb[17].mxu1  ;;  %v14880_v3 = vsel %vm946_vm5, %v1411_v62, -1e+30 }
 0x5ec   : > { %v1414_v61 = vpop.f32.mrb[18].mxu1  ;;  %v2171_v40 = vsel %vm2170_vm6, %v14880_v3, -inf }
 0x5ed   : > { %v12176_v54 = vpop.f32.mrb[19].mxu1  ;;  %2172 = vmax.xlane.f32.xlu0 %v2171_v40 }
 0x5f2   : > { %v1460_v0 = vpop.f32.mrb[20].mxu1 }
 0x5f3   : > { %v12181_v59 = vpop.f32.mrb[21].mxu1  ;;  %v14886_v56 = vsel %vm946_vm5, %v1460_v0, -1e+30 }
 0x5f4   : > { %v1463_v15 = vpop.f32.mrb[22].mxu1  ;;  %v2174_v4 = vsel %vm2170_vm6, %v14886_v56, -inf }
 0x5f5   : > { %2175 = vmax.xlane.f32.xlu1 %v2174_v4  ;;  %v12182_v36 = vpop.f32.mrb[23].mxu1 }
 0x5fa   : > { %v1509_v50 = vpop.f32.mrb[24].mxu1 }
 0x5fb   : > { %v12187_v19 = vpop.f32.mrb[25].mxu1  ;;  %v14892_v37 = vsel %vm946_vm5, %v1509_v50, -1e+30 }
 0x5fc   : > { %v1512_v47 = vpop.f32.mrb[26].mxu1  ;;  %v2177_v32 = vsel %vm2170_vm6, %v14892_v37, -inf }
 0x5fd   : > { %2178 = vmax.xlane.f32.xlu0 %v2177_v32  ;;  %v12188_v17 = vpop.f32.mrb[27].mxu1 }
 0x602   : > { %v1558_v31 = vpop.f32.mrb[28].mxu1 }
 0x603   : > { %v12193_v33 = vpop.f32.mrb[29].mxu1  ;;  %v14898_v16 = vsel %vm946_vm5, %v1558_v31, -1e+30 }
 0x604   : > { %v1561_v20 = vpop.f32.mrb[30].mxu1  ;;  %v2180_v28 = vsel %vm2170_vm6, %v14898_v16, -inf }
 0x605   : > { %2181 = vmax.xlane.f32.xlu0 %v2180_v28  ;;  %v12194_v53 = vpop.f32.mrb[31].mxu1 }
 0x60a   : > { %v1607_v29 = vpop.f32.mrb[32].mxu1  ;;  %v1852_v62 = vpop.f32.mrb[32].mxu0 }
 0x60b   : > { %v12199_v24 = vpop.f32.mrb[33].mxu1  ;;  %v12229_v61 = vpop.f32.mrb[33].mxu0  ;;  %v14904_v40 = vsel %vm946_vm5, %v1607_v29, -1e+30  ;;  %v14908_v54 = vsel %vm946_vm5, %v1852_v62, -1e+30 }
 0x60c   : > { %v1610_v0 = vpop.f32.mrb[34].mxu1  ;;  %v1855_v59 = vpop.f32.mrb[34].mxu0  ;;  %v2183_v15 = vsel %vm2170_vm6, %v14904_v40, -inf  ;;  %v2198_v4 = vsel %vm2170_vm6, %v14908_v54, -inf }
 0x60d   : > { %2184 = vmax.xlane.f32.xlu0 %v2183_v15  ;;  %v12200_v36 = vpop.f32.mrb[35].mxu1  ;;  %2199 = vmax.xlane.f32.xlu1 %v2198_v4  ;;  %v12230_v50 = vpop.f32.mrb[35].mxu0 }
 0x612   : > { %v1656_v19 = vpop.f32.mrb[36].mxu1  ;;  %v1950_v47 = vpop.f32.mrb[36].mxu0 }
 0x613   : > { %v12205_v32 = vpop.f32.mrb[37].mxu1  ;;  %v12241_v17 = vpop.f32.mrb[37].mxu0  ;;  %v14916_v31 = vsel %vm946_vm5, %v1656_v19, -1e+30  ;;  %v14922_v62 = vsel %vm946_vm5, %v1950_v47, -1e+30 }
 0x614   : > { %v1659_v33 = vpop.f32.mrb[38].mxu1  ;;  %v1953_v20 = vpop.f32.mrb[38].mxu0  ;;  %v2186_v28 = vsel %vm2170_vm6, %v14916_v31, -inf  ;;  %v2204_v24 = vsel %vm2170_vm6, %v14922_v62, -inf }
 0x615   : > { %v12206_v53 = vpop.f32.mrb[39].mxu1  ;;  %2187 = vmax.xlane.f32.xlu1 %v2186_v28  ;;  %v12242_v29 = vpop.f32.mrb[39].mxu0 }
 0x619   : > { %2205 = vmax.xlane.f32.xlu1 %v2204_v24 }
 0x61a   : > { %v1705_v61 = vpop.f32.mrb[40].mxu1  ;;  %v2048_v0 = vpop.f32.mrb[40].mxu0 }
 0x61b   : > { %v12211_v59 = vpop.f32.mrb[41].mxu1  ;;  %v12253_v15 = vpop.f32.mrb[41].mxu0  ;;  %v14928_v4 = vsel %vm946_vm5, %v1705_v61, -1e+30  ;;  %v14932_v36 = vsel %vm946_vm5, %v2048_v0, -1e+30 }
 0x61c   : > { %v1708_v50 = vpop.f32.mrb[42].mxu1  ;;  %v2051_v19 = vpop.f32.mrb[42].mxu0  ;;  %v2189_v47 = vsel %vm2170_vm6, %v14928_v4, -inf  ;;  %v2210_v32 = vsel %vm2170_vm6, %v14932_v36, -inf }
 0x61d   : > { %2190 = vmax.xlane.f32.xlu0 %v2189_v47  ;;  %v12212_v17 = vpop.f32.mrb[43].mxu1  ;;  %2211 = vmax.xlane.f32.xlu1 %v2210_v32  ;;  %v12254_v33 = vpop.f32.mrb[43].mxu0 }
 0x622   : > { %v1754_v20 = vpop.f32.mrb[44].mxu1  ;;  %v2146_v28 = vpop.f32.mrb[44].mxu0 }
 0x623   : > { %v12217_v53 = vpop.f32.mrb[45].mxu1  ;;  %v12265_v29 = vpop.f32.mrb[45].mxu0  ;;  %v14940_v24 = vsel %vm946_vm5, %v1754_v20, -1e+30  ;;  %v14946_v19 = vsel %vm946_vm5, %v2146_v28, -1e+30 }
 0x624   : > { %v1757_v61 = vpop.f32.mrb[46].mxu1  ;;  %v2149_v0 = vpop.f32.mrb[46].mxu0  ;;  %v2192_v59 = vsel %vm2170_vm6, %v14940_v24, -inf  ;;  %v2216_v47 = vsel %vm2170_vm6, %v14946_v19, -inf }
 0x625   : > { %v12218_v15 = vpop.f32.mrb[47].mxu1  ;;  %2193 = vmax.xlane.f32.xlu1 %v2192_v59  ;;  %v12266_v50 = vpop.f32.mrb[47].mxu0 }
 0x629   : > { %2217 = vmax.xlane.f32.xlu1 %v2216_v47 }
 0x62a   : > { %v1803_v32 = vpop.f32.mrb[48].mxu1 }
 0x62b   : > { %v12223_v17 = vpop.f32.mrb[49].mxu1  ;;  %v14952_v33 = vsel %vm946_vm5, %v1803_v32, -1e+30 }
 0x62c   : > { %v1806_v20 = vpop.f32.mrb[50].mxu1  ;;  %v2195_v53 = vsel %vm2170_vm6, %v14952_v33, -inf }
 0x62d   : > { %2196 = vmax.xlane.f32.xlu0 %v2195_v53  ;;  %v12224_v29 = vpop.f32.mrb[51].mxu1 }
 0x632   : > { %v1901_v61 = vpop.f32.mrb[52].mxu1 }
 0x633   : > { %v12235_v0 = vpop.f32.mrb[53].mxu1  ;;  %v14958_v28 = vsel %vm946_vm5, %v1901_v61, -1e+30 }
 0x634   : > { %v1904_v59 = vpop.f32.mrb[54].mxu1  ;;  %v2201_v15 = vsel %vm2170_vm6, %v14958_v28, -inf }
 0x635   : > { %2202 = vmax.xlane.f32.xlu0 %v2201_v15  ;;  %v12236_v50 = vpop.f32.mrb[55].mxu1 }
 0x63a   : > { %v1999_v47 = vpop.f32.mrb[56].mxu1  ;;  %2988 = vrot.lane.b32.xlu1 %v14736_v11, %s13937_s16 }
 0x63b   : > { %v12247_v32 = vpop.f32.mrb[57].mxu1  ;;  %v14966_v17 = vsel %vm946_vm5, %v1999_v47, -1e+30  ;;  %v14978_v47 = vpop.permute.xlu1 %2508 }
 0x63c   : > { %v2002_v20 = vpop.f32.mrb[58].mxu1  ;;  %v2207_v53 = vsel %vm2170_vm6, %v14966_v17, -inf }
 0x63d   : > { %2208 = vmax.xlane.f32.xlu0 %v2207_v53  ;;  %v12248_v29 = vpop.f32.mrb[59].mxu1  ;;  %v14980_v20 = vpop.permute.xlu0 %2460 }
 0x63f   : > { %v14982_v53 = vpop.permute.xlu1 %2604 }
 0x641   : > { %v14984_v29 = vpop.permute.xlu0 %2556 }
 0x642   : > { %v2097_v61 = vpop.f32.mrb[60].mxu1 }
 0x643   : > { %v12259_v0 = vpop.f32.mrb[61].mxu1  ;;  %v14972_v59 = vsel %vm946_vm5, %v2097_v61, -1e+30 }
 0x644   : > { %v2100_v15 = vpop.f32.mrb[62].mxu1  ;;  %v2213_v50 = vsel %vm2170_vm6, %v14972_v59, -inf  ;;  %v14986_v0 = vpop.permute.xlu1 %2700 }
 0x645   : > { %2214 = vmax.xlane.f32.xlu0 %v2213_v50  ;;  %v12260_v32 = vpop.f32.mrb[63].mxu1  ;;  %v14988_v61 = vpop.permute.xlu0 %2652 }
 0x648   : > { %v14990_v15 = vpop.permute.xlu1 %2796 }
 0x649   : > { %v14992_v1 = vpop.permute.xlu0 %2748 }
 0x64c   : > { %v14994_v50 = vpop.permute.xlu1 %2844 }
 0x650   : > { %v14997_v34 = vpop.permute.xlu1 %2892 }
 0x65b   : > { %2940 = vrot.lane.b32.xlu0 %v14734_v18, %s13937_s16 }
 0x67a   : > { %v2173_v32 = vpop.xlane.xlu0 %2172 }
 0x67b   : > { %v2219_v45 = vsub.f32 %v14880_v3, %v2173_v32 }
 0x67d   : > { %v2235_v41 = vmul.f32 1.442695, %v2219_v45 }
 0x67f   : > { %13339 = vpow2.f32 %v2235_v41 }
 0x682   : > { %v2176_v43 = vpop.xlane.xlu1 %2175 }
 0x683   : > { %v2220_v9 = vsub.f32 %v14886_v56, %v2176_v43 }
 0x685   : > { %v2237_v2 = vmul.f32 1.442695, %v2220_v9 }
 0x687   : > { %13341 = vpow2.f32 %v2237_v2 }
 0x689   : > { %v15000_v7 = vpop.eup %13339 }
 0x68a   : > { %v2179_v57 = vpop.xlane.xlu0 %2178  ;;  %v2267_v23 = vsel %vm2170_vm6, %v15000_v7, 0.0 }
 0x68b   : > { %v2221_v22 = vsub.f32 %v14892_v37, %v2179_v57  ;;  %2268 = vadd.xlane.f32.xlu0 %v2267_v23 }
 0x68d   : > { %v2239_v27 = vmul.f32 1.442695, %v2221_v22 }
 0x68f   : > { %13343 = vpow2.f32 %v2239_v27 }
 0x691   : > { %v15005_v45 = vpop.eup %13341 }
 0x692   : > { %v2182_v3 = vpop.xlane.xlu0 %2181  ;;  %v2270_v41 = vsel %vm2170_vm6, %v15005_v45, 0.0 }
 0x693   : > { %v2222_v9 = vsub.f32 %v14898_v16, %v2182_v3  ;;  %2271 = vadd.xlane.f32.xlu1 %v2270_v41 }
 0x695   : > { %v2241_v2 = vmul.f32 1.442695, %v2222_v9 }
 0x697   : > { %13345 = vpow2.f32 %v2241_v2 }
 0x699   : > { %v15010_v43 = vpop.eup %13343 }
 0x69a   : > { %v2185_v56 = vpop.xlane.xlu0 %2184  ;;  %v2200_v32 = vpop.xlane.xlu1 %2199  ;;  %v2273_v23 = vsel %vm2170_vm6, %v15010_v43, 0.0 }
 0x69b   : > { %v2223_v22 = vsub.f32 %v14904_v40, %v2185_v56  ;;  %v2228_v27 = vsub.f32 %v14908_v54, %v2200_v32  ;;  %2274 = vadd.xlane.f32.xlu0 %v2273_v23 }
 0x69d   : > { %v2243_v57 = vmul.f32 1.442695, %v2223_v22  ;;  %v2253_v37 = vmul.f32 1.442695, %v2228_v27 }
 0x69f   : > { %13347 = vpow2.f32 %v2243_v57 }
 0x6a0   : > { %13349 = vpow2.f32 %v2253_v37 }
 0x6a1   : > { %v15016_v13 = vpop.eup %13345 }
 0x6a2   : > { %v2188_v16 = vpop.xlane.xlu1 %2187  ;;  %v2276_v3 = vsel %vm2170_vm6, %v15016_v13, 0.0 }
 0x6a3   : > { %v2224_v41 = vsub.f32 %v14916_v31, %v2188_v16  ;;  %2277 = vadd.xlane.f32.xlu1 %v2276_v3 }
 0x6a5   : > { %v2245_v9 = vmul.f32 1.442695, %v2224_v41 }
 0x6a6   : > { %v2206_v2 = vpop.xlane.xlu1 %2205 }
 0x6a7   : > { %13351 = vpow2.f32 %v2245_v9  ;;  %v2230_v40 = vsub.f32 %v14922_v62, %v2206_v2 }
 0x6a9   : > { %v15022_v54 = vpop.eup %13347  ;;  %v2257_v56 = vmul.f32 1.442695, %v2230_v40 }
 0x6aa   : > { %v2191_v32 = vpop.xlane.xlu0 %2190  ;;  %v2212_v23 = vpop.xlane.xlu1 %2211  ;;  %v2279_v22 = vsel %vm2170_vm6, %v15022_v54, 0.0 }
 0x6ab   : > { %v15026_v27 = vpop.eup %13349  ;;  %13353 = vpow2.f32 %v2257_v56  ;;  %v2225_v57 = vsub.f32 %v14928_v4, %v2191_v32  ;;  %v2232_v31 = vsub.f32 %v14932_v36, %v2212_v23  ;;  %2280 = vadd.xlane.f32.xlu0 %v2279_v22 }
 0x6ac   : > { %v2294_v62 = vsel %vm2170_vm6, %v15026_v27, 0.0 }
 0x6ad   : > { %v2247_v37 = vmul.f32 1.442695, %v2225_v57  ;;  %v2261_v16 = vmul.f32 1.442695, %v2232_v31 }
 0x6af   : > { %13355 = vpow2.f32 %v2247_v37  ;;  %2295 = vadd.xlane.f32.xlu0 %v2294_v62 }
 0x6b0   : > { %13357 = vpow2.f32 %v2261_v16 }
 0x6b1   : > { %v15032_v3 = vpop.eup %13351 }
 0x6b2   : > { %v2282_v41 = vsel %vm2170_vm6, %v15032_v3, 0.0  ;;  %v2194_v32 = vpop.xlane.xlu1 %2193 }
 0x6b3   : > { %2283 = vadd.xlane.f32.xlu1 %v2282_v41  ;;  %v2226_v23 = vsub.f32 %v14940_v24, %v2194_v32 }
 0x6b5   : > { %v15036_v9 = vpop.eup %13353  ;;  %v2249_v57 = vmul.f32 1.442695, %v2226_v23 }
 0x6b6   : > { %v2300_v4 = vsel %vm2170_vm6, %v15036_v9, 0.0  ;;  %v2218_v16 = vpop.xlane.xlu1 %2217 }
 0x6b7   : > { %2301 = vadd.xlane.f32.xlu0 %v2300_v4  ;;  %13359 = vpow2.f32 %v2249_v57 }
 0x6b9   : > { %v15040_v36 = vpop.eup %13355 }
 0x6ba   : > { %v2285_v2 = vsel %vm2170_vm6, %v15040_v36, 0.0  ;;  %v15044_v40 = vpop.eup %13357  ;;  %v2197_v22 = vpop.xlane.xlu0 %2196 }
 0x6bb   : > { %2286 = vadd.xlane.f32.xlu0 %v2285_v2  ;;  %v2306_v56 = vsel %vm2170_vm6, %v15044_v40, 0.0  ;;  %v2227_v31 = vsub.f32 %v14952_v33, %v2197_v22  ;;  %v2234_v2 = vsub.f32 %v14946_v19, %v2218_v16 }
 0x6bd   : > { %v2251_v62 = vmul.f32 1.442695, %v2227_v31  ;;  %v2265_v32 = vmul.f32 1.442695, %v2234_v2  ;;  %v15092_v2 = vpop.permute.xlu1 %2988 }
 0x6bf   : > { %2307 = vadd.xlane.f32.xlu0 %v2306_v56  ;;  %13361 = vpow2.f32 %v2251_v62 }
 0x6c1   : > { %v15057_v46 = vpop.eup %13359 }
 0x6c2   : > { %v2203_v37 = vpop.xlane.xlu0 %2202  ;;  %v2288_v33 = vsel %vm2170_vm6, %v15057_v46, 0.0 }
 0x6c3   : > { %v2229_v41 = vsub.f32 %v14958_v28, %v2203_v37 }
 0x6c4   : > { %3084 = vrot.lane.b32.xlu1 %v14744_v51, %s13937_s16 }
 0x6c5   : > { %v2255_v56 = vmul.f32 1.442695, %v2229_v41 }
 0x6c7   : > { %13363 = vpow2.f32 %v2255_v56 }
 0x6c8   : > { %13365 = vpow2.f32 %v2265_v32 }
 0x6c9   : > { %v15061_v23 = vpop.eup %13361 }
 0x6ca   : > { %v2209_v4 = vpop.xlane.xlu0 %2208  ;;  %v2291_v19 = vsel %vm2170_vm6, %v15061_v23, 0.0 }
 0x6cb   : > { %v2231_v24 = vsub.f32 %v14966_v17, %v2209_v4 }
 0x6cd   : > { %v2259_v63 = vmul.f32 1.442695, %v2231_v24 }
 0x6cf   : > { %13367 = vpow2.f32 %v2259_v63 }
 0x6d1   : > { %v15065_v28 = vpop.eup %13363 }
 0x6d2   : > { %v15067_v17 = vpop.eup %13365  ;;  %v2297_v22 = vsel %vm2170_vm6, %v15065_v28, 0.0  ;;  %v2215_v37 = vpop.xlane.xlu0 %2214 }
 0x6d3   : > { %v2312_v31 = vsel %vm2170_vm6, %v15067_v17, 0.0  ;;  %v2233_v16 = vsub.f32 %v14972_v59, %v2215_v37 }
 0x6d5   : > { %3036 = vrot.lane.b32.xlu0 %v14740_v8, %s13937_s16  ;;  %v2263_v41 = vmul.f32 1.442695, %v2233_v16  ;;  %v2514_v16 = vsel %vm2368_vm4, %v14978_v47, 0 }
 0x6d6   : > { %v15086_v62 = vpop.permute.xlu0 %2940 }
 0x6d9   : > { %v15071_v57 = vpop.eup %13367 }
 0x6da   : > { %v2303_v63 = vsel %vm2170_vm6, %v15071_v57, 0.0 }
 0x6e8   : > { %2289 = vadd.xlane.f32.xlu1 %v2288_v33 }
 0x6ec   : > { %2292 = vadd.xlane.f32.xlu1 %v2291_v19  ;;  %v2466_v19 = vsel %vm2368_vm4, %v14980_v20, 0 }
 0x6f0   : > { %2298 = vadd.xlane.f32.xlu1 %v2297_v22 }
 0x6f4   : > { %2304 = vadd.xlane.f32.xlu1 %v2303_v63  ;;  %2313 = vadd.xlane.f32.xlu0 %v2312_v31 }
 0x705   : > { %3192 = vrot.lane.b32.xlu1 %v14688_v42, %s13938_s15 }
 0x70a   : > { %3142 = vrot.lane.b32.xlu0 %v14686_v21, %s13938_s15 }
 0x70e   : > { %3140 = vrot.lane.b32.xlu0 %v14686_v21, %s18241_s27 }
 0x712   : > { %3242 = vrot.lane.b32.xlu0 %v14694_v26, %s13938_s15 }
 0x716   : > { %3240 = vrot.lane.b32.xlu0 %v14694_v26, %s18241_s27 }
 0x718   : > { %v2269_v4 = vpop.xlane.xlu0 %2268 }
 0x719   : > { %13369 = vrcp.f32 %v2269_v4 }
 0x71a   : > { %3342 = vrot.lane.b32.xlu0 %v14702_v38, %s13938_s15  ;;  %13371 = vpow2.f32 %v2263_v41 }
 0x71e   : > { %3340 = vrot.lane.b32.xlu0 %v14702_v38, %s18241_s27 }
 0x720   : > { %v2272_v56 = vpop.xlane.xlu1 %2271 }
 0x721   : > { %13373 = vrcp.f32 %v2272_v56  ;;  %v2562_v56 = vsel %vm2368_vm4, %v14984_v29, 0 }
 0x722   : > { %3442 = vrot.lane.b32.xlu0 %v14708_v49, %s13938_s15 }
 0x723   : > { %v13370_v59 = vpop.eup %13369 }
 0x724   : > { %v2331_v24 = vmul.f32 %v13370_v59, %v15000_v7  ;;  %v15099_v32 = vpop.eup %13371  ;;  %v18274_v7 = vmov 0.0  }
 0x725   : > { %v2309_v63 = vsel %vm2170_vm6, %v15099_v32, 0.0 }
 0x726   : > { %3440 = vrot.lane.b32.xlu0 %v14708_v49, %s18241_s27  ;;  %v2347_v33 = vpack.c.bf16 %v2331_v24, %v2331_v24 }
 0x728   : > { %12270 = vmatmul.mubr.msk.bf16.vlgmr.msra.gmra.mrb[64].mxu1 %vm2170_vm6, %v2347_v33  ;;  %v2275_v22 = vpop.xlane.xlu0 %2274  ;;  %v2610_v33 = vsel %vm2368_vm4, %v14982_v53, 0 }
 0x729   : > { %12280 = vmatpush3.bf16.msra.mxu1 %v2466_v19  ;;  %13375 = vrcp.f32 %v2275_v22  ;;  %2310 = vadd.xlane.f32.xlu1 %v2309_v63 }
 0x72a   : > { %3542 = vrot.lane.b32.xlu0 %v14718_v35, %s13938_s15  ;;  %12281 = vmatprep.mubr.msk.bf16.mxu1 %vm13935_vm2, %v18274_v7 }
 0x72b   : > { %v13374_v31 = vpop.eup %13373  ;;  %12291 = vmatprep.subr.bf16.mxu1 %v18274_v7 }
 0x72c   : > { %v2332_v20 = vmul.f32 %v13374_v31, %v15005_v45 }
 0x72e   : > { %3540 = vrot.lane.b32.xlu0 %v14718_v35, %s18241_s27  ;;  %v2348_v37 = vpack.c.bf16 %v2332_v20, %v2332_v20  ;;  %v2658_v20 = vsel %vm2368_vm4, %v14988_v61, 0 }
 0x730   : > { %12276 = vmatmul.mubr.msk.bf16.vlgmr.msra.gmra.mrb[48].mxu0 %vm2170_vm6, %v2348_v37  ;;  %v2278_v41 = vpop.xlane.xlu1 %2277 }
 0x731   : > { %12286 = vmatpush3.bf16.msra.mxu0 %v2514_v16  ;;  %13377 = vrcp.f32 %v2278_v41  ;;  %12287 = vmatprep.mubr.msk.bf16.mxu0 %vm13935_vm2, %v18274_v7  ;;  %v2706_v41 = vsel %vm2368_vm4, %v14986_v0, 0 }
 0x732   : > { %3642 = vrot.lane.b32.xlu0 %v14724_v58, %s13938_s15  ;;  %12297 = vmatprep.subr.bf16.mxu0 %v18274_v7 }
 0x733   : > { %v13376_v45 = vpop.eup %13375 }
 0x734   : > { %v2333_v4 = vmul.f32 %v13376_v45, %v15010_v43 }
 0x736   : > { %3640 = vrot.lane.b32.xlu0 %v14724_v58, %s18241_s27  ;;  %v2349_v47 = vpack.c.bf16 %v2333_v4, %v2333_v4 }
 0x738   : > { %12282 = vmatmul.mubr.msk.bf16.vlgmr.msra.gmra.mrb[68].mxu1 %vm2170_vm6, %v2349_v47  ;;  %v2281_v59 = vpop.xlane.xlu0 %2280 }
 0x739   : > { %12292 = vmatpush3.bf16.msra.mxu1 %v2562_v56  ;;  %13379 = vrcp.f32 %v2281_v59  ;;  %12293 = vmatprep.mubr.msk.bf16.mxu1 %vm13935_vm2, %v18274_v7 }
 0x73a   : > { %3190 = vrot.lane.b32.xlu1 %v14688_v42, %s18241_s27  ;;  %3742 = vrot.lane.b32.xlu0 %v14734_v18, %s13938_s15 }
 0x73b   : > { %v13378_v43 = vpop.eup %13377  ;;  %12303 = vmatprep.subr.bf16.mxu1 %v18274_v7 }
 0x73c   : > { %v2334_v24 = vmul.f32 %v13378_v43, %v15016_v13  ;;  %v2296_v19 = vpop.xlane.xlu0 %2295  ;;  %v2802_v43 = vsel %vm2368_vm4, %v14990_v15, 0 }
 0x73e   : > { %3292 = vrot.lane.b32.xlu1 %v14698_v14, %s13938_s15  ;;  %3740 = vrot.lane.b32.xlu0 %v14734_v18, %s18241_s27  ;;  %v2350_v29 = vpack.c.bf16 %v2334_v24, %v2334_v24 }
 0x740   : > { %12288 = vmatmul.mubr.msk.bf16.vlgmr.msra.gmra.mrb[52].mxu0 %vm2170_vm6, %v2350_v29  ;;  %v2284_v22 = vpop.xlane.xlu1 %2283  ;;  %v2850_v29 = vsel %vm2368_vm4, %v14994_v50, 0 }
 0x741   : > { %12298 = vmatpush3.bf16.msra.mxu0 %v2610_v33  ;;  %13381 = vrcp.f32 %v2284_v22  ;;  %12299 = vmatprep.mubr.msk.bf16.mxu0 %vm13935_vm2, %v18274_v7 }
 0x742   : > { %3290 = vrot.lane.b32.xlu1 %v14698_v14, %s18241_s27  ;;  %3842 = vrot.lane.b32.xlu0 %v14740_v8, %s13938_s15 }
 0x743   : > { %v13380_v13 = vpop.eup %13379  ;;  %12309 = vmatprep.subr.bf16.mxu0 %v18274_v7 }
 0x744   : > { %v2302_v63 = vpop.xlane.xlu0 %2301  ;;  %v2335_v53 = vmul.f32 %v13380_v13, %v15022_v54 }
 0x746   : > { %3392 = vrot.lane.b32.xlu1 %v14704_v12, %s13938_s15  ;;  %3840 = vrot.lane.b32.xlu0 %v14740_v8, %s18241_s27  ;;  %v2351_v31 = vpack.c.bf16 %v2335_v53, %v2335_v53 }
 0x748   : > { %12294 = vmatmul.mubr.msk.bf16.vlgmr.msra.gmra.mrb[72].mxu1 %vm2170_vm6, %v2351_v31  ;;  %v2287_v37 = vpop.xlane.xlu0 %2286 }
 0x749   : > { %12304 = vmatpush3.bf16.msra.mxu1 %v2658_v20  ;;  %13383 = vrcp.f32 %v2287_v37  ;;  %12305 = vmatprep.mubr.msk.bf16.mxu1 %vm13935_vm2, %v18274_v7 }
 0x74a   : > { %3390 = vrot.lane.b32.xlu1 %v14704_v12, %s18241_s27  ;;  %4148 = vrot.lane.b32.xlu0 %v14686_v21, %s18239_s28 }
 0x74b   : > { %v13382_v54 = vpop.eup %13381  ;;  %12315 = vmatprep.subr.bf16.mxu1 %v18274_v7 }
 0x74c   : > { %v2336_v61 = vmul.f32 %v13382_v54, %v15032_v3  ;;  %v2754_v3 = vsel %vm2368_vm4, %v14992_v1, 0  ;;  %v15205_v1 = vpop.permute.xlu1 %3084 }
 0x74d   : > { %v3090_v54 = vsel %vm2368_vm4, %v15205_v1, 0 }
 0x74e   : > { %3492 = vrot.lane.b32.xlu1 %v14712_v52, %s13938_s15  ;;  %4244 = vrot.lane.b32.xlu0 %v14694_v26, %s18239_s28  ;;  %v2352_v16 = vpack.c.bf16 %v2336_v61, %v2336_v61 }
 0x750   : > { %12300 = vmatmul.mubr.msk.bf16.vlgmr.msra.gmra.mrb[56].mxu0 %vm2170_vm6, %v2352_v16 }
 0x751   : > { %12310 = vmatpush3.bf16.msra.mxu0 %v2706_v41  ;;  %12311 = vmatprep.mubr.msk.bf16.mxu0 %vm13935_vm2, %v18274_v7 }
 0x752   : > { %3490 = vrot.lane.b32.xlu1 %v14712_v52, %s18241_s27  ;;  %4340 = vrot.lane.b32.xlu0 %v14702_v38, %s18239_s28 }
 0x753   : > { %v13384_v21 = vpop.eup %13383  ;;  %12321 = vmatprep.subr.bf16.mxu0 %v18274_v7 }
 0x754   : > { %v2337_v26 = vmul.f32 %v13384_v21, %v15040_v36 }
 0x756   : > { %3592 = vrot.lane.b32.xlu1 %v14720_v44, %s13938_s15  ;;  %4436 = vrot.lane.b32.xlu0 %v14708_v49, %s18239_s28  ;;  %v2353_v0 = vpack.c.bf16 %v2337_v26, %v2337_v26 }
 0x758   : > { %12306 = vmatmul.mubr.msk.bf16.vlgmr.msra.gmra.mrb[76].mxu1 %vm2170_vm6, %v2353_v0 }
 0x759   : > { %12316 = vmatpush3.bf16.msra.mxu1 %v2754_v3  ;;  %12317 = vmatprep.mubr.msk.bf16.mxu1 %vm13935_vm2, %v18274_v7 }
 0x75a   : > { %3590 = vrot.lane.b32.xlu1 %v14720_v44, %s18241_s27  ;;  %12327 = vmatprep.subr.bf16.mxu1 %v18274_v7 }
 0x75e   : > { %3692 = vrot.lane.b32.xlu1 %v14728_v10, %s13938_s15 }
 0x762   : > { %3690 = vrot.lane.b32.xlu1 %v14728_v10, %s18241_s27 }
 0x766   : > { %3792 = vrot.lane.b32.xlu1 %v14736_v11, %s13938_s15 }
 0x76a   : > { %3790 = vrot.lane.b32.xlu1 %v14736_v11, %s18241_s27 }
 0x76e   : > { %3892 = vrot.lane.b32.xlu1 %v14744_v51, %s13938_s15 }
 0x772   : > { %3890 = vrot.lane.b32.xlu1 %v14744_v51, %s18241_s27  ;;  %s405_s27 = scalar_lea.vmem [#allocation5], %s11466_s26 }
 0x775   : > { %v2290_v38 = vpop.xlane.xlu1 %2289 }
 0x776   : > { %13385 = vrcp.f32 %v2290_v38  ;;  %4196 = vrot.lane.b32.xlu1 %v14688_v42, %s18239_s28 }
 0x777   : > { %13387 = vrcp.f32 %v2296_v19 }
 0x779   : > { %v2293_v49 = vpop.xlane.xlu1 %2292 }
 0x77a   : > { %13389 = vrcp.f32 %v2293_v49  ;;  %4292 = vrot.lane.b32.xlu1 %v14698_v14, %s18239_s28  ;;  %v2308_v14 = vpop.xlane.xlu0 %2307 }
 0x77d   : > { %v2299_v36 = vpop.xlane.xlu1 %2298 }
 0x77e   : > { %13391 = vrcp.f32 %v2299_v36  ;;  %4388 = vrot.lane.b32.xlu1 %v14704_v12, %s18239_s28  ;;  %v3037_v15 = vpop.permute.xlu0 %3036 }
 0x77f   : > { %13393 = vrcp.f32 %v2302_v63  ;;  %v3042_v37 = vsel %vm2368_vm4, %v3037_v15, 0 }
 0x780   : > { %v13386_v45 = vpop.eup %13385 }
 0x781   : > { %v2338_v4 = vmul.f32 %v13386_v45, %v15057_v46  ;;  %v13388_v47 = vpop.eup %13387  ;;  %v2305_v42 = vpop.xlane.xlu1 %2304 }
 0x782   : > { %4484 = vrot.lane.b32.xlu1 %v14712_v52, %s18239_s28  ;;  %13395 = vrcp.f32 %v2305_v42  ;;  %v2340_v12 = vmul.f32 %v13388_v47, %v15026_v27  ;;  %v2898_v27 = vsel %vm2368_vm4, %v14997_v34, 0  ;;  %v2314_v50 = vpop.xlane.xlu0 %2313 }
 0x783   : > { %v2354_v56 = vpack.c.bf16 %v2338_v4, %v2338_v4  ;;  %13397 = vrcp.f32 %v2308_v14 }
 0x784   : > { %v13390_v59 = vpop.eup %13389  ;;  %13399 = vrcp.f32 %v2314_v50 }
 0x785   : > { %12312 = vmatmul.mubr.msk.bf16.vlgmr.msra.gmra.mrb[60].mxu0 %vm2170_vm6, %v2354_v56  ;;  %v2339_v24 = vmul.f32 %v13390_v59, %v15061_v23  ;;  %v2356_v23 = vpack.c.bf16 %v2340_v12, %v2340_v12  ;;  %v3193_v16 = vpop.permute.xlu1 %3192 }
 0x786   : > { %12322 = vmatpush3.bf16.msra.mxu0 %v2802_v43  ;;  %12323 = vmatprep.mubr.msk.bf16.mxu0 %vm13935_vm2, %v18274_v7  ;;  %v3143_v61 = vpop.permute.xlu0 %3142  ;;  %v3198_v21 = vsel %vm1370_vm3, %v3193_v16, 0 }
 0x787   : > { %v2355_v46 = vpack.c.bf16 %v2339_v24, %v2339_v24  ;;  %12333 = vmatprep.subr.bf16.mxu0 %v18274_v7  ;;  %v3148_v59 = vsel %vm1370_vm3, %v3143_v61, 0 }
 0x788   : > { %v13392_v52 = vpop.eup %13391 }
 0x789   : > { %12318 = vmatmul.mubr.msk.bf16.vlgmr.msra.gmra.mrb[80].mxu1 %vm2170_vm6, %v2355_v46  ;;  %v2341_v33 = vmul.f32 %v13392_v52, %v15065_v28  ;;  %v13394_v19 = vpop.eup %13393  ;;  %v2946_v28 = vsel %vm2368_vm4, %v15086_v62, 0 }
 0x78a   : > { %12328 = vmatpush3.bf16.msra.mxu1 %v2850_v29  ;;  %12329 = vmatprep.mubr.msk.bf16.mxu1 %vm13935_vm2, %v18274_v7  ;;  %v2342_v13 = vmul.f32 %v13394_v19, %v15036_v9  ;;  %v2994_v9 = vsel %vm2368_vm4, %v15092_v2, 0  ;;  %v3141_v26 = vpop.permute.xlu0 %3140 }
 0x78b   : > { %12339 = vmatprep.subr.bf16.mxu1 %v18274_v7  ;;  %v2357_v22 = vpack.c.bf16 %v2341_v33, %v2341_v33 }
 0x78c   : > { %v13396_v63 = vpop.eup %13395  ;;  %v2358_v34 = vpack.c.bf16 %v2342_v13, %v2342_v13 }
 0x78d   : > { %12324 = vmatmul.mubr.msk.bf16.vlgmr.msra.gmra.mrb[64].mxu0 %vm2170_vm6, %v2356_v23  ;;  %v2343_v53 = vmul.f32 %v13396_v63, %v15071_v57  ;;  %v13398_v31 = vpop.eup %13397 }
 0x78e   : > { %12334 = vmatpush3.bf16.msra.mxu0 %v2898_v27  ;;  %12335 = vmatprep.mubr.msk.bf16.mxu0 %vm13935_vm2, %v18274_v7  ;;  %v2344_v20 = vmul.f32 %v13398_v31, %v15044_v40  ;;  %v13400_v2 = vpop.eup %13399  ;;  %v3243_v0 = vpop.permute.xlu0 %3242 }
 0x78f   : > { %12345 = vmatprep.subr.bf16.mxu0 %v18274_v7  ;;  %v2359_v62 = vpack.c.bf16 %v2343_v53, %v2343_v53  ;;  %v2346_v40 = vmul.f32 %v13400_v2, %v15067_v17  ;;  %v3248_v12 = vsel %vm1370_vm3, %v3243_v0, 0 }
 0x790   : > { %v2360_v57 = vpack.c.bf16 %v2344_v20, %v2344_v20 }
 0x791   : > { %12330 = vmatmul.mubr.msk.bf16.vlgmr.msra.gmra.mrb[84].mxu1 %vm2170_vm6, %v2357_v22  ;;  %v2362_v41 = vpack.c.bf16 %v2346_v40, %v2346_v40 }
 0x792   : > { %12340 = vmatpush3.bf16.msra.mxu1 %v2946_v28  ;;  %12341 = vmatprep.mubr.msk.bf16.mxu1 %vm13935_vm2, %v18274_v7  ;;  %v3241_v3 = vpop.permute.xlu0 %3240 }
 0x793   : > { %12351 = vmatprep.subr.bf16.mxu1 %v18274_v7 }
 0x795   : > { %12336 = vmatmul.mubr.msk.bf16.vlgmr.msra.gmra.mrb[68].mxu0 %vm2170_vm6, %v2358_v34 }
 0x796   : > { %12346 = vmatpush3.bf16.msra.mxu0 %v2994_v9  ;;  %12347 = vmatprep.mubr.msk.bf16.mxu0 %vm13935_vm2, %v18274_v7  ;;  %v3343_v38 = vpop.permute.xlu0 %3342 }
 0x797   : > { %12357 = vmatprep.subr.bf16.mxu0 %v18274_v7  ;;  %v3348_v33 = vsel %vm1370_vm3, %v3343_v38, 0 }
 0x799   : > { %12342 = vmatmul.mubr.msk.bf16.vlgmr.msra.gmra.mrb[88].mxu1 %vm2170_vm6, %v2359_v62 }
 0x79a   : > { %12352 = vmatpush3.bf16.msra.mxu1 %v3042_v37  ;;  %12353 = vmatprep.mubr.msk.bf16.mxu1 %vm13935_vm2, %v18274_v7  ;;  %v3341_v4 = vpop.permute.xlu0 %3340 }
 0x79b   : > { %12363 = vmatprep.subr.bf16.mxu1 %v18274_v7 }
 0x79d   : > { %12348 = vmatmul.mubr.msk.bf16.vlgmr.msra.gmra.mrb[72].mxu0 %vm2170_vm6, %v2360_v57 }
 0x79e   : > { %12358 = vmatpush3.bf16.msra.mxu0 %v3090_v54  ;;  %12359 = vmatprep.mubr.msk.bf16.mxu0 %vm13935_vm2, %v18274_v7  ;;  %v3443_v14 = vpop.permute.xlu0 %3442 }
 0x79f   : > { %12369 = vmatprep.subr.bf16.mxu0 %v18274_v7  ;;  %v3448_v13 = vsel %vm1370_vm3, %v3443_v14, 0 }
 0x7a2   : > { %v3441_v46 = vpop.permute.xlu0 %3440 }
 0x7a5   : > { %12360 = vmatmul.mubr.msk.bf16.vlgmr.msra.gmra.mrb[76].mxu0 %vm2170_vm6, %v2362_v41 }
 0x7a6   : > { %12371 = vmatprep.mubr.msk.bf16.mxu0 %vm13935_vm2, %v18274_v7  ;;  %v3543_v23 = vpop.permute.xlu0 %3542 }
 0x7a7   : > { %12370 = vmatpush3.bf16.xpose.msra.mxu0 %v3198_v21  ;;  %v3548_v9 = vsel %vm1370_vm3, %v3543_v23, 0 }
 0x7a8   : > { %12381 = vmatprep.subr.bf16.mxu0 %v18274_v7 }
 0x7aa   : > { %v3541_v50 = vpop.permute.xlu0 %3540 }
 0x7ae   : > { %v3643_v28 = vpop.permute.xlu0 %3642 }
 0x7af   : > { %v3648_v2 = vsel %vm1370_vm3, %v3643_v28, 0 }
 0x7b2   : > { %v3641_v31 = vpop.permute.xlu0 %3640 }
 0x7b6   : > { %v2311_v1 = vpop.xlane.xlu1 %2310  ;;  %v3743_v57 = vpop.permute.xlu0 %3742 }
 0x7b7   : > { %13401 = vrcp.f32 %v2311_v1  ;;  %v3748_v41 = vsel %vm1370_vm3, %v3743_v57, 0 }
 0x7ba   : > { %v3191_v17 = vpop.permute.xlu1 %3190  ;;  %v3741_v61 = vpop.permute.xlu0 %3740 }
 0x7bb   : > { %12372 = vmatmul.mubr.msk.bf16.vlgmr.msra.gmra.mrb[80].mxu0 %vm1370_vm3, %v3191_v17 }
 0x7bc   : > { %12383 = vmatprep.mubr.msk.bf16.mxu0 %vm13935_vm2, %v18274_v7 }
 0x7be   : > { %v3293_v49 = vpop.permute.xlu1 %3292 }
 0x7bf   : > { %v3298_v36 = vsel %vm1370_vm3, %v3293_v49, 0 }
 0x7c0   : > { %12382 = vmatpush3.bf16.xpose.msra.mxu0 %v3298_v36 }
 0x7c1   : > { %v13402_v45 = vpop.eup %13401  ;;  %12393 = vmatprep.subr.bf16.mxu0 %v18274_v7 }
 0x7c2   : > { %v3291_v47 = vpop.permute.xlu1 %3290  ;;  %v2345_v42 = vmul.f32 %v13402_v45, %v15099_v32 }
 0x7c4   : > { %v2361_v56 = vpack.c.bf16 %v2345_v42, %v2345_v42 }
 0x7c6   : > { %12354 = vmatmul.mubr.msk.bf16.vlgmr.msra.gmra.mrb[92].mxu1 %vm2170_vm6, %v2361_v56  ;;  %v3393_v43 = vpop.permute.xlu1 %3392 }
 0x7c7   : > { %12364 = vmatpush3.bf16.xpose.msra.mxu1 %v3148_v59  ;;  %v3398_v24 = vsel %vm1370_vm3, %v3393_v43, 0  ;;  %12384 = vmatmul.mubr.msk.bf16.vlgmr.msra.gmra.mrb[84].mxu0 %vm1370_vm3, %v3291_v47 }
 0x7c8   : > { %12394 = vmatpush3.bf16.xpose.msra.mxu0 %v3398_v24  ;;  %12365 = vmatprep.mubr.msk.bf16.mxu1 %vm13935_vm2, %v18274_v7 }
 0x7c9   : > { %12375 = vmatprep.subr.bf16.mxu1 %v18274_v7  ;;  %12395 = vmatprep.mubr.msk.bf16.mxu0 %vm13935_vm2, %v18274_v7 }
 0x7ca   : > { %v3391_v32 = vpop.permute.xlu1 %3390  ;;  %12405 = vmatprep.subr.bf16.mxu0 %v18274_v7 }
 0x7ce   : > { %12366 = vmatmul.mubr.msk.bf16.vlgmr.msra.gmra.mrb[96].mxu1 %vm1370_vm3, %v3141_v26  ;;  %v3493_v52 = vpop.permute.xlu1 %3492  ;;  %v3843_v26 = vpop.permute.xlu0 %3842 }
 0x7cf   : > { %12376 = vmatpush3.bf16.xpose.msra.mxu1 %v3248_v12  ;;  %v3498_v29 = vsel %vm1370_vm3, %v3493_v52, 0  ;;  %12396 = vmatmul.mubr.msk.bf16.vlgmr.msra.gmra.mrb[88].mxu0 %vm1370_vm3, %v3391_v32  ;;  %v3848_v49 = vsel %vm1370_vm3, %v3843_v26, 0 }
 0x7d0   : > { %12406 = vmatpush3.bf16.xpose.msra.mxu0 %v3498_v29  ;;  %12377 = vmatprep.mubr.msk.bf16.mxu1 %vm13935_vm2, %v18274_v7 }
 0x7d1   : > { %12387 = vmatprep.subr.bf16.mxu1 %v18274_v7  ;;  %12407 = vmatprep.mubr.msk.bf16.mxu0 %vm13935_vm2, %v18274_v7 }
 0x7d2   : > { %v3491_v15 = vpop.permute.xlu1 %3490  ;;  %12417 = vmatprep.subr.bf16.mxu0 %v18274_v7  ;;  %v3841_v17 = vpop.permute.xlu0 %3840 }
 0x7d6   : > { %12378 = vmatmul.mubr.msk.bf16.vlgmr.msra.gmra.mrb[100].mxu1 %vm1370_vm3, %v3241_v3  ;;  %v3593_v19 = vpop.permute.xlu1 %3592  ;;  %v4149_v45 = vpop.permute.xlu0 %4148 }
 0x7d7   : > { %12388 = vmatpush3.bf16.xpose.msra.mxu1 %v3348_v33  ;;  %v3598_v27 = vsel %vm1370_vm3, %v3593_v19, 0  ;;  %12408 = vmatmul.mubr.msk.bf16.vlgmr.msra.gmra.mrb[92].mxu0 %vm1370_vm3, %v3491_v15  ;;  %v4154_v59 = vsel %vm2368_vm4, %v4149_v45, 0 }
 0x7d8   : > { %12418 = vmatpush3.bf16.xpose.msra.mxu0 %v3598_v27  ;;  %12389 = vmatprep.mubr.msk.bf16.mxu1 %vm13935_vm2, %v18274_v7 }
 0x7d9   : > { %12399 = vmatprep.subr.bf16.mxu1 %v18274_v7  ;;  %12419 = vmatprep.mubr.msk.bf16.mxu0 %vm13935_vm2, %v18274_v7 }
 0x7da   : > { %v3591_v22 = vpop.permute.xlu1 %3590  ;;  %12429 = vmatprep.subr.bf16.mxu0 %v18274_v7 }
 0x7de   : > { %12390 = vmatmul.mubr.msk.bf16.vlgmr.msra.gmra.mrb[104].mxu1 %vm1370_vm3, %v3341_v4  ;;  %v3693_v63 = vpop.permute.xlu1 %3692 }
 0x7df   : > { %12400 = vmatpush3.bf16.xpose.msra.mxu1 %v3448_v13  ;;  %v3698_v34 = vsel %vm1370_vm3, %v3693_v63, 0  ;;  %12420 = vmatmul.mubr.msk.bf16.vlgmr.msra.gmra.mrb[96].mxu0 %vm1370_vm3, %v3591_v22 }
 0x7e0   : > { %12430 = vmatpush3.bf16.xpose.msra.mxu0 %v3698_v34  ;;  %12401 = vmatprep.mubr.msk.bf16.mxu1 %vm13935_vm2, %v18274_v7 }
 0x7e1   : > { %12411 = vmatprep.subr.bf16.mxu1 %v18274_v7  ;;  %12431 = vmatprep.mubr.msk.bf16.mxu0 %vm13935_vm2, %v18274_v7 }
 0x7e2   : > { %v3691_v53 = vpop.permute.xlu1 %3690  ;;  %12441 = vmatprep.subr.bf16.mxu0 %v18274_v7 }
 0x7e6   : > { %12402 = vmatmul.mubr.msk.bf16.vlgmr.msra.gmra.mrb[108].mxu1 %vm1370_vm3, %v3441_v46  ;;  %v3793_v62 = vpop.permute.xlu1 %3792 }
 0x7e7   : > { %12412 = vmatpush3.bf16.xpose.msra.mxu1 %v3548_v9  ;;  %v3798_v20 = vsel %vm1370_vm3, %v3793_v62, 0  ;;  %12432 = vmatmul.mubr.msk.bf16.vlgmr.msra.gmra.mrb[100].mxu0 %vm1370_vm3, %v3691_v53 }
 0x7e8   : > { %12442 = vmatpush3.bf16.xpose.msra.mxu0 %v3798_v20  ;;  %12413 = vmatprep.mubr.msk.bf16.mxu1 %vm13935_vm2, %v18274_v7 }
 0x7e9   : > { %12423 = vmatprep.subr.bf16.mxu1 %v18274_v7  ;;  %12443 = vmatprep.mubr.msk.bf16.mxu0 %vm13935_vm2, %v18274_v7 }
 0x7ea   : > { %v3791_v37 = vpop.permute.xlu1 %3790  ;;  %12453 = vmatprep.subr.bf16.mxu0 %v18274_v7 }
 0x7ee   : > { %12414 = vmatmul.mubr.msk.bf16.vlgmr.msra.gmra.mrb[112].mxu1 %vm1370_vm3, %v3541_v50  ;;  %v3893_v54 = vpop.permute.xlu1 %3892 }
 0x7ef   : > { %12424 = vmatpush3.bf16.xpose.msra.mxu1 %v3648_v2  ;;  %v3898_v40 = vsel %vm1370_vm3, %v3893_v54, 0  ;;  %12444 = vmatmul.mubr.msk.bf16.vlgmr.msra.gmra.mrb[104].mxu0 %vm1370_vm3, %v3791_v37 }
 0x7f0   : > { %12454 = vmatpush3.bf16.xpose.msra.mxu0 %v3898_v40  ;;  %12425 = vmatprep.mubr.msk.bf16.mxu1 %vm13935_vm2, %v18274_v7 }
 0x7f1   : > { %12435 = vmatprep.subr.bf16.mxu1 %v18274_v7  ;;  %12455 = vmatprep.mubr.msk.bf16.mxu0 %vm13935_vm2, %v18274_v7 }
 0x7f2   : > { %v3891_v16 = vpop.permute.xlu1 %3890  ;;  %12465 = vmatprep.subr.bf16.mxu0 %v18274_v7 }
 0x7f6   : > { %12426 = vmatmul.mubr.msk.bf16.vlgmr.msra.gmra.mrb[116].mxu1 %vm1370_vm3, %v3641_v31  ;;  %v4197_v21 = vpop.permute.xlu1 %4196 }
 0x7f7   : > { %12436 = vmatpush3.bf16.xpose.msra.mxu1 %v3748_v41  ;;  %v4202_v0 = vsel %vm2368_vm4, %v4197_v21, 0  ;;  %12456 = vmatmul.mubr.msk.bf16.vlgmr.msra.gmra.mrb[108].mxu0 %vm1370_vm3, %v3891_v16 }
 0x7f8   : > { %12466 = vmatpush3.bf16.msra.mxu0 %v4202_v0  ;;  %12437 = vmatprep.mubr.msk.bf16.mxu1 %vm13935_vm2, %v18274_v7 }
 0x7f9   : > { %12447 = vmatprep.subr.bf16.mxu1 %v18274_v7  ;;  %12467 = vmatprep.mubr.msk.bf16.mxu0 %vm13935_vm2, %v18274_v7 }
 0x7fa   : > { %12477 = vmatprep.subr.bf16.mxu0 %v18274_v7 }
 0x7fb   : > { %v15347_v3 = vpop.f32.mrb[64].mxu1 }
 0x7fc   : > { %v12271_v1 = vpop.f32.mrb[65].mxu1 }
 0x7fd   : > { %v2409_v38 = vpop.f32.mrb[66].mxu1 }
 0x7fe   : > { %v12272_v36 = vpop.f32.mrb[67].mxu1  ;;  %12438 = vmatmul.mubr.msk.bf16.vlgmr.msra.gmra.mrb[120].mxu1 %vm1370_vm3, %v3741_v61 }
 0x7ff   : > { %12448 = vmatpush3.bf16.xpose.msra.mxu1 %v3848_v49  ;;  %12449 = vmatprep.mubr.msk.bf16.mxu1 %vm13935_vm2, %v18274_v7 }
 0x800   : > { %12459 = vmatprep.subr.bf16.mxu1 %v18274_v7 }
 0x803   : > { %v15354_v4 = vpop.f32.mrb[48].mxu0 }
 0x804   : > { %v12277_v42 = vpop.f32.mrb[49].mxu0 }
 0x805   : > { %v2457_v56 = vpop.f32.mrb[50].mxu0 }
 0x806   : > { %v12278_v43 = vpop.f32.mrb[51].mxu0  ;;  %12450 = vmatmul.mubr.msk.bf16.vlgmr.msra.gmra.mrb[124].mxu1 %vm1370_vm3, %v3841_v17 }
 0x807   : > { %12460 = vmatpush3.bf16.msra.mxu1 %v4154_v59  ;;  %12461 = vmatprep.mubr.msk.bf16.mxu1 %vm13935_vm2, %v18274_v7 }
 0x808   : > { %12471 = vmatprep.subr.bf16.mxu1 %v18274_v7 }
 0x80b   : > { %v15363_v14 = vpop.f32.mrb[68].mxu1 }
 0x80c   : > { %v12283_v24 = vpop.f32.mrb[69].mxu1 }
 0x80d   : > { %v2505_v32 = vpop.f32.mrb[70].mxu1 }
 0x80e   : > { %v12284_v46 = vpop.f32.mrb[71].mxu1 }
 0x813   : > { %v15365_v12 = vpop.f32.mrb[52].mxu0 }
 0x814   : > { %v12289_v29 = vpop.f32.mrb[53].mxu0 }
 0x815   : > { %v2553_v15 = vpop.f32.mrb[54].mxu0 }
 0x816   : > { %v12290_v23 = vpop.f32.mrb[55].mxu0 }
 0x81b   : > { %v15369_v33 = vpop.f32.mrb[72].mxu1 }
 0x81c   : > { %v12295_v19 = vpop.f32.mrb[73].mxu1 }
 0x81d   : > { %v2601_v27 = vpop.f32.mrb[74].mxu1 }
 0x81e   : > { %v12296_v50 = vpop.f32.mrb[75].mxu1 }
 0x823   : > { %v15371_v22 = vpop.f32.mrb[56].mxu0 }
 0x824   : > { %v12301_v63 = vpop.f32.mrb[57].mxu0 }
 0x825   : > { %v2649_v28 = vpop.f32.mrb[58].mxu0 }
 0x826   : > { %v12302_v34 = vpop.f32.mrb[59].mxu0 }
 0x82b   : > { %v15375_v53 = vpop.f32.mrb[76].mxu1 }
 0x82c   : > { %v12307_v31 = vpop.f32.mrb[77].mxu1 }
 0x82d   : > { %v2697_v9 = vpop.f32.mrb[78].mxu1 }
 0x82e   : > { %v12308_v62 = vpop.f32.mrb[79].mxu1 }
 0x858   : > { %v15377_v20 = vpop.f32.mrb[60].mxu0 }
 0x859   : > { %v12313_v57 = vpop.f32.mrb[61].mxu0 }
 0x85a   : > { %v2745_v2 = vpop.f32.mrb[62].mxu0 }
 0x85b   : > { %v12314_v54 = vpop.f32.mrb[63].mxu0 }
 0x85c   : > { %v15381_v40 = vpop.f32.mrb[80].mxu1 }
 0x85d   : > { %v12319_v61 = vpop.f32.mrb[81].mxu1 }
 0x85e   : > { %v2793_v16 = vpop.f32.mrb[82].mxu1 }
 0x85f   : > { %v12320_v41 = vpop.f32.mrb[83].mxu1 }
 0x860   : > { %v15383_v21 = vpop.f32.mrb[64].mxu0 }
 0x861   : > { %v12325_v0 = vpop.f32.mrb[65].mxu0 }
 0x862   : > { %v2841_v1 = vpop.f32.mrb[66].mxu0 }
 0x863   : > { %v12326_v17 = vpop.f32.mrb[67].mxu0 }
 0x864   : > { %v15387_v38 = vpop.f32.mrb[84].mxu1 }
 0x865   : > { %v12331_v49 = vpop.f32.mrb[85].mxu1 }
 0x866   : > { %v2889_v36 = vpop.f32.mrb[86].mxu1 }
 0x867   : > { %v12332_v45 = vpop.f32.mrb[87].mxu1 }
 0x868   : > { %v15389_v42 = vpop.f32.mrb[68].mxu0 }
 0x869   : > { %v12337_v59 = vpop.f32.mrb[69].mxu0 }
 0x86a   : > { %v2937_v43 = vpop.f32.mrb[70].mxu0 }
 0x86b   : > { %v12338_v24 = vpop.f32.mrb[71].mxu0 }
 0x86c   : > { %v15393_v32 = vpop.f32.mrb[88].mxu1 }
 0x86d   : > { %v12343_v46 = vpop.f32.mrb[89].mxu1 }
 0x86e   : > { %v2985_v29 = vpop.f32.mrb[90].mxu1 }
 0x86f   : > { %v12344_v15 = vpop.f32.mrb[91].mxu1 }
 0x870   : > { %v15395_v23 = vpop.f32.mrb[72].mxu0 }
 0x871   : > { %v12349_v27 = vpop.f32.mrb[73].mxu0 }
 0x872   : > { %v3033_v50 = vpop.f32.mrb[74].mxu0 }
 0x873   : > { %v12350_v63 = vpop.f32.mrb[75].mxu0 }
 0x878   : > { %v15399_v28 = vpop.f32.mrb[76].mxu0 }
 0x879   : > { %v12361_v34 = vpop.f32.mrb[77].mxu0 }
 0x87a   : > { %v3129_v31 = vpop.f32.mrb[78].mxu0 }
 0x87b   : > { %v12362_v9 = vpop.f32.mrb[79].mxu0 }
 0x88e   : > { %v3234_v62 = vpop.f32.mrb[80].mxu0 }
 0x88f   : > { %v12373_v57 = vpop.f32.mrb[81].mxu0  ;;  %v15403_v2 = vsel %vm946_vm5, %v3234_v62, -1e+30 }
 0x890   : > { %v3237_v54 = vpop.f32.mrb[82].mxu0  ;;  %v3959_v61 = vsel %vm2170_vm6, %v15403_v2, -inf }
 0x891   : > { %3960 = vmax.xlane.f32.xlu1 %v3959_v61  ;;  %v12374_v16 = vpop.f32.mrb[83].mxu0 }
 0x899   : > { %v15407_v41 = vpop.f32.mrb[92].mxu1 }
 0x89a   : > { %v12355_v1 = vpop.f32.mrb[93].mxu1  ;;  %v3334_v17 = vpop.f32.mrb[84].mxu0 }
 0x89b   : > { %v3081_v49 = vpop.f32.mrb[94].mxu1  ;;  %v12385_v36 = vpop.f32.mrb[85].mxu0 }
 0x89c   : > { %v12356_v45 = vpop.f32.mrb[95].mxu1  ;;  %v3337_v59 = vpop.f32.mrb[86].mxu0 }
 0x89d   : > { %v12386_v43 = vpop.f32.mrb[87].mxu0 }
 0x8a1   : > { %v3184_v24 = vpop.f32.mrb[96].mxu1 }
 0x8a2   : > { %v15413_v46 = vsel %vm946_vm5, %v3184_v24, -1e+30  ;;  %v12367_v29 = vpop.f32.mrb[97].mxu1  ;;  %v3434_v15 = vpop.f32.mrb[88].mxu0 }
 0x8a3   : > { %v3956_v27 = vsel %vm2170_vm6, %v15413_v46, -inf  ;;  %v15419_v50 = vsel %vm946_vm5, %v3434_v15, -1e+30  ;;  %v3187_v63 = vpop.f32.mrb[98].mxu1  ;;  %v12397_v34 = vpop.f32.mrb[89].mxu0 }
 0x8a4   : > { %v3971_v31 = vsel %vm2170_vm6, %v15419_v50, -inf  ;;  %3957 = vmax.xlane.f32.xlu0 %v3956_v27  ;;  %v12368_v9 = vpop.f32.mrb[99].mxu1  ;;  %v3437_v62 = vpop.f32.mrb[90].mxu0  ;;  %v15437_v15 = vsel %vm946_vm5, %v3334_v17, -1e+30 }
 0x8a5   : > { %3972 = vmax.xlane.f32.xlu1 %v3971_v31  ;;  %v12398_v57 = vpop.f32.mrb[91].mxu0  ;;  %v3965_v63 = vsel %vm2170_vm6, %v15437_v15, -inf }
 0x8a9   : > { %v3284_v54 = vpop.f32.mrb[100].mxu1 }
 0x8aa   : > { %v15425_v61 = vsel %vm946_vm5, %v3284_v54, -1e+30  ;;  %v12379_v16 = vpop.f32.mrb[101].mxu1  ;;  %v3534_v1 = vpop.f32.mrb[92].mxu0 }
 0x8ab   : > { %v3962_v49 = vsel %vm2170_vm6, %v15425_v61, -inf  ;;  %v15431_v36 = vsel %vm946_vm5, %v3534_v1, -1e+30  ;;  %v3287_v45 = vpop.f32.mrb[102].mxu1  ;;  %v12409_v59 = vpop.f32.mrb[93].mxu0 }
 0x8ac   : > { %v3977_v43 = vsel %vm2170_vm6, %v15431_v36, -inf  ;;  %3963 = vmax.xlane.f32.xlu0 %v3962_v49  ;;  %v12380_v24 = vpop.f32.mrb[103].mxu1  ;;  %v3537_v29 = vpop.f32.mrb[94].mxu0 }
 0x8ad   : > { %3978 = vmax.xlane.f32.xlu1 %v3977_v43  ;;  %v12410_v27 = vpop.f32.mrb[95].mxu0 }
 0x8b0   : > { %3966 = vmax.xlane.f32.xlu0 %v3965_v63 }
 0x8b1   : > { %v3384_v34 = vpop.f32.mrb[104].mxu1 }
 0x8b2   : > { %v15443_v31 = vsel %vm946_vm5, %v3384_v34, -1e+30  ;;  %v12391_v9 = vpop.f32.mrb[105].mxu1  ;;  %v3634_v62 = vpop.f32.mrb[96].mxu0 }
 0x8b3   : > { %v3968_v57 = vsel %vm2170_vm6, %v15443_v31, -inf  ;;  %v15449_v17 = vsel %vm946_vm5, %v3634_v62, -1e+30  ;;  %v3387_v54 = vpop.f32.mrb[106].mxu1  ;;  %v12421_v16 = vpop.f32.mrb[97].mxu0 }
 0x8b4   : > { %v3983_v1 = vsel %vm2170_vm6, %v15449_v17, -inf  ;;  %v12392_v49 = vpop.f32.mrb[107].mxu1  ;;  %3969 = vmax.xlane.f32.xlu0 %v3968_v57  ;;  %v3637_v45 = vpop.f32.mrb[98].mxu0 }
 0x8b5   : > { %3984 = vmax.xlane.f32.xlu1 %v3983_v1  ;;  %v12422_v59 = vpop.f32.mrb[99].mxu0 }
 0x8b9   : > { %v3484_v43 = vpop.f32.mrb[108].mxu1 }
 0x8ba   : > { %v15455_v24 = vsel %vm946_vm5, %v3484_v43, -1e+30  ;;  %v12403_v29 = vpop.f32.mrb[109].mxu1  ;;  %v3734_v27 = vpop.f32.mrb[100].mxu0 }
 0x8bb   : > { %v3974_v63 = vsel %vm2170_vm6, %v15455_v24, -inf  ;;  %v15461_v34 = vsel %vm946_vm5, %v3734_v27, -1e+30  ;;  %v3487_v9 = vpop.f32.mrb[110].mxu1  ;;  %v12433_v62 = vpop.f32.mrb[101].mxu0 }
 0x8bc   : > { %v3989_v57 = vsel %vm2170_vm6, %v15461_v34, -inf  ;;  %v12404_v54 = vpop.f32.mrb[111].mxu1  ;;  %3975 = vmax.xlane.f32.xlu0 %v3974_v63  ;;  %v3737_v16 = vpop.f32.mrb[102].mxu0 }
 0x8bd   : > { %3990 = vmax.xlane.f32.xlu1 %v3989_v57  ;;  %v12434_v1 = vpop.f32.mrb[103].mxu0 }
 0x8c1   : > { %v3584_v49 = vpop.f32.mrb[112].mxu1 }
 0x8c2   : > { %v15467_v45 = vsel %vm946_vm5, %v3584_v49, -1e+30  ;;  %v12415_v59 = vpop.f32.mrb[113].mxu1  ;;  %v3834_v43 = vpop.f32.mrb[104].mxu0 }
 0x8c3   : > { %v3980_v29 = vsel %vm2170_vm6, %v15467_v45, -inf  ;;  %v15473_v27 = vsel %vm946_vm5, %v3834_v43, -1e+30  ;;  %v3587_v9 = vpop.f32.mrb[114].mxu1  ;;  %v12445_v62 = vpop.f32.mrb[105].mxu0 }
 0x8c4   : > { %v3995_v63 = vsel %vm2170_vm6, %v15473_v27, -inf  ;;  %v12416_v57 = vpop.f32.mrb[115].mxu1  ;;  %3981 = vmax.xlane.f32.xlu0 %v3980_v29  ;;  %v3837_v54 = vpop.f32.mrb[106].mxu0 }
 0x8c5   : > { %3996 = vmax.xlane.f32.xlu1 %v3995_v63  ;;  %v12446_v16 = vpop.f32.mrb[107].mxu0 }
 0x8c9   : > { %v3684_v1 = vpop.f32.mrb[116].mxu1 }
 0x8ca   : > { %v15479_v49 = vsel %vm946_vm5, %v3684_v1, -1e+30  ;;  %v12427_v59 = vpop.f32.mrb[117].mxu1  ;;  %v3934_v0 = vpop.f32.mrb[108].mxu0 }
 0x8cb   : > { %v3986_v43 = vsel %vm2170_vm6, %v15479_v49, -inf  ;;  %v3687_v9 = vpop.f32.mrb[118].mxu1  ;;  %v12457_v62 = vpop.f32.mrb[109].mxu0 }
 0x8cc   : > { %v12428_v19 = vpop.f32.mrb[119].mxu1  ;;  %3987 = vmax.xlane.f32.xlu0 %v3986_v43  ;;  %v3937_v56 = vpop.f32.mrb[110].mxu0 }
 0x8cd   : > { %v12458_v57 = vpop.f32.mrb[111].mxu0 }
 0x8d1   : > { %v3784_v29 = vpop.f32.mrb[120].mxu1 }
 0x8d2   : > { %v15485_v63 = vsel %vm946_vm5, %v3784_v29, -1e+30  ;;  %v12439_v54 = vpop.f32.mrb[121].mxu1 }
 0x8d3   : > { %v3992_v16 = vsel %vm2170_vm6, %v15485_v63, -inf  ;;  %v3787_v1 = vpop.f32.mrb[122].mxu1 }
 0x8d4   : > { %v12440_v59 = vpop.f32.mrb[123].mxu1  ;;  %3993 = vmax.xlane.f32.xlu0 %v3992_v16 }
 0x8d5   : > { %v15516_v59 = vpop.permute.xlu0 %4244 }
 0x8d6   : > { %4580 = vrot.lane.b32.xlu1 %v14720_v44, %s18239_s28  ;;  %v15505_v44 = vsel %vm946_vm5, %v3934_v0, -1e+30 }
 0x8d7   : > { %v4001_v29 = vsel %vm2170_vm6, %v15505_v44, -inf }
 0x8d9   : > { %v3884_v9 = vpop.f32.mrb[124].mxu1 }
 0x8da   : > { %v15493_v56 = vsel %vm946_vm5, %v3884_v9, -1e+30  ;;  %v12451_v19 = vpop.f32.mrb[125].mxu1  ;;  %4628 = vrot.lane.b32.xlu1 %v14724_v58, %s18239_s28  ;;  %v15509_v58 = vpop.permute.xlu1 %4292 }
 0x8db   : > { %v3998_v43 = vsel %vm2170_vm6, %v15493_v56, -inf  ;;  %v3887_v62 = vpop.f32.mrb[126].mxu1  ;;  %v15518_v9 = vpop.permute.xlu0 %4340 }
 0x8dc   : > { %v12452_v57 = vpop.f32.mrb[127].mxu1  ;;  %3999 = vmax.xlane.f32.xlu0 %v3998_v43 }
 0x8de   : > { %4676 = vrot.lane.b32.xlu1 %v14728_v10, %s18239_s28  ;;  %v15511_v54 = vpop.permute.xlu1 %4388 }
 0x8df   : > { %v15522_v19 = vpop.permute.xlu0 %4436 }
 0x8e2   : > { %v15513_v16 = vpop.permute.xlu1 %4484 }
 0x8f2   : > { %4532 = vrot.lane.b32.xlu0 %v14718_v35, %s18239_s28 }
 0x902   : > { %4002 = vmax.xlane.f32.xlu1 %v4001_v29 }
 0x91e   : > { %v3961_v1 = vpop.xlane.xlu1 %3960 }
 0x91f   : > { %v4005_v10 = vsub.f32 %v15403_v2, %v3961_v1 }
 0x921   : > { %v4022_v35 = vmul.f32 1.442695, %v4005_v10 }
 0x923   : > { %13403 = vpow2.f32 %v4022_v35 }
 0x92d   : > { %v15520_v0 = vpop.eup %13403 }
 0x92e   : > { %v4055_v43 = vsel %vm2170_vm6, %v15520_v0, 0.0 }
 0x92f   : > { %4056 = vadd.xlane.f32.xlu1 %v4055_v43 }
 0x931   : > { %v3958_v62 = vpop.xlane.xlu0 %3957 }
 0x932   : > { %v4004_v57 = vsub.f32 %v15413_v46, %v3958_v62  ;;  %v3973_v2 = vpop.xlane.xlu1 %3972 }
 0x933   : > { %v4009_v35 = vsub.f32 %v15419_v50, %v3973_v2 }
 0x934   : > { %v4020_v29 = vmul.f32 1.442695, %v4004_v57 }
 0x935   : > { %v4030_v43 = vmul.f32 1.442695, %v4009_v35 }
 0x936   : > { %13405 = vpow2.f32 %v4020_v29 }
 0x939   : > { %v3964_v1 = vpop.xlane.xlu0 %3963 }
 0x93a   : > { %v4006_v10 = vsub.f32 %v15425_v61, %v3964_v1  ;;  %v3979_v37 = vpop.xlane.xlu1 %3978 }
 0x93b   : > { %v4011_v55 = vsub.f32 %v15431_v36, %v3979_v37 }
 0x93c   : > { %v4024_v26 = vmul.f32 1.442695, %v4006_v10 }
 0x93d   : > { %v3967_v13 = vpop.xlane.xlu0 %3966  ;;  %v4034_v50 = vmul.f32 1.442695, %v4011_v55 }
 0x93e   : > { %13407 = vpow2.f32 %v4024_v26  ;;  %v4007_v52 = vsub.f32 %v15437_v15, %v3967_v13 }
 0x940   : > { %v15530_v47 = vpop.eup %13405  ;;  %v4026_v46 = vmul.f32 1.442695, %v4007_v52 }
 0x941   : > { %v3970_v62 = vpop.xlane.xlu0 %3969  ;;  %v4052_v57 = vsel %vm2170_vm6, %v15530_v47, 0.0 }
 0x942   : > { %13409 = vpow2.f32 %v4026_v46  ;;  %v4008_v61 = vsub.f32 %v15443_v31, %v3970_v62  ;;  %4053 = vadd.xlane.f32.xlu0 %v4052_v57  ;;  %v3985_v26 = vpop.xlane.xlu1 %3984 }
 0x943   : > { %13411 = vpow2.f32 %v4030_v43  ;;  %v4013_v15 = vsub.f32 %v15449_v17, %v3985_v26 }
 0x944   : > { %v4028_v29 = vmul.f32 1.442695, %v4008_v61 }
 0x945   : > { %v4038_v1 = vmul.f32 1.442695, %v4013_v15 }
 0x946   : > { %13413 = vpow2.f32 %v4028_v29 }
 0x947   : > { %13415 = vpow2.f32 %v4034_v50 }
 0x948   : > { %v15536_v13 = vpop.eup %13407 }
 0x949   : > { %v3976_v37 = vpop.xlane.xlu0 %3975  ;;  %v4058_v52 = vsel %vm2170_vm6, %v15536_v13, 0.0 }
 0x94a   : > { %v4010_v36 = vsub.f32 %v15455_v24, %v3976_v37  ;;  %4059 = vadd.xlane.f32.xlu0 %v4058_v52  ;;  %v3991_v2 = vpop.xlane.xlu1 %3990 }
 0x94b   : > { %v4015_v10 = vsub.f32 %v15461_v34, %v3991_v2 }
 0x94c   : > { %v15542_v31 = vpop.eup %13409  ;;  %v4032_v55 = vmul.f32 1.442695, %v4010_v36 }
 0x94d   : > { %v4061_v35 = vsel %vm2170_vm6, %v15542_v31, 0.0  ;;  %v15547_v43 = vpop.eup %13411  ;;  %v4042_v46 = vmul.f32 1.442695, %v4015_v10 }
 0x94e   : > { %13417 = vpow2.f32 %v4032_v55  ;;  %4062 = vadd.xlane.f32.xlu1 %v4061_v35  ;;  %v4067_v57 = vsel %vm2170_vm6, %v15547_v43, 0.0 }
 0x94f   : > { %13419 = vpow2.f32 %v4038_v1 }
 0x950   : > { %v15549_v17 = vpop.eup %13413  ;;  %13421 = vpow2.f32 %v4042_v46 }
 0x951   : > { %v3982_v24 = vpop.xlane.xlu0 %3981  ;;  %v4064_v62 = vsel %vm2170_vm6, %v15549_v17, 0.0  ;;  %v15555_v61 = vpop.eup %13415 }
 0x952   : > { %v4012_v34 = vsub.f32 %v15467_v45, %v3982_v24  ;;  %4065 = vadd.xlane.f32.xlu0 %v4064_v62  ;;  %4068 = vadd.xlane.f32.xlu1 %v4067_v57  ;;  %v4073_v29 = vsel %vm2170_vm6, %v15555_v61, 0.0  ;;  %v3997_v24 = vpop.xlane.xlu1 %3996 }
 0x953   : > { %v4017_v57 = vsub.f32 %v15473_v27, %v3997_v24 }
 0x954   : > { %v4036_v50 = vmul.f32 1.442695, %v4012_v34 }
 0x955   : > { %v4046_v34 = vmul.f32 1.442695, %v4017_v57 }
 0x956   : > { %13423 = vpow2.f32 %v4036_v50  ;;  %4074 = vadd.xlane.f32.xlu1 %v4073_v29  ;;  %v15585_v62 = vpop.permute.xlu1 %4580 }
 0x958   : > { %v15560_v26 = vpop.eup %13417 }
 0x959   : > { %v3988_v15 = vpop.xlane.xlu0 %3987  ;;  %v4070_v37 = vsel %vm2170_vm6, %v15560_v26, 0.0  ;;  %v15564_v52 = vpop.eup %13419 }
 0x95a   : > { %v4014_v36 = vsub.f32 %v15479_v49, %v3988_v15  ;;  %4071 = vadd.xlane.f32.xlu0 %v4070_v37  ;;  %v4079_v2 = vsel %vm2170_vm6, %v15564_v52, 0.0  ;;  %v15569_v1 = vpop.eup %13421  ;;  %v15588_v50 = vpop.permute.xlu1 %4628 }
 0x95b   : > { %v4085_v10 = vsel %vm2170_vm6, %v15569_v1, 0.0 }
 0x95c   : > { %v4040_v45 = vmul.f32 1.442695, %v4014_v36 }
 0x95e   : > { %13425 = vpow2.f32 %v4040_v45  ;;  %4080 = vadd.xlane.f32.xlu0 %v4079_v2  ;;  %v15591_v36 = vpop.permute.xlu1 %4676 }
 0x95f   : > { %13427 = vpow2.f32 %v4046_v34 }
 0x960   : > { %v15571_v55 = vpop.eup %13423 }
 0x961   : > { %v4076_v35 = vsel %vm2170_vm6, %v15571_v55, 0.0  ;;  %v3994_v29 = vpop.xlane.xlu0 %3993 }
 0x962   : > { %4086 = vadd.xlane.f32.xlu0 %v4085_v10  ;;  %4077 = vadd.xlane.f32.xlu1 %v4076_v35  ;;  %v4016_v15 = vsub.f32 %v15485_v63, %v3994_v29 }
 0x964   : > { %v4044_v45 = vmul.f32 1.442695, %v4016_v15 }
 0x966   : > { %13429 = vpow2.f32 %v4044_v45 }
 0x968   : > { %v15577_v49 = vpop.eup %13425 }
 0x969   : > { %v4082_v46 = vsel %vm2170_vm6, %v15577_v49, 0.0  ;;  %v4000_v37 = vpop.xlane.xlu0 %3999  ;;  %v15595_v27 = vpop.eup %13427 }
 0x96a   : > { %4083 = vadd.xlane.f32.xlu1 %v4082_v46  ;;  %v4091_v46 = vsel %vm2170_vm6, %v15595_v27, 0.0 }
 0x970   : > { %v15599_v63 = vpop.eup %13429 }
 0x978   : > { %4724 = vrot.lane.b32.xlu0 %v14734_v18, %s18239_s28  ;;  %v4018_v18 = vsub.f32 %v15493_v56, %v4000_v37  ;;  %v4088_v56 = vsel %vm2170_vm6, %v15599_v63, 0.0 }
 0x97a   : > { %v4048_v10 = vmul.f32 1.442695, %v4018_v18  ;;  %v15616_v18 = vpop.permute.xlu0 %4532 }
 0x97b   : > { %4772 = vrot.lane.b32.xlu1 %v14736_v11, %s18239_s28 }
 0x98f   : > { %v4003_v2 = vpop.xlane.xlu1 %4002 }
 0x990   : > { %v4019_v11 = vsub.f32 %v15505_v44, %v4003_v2  ;;  %v4298_v2 = vsel %vm2368_vm4, %v15509_v58, 0  ;;  %v4250_v58 = vsel %vm2368_vm4, %v15516_v59, 0  ;;  %v4346_v59 = vsel %vm2368_vm4, %v15518_v9, 0 }
 0x992   : > { %v4050_v35 = vmul.f32 1.442695, %v4019_v11 }
 0x994   : > { %13431 = vpow2.f32 %v4050_v35 }
 0x995   : > { %13433 = vpow2.f32 %v4048_v10 }
 0x997   : > { %4092 = vadd.xlane.f32.xlu0 %v4091_v46 }
 0x99e   : > { %v15601_v24 = vpop.eup %13431 }
 0x99f   : > { %v15605_v57 = vpop.eup %13433  ;;  %4089 = vadd.xlane.f32.xlu1 %v4088_v56  ;;  %v4097_v44 = vsel %vm2170_vm6, %v15601_v24, 0.0 }
 0x9a0   : > { %4098 = vadd.xlane.f32.xlu0 %v4097_v44  ;;  %v4094_v34 = vsel %vm2170_vm6, %v15605_v57, 0.0 }
 0x9a3   : > { %4095 = vadd.xlane.f32.xlu1 %v4094_v34 }
 0x9b4   : > { %4868 = vrot.lane.b32.xlu1 %v14744_v51, %s18239_s28 }
 0x9b6   : > { %4820 = vrot.lane.b32.xlu0 %v14740_v8, %s18239_s28  ;;  %s11384_s28 = sshll.u32 %s405_s27, 4  ;;  %s18163_s28 = int_to_ptr.vmem [resolvable:$true] %s11384_s28 }
 0x9b7   : > { %s13862_s21 = scalar_lea.vmem %s18163_s28, 256 }
 0x9b8   : > { %p13863_p6 = scmp.ne.s32.totalorder %s18163_s28, %s13862_s21 }
 0x9ba   : > { %p13864_p12 = pnand %p13863_p6, %p18328_p11 }
 0x9bc   : > { %v4057_v29 = vpop.xlane.xlu1 %4056  ;;  %p13865_p13 = pneg %p13864_p12 }
 0x9bd   : > { %13435 = vrcp.f32 %v4057_v29 }
 0x9c7   : > { %v13436_v15 = vpop.eup %13435 }
 0x9c8   : > { %v4117_v37 = vmul.f32 %v13436_v15, %v15520_v0 }
 0x9ca   : > { %v4133_v45 = vpack.c.bf16 %v4117_v37, %v4117_v37 }
 0x9cc   : > { %12468 = vmatmul.mubr.msk.bf16.vlgmr.msra.gmra.mrb[112].mxu0 %vm2170_vm6, %v4133_v45 }
 0x9cd   : > { %12478 = vmatpush3.bf16.msra.mxu0 %v4298_v2  ;;  %12479 = vmatprep.mubr.msk.bf16.mxu0 %vm13935_vm2, %v18274_v7 }
 0x9ce   : > { %12489 = vmatprep.subr.bf16.mxu0 %v18274_v7 }
 0x9cf   : > { %v4054_v8 = vpop.xlane.xlu0 %4053 }
 0x9d0   : > { %13437 = vrcp.f32 %v4054_v8 }
 0x9d7   : > { %v4060_v51 = vpop.xlane.xlu0 %4059 }
 0x9d8   : > { %13439 = vrcp.f32 %v4060_v51  ;;  %v4394_v51 = vsel %vm2368_vm4, %v15511_v54, 0 }
 0x9da   : > { %v13438_v11 = vpop.eup %13437 }
 0x9db   : > { %v4063_v0 = vpop.xlane.xlu1 %4062  ;;  %v4116_v10 = vmul.f32 %v13438_v11, %v15530_v47 }
 0x9dc   : > { %13441 = vrcp.f32 %v4063_v0 }
 0x9dd   : > { %v4132_v35 = vpack.c.bf16 %v4116_v10, %v4116_v10  ;;  %v4442_v10 = vsel %vm2368_vm4, %v15522_v19, 0 }
 0x9df   : > { %12462 = vmatmul.mubr.msk.bf16.vlgmr.msra.gmra.mrb[128].mxu1 %vm2170_vm6, %v4132_v35  ;;  %v4066_v46 = vpop.xlane.xlu0 %4065  ;;  %v4069_v56 = vpop.xlane.xlu1 %4068 }
 0x9e0   : > { %12472 = vmatpush3.bf16.msra.mxu1 %v4250_v58  ;;  %13443 = vrcp.f32 %v4066_v46  ;;  %12473 = vmatprep.mubr.msk.bf16.mxu1 %vm13935_vm2, %v18274_v7 }
 0x9e1   : > { %13445 = vrcp.f32 %v4069_v56  ;;  %12483 = vmatprep.subr.bf16.mxu1 %v18274_v7 }
 0x9e2   : > { %v13440_v44 = vpop.eup %13439 }
 0x9e3   : > { %v4118_v47 = vmul.f32 %v13440_v44, %v15536_v13  ;;  %v4075_v34 = vpop.xlane.xlu1 %4074 }
 0x9e4   : > { %13447 = vrcp.f32 %v4075_v34 }
 0x9e5   : > { %v4134_v29 = vpack.c.bf16 %v4118_v47, %v4118_v47  ;;  %v4538_v47 = vsel %vm2368_vm4, %v15616_v18, 0 }
 0x9e6   : > { %v13442_v15 = vpop.eup %13441 }
 0x9e7   : > { %12474 = vmatmul.mubr.msk.bf16.vlgmr.msra.gmra.mrb[132].mxu1 %vm2170_vm6, %v4134_v29  ;;  %v4072_v37 = vpop.xlane.xlu0 %4071  ;;  %v4119_v45 = vmul.f32 %v13442_v15, %v15542_v31 }
 0x9e8   : > { %12484 = vmatpush3.bf16.msra.mxu1 %v4346_v59  ;;  %13449 = vrcp.f32 %v4072_v37  ;;  %12485 = vmatprep.mubr.msk.bf16.mxu1 %vm13935_vm2, %v18274_v7  ;;  %v4634_v37 = vsel %vm2368_vm4, %v15588_v50, 0 }
 0x9e9   : > { %v4135_v2 = vpack.c.bf16 %v4119_v45, %v4119_v45  ;;  %12495 = vmatprep.subr.bf16.mxu1 %v18274_v7 }
 0x9ea   : > { %v13444_v13 = vpop.eup %13443 }
 0x9eb   : > { %v13446_v8 = vpop.eup %13445  ;;  %12480 = vmatmul.mubr.msk.bf16.vlgmr.msra.gmra.mrb[116].mxu0 %vm2170_vm6, %v4135_v2  ;;  %v4120_v9 = vmul.f32 %v13444_v13, %v15549_v17  ;;  %v4081_v31 = vpop.xlane.xlu0 %4080  ;;  %v4682_v2 = vsel %vm2368_vm4, %v15591_v36, 0 }
 0x9ec   : > { %12490 = vmatpush3.bf16.msra.mxu0 %v4394_v51  ;;  %12491 = vmatprep.mubr.msk.bf16.mxu0 %vm13935_vm2, %v18274_v7  ;;  %v4121_v0 = vmul.f32 %v13446_v8, %v15547_v43  ;;  %13451 = vrcp.f32 %v4081_v31  ;;  %v4490_v43 = vsel %vm2368_vm4, %v15513_v16, 0 }
 0x9ed   : > { %v4136_v11 = vpack.c.bf16 %v4120_v9, %v4120_v9  ;;  %12501 = vmatprep.subr.bf16.mxu0 %v18274_v7 }
 0x9ee   : > { %v13448_v17 = vpop.eup %13447  ;;  %v4137_v35 = vpack.c.bf16 %v4121_v0, %v4121_v0 }
 0x9ef   : > { %12486 = vmatmul.mubr.msk.bf16.vlgmr.msra.gmra.mrb[136].mxu1 %vm2170_vm6, %v4136_v11  ;;  %v4078_v54 = vpop.xlane.xlu1 %4077  ;;  %v4087_v46 = vpop.xlane.xlu0 %4086  ;;  %v4123_v44 = vmul.f32 %v13448_v17, %v15555_v61  ;;  %v4586_v61 = vsel %vm2368_vm4, %v15585_v62, 0 }
 0x9f0   : > { %12496 = vmatpush3.bf16.msra.mxu1 %v4442_v10  ;;  %12497 = vmatprep.mubr.msk.bf16.mxu1 %vm13935_vm2, %v18274_v7  ;;  %13453 = vrcp.f32 %v4078_v54 }
 0x9f1   : > { %12507 = vmatprep.subr.bf16.mxu1 %v18274_v7  ;;  %13455 = vrcp.f32 %v4087_v46 }
 0x9f2   : > { %v13450_v58 = vpop.eup %13449 }
 0x9f3   : > { %12492 = vmatmul.mubr.msk.bf16.vlgmr.msra.gmra.mrb[120].mxu0 %vm2170_vm6, %v4137_v35  ;;  %v4122_v19 = vmul.f32 %v13450_v58, %v15560_v26  ;;  %v4139_v26 = vpack.c.bf16 %v4123_v44, %v4123_v44  ;;  %v4725_v50 = vpop.permute.xlu0 %4724 }
 0x9f4   : > { %12502 = vmatpush3.bf16.msra.mxu0 %v4490_v43  ;;  %12503 = vmatprep.mubr.msk.bf16.mxu0 %vm13935_vm2, %v18274_v7  ;;  %v4730_v51 = vsel %vm2368_vm4, %v4725_v50, 0 }
 0x9f5   : > { %v4138_v56 = vpack.c.bf16 %v4122_v19, %v4122_v19  ;;  %12513 = vmatprep.subr.bf16.mxu0 %v18274_v7 }
 0x9f6   : > { %v13452_v34 = vpop.eup %13451 }
 0x9f7   : > { %12498 = vmatmul.mubr.msk.bf16.vlgmr.msra.gmra.mrb[140].mxu1 %vm2170_vm6, %v4138_v56  ;;  %v4084_v16 = vpop.xlane.xlu1 %4083  ;;  %v4125_v15 = vmul.f32 %v13452_v34, %v15564_v52  ;;  %v13247_v34 = vld [vmem:[%s18213_s6 + $0x8] sm:$0xff]  }
 0x9f8   : > { %12508 = vmatpush3.bf16.msra.mxu1 %v4538_v47  ;;  %13457 = vrcp.f32 %v4084_v16  ;;  %12509 = vmatprep.mubr.msk.bf16.mxu1 %vm13935_vm2, %v18274_v7 }
 0x9f9   : > { %12519 = vmatprep.subr.bf16.mxu1 %v18274_v7  ;;  %v4141_v62 = vpack.c.bf16 %v4125_v15, %v4125_v15 }
 0x9fa   : > { %v13454_v29 = vpop.eup %13453 }
 0x9fb   : > { %12504 = vmatmul.mubr.msk.bf16.vlgmr.msra.gmra.mrb[124].mxu0 %vm2170_vm6, %v4139_v26  ;;  %v4124_v18 = vmul.f32 %v13454_v29, %v15571_v55  ;;  %v13456_v45 = vpop.eup %13455  ;;  %v4773_v9 = vpop.permute.xlu1 %4772  ;;  %v13248_v29 = vld [vmem:[%s18213_s6] sm:$0xff]  }
 0x9fc   : > { %12514 = vmatpush3.bf16.msra.mxu0 %v4586_v61  ;;  %12515 = vmatprep.mubr.msk.bf16.mxu0 %vm13935_vm2, %v18274_v7  ;;  %v4127_v8 = vmul.f32 %v13456_v45, %v15569_v1 }
 0x9fd   : > { %12525 = vmatprep.subr.bf16.mxu0 %v18274_v7  ;;  %v4140_v59 = vpack.c.bf16 %v4124_v18, %v4124_v18 }
 0x9fe   : > { %v4143_v36 = vpack.c.bf16 %v4127_v8, %v4127_v8 }
 0x9ff   : > { %12510 = vmatmul.mubr.msk.bf16.vlgmr.msra.gmra.mrb[144].mxu1 %vm2170_vm6, %v4140_v59 }
 0xa00   : > { %12520 = vmatpush3.bf16.msra.mxu1 %v4634_v37  ;;  %12521 = vmatprep.mubr.msk.bf16.mxu1 %vm13935_vm2, %v18274_v7 }
 0xa01   : > { %12531 = vmatprep.subr.bf16.mxu1 %v18274_v7 }
 0xa02   : > { %v13458_v55 = vpop.eup %13457 }
 0xa03   : > { %12516 = vmatmul.mubr.msk.bf16.vlgmr.msra.gmra.mrb[128].mxu0 %vm2170_vm6, %v4141_v62  ;;  %v4126_v52 = vmul.f32 %v13458_v55, %v15577_v49  ;;  %v4778_v49 = vsel %vm2368_vm4, %v4773_v9, 0 }
 0xa04   : > { %12526 = vmatpush3.bf16.msra.mxu0 %v4682_v2  ;;  %12527 = vmatprep.mubr.msk.bf16.mxu0 %vm13935_vm2, %v18274_v7 }
 0xa05   : > { %v4142_v13 = vpack.c.bf16 %v4126_v52, %v4126_v52  ;;  %12537 = vmatprep.subr.bf16.mxu0 %v18274_v7 }
 0xa07   : > { %12522 = vmatmul.mubr.msk.bf16.vlgmr.msra.gmra.mrb[148].mxu1 %vm2170_vm6, %v4142_v13 }
 0xa08   : > { %12532 = vmatpush3.bf16.msra.mxu1 %v4730_v51  ;;  %12533 = vmatprep.mubr.msk.bf16.mxu1 %vm13935_vm2, %v18274_v7 }
 0xa09   : > { %12543 = vmatprep.subr.bf16.mxu1 %v18274_v7 }
 0xa0b   : > { %12528 = vmatmul.mubr.msk.bf16.vlgmr.msra.gmra.mrb[132].mxu0 %vm2170_vm6, %v4143_v36 }
 0xa0c   : > { %12538 = vmatpush3.bf16.msra.mxu0 %v4778_v49  ;;  %12539 = vmatprep.mubr.msk.bf16.mxu0 %vm13935_vm2, %v18274_v7 }
 0xa0d   : > { %12549 = vmatprep.subr.bf16.mxu0 %v18274_v7 }
 0xa24   : > { %v4093_v1 = vpop.xlane.xlu0 %4092 }
 0xa25   : > { %13459 = vrcp.f32 %v4093_v1 }
 0xa2c   : > { %v4090_v31 = vpop.xlane.xlu1 %4089 }
 0xa2d   : > { %13461 = vrcp.f32 %v4090_v31  ;;  %v4099_v11 = vpop.xlane.xlu0 %4098 }
 0xa2e   : > { %13463 = vrcp.f32 %v4099_v11 }
 0xa2f   : > { %v13460_v0 = vpop.eup %13459 }
 0xa30   : > { %v4096_v10 = vpop.xlane.xlu1 %4095  ;;  %v4129_v54 = vmul.f32 %v13460_v0, %v15595_v27 }
 0xa31   : > { %13465 = vrcp.f32 %v4096_v10  ;;  %v4821_v56 = vpop.permute.xlu0 %4820 }
 0xa32   : > { %v4145_v17 = vpack.c.bf16 %v4129_v54, %v4129_v54  ;;  %v4826_v26 = vsel %vm2368_vm4, %v4821_v56, 0 }
 0xa34   : > { %12540 = vmatmul.mubr.msk.bf16.vlgmr.msra.gmra.mrb[136].mxu0 %vm2170_vm6, %v4145_v17  ;;  %v4869_v35 = vpop.permute.xlu1 %4868 }
 0xa35   : > { %v4874_v58 = vsel %vm2368_vm4, %v4869_v35, 0  ;;  %12551 = vmatprep.mubr.msk.bf16.mxu0 %vm13935_vm2, %v18274_v7 }
 0xa36   : > { %12550 = vmatpush3.bf16.msra.mxu0 %v4874_v58 }
 0xa37   : > { %v13462_v43 = vpop.eup %13461 }
 0xa38   : > { %v13464_v19 = vpop.eup %13463  ;;  %v4128_v46 = vmul.f32 %v13462_v43, %v15599_v63 }
 0xa39   : > { %v4131_v44 = vmul.f32 %v13464_v19, %v15601_v24 }
 0xa3a   : > { %v4144_v47 = vpack.c.bf16 %v4128_v46, %v4128_v46 }
 0xa3b   : > { %v13466_v27 = vpop.eup %13465  ;;  %v4147_v16 = vpack.c.bf16 %v4131_v44, %v4131_v44 }
 0xa3c   : > { %12534 = vmatmul.mubr.msk.bf16.vlgmr.msra.gmra.mrb[152].mxu1 %vm2170_vm6, %v4144_v47  ;;  %v4130_v63 = vmul.f32 %v13466_v27, %v15605_v57 }
 0xa3d   : > { %12544 = vmatpush3.bf16.msra.mxu1 %v4826_v26  ;;  %12552 = vmatmul.mubr.msk.bf16.vlgmr.msra.gmra.mrb[140].mxu0 %vm2170_vm6, %v4147_v16 }
 0xa3e   : > { %12545 = vmatprep.mubr.msk.bf16.mxu1 %vm13935_vm2, %v18274_v7  ;;  %12555 = vmatprep.subr.bf16.mxu1 %v13247_v34  ;;  %v4146_v24 = vpack.c.bf16 %v4130_v63, %v4130_v63 }
 0xa44   : > { %12546 = vmatmul.mubr.msk.bf16.vlgmr.msra.gmra.mrb[156].mxu1 %vm2170_vm6, %v4146_v24 }
 0xa45   : > { %12556 = vmatpush3.bf16.msra.mxu1 %v13247_v34 }
 0xa46   : > { %12573 = vmatprep.subr.bf16.mxu1 %v13248_v29 }
 0xa9f   : > { %v4238_v61 = vpop.f32.mrb[112].mxu0 }
 0xaa0   : > { %v12469_v18 = vpop.f32.mrb[113].mxu0 }
 0xaa1   : > { %v4241_v15 = vpop.f32.mrb[114].mxu0 }
 0xaa2   : > { %v12470_v59 = vpop.f32.mrb[115].mxu0 }
 0xab2   : > { %v4190_v37 = vpop.f32.mrb[128].mxu1 }
 0xab3   : > { %v4916_v45 = vpack.c.bf16 %v4238_v61, %v4190_v37  ;;  %v12463_v62 = vpop.f32.mrb[129].mxu1 }
 0xab4   : > { %v4193_v55 = vpop.f32.mrb[130].mxu1 }
 0xab5   : > { %v12464_v2 = vpop.f32.mrb[131].mxu1  ;;  %12557 = vmatprep.mubr.msk.bf16.mxu1 %vm1370_vm3, %v4916_v45 }
 0xaba   : > { %v4286_v57 = vpop.f32.mrb[132].mxu1 }
 0xabb   : > { %v12475_v52 = vpop.f32.mrb[133].mxu1 }
 0xabc   : > { %v4289_v50 = vpop.f32.mrb[134].mxu1 }
 0xabd   : > { %v12476_v13 = vpop.f32.mrb[135].mxu1 }
 0xabe   : > { %v4334_v8 = vpop.f32.mrb[116].mxu0 }
 0xabf   : > { %v4917_v51 = vpack.c.bf16 %v4334_v8, %v4286_v57  ;;  %v12481_v9 = vpop.f32.mrb[117].mxu0 }
 0xac0   : > { %v4337_v36 = vpop.f32.mrb[118].mxu0 }
 0xac1   : > { %v12482_v49 = vpop.f32.mrb[119].mxu0  ;;  %12558 = vmatmul.mubr.msk.bf16.vlgmr.msra.gmra.mrb[160].mxu1 %vm1370_vm3, %v4917_v51 }
 0xac2   : > { %v4382_v1 = vpop.f32.mrb[136].mxu1  ;;  %12574 = vmatpush3.bf16.msra.mxu1 %v13248_v29 }
 0xac3   : > { %v12487_v31 = vpop.f32.mrb[137].mxu1 }
 0xac4   : > { %v4385_v11 = vpop.f32.mrb[138].mxu1 }
 0xac5   : > { %v12488_v0 = vpop.f32.mrb[139].mxu1 }
 0xac6   : > { %v4430_v10 = vpop.f32.mrb[120].mxu0 }
 0xac7   : > { %v4918_v54 = vpack.c.bf16 %v4430_v10, %v4382_v1  ;;  %v12493_v17 = vpop.f32.mrb[121].mxu0 }
 0xac8   : > { %v4433_v35 = vpop.f32.mrb[122].mxu0 }
 0xac9   : > { %v12494_v58 = vpop.f32.mrb[123].mxu0  ;;  %12561 = vmatprep.mubr.msk.bf16.mxu1 %vm1370_vm3, %v4918_v54 }
 0xaca   : > { %v4478_v43 = vpop.f32.mrb[140].mxu1 }
 0xacb   : > { %v12499_v19 = vpop.f32.mrb[141].mxu1 }
 0xacc   : > { %v4481_v46 = vpop.f32.mrb[142].mxu1 }
 0xacd   : > { %v12500_v56 = vpop.f32.mrb[143].mxu1 }
 0xace   : > { %v4526_v44 = vpop.f32.mrb[124].mxu0 }
 0xacf   : > { %v4919_v47 = vpack.c.bf16 %v4526_v44, %v4478_v43  ;;  %v12505_v27 = vpop.f32.mrb[125].mxu0 }
 0xad0   : > { %v4529_v16 = vpop.f32.mrb[126].mxu0  ;;  %v18276_v27 = vpack.c.bf16 %v15365_v12, %v15363_v14  ;;  %v18281_v14 = vpack.c.bf16 %v15395_v23, %v15393_v32  ;;  %v18282_v12 = vpack.c.bf16 %v15399_v28, %v15407_v41 }
 0xad1   : > { %v12506_v26 = vpop.f32.mrb[127].mxu0  ;;  %12562 = vmatmul.mubr.msk.bf16.gmra.mrb[164].mxu1 %vm1370_vm3, %v4919_v47  ;;  %v18275_v47 = vpack.c.bf16 %v15354_v4, %v15347_v3  ;;  %v18277_v16 = vpack.c.bf16 %v15371_v22, %v15369_v33  ;;  %v18279_v3 = vpack.c.bf16 %v15383_v21, %v15381_v40  ;;  %v18280_v4 = vpack.c.bf16 %v15389_v42, %v15387_v38  ;;  %v693_v33 = vld [vmem:[%s18210_s3 + $0x8] sm:$0xff] }
 0xad2   : > { %v4574_v34 = vpop.f32.mrb[144].mxu1  ;;  %v18278_v26 = vpack.c.bf16 %v15377_v20, %v15375_v53  ;;  %v18283_v53 = vsub.s32 0, %v14376_v30 }
 0xad3   : > { %v12511_v63 = vpop.f32.mrb[145].mxu1 }
 0xad4   : > { %v4577_v24 = vpop.f32.mrb[146].mxu1  ;;  %v15764_v20 = vrot.slane %v693_v33, %v18283_v53 }
 0xad5   : > { %v12512_v29 = vpop.f32.mrb[147].mxu1 }
 0xad6   : > { %v4622_v61 = vpop.f32.mrb[128].mxu0 }
 0xad7   : > { %v4920_v18 = vpack.c.bf16 %v4622_v61, %v4574_v34  ;;  %v12517_v15 = vpop.f32.mrb[129].mxu0 }
 0xad8   : > { %v4625_v59 = vpop.f32.mrb[130].mxu0 }
 0xad9   : > { %v12518_v37 = vpop.f32.mrb[131].mxu0  ;;  %12565 = vmatprep.mubr.msk.bf16.mxu1 %vm1370_vm3, %v4920_v18 }
 0xada   : > { %v4670_v45 = vpop.f32.mrb[148].mxu1  ;;  %v18284_v37 = vld [vmem:[#allocation10_spill] sm:$0xff] }
 0xadb   : > { %v12523_v62 = vpop.f32.mrb[149].mxu1 }
 0xadc   : > { %v4673_v55 = vpop.f32.mrb[150].mxu1  ;;  %v18285_v62 = vld [vmem:[#allocation11_spill] sm:$0xff] }
 0xadd   : > { %v12524_v2 = vpop.f32.mrb[151].mxu1 }
 0xade   : > { %v4718_v57 = vpop.f32.mrb[132].mxu0 }
 0xadf   : > { %v4921_v52 = vpack.c.bf16 %v4718_v57, %v4670_v45  ;;  %v12529_v50 = vpop.f32.mrb[133].mxu0 }
 0xae0   : > { %v4721_v13 = vpop.f32.mrb[134].mxu0 }
 0xae1   : > { %v12530_v8 = vpop.f32.mrb[135].mxu0  ;;  %12566 = vmatmul.mubr.msk.bf16.gmra.mrb[168].mxu1 %vm1370_vm3, %v4921_v52 }
 0xb07   : > { %v4814_v51 = vpop.f32.mrb[136].mxu0 }
 0xb08   : > { %v12541_v9 = vpop.f32.mrb[137].mxu0 }
 0xb09   : > { %v4817_v36 = vpop.f32.mrb[138].mxu0 }
 0xb0a   : > { %v12542_v49 = vpop.f32.mrb[139].mxu0 }
 0xb0f   : > { %v4766_v1 = vpop.f32.mrb[152].mxu1 }
 0xb10   : > { %v4922_v31 = vpack.c.bf16 %v4814_v51, %v4766_v1  ;;  %v12535_v11 = vpop.f32.mrb[153].mxu1  ;;  %v4910_v0 = vpop.f32.mrb[140].mxu0  ;;  %v18286_v51 = vld [vmem:[#allocation12_spill] sm:$0xff] }
 0xb11   : > { %v4769_v10 = vpop.f32.mrb[154].mxu1  ;;  %v12553_v54 = vpop.f32.mrb[141].mxu0 }
 0xb12   : > { %v12536_v17 = vpop.f32.mrb[155].mxu1  ;;  %v4913_v35 = vpop.f32.mrb[142].mxu0  ;;  %12569 = vmatprep.mubr.msk.bf16.mxu1 %vm1370_vm3, %v4922_v31  ;;  %v18287_v31 = vld [vmem:[#allocation15_spill] sm:$0xff] }
 0xb13   : > { %v12554_v58 = vpop.f32.mrb[143].mxu0  ;;  %v18289_v17 = vld [vmem:[#allocation14_spill] sm:$0xff] }
 0xb17   : > { %v4862_v43 = vpop.f32.mrb[156].mxu1 }
 0xb18   : > { %v4923_v19 = vpack.c.bf16 %v4910_v0, %v4862_v43  ;;  %v12547_v46 = vpop.f32.mrb[157].mxu1  ;;  %v18288_v0 = vld [vmem:[#allocation13_spill] sm:$0xff] }
 0xb19   : > { %v4865_v56 = vpop.f32.mrb[158].mxu1 }
 0xb1a   : > { %v12548_v44 = vpop.f32.mrb[159].mxu1  ;;  %12570 = vmatmul.mubr.msk.bf16.gmra.mrb[172].mxu1 %vm1370_vm3, %v4923_v19 }
 0xb1b   : > { %12575 = vmatprep.mubr.msk.bf16.mxu1 %vm1370_vm3, %v18275_v47 }
 0xb22   : > { %12576 = vmatmul.mubr.msk.bf16.vlgmr.msra.gmra.mrb[160].mxu1 %vm1370_vm3, %v18276_v27 }
 0xb23   : > { %12579 = vmatprep.mubr.msk.bf16.mxu1 %vm1370_vm3, %v18277_v16  ;;  %v18290_v16 = vld [vmem:[#allocation16_spill] sm:$0xff] }
 0xb2a   : > { %12580 = vmatmul.mubr.msk.bf16.gmra.mrb[164].mxu1 %vm1370_vm3, %v18278_v26 }
 0xb2b   : > { %12583 = vmatprep.mubr.msk.bf16.mxu1 %vm1370_vm3, %v18279_v3 }
 0xb32   : > { %12584 = vmatmul.mubr.msk.bf16.gmra.mrb[168].mxu1 %vm1370_vm3, %v18280_v4 }
 0xb33   : > { %12587 = vmatprep.mubr.msk.bf16.mxu1 %vm1370_vm3, %v18281_v14 }
 0xb3a   : > { %12588 = vmatmul.mubr.msk.bf16.gmra.mrb[172].mxu1 %vm1370_vm3, %v18282_v12  ;;  %v18291_v12 = vld [vmem:[#allocation19_spill] sm:$0xff] }
 0xbf5   : > { %v12577_v22 = vpop.f32.mrb[160].mxu1 }
 0xbf6   : > { %v5115_v40 = vpop.f32.mrb[161].mxu1  ;;  %v5180_v21 = vadd.f32 %v12577_v22, %v14412_v48  ;;  %v18292_v22 = vld [vmem:[#allocation17_spill] sm:$0xff] }
 0xbf7   : > { %v5178_v38 = vadd.f32 %v5115_v40, %v14398_v60  ;;  %v12578_v42 = vpop.f32.mrb[162].mxu1 }
 0xbf8   : > { %v5118_v32 = vpop.f32.mrb[163].mxu1  ;;  %v15773_v41 = vadd.f32 %v15764_v20, %v5180_v21  ;;  %v5181_v34 = vadd.f32 %v12578_v42, %v14419_v25  ;;  %v18293_v21 = vld [vmem:[#allocation18_spill] sm:$0xff] }
 0xbf9   : > { %v15769_v23 = vadd.f32 %v15764_v20, %v5178_v38  ;;  %v5179_v28 = vadd.f32 %v5118_v32, %v14405_v6 }
 0xbfa   : > { %v15784_v6 = vadd.f32 %v15764_v20, %v5181_v34  ;;  %v5220_v25 = vsel %vm694_vm1, %v15773_v41, 0.0 }
 0xbfb   : > { %v15777_v63 = vadd.f32 %v15764_v20, %v5179_v28  ;;  %v5214_v48 = vsel %vm694_vm1, %v15769_v23, 0.0 }
 0xbfc   : > { %5215 = vadd.xlane.f32.xlu0 %v5214_v48 }
 0xbfd   : > { %v12581_v60 = vpop.f32.mrb[164].mxu1  ;;  %v5217_v24 = vsel %vm694_vm1, %v15777_v63, 0.0 }
 0xbfe   : > { %5218 = vadd.xlane.f32.xlu1 %v5217_v24  ;;  %v5131_v29 = vpop.f32.mrb[165].mxu1  ;;  %v5184_v55 = vadd.f32 %v12581_v60, %v18285_v62 }
 0xbff   : > { %v5182_v61 = vadd.f32 %v5131_v29, %v14427_v39  ;;  %v12582_v18 = vpop.f32.mrb[166].mxu1  ;;  %v5223_v39 = vsel %vm694_vm1, %v15784_v6, 0.0 }
 0xc00   : > { %5221 = vadd.xlane.f32.xlu0 %v5220_v25  ;;  %v5134_v15 = vpop.f32.mrb[167].mxu1  ;;  %v5185_v59 = vadd.f32 %v12582_v18, %v14447_v5  ;;  %v15806_v8 = vadd.f32 %v15764_v20, %v5184_v55 }
 0xc01   : > { %v5183_v45 = vadd.f32 %v5134_v15, %v18284_v37  ;;  %v15793_v2 = vadd.f32 %v15764_v20, %v5182_v61 }
 0xc02   : > { %v15801_v52 = vadd.f32 %v15764_v20, %v5185_v59  ;;  %v5232_v19 = vsel %vm694_vm1, %v15806_v8, 0.0 }
 0xc03   : > { %v15796_v57 = vadd.f32 %v15764_v20, %v5183_v45  ;;  %v5226_v49 = vsel %vm694_vm1, %v15793_v2, 0.0 }
 0xc04   : > { %5224 = vadd.xlane.f32.xlu0 %v5223_v39  ;;  %v5235_v54 = vsel %vm694_vm1, %v15801_v52, 0.0 }
 0xc05   : > { %v12585_v50 = vpop.f32.mrb[168].mxu1  ;;  %v5229_v5 = vsel %vm694_vm1, %v15796_v57, 0.0 }
 0xc06   : > { %5230 = vadd.xlane.f32.xlu1 %v5229_v5  ;;  %v5147_v13 = vpop.f32.mrb[169].mxu1  ;;  %v5188_v35 = vadd.f32 %v12585_v50, %v18289_v17 }
 0xc07   : > { %v5186_v9 = vadd.f32 %v5147_v13, %v18286_v51  ;;  %v12586_v36 = vpop.f32.mrb[170].mxu1 }
 0xc08   : > { %5227 = vadd.xlane.f32.xlu0 %v5226_v49  ;;  %v5150_v1 = vpop.f32.mrb[171].mxu1  ;;  %v5189_v11 = vadd.f32 %v12586_v36, %v18287_v31  ;;  %v15830_v27 = vadd.f32 %v15764_v20, %v5188_v35 }
 0xc09   : > { %v5187_v10 = vadd.f32 %v5150_v1, %v18288_v0  ;;  %v15817_v58 = vadd.f32 %v15764_v20, %v5186_v9 }
 0xc0a   : > { %5236 = vadd.xlane.f32.xlu1 %v5235_v54  ;;  %v15825_v46 = vadd.f32 %v15764_v20, %v5189_v11  ;;  %v5244_v28 = vsel %vm694_vm1, %v15830_v27, 0.0 }
 0xc0b   : > { %v15820_v43 = vadd.f32 %v15764_v20, %v5187_v10  ;;  %v5238_v4 = vsel %vm694_vm1, %v15817_v58, 0.0 }
 0xc0c   : > { %5233 = vadd.xlane.f32.xlu0 %v5232_v19  ;;  %v5247_v40 = vsel %vm694_vm1, %v15825_v46, 0.0 }
 0xc0d   : > { %v12589_v56 = vpop.f32.mrb[172].mxu1  ;;  %v5241_v44 = vsel %vm694_vm1, %v15820_v43, 0.0 }
 0xc0e   : > { %5242 = vadd.xlane.f32.xlu1 %v5241_v44  ;;  %v5163_v47 = vpop.f32.mrb[173].mxu1  ;;  %v5192_v38 = vadd.f32 %v12589_v56, %v18293_v21 }
 0xc0f   : > { %v5190_v26 = vadd.f32 %v5163_v47, %v18290_v16  ;;  %v12590_v3 = vpop.f32.mrb[174].mxu1 }
 0xc10   : > { %5239 = vadd.xlane.f32.xlu0 %v5238_v4  ;;  %v5166_v14 = vpop.f32.mrb[175].mxu1  ;;  %v5193_v33 = vadd.f32 %v12590_v3, %v18291_v12  ;;  %v15854_v60 = vadd.f32 %v15764_v20, %v5192_v38 }
 0xc11   : > { %v5191_v53 = vadd.f32 %v5166_v14, %v18292_v22  ;;  %v15841_v42 = vadd.f32 %v15764_v20, %v5190_v26 }
 0xc12   : > { %5248 = vadd.xlane.f32.xlu1 %v5247_v40  ;;  %v15849_v34 = vadd.f32 %v15764_v20, %v5193_v33  ;;  %v5256_v61 = vsel %vm694_vm1, %v15854_v60, 0.0 }
 0xc13   : > { %v15844_v32 = vadd.f32 %v15764_v20, %v5191_v53  ;;  %v5250_v24 = vsel %vm694_vm1, %v15841_v42, 0.0 }
 0xc14   : > { %5245 = vadd.xlane.f32.xlu0 %v5244_v28  ;;  %v5259_v29 = vsel %vm694_vm1, %v15849_v34, 0.0 }
 0xc15   : > { %v5253_v48 = vsel %vm694_vm1, %v15844_v32, 0.0 }
 0xc16   : > { %5254 = vadd.xlane.f32.xlu1 %v5253_v48 }
 0xc18   : > { %5251 = vadd.xlane.f32.xlu0 %v5250_v24 }
 0xc1a   : > { %5260 = vadd.xlane.f32.xlu1 %v5259_v29 }
 0xc1c   : > { %5257 = vadd.xlane.f32.xlu0 %v5256_v61 }
 0xc89   : > { %v5216_v18 = vpop.xlane.xlu0 %5215 }
 0xc8a   : > { %v5262_v25 = vmul.f32 0.03125, %v5216_v18 }
 0xc8b   : > { %v5219_v15 = vpop.xlane.xlu1 %5218 }
 0xc8c   : > { %v15863_v59 = vsub.f32 %v15769_v23, %v5262_v25  ;;  %v5263_v20 = vmul.f32 0.03125, %v5219_v15 }
 0xc8d   : > { %v5222_v37 = vpop.xlane.xlu0 %5221 }
 0xc8e   : > { %v15866_v45 = vsub.f32 %v15777_v63, %v5263_v20  ;;  %v5264_v62 = vmul.f32 0.03125, %v5222_v37  ;;  %v5294_v55 = vmul.f32 %v15863_v59, %v15863_v59 }
 0xc90   : > { %v15871_v39 = vsub.f32 %v15773_v41, %v5264_v62  ;;  %v5310_v50 = vsel %vm694_vm1, %v5294_v55, 0.0  ;;  %v5295_v5 = vmul.f32 %v15866_v45, %v15866_v45 }
 0xc91   : > { %v5225_v13 = vpop.xlane.xlu0 %5224  ;;  %5311 = vadd.xlane.f32.xlu0 %v5310_v50 }
 0xc92   : > { %v5265_v51 = vmul.f32 0.03125, %v5225_v13  ;;  %v5313_v9 = vsel %vm694_vm1, %v5295_v5, 0.0  ;;  %v5296_v36 = vmul.f32 %v15871_v39, %v15871_v39 }
 0xc93   : > { %v5231_v49 = vpop.xlane.xlu1 %5230  ;;  %5314 = vadd.xlane.f32.xlu1 %v5313_v9 }
 0xc94   : > { %v15880_v1 = vsub.f32 %v15784_v6, %v5265_v51  ;;  %v5267_v31 = vmul.f32 0.03125, %v5231_v49  ;;  %v5316_v11 = vsel %vm694_vm1, %v5296_v36, 0.0 }
 0xc95   : > { %v5228_v0 = vpop.xlane.xlu0 %5227  ;;  %5317 = vadd.xlane.f32.xlu0 %v5316_v11 }
 0xc96   : > { %v15884_v10 = vsub.f32 %v15796_v57, %v5267_v31  ;;  %v5266_v54 = vmul.f32 0.03125, %v5228_v0  ;;  %v5297_v17 = vmul.f32 %v15880_v1, %v15880_v1 }
 0xc97   : > { %v5237_v35 = vpop.xlane.xlu1 %5236 }
 0xc98   : > { %v15889_v19 = vsub.f32 %v15793_v2, %v5266_v54  ;;  %v5269_v56 = vmul.f32 0.03125, %v5237_v35  ;;  %v5319_v44 = vsel %vm694_vm1, %v5297_v17, 0.0  ;;  %v5299_v47 = vmul.f32 %v15884_v10, %v15884_v10 }
 0xc99   : > { %v5234_v16 = vpop.xlane.xlu0 %5233  ;;  %5320 = vadd.xlane.f32.xlu1 %v5319_v44 }
 0xc9a   : > { %v15895_v26 = vsub.f32 %v15801_v52, %v5269_v56  ;;  %v5268_v3 = vmul.f32 0.03125, %v5234_v16  ;;  %v5298_v4 = vmul.f32 %v15889_v19, %v15889_v19  ;;  %v5325_v12 = vsel %vm694_vm1, %v5299_v47, 0.0 }
 0xc9b   : > { %v5243_v14 = vpop.xlane.xlu1 %5242 }
 0xc9c   : > { %v15901_v33 = vsub.f32 %v15806_v8, %v5268_v3  ;;  %v5271_v22 = vmul.f32 0.03125, %v5243_v14  ;;  %v5322_v53 = vsel %vm694_vm1, %v5298_v4, 0.0  ;;  %v5301_v40 = vmul.f32 %v15895_v26, %v15895_v26 }
 0xc9d   : > { %v5240_v21 = vpop.xlane.xlu0 %5239  ;;  %5323 = vadd.xlane.f32.xlu0 %v5322_v53  ;;  %5326 = vadd.xlane.f32.xlu1 %v5325_v12 }
 0xc9e   : > { %v15907_v38 = vsub.f32 %v15820_v43, %v5271_v22  ;;  %v5270_v28 = vmul.f32 0.03125, %v5240_v21  ;;  %v5300_v48 = vmul.f32 %v15901_v33, %v15901_v33  ;;  %v5331_v29 = vsel %vm694_vm1, %v5301_v40, 0.0 }
 0xc9f   : > { %v5249_v24 = vpop.xlane.xlu1 %5248 }
 0xca0   : > { %v15913_v61 = vsub.f32 %v15817_v58, %v5270_v28  ;;  %v5273_v18 = vmul.f32 0.03125, %v5249_v24  ;;  %v5328_v25 = vsel %vm694_vm1, %v5300_v48, 0.0  ;;  %v5303_v15 = vmul.f32 %v15907_v38, %v15907_v38  ;;  %v13249_v24 = vld [vmem:[%s18214_s7] sm:$0xff]  }
 0xca1   : > { %v5246_v20 = vpop.xlane.xlu0 %5245  ;;  %5329 = vadd.xlane.f32.xlu0 %v5328_v25  ;;  %5332 = vadd.xlane.f32.xlu1 %v5331_v29  ;;  %v13250_v29 = vld [vmem:[%s18214_s7 + $0x8] sm:$0xff]  }
 0xca2   : > { %v15919_v37 = vsub.f32 %v15825_v46, %v5273_v18  ;;  %v5272_v62 = vmul.f32 0.03125, %v5246_v20  ;;  %v5302_v55 = vmul.f32 %v15913_v61, %v15913_v61  ;;  %v5337_v5 = vsel %vm694_vm1, %v5303_v15, 0.0  ;;  %12591 = vmatprep.subr.bf16.mxu0 %v13249_v24 }
 0xca3   : > { %v5255_v50 = vpop.xlane.xlu1 %5254  ;;  %12592 = vmatpush3.bf16.msra.mxu0 %v13249_v24 }
 0xca4   : > { %v15925_v13 = vsub.f32 %v15830_v27, %v5272_v62  ;;  %v5275_v51 = vmul.f32 0.03125, %v5255_v50  ;;  %v5334_v9 = vsel %vm694_vm1, %v5302_v55, 0.0  ;;  %v5305_v36 = vmul.f32 %v15919_v37, %v15919_v37  ;;  %12593 = vmatprep.subr.bf16.mxu0 %v13250_v29 }
 0xca5   : > { %5335 = vadd.xlane.f32.xlu0 %v5334_v9  ;;  %v5252_v49 = vpop.xlane.xlu0 %5251  ;;  %5338 = vadd.xlane.f32.xlu1 %v5337_v5 }
 0xca6   : > { %v15931_v31 = vsub.f32 %v15844_v32, %v5275_v51  ;;  %v5274_v11 = vmul.f32 0.03125, %v5252_v49  ;;  %v5304_v0 = vmul.f32 %v15925_v13, %v15925_v13  ;;  %v5343_v17 = vsel %vm694_vm1, %v5305_v36, 0.0 }
 0xca7   : > { %v5261_v54 = vpop.xlane.xlu1 %5260  ;;  %12594 = vmatpush3.bf16.msra.mxu0 %v13250_v29  ;;  %v18246_v49 = vsub.s32 6, %v14376_v30 }
 0xca8   : > { %v15937_v35 = vsub.f32 %v15841_v42, %v5274_v11  ;;  %v5277_v56 = vmul.f32 0.03125, %v5261_v54  ;;  %v5340_v44 = vsel %vm694_vm1, %v5304_v0, 0.0  ;;  %v5307_v47 = vmul.f32 %v15931_v31, %v15931_v31 }
 0xca9   : > { %5341 = vadd.xlane.f32.xlu0 %v5340_v44  ;;  %v5258_v16 = vpop.xlane.xlu0 %5257  ;;  %5344 = vadd.xlane.f32.xlu1 %v5343_v17  ;;  %v13827_v44 = vld [vmem:[%s18210_s3] sm:$0xff] }
 0xcaa   : > { %v15943_v3 = vsub.f32 %v15849_v34, %v5277_v56  ;;  %v5276_v4 = vmul.f32 0.03125, %v5258_v16  ;;  %v5306_v14 = vmul.f32 %v15937_v35, %v15937_v35  ;;  %v5349_v53 = vsel %vm694_vm1, %v5307_v47, 0.0 }
 0xcab   : > { %v15970_v47 = vrot.slane %v13827_v44, %v18246_v49  ;;  %v18245_v16 = vsub.s32 7, %v14376_v30 }
 0xcac   : > { %v15948_v12 = vsub.f32 %v15854_v60, %v5276_v4  ;;  %v5346_v22 = vsel %vm694_vm1, %v5306_v14, 0.0  ;;  %v5309_v40 = vmul.f32 %v15943_v3, %v15943_v3 }
 0xcad   : > { %5347 = vadd.xlane.f32.xlu0 %v5346_v22  ;;  %5350 = vadd.xlane.f32.xlu1 %v5349_v53 }
 0xcae   : > { %v5308_v21 = vmul.f32 %v15948_v12, %v15948_v12  ;;  %v5355_v48 = vsel %vm694_vm1, %v5309_v40, 0.0 }
 0xcb0   : > { %v5352_v28 = vsel %vm694_vm1, %v5308_v21, 0.0 }
 0xcb1   : > { %5353 = vadd.xlane.f32.xlu0 %v5352_v28  ;;  %5356 = vadd.xlane.f32.xlu1 %v5355_v48 }
 0xd1e   : > { %v5312_v18 = vpop.xlane.xlu0 %5311 }
 0xd1f   : > { %v5358_v25 = vmul.f32 0.03125, %v5312_v18 }
 0xd20   : > { %v5315_v15 = vpop.xlane.xlu1 %5314 }
 0xd21   : > { %v5374_v20 = vadd.f32 1e-05, %v5358_v25  ;;  %v5359_v62 = vmul.f32 0.03125, %v5315_v15  ;;  %v15978_v25 = vrot.slane %v13827_v44, %v18245_v16 }
 0xd22   : > { %v5318_v55 = vpop.xlane.xlu0 %5317 }
 0xd23   : > { %13467 = vrsqrt.f32 %v5374_v20  ;;  %v5375_v50 = vadd.f32 1e-05, %v5359_v62  ;;  %v5360_v5 = vmul.f32 0.03125, %v5318_v55 }
 0xd25   : > { %13469 = vrsqrt.f32 %v5375_v50  ;;  %v5376_v51 = vadd.f32 1e-05, %v5360_v5 }
 0xd26   : > { %v5321_v9 = vpop.xlane.xlu1 %5320 }
 0xd27   : > { %13471 = vrsqrt.f32 %v5376_v51  ;;  %v5361_v36 = vmul.f32 0.03125, %v5321_v9 }
 0xd29   : > { %v5377_v11 = vadd.f32 1e-05, %v5361_v36 }
 0xd2a   : > { %v5324_v0 = vpop.xlane.xlu0 %5323  ;;  %v5327_v54 = vpop.xlane.xlu1 %5326 }
 0xd2b   : > { %13473 = vrsqrt.f32 %v5377_v11  ;;  %v5362_v17 = vmul.f32 0.03125, %v5324_v0  ;;  %v5363_v56 = vmul.f32 0.03125, %v5327_v54 }
 0xd2d   : > { %v13468_v4 = vpop.eup %13467  ;;  %v5378_v14 = vadd.f32 1e-05, %v5362_v17  ;;  %v5379_v22 = vadd.f32 1e-05, %v5363_v56 }
 0xd2e   : > { %v5330_v53 = vpop.xlane.xlu0 %5329  ;;  %v5333_v40 = vpop.xlane.xlu1 %5332  ;;  %v5406_v21 = vmul.f32 %v13468_v4, %v15863_v59 }
 0xd2f   : > { %v13470_v28 = vpop.eup %13469  ;;  %13475 = vrsqrt.f32 %v5378_v14  ;;  %v5364_v48 = vmul.f32 0.03125, %v5330_v53  ;;  %v5365_v24 = vmul.f32 0.03125, %v5333_v40 }
 0xd30   : > { %13477 = vrsqrt.f32 %v5379_v22  ;;  %v5407_v29 = vmul.f32 %v13470_v28, %v15866_v45  ;;  %v5426_v18 = vmul.f32 %v15970_v47, %v5406_v21 }
 0xd31   : > { %v13472_v15 = vpop.eup %13471  ;;  %v5380_v20 = vadd.f32 1e-05, %v5364_v48  ;;  %v5381_v62 = vadd.f32 1e-05, %v5365_v24 }
 0xd32   : > { %v5408_v55 = vmul.f32 %v13472_v15, %v15871_v39  ;;  %v5336_v50 = vpop.xlane.xlu0 %5335  ;;  %v5339_v59 = vpop.xlane.xlu1 %5338  ;;  %v5427_v5 = vmul.f32 %v15970_v47, %v5407_v29  ;;  %v5446_v45 = vadd.f32 %v15978_v25, %v5426_v18 }
 0xd33   : > { %13479 = vrsqrt.f32 %v5380_v20  ;;  %v5366_v51 = vmul.f32 0.03125, %v5336_v50  ;;  %v5367_v9 = vmul.f32 0.03125, %v5339_v59 }
 0xd34   : > { %13481 = vrsqrt.f32 %v5381_v62  ;;  %v5447_v36 = vadd.f32 %v15978_v25, %v5427_v5  ;;  %v5428_v17 = vmul.f32 %v15970_v47, %v5408_v55 }
 0xd35   : > { %v13474_v11 = vpop.eup %13473  ;;  %v5382_v0 = vadd.f32 1e-05, %v5366_v51  ;;  %v5383_v54 = vadd.f32 1e-05, %v5367_v9 }
 0xd36   : > { %v5409_v56 = vmul.f32 %v13474_v11, %v15880_v1  ;;  %v5342_v39 = vpop.xlane.xlu0 %5341  ;;  %v5345_v44 = vpop.xlane.xlu1 %5344  ;;  %v5466_v4 = vpack.c.bf16 %v5447_v36, %v5446_v45  ;;  %v5448_v18 = vadd.f32 %v15978_v25, %v5428_v17 }
 0xd37   : > { %13483 = vrsqrt.f32 %v5382_v0  ;;  %v5368_v14 = vmul.f32 0.03125, %v5342_v39  ;;  %v5369_v22 = vmul.f32 0.03125, %v5345_v44 }
 0xd38   : > { %v5429_v53 = vmul.f32 %v15970_v47, %v5409_v56  ;;  %13485 = vrsqrt.f32 %v5383_v54  ;;  %12595 = vmatprep.mubr.msk.bf16.mxu0 %vm694_vm1, %v5466_v4 }
 0xd39   : > { %v13476_v40 = vpop.eup %13475  ;;  %v5384_v21 = vadd.f32 1e-05, %v5368_v14  ;;  %v5385_v28 = vadd.f32 1e-05, %v5369_v22 }
 0xd3a   : > { %v13478_v48 = vpop.eup %13477  ;;  %v5348_v24 = vpop.xlane.xlu0 %5347  ;;  %v5449_v1 = vadd.f32 %v15978_v25, %v5429_v53  ;;  %v5410_v15 = vmul.f32 %v13476_v40, %v15889_v19 }
 0xd3b   : > { %v5351_v29 = vpop.xlane.xlu1 %5350  ;;  %13487 = vrsqrt.f32 %v5384_v21  ;;  %v5370_v20 = vmul.f32 0.03125, %v5348_v24  ;;  %v5411_v55 = vmul.f32 %v13478_v48, %v15884_v10 }
 0xd3c   : > { %v5371_v62 = vmul.f32 0.03125, %v5351_v29  ;;  %13489 = vrsqrt.f32 %v5385_v28  ;;  %v5467_v50 = vpack.c.bf16 %v5449_v1, %v5448_v18  ;;  %v5430_v59 = vmul.f32 %v15970_v47, %v5410_v15 }
 0xd3d   : > { %v13480_v5 = vpop.eup %13479  ;;  %v5386_v51 = vadd.f32 1e-05, %v5370_v20  ;;  %v5431_v45 = vmul.f32 %v15970_v47, %v5411_v55 }
 0xd3e   : > { %v5387_v9 = vadd.f32 1e-05, %v5371_v62  ;;  %v13482_v36 = vpop.eup %13481  ;;  %v5354_v11 = vpop.xlane.xlu0 %5353  ;;  %12596 = vmatmul.mubr.msk.bf16.vlgmr.msra.gmra.mrb[144].mxu0 %vm694_vm1, %v5467_v50  ;;  %v5450_v19 = vadd.f32 %v15978_v25, %v5430_v59  ;;  %v5412_v54 = vmul.f32 %v13480_v5, %v15901_v33 }
 0xd3f   : > { %v5357_v0 = vpop.xlane.xlu1 %5356  ;;  %13491 = vrsqrt.f32 %v5386_v51  ;;  %v5372_v10 = vmul.f32 0.03125, %v5354_v11  ;;  %v5451_v56 = vadd.f32 %v15978_v25, %v5431_v45  ;;  %v5413_v39 = vmul.f32 %v13482_v36, %v15895_v26 }
 0xd40   : > { %v5373_v17 = vmul.f32 0.03125, %v5357_v0  ;;  %13493 = vrsqrt.f32 %v5387_v9  ;;  %v5432_v44 = vmul.f32 %v15970_v47, %v5412_v54 }
 0xd41   : > { %v13484_v4 = vpop.eup %13483  ;;  %v5388_v14 = vadd.f32 1e-05, %v5372_v10  ;;  %v5468_v53 = vpack.c.bf16 %v5451_v56, %v5450_v19  ;;  %v5433_v21 = vmul.f32 %v15970_v47, %v5413_v39 }
 0xd42   : > { %v5389_v22 = vadd.f32 1e-05, %v5373_v17  ;;  %v13486_v40 = vpop.eup %13485  ;;  %v5452_v28 = vadd.f32 %v15978_v25, %v5432_v44  ;;  %v5414_v33 = vmul.f32 %v13484_v4, %v15913_v61 }
 0xd43   : > { %13495 = vrsqrt.f32 %v5388_v14  ;;  %12599 = vmatprep.mubr.msk.bf16.mxu0 %vm694_vm1, %v5468_v53  ;;  %v5415_v48 = vmul.f32 %v13486_v40, %v15907_v38  ;;  %v5453_v26 = vadd.f32 %v15978_v25, %v5433_v21  ;;  %v13255_v53 = vld [vmem:[%s18216_s9 + $0x20] sm:$0xff]   ;;  %v13256_v40 = vld [vmem:[%s18216_s9 + $0x28] sm:$0xff]   ;;  %v13257_v21 = vld [vmem:[%s18216_s9 + $0x30] sm:$0xff]  }
 0xd44   : > { %13497 = vrsqrt.f32 %v5389_v22  ;;  %v5434_v24 = vmul.f32 %v15970_v47, %v5414_v33  ;;  %v16061_v33 = vld [vmem:[%s18215_s8] ss:$0 sm:$0xff] }
 0xd45   : > { %v13488_v29 = vpop.eup %13487  ;;  %v5435_v18 = vmul.f32 %v15970_v47, %v5415_v48  ;;  %v5469_v15 = vpack.c.bf16 %v5453_v26, %v5452_v28  ;;  %v13258_v28 = vld [vmem:[%s18216_s9 + $0x38] sm:$0xff]  }
 0xd46   : > { %v13490_v1 = vpop.eup %13489  ;;  %v5454_v20 = vadd.f32 %v15978_v25, %v5434_v24  ;;  %v5416_v62 = vmul.f32 %v13488_v29, %v15925_v13 }
 0xd47   : > { %v5455_v61 = vadd.f32 %v15978_v25, %v5435_v18  ;;  %v5417_v55 = vmul.f32 %v13490_v1, %v15919_v37  ;;  %12600 = vmatmul.mubr.msk.bf16.gmra.mrb[148].mxu0 %vm694_vm1, %v5469_v15 }
 0xd48   : > { %v5436_v38 = vmul.f32 %v15970_v47, %v5416_v62 }
 0xd49   : > { %v13492_v50 = vpop.eup %13491  ;;  %v5470_v59 = vpack.c.bf16 %v5455_v61, %v5454_v20  ;;  %v5437_v5 = vmul.f32 %v15970_v47, %v5417_v55 }
 0xd4a   : > { %v13494_v51 = vpop.eup %13493  ;;  %v5456_v9 = vadd.f32 %v15978_v25, %v5436_v38  ;;  %v5418_v45 = vmul.f32 %v13492_v50, %v15937_v35 }
 0xd4b   : > { %12603 = vmatprep.mubr.msk.bf16.mxu0 %vm694_vm1, %v5470_v59  ;;  %v5457_v13 = vadd.f32 %v15978_v25, %v5437_v5  ;;  %v5419_v36 = vmul.f32 %v13494_v51, %v15931_v31 }
 0xd4c   : > { %v5438_v37 = vmul.f32 %v15970_v47, %v5418_v45 }
 0xd4d   : > { %v13496_v11 = vpop.eup %13495  ;;  %v5471_v0 = vpack.c.bf16 %v5457_v13, %v5456_v9  ;;  %v5439_v19 = vmul.f32 %v15970_v47, %v5419_v36 }
 0xd4e   : > { %v13498_v54 = vpop.eup %13497  ;;  %v5458_v10 = vadd.f32 %v15978_v25, %v5438_v37  ;;  %v5420_v17 = vmul.f32 %v13496_v11, %v15948_v12  ;;  %v13252_v12 = vld [vmem:[%s18216_s9 + $0x8] sm:$0xff]  }
 0xd4f   : > { %v5459_v56 = vadd.f32 %v15978_v25, %v5439_v19  ;;  %v5421_v35 = vmul.f32 %v13498_v54, %v15943_v3  ;;  %12604 = vmatmul.mubr.msk.bf16.gmra.mrb[152].mxu0 %vm694_vm1, %v5471_v0  ;;  %v13251_v3 = vld [vmem:[%s18216_s9] sm:$0xff]  }
 0xd50   : > { %v5440_v39 = vmul.f32 %v15970_v47, %v5420_v17  ;;  %12611 = vmatprep.subr.bf16.mxu0 %v13251_v3 }
 0xd51   : > { %v5472_v31 = vpack.c.bf16 %v5459_v56, %v5458_v10  ;;  %v5441_v44 = vmul.f32 %v15970_v47, %v5421_v35  ;;  %12612 = vmatpush3.bf16.msra.mxu0 %v13251_v3  ;;  %v13253_v47 = vld [vmem:[%s18216_s9 + $0x10] sm:$0xff]  }
 0xd52   : > { %v5460_v4 = vadd.f32 %v15978_v25, %v5440_v39  ;;  %12613 = vmatprep.subr.bf16.mxu0 %v13252_v12 }
 0xd53   : > { %12607 = vmatprep.mubr.msk.bf16.mxu0 %vm694_vm1, %v5472_v31  ;;  %v5461_v14 = vadd.f32 %v15978_v25, %v5441_v44  ;;  %v13254_v25 = vld [vmem:[%s18216_s9 + $0x18] sm:$0xff]  }
 0xd55   : > { %v5473_v22 = vpack.c.bf16 %v5461_v14, %v5460_v4  ;;  %12614 = vmatpush3.bf16.msra.mxu0 %v13252_v12 }
 0xd56   : > { %12615 = vmatprep.subr.bf16.mxu0 %v13253_v47 }
 0xd57   : > { %12608 = vmatmul.mubr.msk.bf16.gmra.mrb[156].mxu0 %vm694_vm1, %v5473_v22 }
 0xd59   : > { %12616 = vmatpush3.bf16.msra.mxu0 %v13253_v47 }
 0xd5a   : > { %12617 = vmatprep.subr.bf16.mxu0 %v13254_v25 }
 0xd5d   : > { %12618 = vmatpush3.bf16.msra.mxu0 %v13254_v25 }
 0xd5e   : > { %12619 = vmatprep.subr.bf16.mxu0 %v13255_v53 }
 0xd61   : > { %12620 = vmatpush3.bf16.msra.mxu0 %v13255_v53 }
 0xd62   : > { %12621 = vmatprep.subr.bf16.mxu0 %v13256_v40 }
 0xd65   : > { %12622 = vmatpush3.bf16.msra.mxu0 %v13256_v40 }
 0xd66   : > { %12623 = vmatprep.subr.bf16.mxu0 %v13257_v21 }
 0xd69   : > { %12624 = vmatpush3.bf16.msra.mxu0 %v13257_v21 }
 0xd6a   : > { %12625 = vmatprep.subr.bf16.mxu0 %v13258_v28 }
 0xd6d   : > { %12626 = vmatpush3.bf16.msra.mxu0 %v13258_v28 }
 0xd6e   : > { %12663 = vmatprep.subr.bf16.mxu0 %v18274_v7 }
 0xe11   : > { %v12597_v48 = vpop.f32.mrb[144].mxu0 }
 0xe12   : > { %v16064_v26 = vadd.f32 %v12597_v48, %v16061_v33  ;;  %v5551_v24 = vpop.f32.mrb[145].mxu0 }
 0xe13   : > { %v16067_v29 = vadd.f32 %v16061_v33, %v5551_v24  ;;  %v12598_v18 = vpop.f32.mrb[146].mxu0 }
 0xe14   : > { %v11593_v1 = vmul.f32 -1.702, %v16064_v26  ;;  %v16071_v15 = vadd.f32 %v12598_v18, %v16061_v33  ;;  %v5554_v20 = vpop.f32.mrb[147].mxu0 }
 0xe15   : > { %v11591_v62 = vmul.f32 -1.702, %v16067_v29  ;;  %v16075_v61 = vadd.f32 %v16061_v33, %v5554_v20 }
 0xe16   : > { %v5650_v55 = vmul.f32 1.442695, %v11593_v1  ;;  %v11594_v38 = vmul.f32 -1.702, %v16071_v15 }
 0xe17   : > { %v5646_v50 = vmul.f32 1.442695, %v11591_v62  ;;  %v11592_v59 = vmul.f32 -1.702, %v16075_v61 }
 0xe18   : > { %13499 = vpow2.f32 %v5650_v55  ;;  %v5652_v5 = vmul.f32 1.442695, %v11594_v38 }
 0xe19   : > { %13501 = vpow2.f32 %v5646_v50  ;;  %v5648_v51 = vmul.f32 1.442695, %v11592_v59 }
 0xe1a   : > { %13503 = vpow2.f32 %v5652_v5  ;;  %v12601_v9 = vpop.f32.mrb[148].mxu0 }
 0xe1b   : > { %13505 = vpow2.f32 %v5648_v51  ;;  %v16080_v45 = vadd.f32 %v12601_v9, %v16061_v33  ;;  %v5567_v13 = vpop.f32.mrb[149].mxu0 }
 0xe1c   : > { %v16083_v36 = vadd.f32 %v16061_v33, %v5567_v13  ;;  %v12602_v37 = vpop.f32.mrb[150].mxu0 }
 0xe1d   : > { %v11597_v11 = vmul.f32 -1.702, %v16080_v45  ;;  %v16087_v0 = vadd.f32 %v12602_v37, %v16061_v33  ;;  %v5570_v19 = vpop.f32.mrb[151].mxu0 }
 0xe1e   : > { %v11595_v54 = vmul.f32 -1.702, %v16083_v36  ;;  %v16091_v10 = vadd.f32 %v16061_v33, %v5570_v19 }
 0xe1f   : > { %v5658_v17 = vmul.f32 1.442695, %v11597_v11  ;;  %v11598_v56 = vmul.f32 -1.702, %v16087_v0 }
 0xe20   : > { %v5654_v35 = vmul.f32 1.442695, %v11595_v54  ;;  %v11596_v39 = vmul.f32 -1.702, %v16091_v10 }
 0xe21   : > { %13507 = vpow2.f32 %v5658_v17  ;;  %v5660_v44 = vmul.f32 1.442695, %v11598_v56 }
 0xe22   : > { %v13500_v31 = vpop.eup %13499  ;;  %13509 = vpow2.f32 %v5654_v35  ;;  %v12605_v22 = vpop.f32.mrb[152].mxu0  ;;  %v5656_v21 = vmul.f32 1.442695, %v11596_v39 }
 0xe23   : > { %v13502_v4 = vpop.eup %13501  ;;  %v5680_v14 = vadd.f32 1.0, %v13500_v31  ;;  %13511 = vpow2.f32 %v5660_v44  ;;  %v16096_v47 = vadd.f32 %v12605_v22, %v16061_v33  ;;  %v5583_v25 = vpop.f32.mrb[153].mxu0 }
 0xe24   : > { %v13504_v3 = vpop.eup %13503  ;;  %v5678_v12 = vadd.f32 1.0, %v13502_v4  ;;  %v16099_v28 = vadd.f32 %v16061_v33, %v5583_v25  ;;  %v12606_v48 = vpop.f32.mrb[154].mxu0 }
 0xe25   : > { %v13506_v53 = vpop.eup %13505  ;;  %13513 = vrcp.f32 %v5680_v14  ;;  %v5681_v40 = vadd.f32 1.0, %v13504_v3  ;;  %v11601_v18 = vmul.f32 -1.702, %v16096_v47  ;;  %v16103_v1 = vadd.f32 %v12606_v48, %v16061_v33  ;;  %v5586_v20 = vpop.f32.mrb[155].mxu0 }
 0xe26   : > { %13515 = vrcp.f32 %v5678_v12  ;;  %v5679_v24 = vadd.f32 1.0, %v13506_v53  ;;  %v11599_v62 = vmul.f32 -1.702, %v16099_v28  ;;  %v16107_v55 = vadd.f32 %v16061_v33, %v5586_v20 }
 0xe27   : > { %13517 = vrcp.f32 %v5681_v40  ;;  %v5666_v38 = vmul.f32 1.442695, %v11601_v18  ;;  %v11602_v50 = vmul.f32 -1.702, %v16103_v1 }
 0xe28   : > { %13519 = vrcp.f32 %v5679_v24  ;;  %v5662_v59 = vmul.f32 1.442695, %v11599_v62  ;;  %v11600_v5 = vmul.f32 -1.702, %v16107_v55 }
 0xe29   : > { %13521 = vpow2.f32 %v5656_v21  ;;  %v5668_v51 = vmul.f32 1.442695, %v11602_v50 }
 0xe2a   : > { %13523 = vpow2.f32 %v5666_v38  ;;  %v5664_v9 = vmul.f32 1.442695, %v11600_v5  ;;  %v12609_v13 = vpop.f32.mrb[156].mxu0 }
 0xe2b   : > { %13525 = vpow2.f32 %v5662_v59  ;;  %v13508_v37 = vpop.eup %13507  ;;  %v16112_v11 = vadd.f32 %v12609_v13, %v16061_v33  ;;  %v5599_v19 = vpop.f32.mrb[157].mxu0 }
 0xe2c   : > { %13527 = vpow2.f32 %v5668_v51  ;;  %v13510_v54 = vpop.eup %13509  ;;  %v5684_v17 = vadd.f32 1.0, %v13508_v37  ;;  %v16115_v56 = vadd.f32 %v16061_v33, %v5599_v19  ;;  %v12610_v35 = vpop.f32.mrb[158].mxu0 }
 0xe2d   : > { %13529 = vpow2.f32 %v5664_v9  ;;  %v13512_v39 = vpop.eup %13511  ;;  %v5682_v31 = vadd.f32 1.0, %v13510_v54  ;;  %v11605_v44 = vmul.f32 -1.702, %v16112_v11  ;;  %v16119_v4 = vadd.f32 %v12610_v35, %v16061_v33  ;;  %v5602_v14 = vpop.f32.mrb[159].mxu0 }
 0xe2e   : > { %13531 = vrcp.f32 %v5684_v17  ;;  %v5685_v3 = vadd.f32 1.0, %v13512_v39  ;;  %v11603_v12 = vmul.f32 -1.702, %v16115_v56  ;;  %v16123_v25 = vadd.f32 %v16061_v33, %v5602_v14 }
 0xe2f   : > { %v13514_v22 = vpop.eup %13513  ;;  %13533 = vrcp.f32 %v5682_v31  ;;  %v5674_v40 = vmul.f32 1.442695, %v11605_v44  ;;  %v11606_v21 = vmul.f32 -1.702, %v16119_v4 }
 0xe30   : > { %v13516_v53 = vpop.eup %13515  ;;  %13535 = vrcp.f32 %v5685_v3  ;;  %v5670_v24 = vmul.f32 1.442695, %v11603_v12  ;;  %v11604_v18 = vmul.f32 -1.702, %v16123_v25  ;;  %v5728_v62 = vmul.f32 %v13514_v22, %v16064_v26 }
 0xe31   : > { %v13518_v48 = vpop.eup %13517  ;;  %13537 = vpow2.f32 %v5674_v40  ;;  %v5676_v50 = vmul.f32 1.442695, %v11606_v21  ;;  %v5726_v33 = vmul.f32 %v13516_v53, %v16067_v29 }
 0xe32   : > { %v13520_v20 = vpop.eup %13519  ;;  %v5729_v38 = vmul.f32 %v13518_v48, %v16071_v15  ;;  %13539 = vpow2.f32 %v5670_v24  ;;  %v5672_v51 = vmul.f32 1.442695, %v11604_v18 }
 0xe33   : > { %v13522_v59 = vpop.eup %13521  ;;  %v5727_v5 = vmul.f32 %v13520_v20, %v16075_v61  ;;  %13541 = vpow2.f32 %v5676_v50 }
 0xe34   : > { %v13524_v9 = vpop.eup %13523  ;;  %v5759_v13 = vpack.c.bf16 %v5729_v38, %v5728_v62  ;;  %v5683_v37 = vadd.f32 1.0, %v13522_v59  ;;  %13543 = vpow2.f32 %v5672_v51 }
 0xe35   : > { %v13526_v19 = vpop.eup %13525  ;;  %v5688_v54 = vadd.f32 1.0, %v13524_v9  ;;  %v5758_v17 = vpack.c.bf16 %v5727_v5, %v5726_v33 }
 0xe36   : > { %v13528_v26 = vpop.eup %13527  ;;  %13545 = vrcp.f32 %v5683_v37  ;;  %v5686_v15 = vadd.f32 1.0, %v13526_v19 }
 0xe37   : > { %v13530_v35 = vpop.eup %13529  ;;  %13547 = vrcp.f32 %v5688_v54  ;;  %v5689_v39 = vadd.f32 1.0, %v13528_v26  ;;  %12627 = vmatprep.mubr.bf16.mxu0 %v5758_v17 }
 0xe38   : > { %13549 = vrcp.f32 %v5686_v15  ;;  %v5687_v29 = vadd.f32 1.0, %v13530_v35  ;;  %12628 = vmatmul.mubr.bf16.vlgmr.msra.gmra.mrb[160].mxu0 %v5759_v13  ;;  %v13532_v61 = vpop.eup %13531 }
 0xe39   : > { %13551 = vrcp.f32 %v5689_v39  ;;  %v13534_v31 = vpop.eup %13533  ;;  %v5732_v22 = vmul.f32 %v13532_v61, %v16080_v45 }
 0xe3a   : > { %13553 = vrcp.f32 %v5687_v29  ;;  %v13536_v44 = vpop.eup %13535  ;;  %v5730_v50 = vmul.f32 %v13534_v31, %v16083_v36  ;;  %v16148_v29 = vld [vmem:[%s18210_s3 + $0x8] sm:$0xff] }
 0xe3b   : > { %v13538_v14 = vpop.eup %13537  ;;  %v5733_v3 = vmul.f32 %v13536_v44, %v16087_v0 }
 0xe3c   : > { %v13540_v12 = vpop.eup %13539  ;;  %v5692_v53 = vadd.f32 1.0, %v13538_v14 }
 0xe3d   : > { %v13542_v40 = vpop.eup %13541  ;;  %v5690_v21 = vadd.f32 1.0, %v13540_v12  ;;  %v5761_v48 = vpack.c.bf16 %v5733_v3, %v5732_v22 }
 0xe3e   : > { %v13544_v24 = vpop.eup %13543  ;;  %13555 = vrcp.f32 %v5692_v53  ;;  %v5693_v18 = vadd.f32 1.0, %v13542_v40 }
 0xe3f   : > { %13557 = vrcp.f32 %v5690_v21  ;;  %v5691_v62 = vadd.f32 1.0, %v13544_v24 }
 0xe40   : > { %v13546_v20 = vpop.eup %13545  ;;  %13559 = vrcp.f32 %v5693_v18 }
 0xe41   : > { %v13548_v38 = vpop.eup %13547  ;;  %v5731_v59 = vmul.f32 %v13546_v20, %v16091_v10  ;;  %13561 = vrcp.f32 %v5691_v62 }
 0xe42   : > { %v13550_v45 = vpop.eup %13549  ;;  %v5736_v51 = vmul.f32 %v13548_v38, %v16096_v47 }
 0xe43   : > { %v13552_v0 = vpop.eup %13551  ;;  %v5760_v33 = vpack.c.bf16 %v5731_v59, %v5730_v50  ;;  %v5734_v13 = vmul.f32 %v13550_v45, %v16099_v28 }
 0xe44   : > { %v13554_v5 = vpop.eup %13553  ;;  %v5737_v9 = vmul.f32 %v13552_v0, %v16103_v1 }
 0xe45   : > { %v5735_v37 = vmul.f32 %v13554_v5, %v16107_v55  ;;  %12631 = vmatprep.mubr.bf16.mxu0 %v5760_v33 }
 0xe46   : > { %12632 = vmatmul.mubr.bf16.gmra.mrb[164].mxu0 %v5761_v48  ;;  %v5763_v19 = vpack.c.bf16 %v5737_v9, %v5736_v51 }
 0xe47   : > { %v5762_v36 = vpack.c.bf16 %v5735_v37, %v5734_v13 }
 0xe48   : > { %v13556_v54 = vpop.eup %13555 }
 0xe49   : > { %12635 = vmatprep.mubr.bf16.mxu0 %v5762_v36  ;;  %v13558_v10 = vpop.eup %13557  ;;  %v5740_v15 = vmul.f32 %v13556_v54, %v16112_v11  ;;  %v18294_v11 = vsub.s32 1, %v14376_v30 }
 0xe4a   : > { %v13560_v17 = vpop.eup %13559  ;;  %v5738_v47 = vmul.f32 %v13558_v10, %v16115_v56 }
 0xe4b   : > { %v13562_v26 = vpop.eup %13561  ;;  %v5741_v35 = vmul.f32 %v13560_v17, %v16119_v4  ;;  %v16153_v56 = vrot.slane %v16148_v29, %v18294_v11 }
 0xe4c   : > { %v5739_v1 = vmul.f32 %v13562_v26, %v16123_v25 }
 0xe4d   : > { %v5765_v28 = vpack.c.bf16 %v5741_v35, %v5740_v15 }
 0xe4e   : > { %12636 = vmatmul.mubr.bf16.gmra.mrb[168].mxu0 %v5763_v19  ;;  %v5764_v55 = vpack.c.bf16 %v5739_v1, %v5738_v47 }
 0xe50   : > { %12639 = vmatprep.mubr.bf16.mxu0 %v5764_v55 }
 0xe56   : > { %12640 = vmatmul.mubr.bf16.gmra.mrb[172].mxu0 %v5765_v28 }
 0xe57   : > { %12665 = vmatprep.mubr.msk.bf16.mxu0 %vm13935_vm2, %v18274_v7 }
 0xf0b   : > { %v12629_v39 = vpop.f32.mrb[160].mxu0 }
 0xf0c   : > { %v5848_v4 = vpop.f32.mrb[161].mxu0  ;;  %v5913_v25 = vadd.f32 %v12629_v39, %v15773_v41 }
 0xf0d   : > { %v5911_v61 = vadd.f32 %v5848_v4, %v15769_v23  ;;  %v12630_v31 = vpop.f32.mrb[162].mxu0 }
 0xf0e   : > { %v5851_v44 = vpop.f32.mrb[163].mxu0  ;;  %v5914_v22 = vadd.f32 %v12630_v31, %v15784_v6  ;;  %v16163_v12 = vadd.f32 %v16153_v56, %v5913_v25 }
 0xf0f   : > { %v16158_v14 = vadd.f32 %v16153_v56, %v5911_v61  ;;  %v5912_v3 = vadd.f32 %v5851_v44, %v15777_v63 }
 0xf10   : > { %v16171_v23 = vadd.f32 %v16153_v56, %v5914_v22  ;;  %v5953_v63 = vsel %vm694_vm1, %v16163_v12, 0.0 }
 0xf11   : > { %v16166_v53 = vadd.f32 %v16153_v56, %v5912_v3  ;;  %v5947_v41 = vsel %vm694_vm1, %v16158_v14, 0.0 }
 0xf12   : > { %5948 = vadd.xlane.f32.xlu0 %v5947_v41  ;;  %v5956_v6 = vsel %vm694_vm1, %v16171_v23, 0.0 }
 0xf13   : > { %v5950_v40 = vsel %vm694_vm1, %v16166_v53, 0.0 }
 0xf14   : > { %5951 = vadd.xlane.f32.xlu1 %v5950_v40 }
 0xf16   : > { %5954 = vadd.xlane.f32.xlu0 %v5953_v63 }
 0xf18   : > { %5957 = vadd.xlane.f32.xlu1 %v5956_v6 }
 0xf19   : > { %v12633_v21 = vpop.f32.mrb[164].mxu0 }
 0xf1a   : > { %v5864_v48 = vpop.f32.mrb[165].mxu0  ;;  %v5917_v24 = vadd.f32 %v12633_v21, %v15806_v8 }
 0xf1b   : > { %v5915_v18 = vadd.f32 %v5864_v48, %v15793_v2  ;;  %v12634_v20 = vpop.f32.mrb[166].mxu0 }
 0xf1c   : > { %v5867_v62 = vpop.f32.mrb[167].mxu0  ;;  %v5918_v50 = vadd.f32 %v12634_v20, %v15801_v52  ;;  %v16187_v45 = vadd.f32 %v16153_v56, %v5917_v24 }
 0xf1d   : > { %v16182_v38 = vadd.f32 %v16153_v56, %v5915_v18  ;;  %v5916_v59 = vadd.f32 %v5867_v62, %v15796_v57 }
 0xf1e   : > { %18295 = vst [vmem:[#allocation10_spill] sm:$0xff] %v16187_v45  ;;  %v16195_v2 = vadd.f32 %v16153_v56, %v5918_v50  ;;  %v5965_v13 = vsel %vm694_vm1, %v16187_v45, 0.0 }
 0xf1f   : > { %v16190_v0 = vadd.f32 %v16153_v56, %v5916_v59  ;;  %v5959_v8 = vsel %vm694_vm1, %v16182_v38, 0.0 }
 0xf20   : > { %5960 = vadd.xlane.f32.xlu0 %v5959_v8  ;;  %v5968_v10 = vsel %vm694_vm1, %v16195_v2, 0.0 }
 0xf21   : > { %v12637_v33 = vpop.f32.mrb[168].mxu0  ;;  %v5962_v5 = vsel %vm694_vm1, %v16190_v0, 0.0 }
 0xf22   : > { %5963 = vadd.xlane.f32.xlu1 %v5962_v5  ;;  %v5880_v52 = vpop.f32.mrb[169].mxu0  ;;  %v5921_v57 = vadd.f32 %v12637_v33, %v15830_v27 }
 0xf23   : > { %v5919_v51 = vadd.f32 %v5880_v52, %v15817_v58  ;;  %v12638_v9 = vpop.f32.mrb[170].mxu0 }
 0xf24   : > { %5966 = vadd.xlane.f32.xlu0 %v5965_v13  ;;  %v5883_v37 = vpop.f32.mrb[171].mxu0  ;;  %v5922_v36 = vadd.f32 %v12638_v9, %v15825_v46  ;;  %v16211_v27 = vadd.f32 %v16153_v56, %v5921_v57 }
 0xf25   : > { %v16204_v19 = vadd.f32 %v16153_v56, %v5919_v51  ;;  %v5920_v54 = vadd.f32 %v5883_v37, %v15820_v43 }
 0xf26   : > { %5969 = vadd.xlane.f32.xlu1 %v5968_v10  ;;  %18297 = vst [vmem:[#allocation12_spill] sm:$0xff] %v16211_v27  ;;  %v16219_v26 = vadd.f32 %v16153_v56, %v5922_v36  ;;  %v5977_v28 = vsel %vm694_vm1, %v16211_v27, 0.0 }
 0xf27   : > { %18296 = vst [vmem:[#allocation11_spill] sm:$0xff] %v16204_v19  ;;  %v16214_v58 = vadd.f32 %v16153_v56, %v5920_v54  ;;  %v5971_v17 = vsel %vm694_vm1, %v16204_v19, 0.0 }
 0xf28   : > { %5972 = vadd.xlane.f32.xlu0 %v5971_v17  ;;  %18299 = vst [vmem:[#allocation13_spill] sm:$0xff] %v16219_v26  ;;  %v5980_v25 = vsel %vm694_vm1, %v16219_v26, 0.0 }
 0xf29   : > { %18298 = vst [vmem:[#allocation15_spill] sm:$0xff] %v16214_v58  ;;  %v12641_v46 = vpop.f32.mrb[172].mxu0  ;;  %v5974_v43 = vsel %vm694_vm1, %v16214_v58, 0.0 }
 0xf2a   : > { %5975 = vadd.xlane.f32.xlu1 %v5974_v43  ;;  %v5896_v15 = vpop.f32.mrb[173].mxu0  ;;  %v5925_v35 = vadd.f32 %v12641_v46, %v15854_v60 }
 0xf2b   : > { %v5923_v47 = vadd.f32 %v5896_v15, %v15841_v42  ;;  %v12642_v1 = vpop.f32.mrb[174].mxu0 }
 0xf2c   : > { %5978 = vadd.xlane.f32.xlu0 %v5977_v28  ;;  %v5899_v55 = vpop.f32.mrb[175].mxu0  ;;  %v5926_v11 = vadd.f32 %v12642_v1, %v15849_v34  ;;  %v16235_v60 = vadd.f32 %v16153_v56, %v5925_v35 }
 0xf2d   : > { %v16228_v39 = vadd.f32 %v16153_v56, %v5923_v47  ;;  %v5924_v4 = vadd.f32 %v5899_v55, %v15844_v32 }
 0xf2e   : > { %5981 = vadd.xlane.f32.xlu1 %v5980_v25  ;;  %18301 = vst [vmem:[#allocation16_spill] sm:$0xff] %v16235_v60  ;;  %v16243_v31 = vadd.f32 %v16153_v56, %v5926_v11  ;;  %v5989_v34 = vsel %vm694_vm1, %v16235_v60, 0.0 }
 0xf2f   : > { %18300 = vst [vmem:[#allocation14_spill] sm:$0xff] %v16228_v39  ;;  %v16238_v42 = vadd.f32 %v16153_v56, %v5924_v4  ;;  %v5983_v61 = vsel %vm694_vm1, %v16228_v39, 0.0 }
 0xf30   : > { %5984 = vadd.xlane.f32.xlu0 %v5983_v61  ;;  %18303 = vst [vmem:[#allocation17_spill] sm:$0xff] %v16243_v31  ;;  %v5992_v44 = vsel %vm694_vm1, %v16243_v31, 0.0 }
 0xf31   : > { %18302 = vst [vmem:[#allocation19_spill] sm:$0xff] %v16238_v42  ;;  %v5986_v32 = vsel %vm694_vm1, %v16238_v42, 0.0 }
 0xf32   : > { %5987 = vadd.xlane.f32.xlu1 %v5986_v32 }
 0xf34   : > { %5990 = vadd.xlane.f32.xlu0 %v5989_v34 }
 0xf36   : > { %5993 = vadd.xlane.f32.xlu1 %v5992_v44 }
 0xf9f   : > { %v5949_v22 = vpop.xlane.xlu0 %5948 }
 0xfa0   : > { %v5995_v3 = vmul.f32 0.03125, %v5949_v22 }
 0xfa1   : > { %v5952_v41 = vpop.xlane.xlu1 %5951 }
 0xfa2   : > { %v16252_v40 = vsub.f32 %v16158_v14, %v5995_v3  ;;  %v5996_v56 = vmul.f32 0.03125, %v5952_v41 }
 0xfa3   : > { %v5955_v63 = vpop.xlane.xlu0 %5954 }
 0xfa4   : > { %v16255_v6 = vsub.f32 %v16166_v53, %v5996_v56  ;;  %v5997_v21 = vmul.f32 0.03125, %v5955_v63  ;;  %v6027_v48 = vmul.f32 %v16252_v40, %v16252_v40 }
 0xfa5   : > { %v5958_v24 = vpop.xlane.xlu1 %5957 }
 0xfa6   : > { %v16260_v18 = vsub.f32 %v16163_v12, %v5997_v21  ;;  %v5998_v20 = vmul.f32 0.03125, %v5958_v24  ;;  %v6043_v62 = vsel %vm694_vm1, %v6027_v48, 0.0  ;;  %v6028_v50 = vmul.f32 %v16255_v6, %v16255_v6 }
 0xfa7   : > { %6044 = vadd.xlane.f32.xlu0 %v6043_v62 }
 0xfa8   : > { %v16266_v59 = vsub.f32 %v16171_v23, %v5998_v20  ;;  %v6046_v8 = vsel %vm694_vm1, %v6028_v50, 0.0  ;;  %v6029_v33 = vmul.f32 %v16260_v18, %v16260_v18 }
 0xfa9   : > { %6047 = vadd.xlane.f32.xlu1 %v6046_v8 }
 0xfaa   : > { %v6049_v5 = vsel %vm694_vm1, %v6029_v33, 0.0  ;;  %v6030_v52 = vmul.f32 %v16266_v59, %v16266_v59 }
 0xfab   : > { %6050 = vadd.xlane.f32.xlu0 %v6049_v5 }
 0xfac   : > { %v6052_v57 = vsel %vm694_vm1, %v6030_v52, 0.0 }
 0xfad   : > { %v5961_v51 = vpop.xlane.xlu0 %5960  ;;  %6053 = vadd.xlane.f32.xlu1 %v6052_v57 }
 0xfae   : > { %v5999_v9 = vmul.f32 0.03125, %v5961_v51 }
 0xfaf   : > { %v5964_v13 = vpop.xlane.xlu1 %5963 }
 0xfb0   : > { %v16276_v37 = vsub.f32 %v16182_v38, %v5999_v9  ;;  %v6000_v36 = vmul.f32 0.03125, %v5964_v13 }
 0xfb1   : > { %v5967_v54 = vpop.xlane.xlu0 %5966 }
 0xfb2   : > { %v16279_v10 = vsub.f32 %v16190_v0, %v6000_v36  ;;  %v6001_v17 = vmul.f32 0.03125, %v5967_v54  ;;  %v6031_v46 = vmul.f32 %v16276_v37, %v16276_v37 }
 0xfb3   : > { %v5970_v43 = vpop.xlane.xlu1 %5969 }
 0xfb4   : > { %v16284_v15 = vsub.f32 %v16187_v45, %v6001_v17  ;;  %v6002_v35 = vmul.f32 0.03125, %v5970_v43  ;;  %v6055_v47 = vsel %vm694_vm1, %v6031_v46, 0.0  ;;  %v6032_v1 = vmul.f32 %v16279_v10, %v16279_v10 }
 0xfb5   : > { %v5973_v28 = vpop.xlane.xlu0 %5972  ;;  %6056 = vadd.xlane.f32.xlu0 %v6055_v47 }
 0xfb6   : > { %v16290_v55 = vsub.f32 %v16195_v2, %v6002_v35  ;;  %v6003_v11 = vmul.f32 0.03125, %v5973_v28  ;;  %v6058_v4 = vsel %vm694_vm1, %v6032_v1, 0.0  ;;  %v6033_v25 = vmul.f32 %v16284_v15, %v16284_v15 }
 0xfb7   : > { %v5976_v61 = vpop.xlane.xlu1 %5975  ;;  %6059 = vadd.xlane.f32.xlu1 %v6058_v4 }
 0xfb8   : > { %v16296_v32 = vsub.f32 %v16204_v19, %v6003_v11  ;;  %v6004_v34 = vmul.f32 0.03125, %v5976_v61  ;;  %v6061_v44 = vsel %vm694_vm1, %v6033_v25, 0.0  ;;  %v6034_v22 = vmul.f32 %v16290_v55, %v16290_v55 }
 0xfb9   : > { %v5979_v3 = vpop.xlane.xlu0 %5978  ;;  %6062 = vadd.xlane.f32.xlu0 %v6061_v44 }
 0xfba   : > { %v16302_v41 = vsub.f32 %v16214_v58, %v6004_v34  ;;  %v6005_v56 = vmul.f32 0.03125, %v5979_v3  ;;  %v6064_v63 = vsel %vm694_vm1, %v6034_v22, 0.0  ;;  %v6035_v21 = vmul.f32 %v16296_v32, %v16296_v32 }
 0xfbb   : > { %v5982_v48 = vpop.xlane.xlu1 %5981  ;;  %6065 = vadd.xlane.f32.xlu1 %v6064_v63  ;;  %v13259_v63 = vld [vmem:[%s18211_s4 + $0x10] sm:$0xff]  }
 0xfbc   : > { %v16308_v24 = vsub.f32 %v16211_v27, %v6005_v56  ;;  %v6006_v20 = vmul.f32 0.03125, %v5982_v48  ;;  %v6067_v62 = vsel %vm694_vm1, %v6035_v21, 0.0  ;;  %v6036_v50 = vmul.f32 %v16302_v41, %v16302_v41  ;;  %12643 = vmatprep.subr.bf16.mxu1 %v13259_v63  ;;  %v13260_v21 = vld [vmem:[%s18211_s4 + $0x18] sm:$0xff]  }
 0xfbd   : > { %6068 = vadd.xlane.f32.xlu0 %v6067_v62  ;;  %v5985_v8 = vpop.xlane.xlu0 %5984  ;;  %12644 = vmatpush3.bf16.msra.mxu1 %v13259_v63 }
 0xfbe   : > { %v16314_v33 = vsub.f32 %v16219_v26, %v6006_v20  ;;  %v6007_v5 = vmul.f32 0.03125, %v5985_v8  ;;  %v6070_v52 = vsel %vm694_vm1, %v6036_v50, 0.0  ;;  %v6037_v57 = vmul.f32 %v16308_v24, %v16308_v24  ;;  %12645 = vmatprep.subr.bf16.mxu1 %v13260_v21 }
 0xfbf   : > { %6071 = vadd.xlane.f32.xlu1 %v6070_v52  ;;  %v5988_v51 = vpop.xlane.xlu1 %5987 }
 0xfc0   : > { %v16320_v9 = vsub.f32 %v16228_v39, %v6007_v5  ;;  %v6008_v13 = vmul.f32 0.03125, %v5988_v51  ;;  %v6073_v36 = vsel %vm694_vm1, %v6037_v57, 0.0  ;;  %v6038_v54 = vmul.f32 %v16314_v33, %v16314_v33 }
 0xfc1   : > { %6074 = vadd.xlane.f32.xlu0 %v6073_v36  ;;  %v5991_v17 = vpop.xlane.xlu0 %5990  ;;  %12646 = vmatpush3.bf16.msra.mxu1 %v13260_v21 }
 0xfc2   : > { %v16326_v46 = vsub.f32 %v16238_v42, %v6008_v13  ;;  %v6009_v43 = vmul.f32 0.03125, %v5991_v17  ;;  %v6076_v35 = vsel %vm694_vm1, %v6038_v54, 0.0  ;;  %v6039_v47 = vmul.f32 %v16320_v9, %v16320_v9  ;;  %12687 = vmatprep.subr.bf16.mxu1 %v18274_v7 }
 0xfc3   : > { %6077 = vadd.xlane.f32.xlu1 %v6076_v35  ;;  %v5994_v1 = vpop.xlane.xlu1 %5993  ;;  %v18244_v17 = vsub.s32 2, %v14376_v30  ;;  %v18243_v35 = vsub.s32 3, %v14376_v30 }
 0xfc4   : > { %v16332_v28 = vsub.f32 %v16235_v60, %v6009_v43  ;;  %v6010_v11 = vmul.f32 0.03125, %v5994_v1  ;;  %v6079_v4 = vsel %vm694_vm1, %v6039_v47, 0.0  ;;  %v6040_v25 = vmul.f32 %v16326_v46, %v16326_v46 }
 0xfc5   : > { %6080 = vadd.xlane.f32.xlu0 %v6079_v4  ;;  %v16358_v43 = vrot.slane %v16148_v29, %v18244_v17 }
 0xfc6   : > { %v16338_v61 = vsub.f32 %v16243_v31, %v6010_v11  ;;  %v6082_v34 = vsel %vm694_vm1, %v6040_v25, 0.0  ;;  %v6041_v44 = vmul.f32 %v16332_v28, %v16332_v28 }
 0xfc7   : > { %6083 = vadd.xlane.f32.xlu1 %v6082_v34 }
 0xfc8   : > { %v6085_v22 = vsel %vm694_vm1, %v6041_v44, 0.0  ;;  %v6042_v3 = vmul.f32 %v16338_v61, %v16338_v61 }
 0xfc9   : > { %6086 = vadd.xlane.f32.xlu0 %v6085_v22 }
 0xfca   : > { %v6088_v56 = vsel %vm694_vm1, %v6042_v3, 0.0  ;;  %v16365_v3 = vrot.slane %v16148_v29, %v18243_v35 }
 0xfcb   : > { %6089 = vadd.xlane.f32.xlu1 %v6088_v56 }
0x1034   : > { %v6045_v48 = vpop.xlane.xlu0 %6044 }
0x1035   : > { %v6091_v20 = vmul.f32 0.03125, %v6045_v48 }
0x1036   : > { %v6048_v62 = vpop.xlane.xlu1 %6047 }
0x1037   : > { %v6107_v50 = vadd.f32 1e-05, %v6091_v20  ;;  %v6092_v8 = vmul.f32 0.03125, %v6048_v62 }
0x1038   : > { %v6051_v5 = vpop.xlane.xlu0 %6050 }
0x1039   : > { %13563 = vrsqrt.f32 %v6107_v50  ;;  %v6108_v52 = vadd.f32 1e-05, %v6092_v8  ;;  %v6093_v57 = vmul.f32 0.03125, %v6051_v5 }
0x103a   : > { %v6054_v51 = vpop.xlane.xlu1 %6053 }
0x103b   : > { %13565 = vrsqrt.f32 %v6108_v52  ;;  %v6109_v13 = vadd.f32 1e-05, %v6093_v57  ;;  %v6094_v36 = vmul.f32 0.03125, %v6054_v51 }
0x103d   : > { %13567 = vrsqrt.f32 %v6109_v13  ;;  %v6110_v54 = vadd.f32 1e-05, %v6094_v36 }
0x103f   : > { %13569 = vrsqrt.f32 %v6110_v54 }
0x1042   : > { %v6057_v47 = vpop.xlane.xlu0 %6056 }
0x1043   : > { %v13564_v1 = vpop.eup %13563  ;;  %v6095_v11 = vmul.f32 0.03125, %v6057_v47 }
0x1044   : > { %v6060_v4 = vpop.xlane.xlu1 %6059  ;;  %v6139_v25 = vmul.f32 %v13564_v1, %v16252_v40 }
0x1045   : > { %v13566_v34 = vpop.eup %13565  ;;  %v6111_v44 = vadd.f32 1e-05, %v6095_v11  ;;  %v6096_v22 = vmul.f32 0.03125, %v6060_v4 }
0x1046   : > { %v6063_v56 = vpop.xlane.xlu0 %6062  ;;  %v6140_v63 = vmul.f32 %v13566_v34, %v16255_v6  ;;  %v6159_v21 = vmul.f32 %v16358_v43, %v6139_v25 }
0x1047   : > { %v13568_v48 = vpop.eup %13567  ;;  %13571 = vrsqrt.f32 %v6111_v44  ;;  %v6112_v20 = vadd.f32 1e-05, %v6096_v22  ;;  %v6097_v62 = vmul.f32 0.03125, %v6063_v56 }
0x1048   : > { %v6141_v50 = vmul.f32 %v13568_v48, %v16260_v18  ;;  %v6066_v40 = vpop.xlane.xlu1 %6065  ;;  %v6160_v8 = vmul.f32 %v16358_v43, %v6140_v63  ;;  %v6179_v13 = vadd.f32 %v16365_v3, %v6159_v21 }
0x1049   : > { %v13570_v5 = vpop.eup %13569  ;;  %13573 = vrsqrt.f32 %v6112_v20  ;;  %v6113_v52 = vadd.f32 1e-05, %v6097_v62  ;;  %v6098_v57 = vmul.f32 0.03125, %v6066_v40 }
0x104a   : > { %v6161_v29 = vmul.f32 %v16358_v43, %v6141_v50  ;;  %v6142_v51 = vmul.f32 %v13570_v5, %v16266_v59  ;;  %v6069_v6 = vpop.xlane.xlu0 %6068  ;;  %v6180_v36 = vadd.f32 %v16365_v3, %v6160_v8 }
0x104b   : > { %13575 = vrsqrt.f32 %v6113_v52  ;;  %v6114_v54 = vadd.f32 1e-05, %v6098_v57  ;;  %v6099_v47 = vmul.f32 0.03125, %v6069_v6 }
0x104c   : > { %v6162_v18 = vmul.f32 %v16358_v43, %v6142_v51  ;;  %v6072_v1 = vpop.xlane.xlu1 %6071  ;;  %v6200_v11 = vpack.c.bf16 %v6180_v36, %v6179_v13  ;;  %v6181_v34 = vadd.f32 %v16365_v3, %v6161_v29 }
0x104d   : > { %13577 = vrsqrt.f32 %v6114_v54  ;;  %v6115_v4 = vadd.f32 1e-05, %v6099_v47  ;;  %v6100_v25 = vmul.f32 0.03125, %v6072_v1 }
0x104e   : > { %v6182_v44 = vadd.f32 %v16365_v3, %v6162_v18  ;;  %v6075_v59 = vpop.xlane.xlu0 %6074  ;;  %12647 = vmatprep.mubr.msk.bf16.mxu1 %vm694_vm1, %v6200_v11 }
0x104f   : > { %13579 = vrsqrt.f32 %v6115_v4  ;;  %v6116_v22 = vadd.f32 1e-05, %v6100_v25  ;;  %v6101_v56 = vmul.f32 0.03125, %v6075_v59 }
0x1050   : > { %v6078_v63 = vpop.xlane.xlu1 %6077  ;;  %v6201_v21 = vpack.c.bf16 %v6182_v44, %v6181_v34 }
0x1051   : > { %v13572_v48 = vpop.eup %13571  ;;  %13581 = vrsqrt.f32 %v6116_v22  ;;  %v6117_v20 = vadd.f32 1e-05, %v6101_v56  ;;  %v6102_v62 = vmul.f32 0.03125, %v6078_v63 }
0x1052   : > { %v6081_v50 = vpop.xlane.xlu0 %6080  ;;  %12648 = vmatmul.mubr.msk.bf16.vlgmr.msra.gmra.mrb[176].mxu1 %vm694_vm1, %v6201_v21  ;;  %v6143_v40 = vmul.f32 %v13572_v48, %v16276_v37 }
0x1053   : > { %v13574_v8 = vpop.eup %13573  ;;  %13583 = vrsqrt.f32 %v6117_v20  ;;  %v6118_v5 = vadd.f32 1e-05, %v6102_v62  ;;  %v6103_v52 = vmul.f32 0.03125, %v6081_v50 }
0x1054   : > { %v6084_v57 = vpop.xlane.xlu1 %6083  ;;  %v6144_v29 = vmul.f32 %v13574_v8, %v16279_v10  ;;  %v6163_v51 = vmul.f32 %v16358_v43, %v6143_v40 }
0x1055   : > { %v13576_v6 = vpop.eup %13575  ;;  %13585 = vrsqrt.f32 %v6118_v5  ;;  %v6119_v13 = vadd.f32 1e-05, %v6103_v52  ;;  %v6104_v36 = vmul.f32 0.03125, %v6084_v57 }
0x1056   : > { %v6087_v54 = vpop.xlane.xlu0 %6086  ;;  %v6164_v47 = vmul.f32 %v16358_v43, %v6144_v29  ;;  %v6145_v18 = vmul.f32 %v13576_v6, %v16284_v15  ;;  %v6183_v25 = vadd.f32 %v16365_v3, %v6163_v51 }
0x1057   : > { %v13578_v1 = vpop.eup %13577  ;;  %13587 = vrsqrt.f32 %v6119_v13  ;;  %v6120_v37 = vadd.f32 1e-05, %v6104_v36  ;;  %v6105_v11 = vmul.f32 0.03125, %v6087_v54 }
0x1058   : > { %v6090_v4 = vpop.xlane.xlu1 %6089  ;;  %v6184_v10 = vadd.f32 %v16365_v3, %v6164_v47  ;;  %v6146_v34 = vmul.f32 %v13578_v1, %v16290_v55  ;;  %v6165_v44 = vmul.f32 %v16358_v43, %v6145_v18 }
0x1059   : > { %v13580_v59 = vpop.eup %13579  ;;  %13589 = vrsqrt.f32 %v6120_v37  ;;  %v6121_v22 = vadd.f32 1e-05, %v6105_v11  ;;  %v6106_v56 = vmul.f32 0.03125, %v6090_v4 }
0x105a   : > { %v6202_v63 = vpack.c.bf16 %v6184_v10, %v6183_v25  ;;  %v6166_v15 = vmul.f32 %v16358_v43, %v6146_v34  ;;  %v6147_v21 = vmul.f32 %v13580_v59, %v16296_v32  ;;  %v6185_v62 = vadd.f32 %v16365_v3, %v6165_v44 }
0x105b   : > { %v13582_v48 = vpop.eup %13581  ;;  %13591 = vrsqrt.f32 %v6121_v22  ;;  %v6122_v20 = vadd.f32 1e-05, %v6106_v56 }
0x105c   : > { %12651 = vmatprep.mubr.msk.bf16.mxu1 %vm694_vm1, %v6202_v63  ;;  %v6186_v55 = vadd.f32 %v16365_v3, %v6166_v15  ;;  %v6148_v50 = vmul.f32 %v13582_v48, %v16302_v41  ;;  %v6167_v40 = vmul.f32 %v16358_v43, %v6147_v21 }
0x105d   : > { %v13584_v8 = vpop.eup %13583  ;;  %13593 = vrsqrt.f32 %v6122_v20 }
0x105e   : > { %v6203_v5 = vpack.c.bf16 %v6186_v55, %v6185_v62  ;;  %v6168_v52 = vmul.f32 %v16358_v43, %v6148_v50  ;;  %v6149_v32 = vmul.f32 %v13584_v8, %v16308_v24  ;;  %v6187_v29 = vadd.f32 %v16365_v3, %v6167_v40 }
0x105f   : > { %v13586_v57 = vpop.eup %13585 }
0x1060   : > { %12652 = vmatmul.mubr.msk.bf16.gmra.mrb[180].mxu1 %vm694_vm1, %v6203_v5  ;;  %v6188_v51 = vadd.f32 %v16365_v3, %v6168_v52  ;;  %v6150_v6 = vmul.f32 %v13586_v57, %v16314_v33  ;;  %v6169_v41 = vmul.f32 %v16358_v43, %v6149_v32 }
0x1061   : > { %v13588_v13 = vpop.eup %13587 }
0x1062   : > { %v6204_v36 = vpack.c.bf16 %v6188_v51, %v6187_v29  ;;  %v6170_v54 = vmul.f32 %v16358_v43, %v6150_v6  ;;  %v6151_v47 = vmul.f32 %v13588_v13, %v16320_v9  ;;  %v6189_v24 = vadd.f32 %v16365_v3, %v6169_v41 }
0x1063   : > { %v13590_v18 = vpop.eup %13589 }
0x1064   : > { %12655 = vmatprep.mubr.msk.bf16.mxu1 %vm694_vm1, %v6204_v36  ;;  %v6190_v1 = vadd.f32 %v16365_v3, %v6170_v54  ;;  %v6152_v37 = vmul.f32 %v13590_v18, %v16326_v46  ;;  %v6171_v11 = vmul.f32 %v16358_v43, %v6151_v47 }
0x1065   : > { %v13592_v33 = vpop.eup %13591 }
0x1066   : > { %v6205_v4 = vpack.c.bf16 %v6190_v1, %v6189_v24  ;;  %v6172_v25 = vmul.f32 %v16358_v43, %v6152_v37  ;;  %v6153_v10 = vmul.f32 %v13592_v33, %v16332_v28  ;;  %v6191_v9 = vadd.f32 %v16365_v3, %v6171_v11 }
0x1067   : > { %v13594_v34 = vpop.eup %13593 }
0x1068   : > { %12656 = vmatmul.mubr.msk.bf16.gmra.mrb[184].mxu1 %vm694_vm1, %v6205_v4  ;;  %v6192_v44 = vadd.f32 %v16365_v3, %v6172_v25  ;;  %v6154_v59 = vmul.f32 %v13594_v34, %v16338_v61  ;;  %v6173_v22 = vmul.f32 %v16358_v43, %v6153_v10  ;;  %v11620_v61 = vld [vmem:[%s18212_s5 + $0x1] ss:$0 sm:$0xff] }
0x106a   : > { %v6206_v46 = vpack.c.bf16 %v6192_v44, %v6191_v9  ;;  %v6174_v56 = vmul.f32 %v16358_v43, %v6154_v59  ;;  %v6193_v63 = vadd.f32 %v16365_v3, %v6173_v22 }
0x106c   : > { %12659 = vmatprep.mubr.msk.bf16.mxu1 %vm694_vm1, %v6206_v46  ;;  %v6194_v28 = vadd.f32 %v16365_v3, %v6174_v56 }
0x106e   : > { %v6207_v15 = vpack.c.bf16 %v6194_v28, %v6193_v63 }
0x1070   : > { %12660 = vmatmul.mubr.msk.bf16.gmra.mrb[188].mxu1 %vm694_vm1, %v6207_v15 }
0x1071   : > { %12689 = vmatprep.mubr.msk.bf16.mxu1 %vm13935_vm2, %v18274_v7 }
0x1125   : > { %v12649_v21 = vpop.f32.mrb[176].mxu1 }
0x1126   : > { %v6286_v48 = vpop.f32.mrb[177].mxu1  ;;  %v6295_v40 = vadd.f32 %v12649_v21, %v11620_v61 }
0x1127   : > { %v6287_v20 = vadd.f32 %v11620_v61, %v6286_v48  ;;  %v12650_v43 = vpop.f32.mrb[178].mxu1 }
0x1128   : > { %v6289_v62 = vpop.f32.mrb[179].mxu1  ;;  %v16435_v8 = vpack.c.bf16 %v6295_v40, %v6295_v40  ;;  %v6298_v5 = vadd.f32 %v12650_v43, %v11620_v61 }
0x1129   : > { %v16427_v55 = vpack.c.bf16 %v6287_v20, %v6287_v20  ;;  %v6290_v50 = vadd.f32 %v11620_v61, %v6289_v62 }
0x112a   : > { %v16439_v52 = vpack.c.bf16 %v6298_v5, %v6298_v5 }
0x112b   : > { %v16429_v3 = vpack.c.bf16 %v6290_v50, %v6290_v50  ;;  %6371 = vrot.lane.b32.xlu0 %v16427_v55, %s13936_s25 }
0x112d   : > { %6420 = vrot.lane.b32.xlu1 %v16429_v3, %s13936_s25 }
0x1131   : > { %6469 = vrot.lane.b32.xlu1 %v16435_v8, %s13936_s25 }
0x1133   : > { %v12653_v32 = vpop.f32.mrb[180].mxu1 }
0x1134   : > { %v6302_v57 = vpop.f32.mrb[181].mxu1  ;;  %v6311_v41 = vadd.f32 %v12653_v32, %v11620_v61 }
0x1135   : > { %v6303_v29 = vadd.f32 %v11620_v61, %v6302_v57  ;;  %v12654_v51 = vpop.f32.mrb[182].mxu1  ;;  %6518 = vrot.lane.b32.xlu1 %v16439_v52, %s13936_s25 }
0x1136   : > { %v6305_v6 = vpop.f32.mrb[183].mxu1  ;;  %v6314_v54 = vadd.f32 %v12654_v51, %v11620_v61  ;;  %v16449_v18 = vpack.c.bf16 %v6311_v41, %v6311_v41 }
0x1137   : > { %v16443_v13 = vpack.c.bf16 %v6303_v29, %v6303_v29  ;;  %v6306_v36 = vadd.f32 %v11620_v61, %v6305_v6 }
0x1138   : > { %v16453_v37 = vpack.c.bf16 %v6314_v54, %v6314_v54 }
0x1139   : > { %v16445_v47 = vpack.c.bf16 %v6306_v36, %v6306_v36  ;;  %6567 = vrot.lane.b32.xlu0 %v16443_v13, %s13936_s25 }
0x113b   : > { %v12657_v24 = vpop.f32.mrb[184].mxu1  ;;  %6616 = vrot.lane.b32.xlu1 %v16445_v47, %s13936_s25 }
0x113c   : > { %v6318_v1 = vpop.f32.mrb[185].mxu1  ;;  %v6327_v25 = vadd.f32 %v12657_v24, %v11620_v61 }
0x113d   : > { %v6319_v11 = vadd.f32 %v11620_v61, %v6318_v1  ;;  %6665 = vrot.lane.b32.xlu0 %v16449_v18, %s13936_s25  ;;  %v12658_v33 = vpop.f32.mrb[186].mxu1 }
0x113e   : > { %v6321_v4 = vpop.f32.mrb[187].mxu1  ;;  %v6330_v9 = vadd.f32 %v12658_v33, %v11620_v61  ;;  %v16465_v59 = vpack.c.bf16 %v6327_v25, %v6327_v25 }
0x113f   : > { %v16457_v10 = vpack.c.bf16 %v6319_v11, %v6319_v11  ;;  %v6322_v34 = vadd.f32 %v11620_v61, %v6321_v4  ;;  %6714 = vrot.lane.b32.xlu1 %v16453_v37, %s13936_s25 }
0x1140   : > { %v16469_v56 = vpack.c.bf16 %v6330_v9, %v6330_v9 }
0x1141   : > { %v16461_v44 = vpack.c.bf16 %v6322_v34, %v6322_v34  ;;  %6763 = vrot.lane.b32.xlu0 %v16457_v10, %s13936_s25 }
0x1143   : > { %v12661_v22 = vpop.f32.mrb[188].mxu1  ;;  %6812 = vrot.lane.b32.xlu1 %v16461_v44, %s13936_s25 }
0x1144   : > { %v6334_v46 = vpop.f32.mrb[189].mxu1  ;;  %v6343_v21 = vadd.f32 %v12661_v22, %v11620_v61 }
0x1145   : > { %v6335_v63 = vadd.f32 %v11620_v61, %v6334_v46  ;;  %6861 = vrot.lane.b32.xlu0 %v16465_v59, %s13936_s25  ;;  %v12662_v28 = vpop.f32.mrb[190].mxu1 }
0x1146   : > { %v6337_v15 = vpop.f32.mrb[191].mxu1  ;;  %v6346_v43 = vadd.f32 %v12662_v28, %v11620_v61  ;;  %v16481_v50 = vpack.c.bf16 %v6343_v21, %v6343_v21 }
0x1147   : > { %v16473_v48 = vpack.c.bf16 %v6335_v63, %v6335_v63  ;;  %v6338_v20 = vadd.f32 %v11620_v61, %v6337_v15  ;;  %6910 = vrot.lane.b32.xlu1 %v16469_v56, %s13936_s25 }
0x1148   : > { %v16485_v40 = vpack.c.bf16 %v6346_v43, %v6346_v43 }
0x1149   : > { %v16477_v62 = vpack.c.bf16 %v6338_v20, %v6338_v20  ;;  %6959 = vrot.lane.b32.xlu0 %v16473_v48, %s13936_s25 }
0x114b   : > { %7008 = vrot.lane.b32.xlu1 %v16477_v62, %s13936_s25 }
0x114d   : > { %7057 = vrot.lane.b32.xlu0 %v16481_v50, %s13936_s25 }
0x114f   : > { %7106 = vrot.lane.b32.xlu1 %v16485_v40, %s13936_s25  ;;  %s18305_s25 = smov 112  }
0x1151   : > { %7362 = vrot.lane.b32.xlu0 %v16427_v55, %s13937_s16 }
0x1153   : > { %7410 = vrot.lane.b32.xlu1 %v16429_v3, %s13937_s16 }
0x1155   : > { %7458 = vrot.lane.b32.xlu0 %v16435_v8, %s13937_s16 }
0x1157   : > { %7506 = vrot.lane.b32.xlu1 %v16439_v52, %s13937_s16 }
0x1159   : > { %7554 = vrot.lane.b32.xlu0 %v16443_v13, %s13937_s16 }
0x115b   : > { %7602 = vrot.lane.b32.xlu1 %v16445_v47, %s13937_s16 }
0x115d   : > { %7650 = vrot.lane.b32.xlu0 %v16449_v18, %s13937_s16 }
0x115f   : > { %7698 = vrot.lane.b32.xlu1 %v16453_v37, %s13937_s16 }
0x1161   : > { %7746 = vrot.lane.b32.xlu0 %v16457_v10, %s13937_s16 }
0x1163   : > { %7794 = vrot.lane.b32.xlu1 %v16461_v44, %s13937_s16 }
0x1167   : > { %7842 = vrot.lane.b32.xlu1 %v16465_v59, %s13937_s16 }
0x119d   : > { %v6372_v61 = vpop.permute.xlu0 %6371 }
0x119e   : > { %v6377_v5 = vsel %vm1370_vm3, %v6372_v61, 0 }
0x119f   : > { %12664 = vmatpush3.bf16.xpose.msra.mxu0 %v6377_v5  ;;  %v6421_v32 = vpop.permute.xlu1 %6420 }
0x11a0   : > { %12669 = vmatprep.subr.bf16.mxu0 %v18274_v7  ;;  %v6426_v57 = vsel %vm1370_vm3, %v6421_v32, 0 }
0x11a3   : > { %v6470_v29 = vpop.permute.xlu1 %6469 }
0x11a4   : > { %v6475_v41 = vsel %vm1370_vm3, %v6470_v29, 0 }
0x11a6   : > { %12666 = vmatmul.mubr.msk.bf16.vlgmr.msra.gmra.mrb[176].mxu0 %vm1370_vm3, %v16427_v55 }
0x11a7   : > { %12670 = vmatpush3.bf16.xpose.msra.mxu0 %v6426_v57  ;;  %12671 = vmatprep.mubr.msk.bf16.mxu0 %vm13935_vm2, %v18274_v7  ;;  %v6519_v54 = vpop.permute.xlu1 %6518 }
0x11a8   : > { %12675 = vmatprep.subr.bf16.mxu0 %v18274_v7  ;;  %v6524_v1 = vsel %vm1370_vm3, %v6519_v54, 0 }
0x11ab   : > { %v6568_v51 = vpop.permute.xlu0 %6567 }
0x11ac   : > { %v6573_v6 = vsel %vm1370_vm3, %v6568_v51, 0 }
0x11ad   : > { %12688 = vmatpush3.bf16.xpose.msra.mxu1 %v6573_v6  ;;  %v6617_v33 = vpop.permute.xlu1 %6616 }
0x11ae   : > { %12672 = vmatmul.mubr.msk.bf16.vlgmr.msra.gmra.mrb[180].mxu0 %vm1370_vm3, %v16429_v3  ;;  %12699 = vmatprep.subr.bf16.mxu1 %v18274_v7  ;;  %v6622_v25 = vsel %vm1370_vm3, %v6617_v33, 0 }
0x11af   : > { %12676 = vmatpush3.bf16.xpose.msra.mxu0 %v6475_v41  ;;  %12677 = vmatprep.mubr.msk.bf16.mxu0 %vm13935_vm2, %v18274_v7  ;;  %v6666_v36 = vpop.permute.xlu0 %6665 }
0x11b0   : > { %12681 = vmatprep.subr.bf16.mxu0 %v18274_v7  ;;  %v6671_v24 = vsel %vm1370_vm3, %v6666_v36, 0 }
0x11b1   : > { %v6715_v9 = vpop.permute.xlu1 %6714 }
0x11b2   : > { %v6720_v46 = vsel %vm1370_vm3, %v6715_v9, 0 }
0x11b3   : > { %v6764_v11 = vpop.permute.xlu0 %6763 }
0x11b4   : > { %12690 = vmatmul.mubr.msk.bf16.vlgmr.msra.gmra.mrb[192].mxu1 %vm1370_vm3, %v16443_v13  ;;  %v6769_v4 = vsel %vm1370_vm3, %v6764_v11, 0 }
0x11b5   : > { %12700 = vmatpush3.bf16.xpose.msra.mxu1 %v6671_v24  ;;  %12701 = vmatprep.mubr.msk.bf16.mxu1 %vm13935_vm2, %v18274_v7  ;;  %v6813_v28 = vpop.permute.xlu1 %6812 }
0x11b6   : > { %12678 = vmatmul.mubr.msk.bf16.vlgmr.msra.gmra.mrb[184].mxu0 %vm1370_vm3, %v16435_v8  ;;  %12711 = vmatprep.subr.bf16.mxu1 %v18274_v7  ;;  %v6818_v21 = vsel %vm1370_vm3, %v6813_v28, 0 }
0x11b7   : > { %12682 = vmatpush3.bf16.xpose.msra.mxu0 %v6524_v1  ;;  %12683 = vmatprep.mubr.msk.bf16.mxu0 %vm13935_vm2, %v18274_v7  ;;  %v6862_v34 = vpop.permute.xlu0 %6861 }
0x11b8   : > { %12693 = vmatprep.subr.bf16.mxu0 %v18274_v7  ;;  %v6867_v22 = vsel %vm1370_vm3, %v6862_v34, 0 }
0x11b9   : > { %v6911_v43 = vpop.permute.xlu1 %6910 }
0x11ba   : > { %v6916_v5 = vsel %vm1370_vm3, %v6911_v43, 0 }
0x11bb   : > { %v6960_v63 = vpop.permute.xlu0 %6959 }
0x11bc   : > { %12702 = vmatmul.mubr.msk.bf16.vlgmr.msra.gmra.mrb[196].mxu1 %vm1370_vm3, %v16449_v18  ;;  %v6965_v15 = vsel %vm1370_vm3, %v6960_v63, 0 }
0x11bd   : > { %12712 = vmatpush3.bf16.xpose.msra.mxu1 %v6769_v4  ;;  %12713 = vmatprep.mubr.msk.bf16.mxu1 %vm13935_vm2, %v18274_v7  ;;  %v7009_v57 = vpop.permute.xlu1 %7008 }
0x11be   : > { %12684 = vmatmul.mubr.msk.bf16.vlgmr.msra.gmra.mrb[188].mxu0 %vm1370_vm3, %v16439_v52  ;;  %12723 = vmatprep.subr.bf16.mxu1 %v18274_v7  ;;  %v7014_v51 = vsel %vm1370_vm3, %v7009_v57, 0 }
0x11bf   : > { %12694 = vmatpush3.bf16.xpose.msra.mxu0 %v6622_v25  ;;  %12695 = vmatprep.mubr.msk.bf16.mxu0 %vm13935_vm2, %v18274_v7  ;;  %v7058_v20 = vpop.permute.xlu0 %7057 }
0x11c0   : > { %12705 = vmatprep.subr.bf16.mxu0 %v18274_v7  ;;  %v7063_v61 = vsel %vm1370_vm3, %v7058_v20, 0 }
0x11c1   : > { %v7107_v6 = vpop.permute.xlu1 %7106 }
0x11c2   : > { %v7112_v41 = vsel %vm1370_vm3, %v7107_v6, 0 }
0x11c3   : > { %v7363_v32 = vpop.permute.xlu0 %7362 }
0x11c4   : > { %12714 = vmatmul.mubr.msk.bf16.vlgmr.msra.gmra.mrb[200].mxu1 %vm1370_vm3, %v16457_v10  ;;  %v7368_v29 = vsel %vm2368_vm4, %v7363_v32, 0 }
0x11c5   : > { %12724 = vmatpush3.bf16.xpose.msra.mxu1 %v6867_v22  ;;  %12725 = vmatprep.mubr.msk.bf16.mxu1 %vm13935_vm2, %v18274_v7  ;;  %v7411_v36 = vpop.permute.xlu1 %7410 }
0x11c6   : > { %12696 = vmatmul.mubr.msk.bf16.vlgmr.msra.gmra.mrb[192].mxu0 %vm1370_vm3, %v16445_v47  ;;  %12735 = vmatprep.subr.bf16.mxu1 %v18274_v7  ;;  %v7416_v54 = vsel %vm2368_vm4, %v7411_v36, 0 }
0x11c7   : > { %12706 = vmatpush3.bf16.xpose.msra.mxu0 %v6720_v46  ;;  %12707 = vmatprep.mubr.msk.bf16.mxu0 %vm13935_vm2, %v18274_v7 }
0x11c8   : > { %12717 = vmatprep.subr.bf16.mxu0 %v18274_v7 }
0x11cc   : > { %12726 = vmatmul.mubr.msk.bf16.vlgmr.msra.gmra.mrb[204].mxu1 %vm1370_vm3, %v16465_v59 }
0x11cd   : > { %12736 = vmatpush3.bf16.xpose.msra.mxu1 %v6965_v15  ;;  %12737 = vmatprep.mubr.msk.bf16.mxu1 %vm13935_vm2, %v18274_v7 }
0x11ce   : > { %12708 = vmatmul.mubr.msk.bf16.vlgmr.msra.gmra.mrb[196].mxu0 %vm1370_vm3, %v16453_v37  ;;  %12747 = vmatprep.subr.bf16.mxu1 %v18274_v7 }
0x11cf   : > { %12718 = vmatpush3.bf16.xpose.msra.mxu0 %v6818_v21  ;;  %12719 = vmatprep.mubr.msk.bf16.mxu0 %vm13935_vm2, %v18274_v7 }
0x11d0   : > { %12729 = vmatprep.subr.bf16.mxu0 %v18274_v7 }
0x11d4   : > { %12738 = vmatmul.mubr.msk.bf16.vlgmr.msra.gmra.mrb[208].mxu1 %vm1370_vm3, %v16473_v48 }
0x11d5   : > { %12748 = vmatpush3.bf16.xpose.msra.mxu1 %v7063_v61  ;;  %12749 = vmatprep.mubr.msk.bf16.mxu1 %vm13935_vm2, %v18274_v7 }
0x11d6   : > { %12720 = vmatmul.mubr.msk.bf16.vlgmr.msra.gmra.mrb[200].mxu0 %vm1370_vm3, %v16461_v44  ;;  %12759 = vmatprep.subr.bf16.mxu1 %v18274_v7 }
0x11d7   : > { %12730 = vmatpush3.bf16.xpose.msra.mxu0 %v6916_v5  ;;  %12731 = vmatprep.mubr.msk.bf16.mxu0 %vm13935_vm2, %v18274_v7 }
0x11d8   : > { %12741 = vmatprep.subr.bf16.mxu0 %v18274_v7 }
0x11dc   : > { %12750 = vmatmul.mubr.msk.bf16.vlgmr.msra.gmra.mrb[212].mxu1 %vm1370_vm3, %v16481_v50 }
0x11dd   : > { %12760 = vmatpush3.bf16.msra.mxu1 %v7368_v29  ;;  %12761 = vmatprep.mubr.msk.bf16.mxu1 %vm13935_vm2, %v18274_v7 }
0x11de   : > { %12732 = vmatmul.mubr.msk.bf16.vlgmr.msra.gmra.mrb[204].mxu0 %vm1370_vm3, %v16469_v56  ;;  %12771 = vmatprep.subr.bf16.mxu1 %v18274_v7 }
0x11df   : > { %12742 = vmatpush3.bf16.xpose.msra.mxu0 %v7014_v51  ;;  %12743 = vmatprep.mubr.msk.bf16.mxu0 %vm13935_vm2, %v18274_v7 }
0x11e0   : > { %12753 = vmatprep.subr.bf16.mxu0 %v18274_v7 }
0x11e6   : > { %12744 = vmatmul.mubr.msk.bf16.vlgmr.msra.gmra.mrb[208].mxu0 %vm1370_vm3, %v16477_v62 }
0x11e7   : > { %12754 = vmatpush3.bf16.xpose.msra.mxu0 %v7112_v41  ;;  %12755 = vmatprep.mubr.msk.bf16.mxu0 %vm13935_vm2, %v18274_v7 }
0x11e8   : > { %12765 = vmatprep.subr.bf16.mxu0 %v18274_v7 }
0x11ee   : > { %12756 = vmatmul.mubr.msk.bf16.vlgmr.msra.gmra.mrb[212].mxu0 %vm1370_vm3, %v16485_v40 }
0x11ef   : > { %12766 = vmatpush3.bf16.msra.mxu0 %v7416_v54  ;;  %12767 = vmatprep.mubr.msk.bf16.mxu0 %vm13935_vm2, %v18274_v7 }
0x11f0   : > { %12777 = vmatprep.subr.bf16.mxu0 %v18274_v7 }
0x1279   : > { %v6413_v24 = vpop.f32.mrb[176].mxu0 }
0x127a   : > { %v16615_v11 = vsel %vm946_vm5, %v6413_v24, -1e+30  ;;  %v12667_v33 = vpop.f32.mrb[177].mxu0 }
0x127b   : > { %v7170_v4 = vsel %vm2170_vm6, %v16615_v11, -inf  ;;  %v6416_v25 = vpop.f32.mrb[178].mxu0 }
0x127c   : > { %v12668_v34 = vpop.f32.mrb[179].mxu0  ;;  %7171 = vmax.xlane.f32.xlu0 %v7170_v4 }
0x1281   : > { %v6462_v9 = vpop.f32.mrb[180].mxu0 }
0x1282   : > { %v16621_v22 = vsel %vm946_vm5, %v6462_v9, -1e+30  ;;  %v12673_v46 = vpop.f32.mrb[181].mxu0 }
0x1283   : > { %v7173_v63 = vsel %vm2170_vm6, %v16621_v22, -inf  ;;  %v6465_v28 = vpop.f32.mrb[182].mxu0 }
0x1284   : > { %7174 = vmax.xlane.f32.xlu1 %v7173_v63  ;;  %v12674_v15 = vpop.f32.mrb[183].mxu0 }
0x1287   : > { %v6609_v21 = vpop.f32.mrb[192].mxu1 }
0x1288   : > { %v16627_v20 = vsel %vm946_vm5, %v6609_v21, -1e+30  ;;  %v12691_v43 = vpop.f32.mrb[193].mxu1 }
0x1289   : > { %v7182_v61 = vsel %vm2170_vm6, %v16627_v20, -inf  ;;  %v6612_v5 = vpop.f32.mrb[194].mxu1  ;;  %v6511_v32 = vpop.f32.mrb[184].mxu0 }
0x128a   : > { %v12692_v57 = vpop.f32.mrb[195].mxu1  ;;  %7183 = vmax.xlane.f32.xlu0 %v7182_v61  ;;  %v16633_v29 = vsel %vm946_vm5, %v6511_v32, -1e+30  ;;  %v12679_v51 = vpop.f32.mrb[185].mxu0 }
0x128b   : > { %v7176_v6 = vsel %vm2170_vm6, %v16633_v29, -inf  ;;  %v6514_v41 = vpop.f32.mrb[186].mxu0 }
0x128c   : > { %v12680_v36 = vpop.f32.mrb[187].mxu0 }
0x128e   : > { %7177 = vmax.xlane.f32.xlu0 %v7176_v6 }
0x128f   : > { %v6707_v54 = vpop.f32.mrb[196].mxu1 }
0x1290   : > { %v16639_v24 = vsel %vm946_vm5, %v6707_v54, -1e+30  ;;  %v12703_v33 = vpop.f32.mrb[197].mxu1 }
0x1291   : > { %v7188_v4 = vsel %vm2170_vm6, %v16639_v24, -inf  ;;  %v6710_v25 = vpop.f32.mrb[198].mxu1  ;;  %v6560_v34 = vpop.f32.mrb[188].mxu0 }
0x1292   : > { %v12704_v9 = vpop.f32.mrb[199].mxu1  ;;  %7189 = vmax.xlane.f32.xlu0 %v7188_v4  ;;  %v16645_v46 = vsel %vm946_vm5, %v6560_v34, -1e+30  ;;  %v12685_v63 = vpop.f32.mrb[189].mxu0 }
0x1293   : > { %v7179_v28 = vsel %vm2170_vm6, %v16645_v46, -inf  ;;  %v6563_v15 = vpop.f32.mrb[190].mxu0 }
0x1294   : > { %v12686_v21 = vpop.f32.mrb[191].mxu0 }
0x1296   : > { %7180 = vmax.xlane.f32.xlu0 %v7179_v28 }
0x1297   : > { %v6805_v43 = vpop.f32.mrb[200].mxu1 }
0x1298   : > { %v16651_v61 = vsel %vm946_vm5, %v6805_v43, -1e+30  ;;  %v12715_v5 = vpop.f32.mrb[201].mxu1 }
0x1299   : > { %v7194_v32 = vsel %vm2170_vm6, %v16651_v61, -inf  ;;  %v6808_v57 = vpop.f32.mrb[202].mxu1  ;;  %v6658_v51 = vpop.f32.mrb[192].mxu0 }
0x129a   : > { %v12716_v6 = vpop.f32.mrb[203].mxu1  ;;  %7195 = vmax.xlane.f32.xlu0 %v7194_v32  ;;  %v16657_v41 = vsel %vm946_vm5, %v6658_v51, -1e+30  ;;  %v12697_v36 = vpop.f32.mrb[193].mxu0 }
0x129b   : > { %v7185_v54 = vsel %vm2170_vm6, %v16657_v41, -inf  ;;  %v6661_v33 = vpop.f32.mrb[194].mxu0 }
0x129c   : > { %7186 = vmax.xlane.f32.xlu1 %v7185_v54  ;;  %v12698_v4 = vpop.f32.mrb[195].mxu0 }
0x129f   : > { %v6903_v25 = vpop.f32.mrb[204].mxu1 }
0x12a0   : > { %v16663_v34 = vsel %vm946_vm5, %v6903_v25, -1e+30  ;;  %v12727_v9 = vpop.f32.mrb[205].mxu1 }
0x12a1   : > { %v7200_v63 = vsel %vm2170_vm6, %v16663_v34, -inf  ;;  %v6906_v28 = vpop.f32.mrb[206].mxu1  ;;  %v6756_v15 = vpop.f32.mrb[196].mxu0 }
0x12a2   : > { %v12728_v21 = vpop.f32.mrb[207].mxu1  ;;  %7201 = vmax.xlane.f32.xlu0 %v7200_v63  ;;  %v16669_v43 = vsel %vm946_vm5, %v6756_v15, -1e+30  ;;  %v12709_v5 = vpop.f32.mrb[197].mxu0 }
0x12a3   : > { %v7191_v32 = vsel %vm2170_vm6, %v16669_v43, -inf  ;;  %v6759_v57 = vpop.f32.mrb[198].mxu0 }
0x12a4   : > { %7192 = vmax.xlane.f32.xlu1 %v7191_v32  ;;  %v12710_v51 = vpop.f32.mrb[199].mxu0 }
0x12a7   : > { %v7001_v6 = vpop.f32.mrb[208].mxu1 }
0x12a8   : > { %v16675_v36 = vsel %vm946_vm5, %v7001_v6, -1e+30  ;;  %v12739_v54 = vpop.f32.mrb[209].mxu1 }
0x12a9   : > { %v7206_v33 = vsel %vm2170_vm6, %v16675_v36, -inf  ;;  %v7004_v4 = vpop.f32.mrb[210].mxu1  ;;  %v6854_v25 = vpop.f32.mrb[200].mxu0 }
0x12aa   : > { %v12740_v9 = vpop.f32.mrb[211].mxu1  ;;  %7207 = vmax.xlane.f32.xlu0 %v7206_v33  ;;  %v16681_v63 = vsel %vm946_vm5, %v6854_v25, -1e+30  ;;  %v12721_v28 = vpop.f32.mrb[201].mxu0 }
0x12ab   : > { %v7197_v15 = vsel %vm2170_vm6, %v16681_v63, -inf  ;;  %v6857_v21 = vpop.f32.mrb[202].mxu0 }
0x12ac   : > { %7198 = vmax.xlane.f32.xlu1 %v7197_v15  ;;  %v12722_v5 = vpop.f32.mrb[203].mxu0 }
0x12af   : > { %v7099_v32 = vpop.f32.mrb[212].mxu1 }
0x12b0   : > { %v16687_v57 = vsel %vm946_vm5, %v7099_v32, -1e+30  ;;  %v12751_v51 = vpop.f32.mrb[213].mxu1 }
0x12b1   : > { %v7212_v6 = vsel %vm2170_vm6, %v16687_v57, -inf  ;;  %v7102_v54 = vpop.f32.mrb[214].mxu1  ;;  %v6952_v33 = vpop.f32.mrb[204].mxu0 }
0x12b2   : > { %v12752_v4 = vpop.f32.mrb[215].mxu1  ;;  %7213 = vmax.xlane.f32.xlu0 %v7212_v6  ;;  %v12733_v25 = vpop.f32.mrb[205].mxu0  ;;  %v16697_v6 = vsel %vm946_vm5, %v6952_v33, -1e+30 }
0x12b3   : > { %v6955_v9 = vpop.f32.mrb[206].mxu0  ;;  %v7203_v54 = vsel %vm2170_vm6, %v16697_v6, -inf  ;;  %v16713_v25 = vpop.permute.xlu0 %7458 }
0x12b4   : > { %v12734_v28 = vpop.f32.mrb[207].mxu0  ;;  %v16715_v9 = vpop.permute.xlu1 %7506 }
0x12b7   : > { %v16717_v28 = vpop.permute.xlu0 %7554 }
0x12b9   : > { %v7050_v35 = vpop.f32.mrb[208].mxu0 }
0x12ba   : > { %v12745_v21 = vpop.f32.mrb[209].mxu0  ;;  %v16703_v4 = vsel %vm946_vm5, %v7050_v35, -1e+30  ;;  %v16719_v35 = vpop.permute.xlu1 %7602 }
0x12bb   : > { %v7053_v15 = vpop.f32.mrb[210].mxu0  ;;  %v16721_v21 = vpop.permute.xlu0 %7650 }
0x12bc   : > { %v12746_v5 = vpop.f32.mrb[211].mxu0 }
0x12bd   : > { %7890 = vrot.lane.b32.xlu1 %v16469_v56, %s13937_s16 }
0x12be   : > { %v16723_v15 = vpop.permute.xlu1 %7698 }
0x12bf   : > { %v16725_v5 = vpop.permute.xlu0 %7746 }
0x12c1   : > { %v7148_v32 = vpop.f32.mrb[212].mxu0 }
0x12c2   : > { %v12757_v17 = vpop.f32.mrb[213].mxu0 }
0x12c3   : > { %v7151_v51 = vpop.f32.mrb[214].mxu0  ;;  %v7209_v17 = vsel %vm2170_vm6, %v16703_v4, -inf }
0x12c4   : > { %v12758_v16 = vpop.f32.mrb[215].mxu0 }
0x12c5   : > { %v16709_v16 = vsel %vm946_vm5, %v7148_v32, -1e+30  ;;  %v16727_v32 = vpop.permute.xlu1 %7794 }
0x12c6   : > { %v7215_v33 = vsel %vm2170_vm6, %v16709_v16, -inf }
0x12c8   : > { %7938 = vrot.lane.b32.xlu0 %v16473_v48, %s13937_s16 }
0x12e1   : > { %7204 = vmax.xlane.f32.xlu1 %v7203_v54 }
0x12e5   : > { %7210 = vmax.xlane.f32.xlu1 %v7209_v17 }
0x12e9   : > { %7216 = vmax.xlane.f32.xlu1 %v7215_v33  ;;  %v16730_v33 = vpop.permute.xlu1 %7842 }
0x1309   : > { %v7172_v51 = vpop.xlane.xlu0 %7171 }
0x130a   : > { %v7218_v54 = vsub.f32 %v16615_v11, %v7172_v51 }
0x130c   : > { %v7234_v17 = vmul.f32 1.442695, %v7218_v54 }
0x130e   : > { %13595 = vpow2.f32 %v7234_v17 }
0x1311   : > { %v7175_v49 = vpop.xlane.xlu1 %7174 }
0x1312   : > { %v7219_v60 = vsub.f32 %v16621_v22, %v7175_v49 }
0x1314   : > { %v7236_v42 = vmul.f32 1.442695, %v7219_v60 }
0x1316   : > { %13597 = vpow2.f32 %v7236_v42 }
0x1317   : > { %v7184_v31 = vpop.xlane.xlu0 %7183 }
0x1318   : > { %v16733_v39 = vpop.eup %13595  ;;  %v7222_v27 = vsub.f32 %v16627_v20, %v7184_v31 }
0x1319   : > { %v7266_v58 = vsel %vm2170_vm6, %v16733_v39, 0.0 }
0x131a   : > { %v7242_v26 = vmul.f32 1.442695, %v7222_v27  ;;  %7267 = vadd.xlane.f32.xlu0 %v7266_v58 }
0x131b   : > { %v7178_v11 = vpop.xlane.xlu0 %7177 }
0x131c   : > { %13599 = vpow2.f32 %v7242_v26  ;;  %v7220_v51 = vsub.f32 %v16633_v29, %v7178_v11 }
0x131e   : > { %v7238_v54 = vmul.f32 1.442695, %v7220_v51 }
0x131f   : > { %v7190_v17 = vpop.xlane.xlu0 %7189 }
0x1320   : > { %v16739_v19 = vpop.eup %13597  ;;  %13601 = vpow2.f32 %v7238_v54  ;;  %v7224_v49 = vsub.f32 %v16639_v24, %v7190_v17 }
0x1321   : > { %v7269_v60 = vsel %vm2170_vm6, %v16739_v19, 0.0 }
0x1322   : > { %v7246_v42 = vmul.f32 1.442695, %v7224_v49  ;;  %7270 = vadd.xlane.f32.xlu1 %v7269_v60 }
0x1323   : > { %v7181_v31 = vpop.xlane.xlu0 %7180 }
0x1324   : > { %13603 = vpow2.f32 %v7246_v42  ;;  %v7221_v27 = vsub.f32 %v16645_v46, %v7181_v31 }
0x1326   : > { %v16745_v58 = vpop.eup %13599  ;;  %v7240_v26 = vmul.f32 1.442695, %v7221_v27 }
0x1327   : > { %v7278_v22 = vsel %vm2170_vm6, %v16745_v58, 0.0  ;;  %v7196_v20 = vpop.xlane.xlu0 %7195 }
0x1328   : > { %13605 = vpow2.f32 %v7240_v26  ;;  %7279 = vadd.xlane.f32.xlu0 %v7278_v22  ;;  %v7226_v29 = vsub.f32 %v16651_v61, %v7196_v20 }
0x1329   : > { %v7187_v24 = vpop.xlane.xlu1 %7186 }
0x132a   : > { %v16750_v11 = vpop.eup %13601  ;;  %v7250_v51 = vmul.f32 1.442695, %v7226_v29  ;;  %v7223_v54 = vsub.f32 %v16657_v41, %v7187_v24 }
0x132b   : > { %v7272_v46 = vsel %vm2170_vm6, %v16750_v11, 0.0 }
0x132c   : > { %13607 = vpow2.f32 %v7250_v51  ;;  %v7244_v17 = vmul.f32 1.442695, %v7223_v54  ;;  %7273 = vadd.xlane.f32.xlu0 %v7272_v46 }
0x132e   : > { %v16755_v49 = vpop.eup %13603  ;;  %13609 = vpow2.f32 %v7244_v17 }
0x132f   : > { %v7202_v60 = vpop.xlane.xlu0 %7201  ;;  %v7284_v42 = vsel %vm2170_vm6, %v16755_v49, 0.0 }
0x1330   : > { %v7228_v61 = vsub.f32 %v16663_v34, %v7202_v60  ;;  %7285 = vadd.xlane.f32.xlu0 %v7284_v42 }
0x1331   : > { %v7193_v31 = vpop.xlane.xlu1 %7192 }
0x1332   : > { %v16760_v27 = vpop.eup %13605  ;;  %v7254_v41 = vmul.f32 1.442695, %v7228_v61  ;;  %v7225_v26 = vsub.f32 %v16669_v43, %v7193_v31 }
0x1333   : > { %v7275_v22 = vsel %vm2170_vm6, %v16760_v27, 0.0 }
0x1334   : > { %13611 = vpow2.f32 %v7254_v41  ;;  %v7248_v20 = vmul.f32 1.442695, %v7225_v26  ;;  %7276 = vadd.xlane.f32.xlu1 %v7275_v22 }
0x1336   : > { %v16765_v29 = vpop.eup %13607  ;;  %13613 = vpow2.f32 %v7248_v20 }
0x1337   : > { %v7290_v24 = vsel %vm2170_vm6, %v16765_v29, 0.0  ;;  %v7208_v41 = vpop.xlane.xlu0 %7207 }
0x1338   : > { %v16769_v34 = vpop.eup %13609  ;;  %7291 = vadd.xlane.f32.xlu1 %v7290_v24  ;;  %v7230_v26 = vsub.f32 %v16675_v36, %v7208_v41 }
0x1339   : > { %v7199_v51 = vpop.xlane.xlu1 %7198  ;;  %v7281_v54 = vsel %vm2170_vm6, %v16769_v34, 0.0 }
0x133a   : > { %v7227_v43 = vsub.f32 %v16681_v63, %v7199_v51  ;;  %v7258_v20 = vmul.f32 1.442695, %v7230_v26 }
0x133c   : > { %v7252_v46 = vmul.f32 1.442695, %v7227_v43  ;;  %7282 = vadd.xlane.f32.xlu1 %v7281_v54 }
0x133d   : > { %v16790_v51 = vpop.permute.xlu1 %7890 }
0x133e   : > { %v16774_v17 = vpop.eup %13611  ;;  %13615 = vpow2.f32 %v7252_v46 }
0x133f   : > { %v7296_v60 = vsel %vm2170_vm6, %v16774_v17, 0.0  ;;  %v7214_v22 = vpop.xlane.xlu0 %7213  ;;  %13617 = vpow2.f32 %v7258_v20 }
0x1340   : > { %v16778_v42 = vpop.eup %13613  ;;  %7297 = vadd.xlane.f32.xlu1 %v7296_v60  ;;  %v7232_v24 = vsub.f32 %v16687_v57, %v7214_v22 }
0x1341   : > { %v7287_v61 = vsel %vm2170_vm6, %v16778_v42, 0.0 }
0x1342   : > { %v7262_v54 = vmul.f32 1.442695, %v7232_v24 }
0x1344   : > { %7288 = vadd.xlane.f32.xlu1 %v7287_v61  ;;  %13619 = vpow2.f32 %v7262_v54 }
0x1348   : > { %v16782_v31 = vpop.eup %13615 }
0x1349   : > { %v7293_v63 = vsel %vm2170_vm6, %v16782_v31, 0.0  ;;  %v16794_v45 = vpop.eup %13617 }
0x134a   : > { %7294 = vadd.xlane.f32.xlu0 %v7293_v63  ;;  %v7302_v57 = vsel %vm2170_vm6, %v16794_v45, 0.0 }
0x134e   : > { %v16798_v41 = vpop.eup %13619 }
0x134f   : > { %v7308_v26 = vsel %vm2170_vm6, %v16798_v41, 0.0 }
0x1355   : > { %7986 = vrot.lane.b32.xlu1 %v16477_v62, %s13937_s16 }
0x136e   : > { %v7205_v43 = vpop.xlane.xlu1 %7204 }
0x136f   : > { %v7229_v46 = vsub.f32 %v16697_v6, %v7205_v43  ;;  %v16825_v43 = vpop.permute.xlu0 %7938 }
0x1371   : > { %v7256_v60 = vmul.f32 1.442695, %v7229_v46 }
0x1372   : > { %v7211_v61 = vpop.xlane.xlu1 %7210 }
0x1373   : > { %13621 = vpow2.f32 %v7256_v60  ;;  %v7231_v63 = vsub.f32 %v16703_v4, %v7211_v61 }
0x1375   : > { %v7260_v36 = vmul.f32 1.442695, %v7231_v63 }
0x1376   : > { %v7217_v24 = vpop.xlane.xlu1 %7216 }
0x1377   : > { %13623 = vpow2.f32 %v7260_v36  ;;  %v7233_v54 = vsub.f32 %v16709_v16, %v7217_v24 }
0x1379   : > { %7303 = vadd.xlane.f32.xlu1 %v7302_v57  ;;  %v7264_v46 = vmul.f32 1.442695, %v7233_v54 }
0x137d   : > { %v16802_v22 = vpop.eup %13621  ;;  %7309 = vadd.xlane.f32.xlu1 %v7308_v26 }
0x137e   : > { %v7299_v6 = vsel %vm2170_vm6, %v16802_v22, 0.0 }
0x137f   : > { %7300 = vadd.xlane.f32.xlu0 %v7299_v6  ;;  %v7464_v6 = vsel %vm2368_vm4, %v16713_v25, 0 }
0x1381   : > { %v16806_v4 = vpop.eup %13623 }
0x1382   : > { %v7305_v20 = vsel %vm2170_vm6, %v16806_v4, 0.0 }
0x1383   : > { %7306 = vadd.xlane.f32.xlu0 %v7305_v20 }
0x138e   : > { %8082 = vrot.lane.b32.xlu1 %v16485_v40, %s13937_s16 }
0x1392   : > { %8190 = vrot.lane.b32.xlu1 %v16429_v3, %s13938_s15 }
0x1396   : > { %8188 = vrot.lane.b32.xlu1 %v16429_v3, %s18305_s25 }
0x1399   : > { %8034 = vrot.lane.b32.xlu0 %v16481_v50, %s13937_s16  ;;  %s18306_s16 = smov 48  }
0x139a   : > { %8290 = vrot.lane.b32.xlu1 %v16439_v52, %s13938_s15 }
0x139e   : > { %8288 = vrot.lane.b32.xlu1 %v16439_v52, %s18305_s25 }
0x13a2   : > { %8390 = vrot.lane.b32.xlu1 %v16445_v47, %s13938_s15 }
0x13a6   : > { %8388 = vrot.lane.b32.xlu1 %v16445_v47, %s18305_s25 }
0x13a7   : > { %v7268_v60 = vpop.xlane.xlu0 %7267 }
0x13a8   : > { %13625 = vrcp.f32 %v7268_v60 }
0x13a9   : > { %13627 = vpow2.f32 %v7264_v46  ;;  %v7512_v46 = vsel %vm2368_vm4, %v16715_v9, 0 }
0x13aa   : > { %8490 = vrot.lane.b32.xlu1 %v16453_v37, %s13938_s15 }
0x13ae   : > { %8488 = vrot.lane.b32.xlu1 %v16453_v37, %s18305_s25 }
0x13af   : > { %v7271_v61 = vpop.xlane.xlu1 %7270 }
0x13b0   : > { %13629 = vrcp.f32 %v7271_v61 }
0x13b2   : > { %v13626_v16 = vpop.eup %13625  ;;  %8590 = vrot.lane.b32.xlu1 %v16461_v44, %s13938_s15 }
0x13b3   : > { %v7330_v63 = vmul.f32 %v13626_v16, %v16733_v39  ;;  %v16836_v36 = vpop.eup %13627 }
0x13b4   : > { %v7311_v20 = vsel %vm2170_vm6, %v16836_v36, 0.0 }
0x13b5   : > { %v7280_v57 = vpop.xlane.xlu0 %7279  ;;  %v7346_v26 = vpack.c.bf16 %v7330_v63, %v7330_v63 }
0x13b6   : > { %8588 = vrot.lane.b32.xlu1 %v16461_v44, %s18305_s25 }
0x13b7   : > { %12762 = vmatmul.mubr.msk.bf16.vlgmr.msra.gmra.mrb[216].mxu1 %vm2170_vm6, %v7346_v26  ;;  %v7560_v26 = vsel %vm2368_vm4, %v16717_v28, 0 }
0x13b8   : > { %12772 = vmatpush3.bf16.msra.mxu1 %v7464_v6  ;;  %7312 = vadd.xlane.f32.xlu0 %v7311_v20 }
0x13b9   : > { %v7274_v24 = vpop.xlane.xlu0 %7273  ;;  %12773 = vmatprep.mubr.msk.bf16.mxu1 %vm13935_vm2, %v18274_v7  ;;  %12783 = vmatprep.subr.bf16.mxu1 %v18274_v7 }
0x13ba   : > { %v13630_v39 = vpop.eup %13629  ;;  %13631 = vrcp.f32 %v7274_v24  ;;  %8690 = vrot.lane.b32.xlu1 %v16469_v56, %s13938_s15 }
0x13bb   : > { %v7331_v25 = vmul.f32 %v13630_v39, %v16739_v19  ;;  %13633 = vrcp.f32 %v7280_v57 }
0x13bd   : > { %v7347_v54 = vpack.c.bf16 %v7331_v25, %v7331_v25  ;;  %v7286_v19 = vpop.xlane.xlu0 %7285 }
0x13be   : > { %8688 = vrot.lane.b32.xlu1 %v16469_v56, %s18305_s25 }
0x13bf   : > { %12768 = vmatmul.mubr.msk.bf16.vlgmr.msra.gmra.mrb[216].mxu0 %vm2170_vm6, %v7347_v54 }
0x13c0   : > { %12778 = vmatpush3.bf16.msra.mxu0 %v7512_v46  ;;  %12779 = vmatprep.mubr.msk.bf16.mxu0 %vm13935_vm2, %v18274_v7  ;;  %v7656_v46 = vsel %vm2368_vm4, %v16721_v21, 0 }
0x13c1   : > { %v7277_v60 = vpop.xlane.xlu1 %7276  ;;  %12789 = vmatprep.subr.bf16.mxu0 %v18274_v7 }
0x13c2   : > { %13635 = vrcp.f32 %v7277_v60  ;;  %8790 = vrot.lane.b32.xlu1 %v16477_v62, %s13938_s15 }
0x13c3   : > { %13637 = vrcp.f32 %v7286_v19 }
0x13c4   : > { %v13632_v61 = vpop.eup %13631 }
0x13c5   : > { %v7292_v16 = vpop.xlane.xlu1 %7291  ;;  %v7332_v63 = vmul.f32 %v13632_v61, %v16750_v11  ;;  %v13634_v57 = vpop.eup %13633 }
0x13c6   : > { %8788 = vrot.lane.b32.xlu1 %v16477_v62, %s18305_s25  ;;  %v7334_v11 = vmul.f32 %v13634_v57, %v16745_v58  ;;  %v7608_v58 = vsel %vm2368_vm4, %v16719_v35, 0  ;;  %v7848_v57 = vsel %vm2368_vm4, %v16730_v33, 0 }
0x13c7   : > { %v7348_v9 = vpack.c.bf16 %v7332_v63, %v7332_v63  ;;  %v7704_v63 = vsel %vm2368_vm4, %v16723_v15, 0 }
0x13c8   : > { %v7350_v25 = vpack.c.bf16 %v7334_v11, %v7334_v11 }
0x13c9   : > { %12774 = vmatmul.mubr.msk.bf16.vlgmr.msra.gmra.mrb[220].mxu1 %vm2170_vm6, %v7348_v9  ;;  %v7283_v6 = vpop.xlane.xlu1 %7282  ;;  %v7800_v9 = vsel %vm2368_vm4, %v16727_v32, 0 }
0x13ca   : > { %12784 = vmatpush3.bf16.msra.mxu1 %v7560_v26  ;;  %13639 = vrcp.f32 %v7283_v6  ;;  %8890 = vrot.lane.b32.xlu1 %v16485_v40, %s13938_s15  ;;  %v7944_v6 = vsel %vm2368_vm4, %v16825_v43, 0 }
0x13cb   : > { %12785 = vmatprep.mubr.msk.bf16.mxu1 %vm13935_vm2, %v18274_v7  ;;  %12795 = vmatprep.subr.bf16.mxu1 %v18274_v7  ;;  %13641 = vrcp.f32 %v7292_v16  ;;  %v7752_v16 = vsel %vm2368_vm4, %v16725_v5, 0 }
0x13cc   : > { %v13636_v20 = vpop.eup %13635 }
0x13cd   : > { %v7298_v24 = vpop.xlane.xlu1 %7297  ;;  %v7333_v39 = vmul.f32 %v13636_v20, %v16760_v27  ;;  %v13638_v54 = vpop.eup %13637 }
0x13ce   : > { %8888 = vrot.lane.b32.xlu1 %v16485_v40, %s18305_s25  ;;  %8140 = vrot.lane.b32.xlu0 %v16427_v55, %s13938_s15  ;;  %v7336_v60 = vmul.f32 %v13638_v54, %v16755_v49 }
0x13cf   : > { %v7349_v28 = vpack.c.bf16 %v7333_v39, %v7333_v39 }
0x13d1   : > { %12780 = vmatmul.mubr.msk.bf16.vlgmr.msra.gmra.mrb[220].mxu0 %vm2170_vm6, %v7349_v28  ;;  %12786 = vmatmul.mubr.msk.bf16.vlgmr.msra.gmra.mrb[224].mxu1 %vm2170_vm6, %v7350_v25  ;;  %v7289_v27 = vpop.xlane.xlu1 %7288 }
0x13d2   : > { %12790 = vmatpush3.bf16.msra.mxu0 %v7608_v58  ;;  %12796 = vmatpush3.bf16.msra.mxu1 %v7656_v46  ;;  %13643 = vrcp.f32 %v7289_v27 }
0x13d3   : > { %9194 = vrot.lane.b32.xlu1 %v16429_v3, %s18306_s16  ;;  %8138 = vrot.lane.b32.xlu0 %v16427_v55, %s18305_s25  ;;  %13645 = vrcp.f32 %v7298_v24  ;;  %v7352_v3 = vpack.c.bf16 %v7336_v60, %v7336_v60 }
0x13d4   : > { %v13640_v21 = vpop.eup %13639  ;;  %12797 = vmatprep.mubr.msk.bf16.mxu1 %vm13935_vm2, %v18274_v7  ;;  %12807 = vmatprep.subr.bf16.mxu1 %v18274_v7 }
0x13d5   : > { %12791 = vmatprep.mubr.msk.bf16.mxu0 %vm13935_vm2, %v18274_v7  ;;  %12801 = vmatprep.subr.bf16.mxu0 %v18274_v7  ;;  %v7335_v35 = vmul.f32 %v13640_v21, %v16769_v34  ;;  %v13642_v61 = vpop.eup %13641 }
0x13d7   : > { %9290 = vrot.lane.b32.xlu1 %v16439_v52, %s18306_s16  ;;  %8240 = vrot.lane.b32.xlu0 %v16435_v8, %s13938_s15  ;;  %v7295_v49 = vpop.xlane.xlu0 %7294  ;;  %v7351_v19 = vpack.c.bf16 %v7335_v35, %v7335_v35  ;;  %v7338_v52 = vmul.f32 %v13642_v61, %v16765_v29 }
0x13d8   : > { %13647 = vrcp.f32 %v7295_v49 }
0x13d9   : > { %12798 = vmatmul.mubr.msk.bf16.vlgmr.msra.gmra.mrb[228].mxu1 %vm2170_vm6, %v7352_v3  ;;  %12792 = vmatmul.mubr.msk.bf16.vlgmr.msra.gmra.mrb[224].mxu0 %vm2170_vm6, %v7351_v19  ;;  %v7354_v5 = vpack.c.bf16 %v7338_v52, %v7338_v52 }
0x13da   : > { %12808 = vmatpush3.bf16.msra.mxu1 %v7752_v16  ;;  %12802 = vmatpush3.bf16.msra.mxu0 %v7704_v63 }
0x13db   : > { %9386 = vrot.lane.b32.xlu1 %v16445_v47, %s18306_s16  ;;  %8238 = vrot.lane.b32.xlu0 %v16435_v8, %s18305_s25 }
0x13dc   : > { %v13644_v34 = vpop.eup %13643  ;;  %12809 = vmatprep.mubr.msk.bf16.mxu1 %vm13935_vm2, %v18274_v7  ;;  %12819 = vmatprep.subr.bf16.mxu1 %v18274_v7 }
0x13dd   : > { %12803 = vmatprep.mubr.msk.bf16.mxu0 %vm13935_vm2, %v18274_v7  ;;  %12813 = vmatprep.subr.bf16.mxu0 %v18274_v7  ;;  %v7337_v15 = vmul.f32 %v13644_v34, %v16778_v42  ;;  %v13646_v29 = vpop.eup %13645 }
0x13de   : > { %v7340_v32 = vmul.f32 %v13646_v29, %v16774_v17  ;;  %v7987_v17 = vpop.permute.xlu1 %7986 }
0x13df   : > { %9482 = vrot.lane.b32.xlu1 %v16453_v37, %s18306_s16  ;;  %8340 = vrot.lane.b32.xlu0 %v16443_v13, %s13938_s15  ;;  %v7353_v47 = vpack.c.bf16 %v7337_v15, %v7337_v15  ;;  %v7992_v60 = vsel %vm2368_vm4, %v7987_v17, 0 }
0x13e0   : > { %v7356_v26 = vpack.c.bf16 %v7340_v32, %v7340_v32 }
0x13e1   : > { %12804 = vmatmul.mubr.msk.bf16.vlgmr.msra.gmra.mrb[228].mxu0 %vm2170_vm6, %v7353_v47  ;;  %12810 = vmatmul.mubr.msk.bf16.vlgmr.msra.gmra.mrb[232].mxu1 %vm2170_vm6, %v7354_v5 }
0x13e2   : > { %v13648_v42 = vpop.eup %13647  ;;  %12814 = vmatpush3.bf16.msra.mxu0 %v7800_v9  ;;  %12820 = vmatpush3.bf16.msra.mxu1 %v7848_v57 }
0x13e3   : > { %8338 = vrot.lane.b32.xlu0 %v16443_v13, %s18305_s25  ;;  %12815 = vmatprep.mubr.msk.bf16.mxu0 %vm13935_vm2, %v18274_v7  ;;  %v7339_v37 = vmul.f32 %v13648_v42, %v16782_v31  ;;  %v7896_v31 = vsel %vm2368_vm4, %v16790_v51, 0 }
0x13e4   : > { %12821 = vmatprep.mubr.msk.bf16.mxu1 %vm13935_vm2, %v18274_v7  ;;  %12825 = vmatprep.subr.bf16.mxu0 %v18274_v7 }
0x13e5   : > { %12831 = vmatprep.subr.bf16.mxu1 %v18274_v7  ;;  %v7355_v33 = vpack.c.bf16 %v7339_v37, %v7339_v37 }
0x13e7   : > { %8440 = vrot.lane.b32.xlu0 %v16449_v18, %s13938_s15 }
0x13e9   : > { %12816 = vmatmul.mubr.msk.bf16.vlgmr.msra.gmra.mrb[232].mxu0 %vm2170_vm6, %v7355_v33  ;;  %12822 = vmatmul.mubr.msk.bf16.vlgmr.msra.gmra.mrb[236].mxu1 %vm2170_vm6, %v7356_v26 }
0x13ea   : > { %12826 = vmatpush3.bf16.msra.mxu0 %v7896_v31  ;;  %12832 = vmatpush3.bf16.msra.mxu1 %v7944_v6 }
0x13eb   : > { %8438 = vrot.lane.b32.xlu0 %v16449_v18, %s18305_s25  ;;  %12833 = vmatprep.mubr.msk.bf16.mxu1 %vm13935_vm2, %v18274_v7 }
0x13ec   : > { %12843 = vmatprep.subr.bf16.mxu1 %v18274_v7  ;;  %12827 = vmatprep.mubr.msk.bf16.mxu0 %vm13935_vm2, %v18274_v7 }
0x13ed   : > { %12837 = vmatprep.subr.bf16.mxu0 %v18274_v7 }
0x13ef   : > { %8540 = vrot.lane.b32.xlu0 %v16457_v10, %s13938_s15 }
0x13f3   : > { %8538 = vrot.lane.b32.xlu0 %v16457_v10, %s18305_s25 }
0x13f7   : > { %8640 = vrot.lane.b32.xlu0 %v16465_v59, %s13938_s15 }
0x13fb   : > { %8638 = vrot.lane.b32.xlu0 %v16465_v59, %s18305_s25 }
0x13ff   : > { %8740 = vrot.lane.b32.xlu0 %v16473_v48, %s13938_s15 }
0x1403   : > { %8738 = vrot.lane.b32.xlu0 %v16473_v48, %s18305_s25 }
0x1406   : > { %v7304_v51 = vpop.xlane.xlu1 %7303 }
0x1407   : > { %13649 = vrcp.f32 %v7304_v51  ;;  %8840 = vrot.lane.b32.xlu0 %v16481_v50, %s13938_s15  ;;  %s13941_s15 = smov [#allocation5]  }
0x1408   : > { %s13866_s13 = sshll.u32 %s13941_s15, 4  ;;  %s13867_s13 = int_to_ptr.vmem [resolvable:$false] %s13866_s13 }
0x1409   : > { %s13868_s19 = scalar_lea.vmem %s13867_s13, 512  ;;  %p13869_p8 = scmp.lt.s32.totalorder %s18163_s28, %s13867_s13 }
0x140a   : > { %v7310_v43 = vpop.xlane.xlu1 %7309  ;;  %p13870_p10 = scmp.lt.s32.totalorder %s13868_s19, %s13862_s21 }
0x140b   : > { %13651 = vrcp.f32 %v7310_v43  ;;  %8838 = vrot.lane.b32.xlu0 %v16481_v50, %s18305_s25  ;;  %s18161_s25 = scalar_lea.hbm %s18218_s11, %s11783_s24 }
0x140c   : > { %v7301_v11 = vpop.xlane.xlu0 %7300  ;;  %p13871_p0 = por %p13870_p10, %p13869_p8 }
0x140d   : > { %13653 = vrcp.f32 %v7301_v11 }
0x140e   : > { %p13872_p2 = pnand %p13871_p0, %p13865_p13 }
0x140f   : > { %9146 = vrot.lane.b32.xlu0 %v16427_v55, %s18306_s16 }
0x1410   : > { %v7307_v20 = vpop.xlane.xlu0 %7306 }
0x1411   : > { %v13650_v24 = vpop.eup %13649  ;;  %13655 = vrcp.f32 %v7307_v20 }
0x1412   : > { %v7342_v39 = vmul.f32 %v13650_v24, %v16794_v45 }
0x1413   : > { %9242 = vrot.lane.b32.xlu0 %v16435_v8, %s18306_s16 }
0x1414   : > { %v8035_v28 = vpop.permute.xlu0 %8034  ;;  %v7358_v25 = vpack.c.bf16 %v7342_v39, %v7342_v39 }
0x1415   : > { %v13652_v54 = vpop.eup %13651  ;;  %v8040_v46 = vsel %vm2368_vm4, %v8035_v28, 0 }
0x1416   : > { %12834 = vmatmul.mubr.msk.bf16.vlgmr.msra.gmra.mrb[240].mxu1 %vm2170_vm6, %v7358_v25  ;;  %v7344_v55 = vmul.f32 %v13652_v54, %v16798_v41 }
0x1417   : > { %v13654_v58 = vpop.eup %13653  ;;  %9338 = vrot.lane.b32.xlu0 %v16443_v13, %s18306_s16  ;;  %12844 = vmatpush3.bf16.msra.mxu1 %v8040_v46 }
0x1418   : > { %12845 = vmatprep.mubr.msk.bf16.mxu1 %vm13935_vm2, %v18274_v7  ;;  %v7341_v45 = vmul.f32 %v13654_v58, %v16802_v22  ;;  %12855 = vmatprep.subr.bf16.mxu1 %v18274_v7  ;;  %v7360_v13 = vpack.c.bf16 %v7344_v55, %v7344_v55  ;;  %v8083_v22 = vpop.permute.xlu1 %8082 }
0x1419   : > { %v8088_v21 = vsel %vm2368_vm4, %v8083_v22, 0 }
0x141a   : > { %v7357_v8 = vpack.c.bf16 %v7341_v45, %v7341_v45 }
0x141b   : > { %v13656_v27 = vpop.eup %13655  ;;  %9434 = vrot.lane.b32.xlu0 %v16449_v18, %s18306_s16 }
0x141c   : > { %12828 = vmatmul.mubr.msk.bf16.vlgmr.msra.gmra.mrb[236].mxu0 %vm2170_vm6, %v7357_v8  ;;  %v7343_v41 = vmul.f32 %v13656_v27, %v16806_v4  ;;  %v8191_v35 = vpop.permute.xlu1 %8190 }
0x141d   : > { %12838 = vmatpush3.bf16.msra.mxu0 %v7992_v60  ;;  %12839 = vmatprep.mubr.msk.bf16.mxu0 %vm13935_vm2, %v18274_v7  ;;  %v8196_v57 = vsel %vm1370_vm3, %v8191_v35, 0 }
0x141e   : > { %12846 = vmatmul.mubr.msk.bf16.vlgmr.msra.gmra.mrb[244].mxu1 %vm2170_vm6, %v7360_v13  ;;  %12849 = vmatprep.subr.bf16.mxu0 %v18274_v7  ;;  %v7359_v18 = vpack.c.bf16 %v7343_v41, %v7343_v41 }
0x141f   : > { %12857 = vmatprep.mubr.msk.bf16.mxu1 %vm13935_vm2, %v18274_v7 }
0x1420   : > { %v8189_v3 = vpop.permute.xlu1 %8188 }
0x1424   : > { %12840 = vmatmul.mubr.msk.bf16.vlgmr.msra.gmra.mrb[240].mxu0 %vm2170_vm6, %v7359_v18  ;;  %v8291_v49 = vpop.permute.xlu1 %8290 }
0x1425   : > { %12850 = vmatpush3.bf16.msra.mxu0 %v8088_v21  ;;  %12851 = vmatprep.mubr.msk.bf16.mxu0 %vm13935_vm2, %v18274_v7  ;;  %v8296_v26 = vsel %vm1370_vm3, %v8291_v49, 0 }
0x1426   : > { %12861 = vmatprep.subr.bf16.mxu0 %v18274_v7 }
0x1428   : > { %v8289_v19 = vpop.permute.xlu1 %8288 }
0x142c   : > { %v8391_v16 = vpop.permute.xlu1 %8390 }
0x142d   : > { %v8396_v43 = vsel %vm1370_vm3, %v8391_v16, 0 }
0x1430   : > { %v8389_v15 = vpop.permute.xlu1 %8388 }
0x1434   : > { %v8491_v37 = vpop.permute.xlu1 %8490 }
0x1435   : > { %v8496_v28 = vsel %vm1370_vm3, %v8491_v37, 0 }
0x1438   : > { %v8489_v33 = vpop.permute.xlu1 %8488 }
0x143c   : > { %v8591_v17 = vpop.permute.xlu1 %8590 }
0x143d   : > { %v8596_v55 = vsel %vm1370_vm3, %v8591_v17, 0 }
0x1440   : > { %v8589_v20 = vpop.permute.xlu1 %8588 }
0x1444   : > { %v8691_v54 = vpop.permute.xlu1 %8690 }
0x1445   : > { %v7313_v4 = vpop.xlane.xlu0 %7312  ;;  %v8696_v41 = vsel %vm1370_vm3, %v8691_v54, 0 }
0x1446   : > { %13657 = vrcp.f32 %v7313_v4 }
0x1448   : > { %v8689_v45 = vpop.permute.xlu1 %8688 }
0x1449   : > { %v8141_v61 = vpop.permute.xlu0 %8140 }
0x144a   : > { %v8146_v63 = vsel %vm1370_vm3, %v8141_v61, 0 }
0x144b   : > { %12856 = vmatpush3.bf16.xpose.msra.mxu1 %v8146_v63 }
0x144c   : > { %12867 = vmatprep.subr.bf16.mxu1 %v18274_v7  ;;  %v8791_v60 = vpop.permute.xlu1 %8790 }
0x144d   : > { %v8139_v52 = vpop.permute.xlu0 %8138 }
0x1450   : > { %v13658_v34 = vpop.eup %13657  ;;  %v8789_v18 = vpop.permute.xlu1 %8788 }
0x1451   : > { %v8241_v47 = vpop.permute.xlu0 %8240  ;;  %v7345_v5 = vmul.f32 %v13658_v34, %v16836_v36 }
0x1452   : > { %v8246_v29 = vsel %vm1370_vm3, %v8241_v47, 0  ;;  %12858 = vmatmul.mubr.msk.bf16.vlgmr.msra.gmra.mrb[248].mxu1 %vm1370_vm3, %v8139_v52 }
0x1453   : > { %12868 = vmatpush3.bf16.xpose.msra.mxu1 %v8246_v29  ;;  %v7361_v9 = vpack.c.bf16 %v7345_v5, %v7345_v5  ;;  %12869 = vmatprep.mubr.msk.bf16.mxu1 %vm13935_vm2, %v18274_v7 }
0x1454   : > { %12879 = vmatprep.subr.bf16.mxu1 %v18274_v7 }
0x1455   : > { %v8239_v42 = vpop.permute.xlu0 %8238  ;;  %12852 = vmatmul.mubr.msk.bf16.vlgmr.msra.gmra.mrb[244].mxu0 %vm2170_vm6, %v7361_v9 }
0x1456   : > { %12862 = vmatpush3.bf16.xpose.msra.mxu0 %v8196_v57  ;;  %12863 = vmatprep.mubr.msk.bf16.mxu0 %vm13935_vm2, %v18274_v7 }
0x1457   : > { %12873 = vmatprep.subr.bf16.mxu0 %v18274_v7 }
0x1459   : > { %v8341_v36 = vpop.permute.xlu0 %8340 }
0x145a   : > { %v8346_v32 = vsel %vm1370_vm3, %v8341_v36, 0  ;;  %12870 = vmatmul.mubr.msk.bf16.vlgmr.msra.gmra.mrb[252].mxu1 %vm1370_vm3, %v8239_v42 }
0x145b   : > { %12880 = vmatpush3.bf16.xpose.msra.mxu1 %v8346_v32  ;;  %12881 = vmatprep.mubr.msk.bf16.mxu1 %vm13935_vm2, %v18274_v7 }
0x145c   : > { %12891 = vmatprep.subr.bf16.mxu1 %v18274_v7 }
0x145d   : > { %v8339_v6 = vpop.permute.xlu0 %8338  ;;  %12864 = vmatmul.mubr.msk.bf16.vlgmr.msra.gmra.mrb[248].mxu0 %vm1370_vm3, %v8189_v3  ;;  %v8796_v3 = vsel %vm1370_vm3, %v8791_v60, 0 }
0x145e   : > { %12874 = vmatpush3.bf16.xpose.msra.mxu0 %v8296_v26  ;;  %12875 = vmatprep.mubr.msk.bf16.mxu0 %vm13935_vm2, %v18274_v7 }
0x145f   : > { %12885 = vmatprep.subr.bf16.mxu0 %v18274_v7 }
0x1461   : > { %v8441_v31 = vpop.permute.xlu0 %8440 }
0x1462   : > { %v8446_v51 = vsel %vm1370_vm3, %v8441_v31, 0  ;;  %12882 = vmatmul.mubr.msk.bf16.vlgmr.msra.gmra.mrb[0].mxu1 %vm1370_vm3, %v8339_v6 }
0x1463   : > { %12892 = vmatpush3.bf16.xpose.msra.mxu1 %v8446_v51  ;;  %12893 = vmatprep.mubr.msk.bf16.mxu1 %vm13935_vm2, %v18274_v7 }
0x1464   : > { %12903 = vmatprep.subr.bf16.mxu1 %v18274_v7 }
0x1465   : > { %v8439_v11 = vpop.permute.xlu0 %8438  ;;  %12876 = vmatmul.mubr.msk.bf16.vlgmr.msra.gmra.mrb[252].mxu0 %vm1370_vm3, %v8289_v19  ;;  %v8891_v19 = vpop.permute.xlu1 %8890 }
0x1466   : > { %12886 = vmatpush3.bf16.xpose.msra.mxu0 %v8396_v43  ;;  %12887 = vmatprep.mubr.msk.bf16.mxu0 %vm13935_vm2, %v18274_v7 }
0x1467   : > { %12897 = vmatprep.subr.bf16.mxu0 %v18274_v7 }
0x1469   : > { %v8541_v24 = vpop.permute.xlu0 %8540  ;;  %v8889_v52 = vpop.permute.xlu1 %8888 }
0x146a   : > { %v8546_v39 = vsel %vm1370_vm3, %v8541_v24, 0  ;;  %12894 = vmatmul.mubr.msk.bf16.vlgmr.msra.gmra.mrb[4].mxu1 %vm1370_vm3, %v8439_v11 }
0x146b   : > { %12904 = vmatpush3.bf16.xpose.msra.mxu1 %v8546_v39  ;;  %12905 = vmatprep.mubr.msk.bf16.mxu1 %vm13935_vm2, %v18274_v7 }
0x146c   : > { %12915 = vmatprep.subr.bf16.mxu1 %v18274_v7 }
0x146d   : > { %v8539_v25 = vpop.permute.xlu0 %8538  ;;  %12888 = vmatmul.mubr.msk.bf16.vlgmr.msra.gmra.mrb[0].mxu0 %vm1370_vm3, %v8389_v15  ;;  %v8896_v15 = vsel %vm1370_vm3, %v8891_v19, 0  ;;  %v9195_v5 = vpop.permute.xlu1 %9194 }
0x146e   : > { %12898 = vmatpush3.bf16.xpose.msra.mxu0 %v8496_v28  ;;  %12899 = vmatprep.mubr.msk.bf16.mxu0 %vm13935_vm2, %v18274_v7  ;;  %v9200_v37 = vsel %vm2368_vm4, %v9195_v5, 0 }
0x146f   : > { %12909 = vmatprep.subr.bf16.mxu0 %v18274_v7 }
0x1471   : > { %v8641_v46 = vpop.permute.xlu0 %8640 }
0x1472   : > { %v8646_v58 = vsel %vm1370_vm3, %v8641_v46, 0  ;;  %12906 = vmatmul.mubr.msk.bf16.vlgmr.msra.gmra.mrb[8].mxu1 %vm1370_vm3, %v8539_v25 }
0x1473   : > { %12916 = vmatpush3.bf16.xpose.msra.mxu1 %v8646_v58  ;;  %12917 = vmatprep.mubr.msk.bf16.mxu1 %vm13935_vm2, %v18274_v7 }
0x1474   : > { %12927 = vmatprep.subr.bf16.mxu1 %v18274_v7 }
0x1475   : > { %v8639_v8 = vpop.permute.xlu0 %8638  ;;  %12900 = vmatmul.mubr.msk.bf16.vlgmr.msra.gmra.mrb[4].mxu0 %vm1370_vm3, %v8489_v33 }
0x1476   : > { %12910 = vmatpush3.bf16.xpose.msra.mxu0 %v8596_v55  ;;  %12911 = vmatprep.mubr.msk.bf16.mxu0 %vm13935_vm2, %v18274_v7 }
0x1477   : > { %12921 = vmatprep.subr.bf16.mxu0 %v18274_v7 }
0x1479   : > { %v8741_v27 = vpop.permute.xlu0 %8740 }
0x147a   : > { %v8746_v13 = vsel %vm1370_vm3, %v8741_v27, 0  ;;  %12918 = vmatmul.mubr.msk.bf16.vlgmr.msra.gmra.mrb[12].mxu1 %vm1370_vm3, %v8639_v8 }
0x147b   : > { %12928 = vmatpush3.bf16.xpose.msra.mxu1 %v8746_v13  ;;  %12929 = vmatprep.mubr.msk.bf16.mxu1 %vm13935_vm2, %v18274_v7 }
0x147c   : > { %12939 = vmatprep.subr.bf16.mxu1 %v18274_v7 }
0x147d   : > { %v8739_v22 = vpop.permute.xlu0 %8738  ;;  %12912 = vmatmul.mubr.msk.bf16.vlgmr.msra.gmra.mrb[8].mxu0 %vm1370_vm3, %v8589_v20 }
0x147e   : > { %12922 = vmatpush3.bf16.xpose.msra.mxu0 %v8696_v41  ;;  %12923 = vmatprep.mubr.msk.bf16.mxu0 %vm13935_vm2, %v18274_v7 }
0x147f   : > { %12933 = vmatprep.subr.bf16.mxu0 %v18274_v7 }
0x1481   : > { %v8841_v21 = vpop.permute.xlu0 %8840 }
0x1482   : > { %v8846_v35 = vsel %vm1370_vm3, %v8841_v21, 0  ;;  %12930 = vmatmul.mubr.msk.bf16.vlgmr.msra.gmra.mrb[16].mxu1 %vm1370_vm3, %v8739_v22 }
0x1483   : > { %12940 = vmatpush3.bf16.xpose.msra.mxu1 %v8846_v35  ;;  %12941 = vmatprep.mubr.msk.bf16.mxu1 %vm13935_vm2, %v18274_v7 }
0x1484   : > { %12951 = vmatprep.subr.bf16.mxu1 %v18274_v7 }
0x1485   : > { %v8839_v49 = vpop.permute.xlu0 %8838  ;;  %12924 = vmatmul.mubr.msk.bf16.vlgmr.msra.gmra.mrb[12].mxu0 %vm1370_vm3, %v8689_v45 }
0x1486   : > { %12934 = vmatpush3.bf16.xpose.msra.mxu0 %v8796_v3  ;;  %12935 = vmatprep.mubr.msk.bf16.mxu0 %vm13935_vm2, %v18274_v7 }
0x1487   : > { %12945 = vmatprep.subr.bf16.mxu0 %v18274_v7 }
0x1489   : > { %v9147_v4 = vpop.permute.xlu0 %9146 }
0x148a   : > { %v9152_v61 = vsel %vm2368_vm4, %v9147_v4, 0  ;;  %v17074_v16 = vpop.f32.mrb[216].mxu1  ;;  %12942 = vmatmul.mubr.msk.bf16.vlgmr.msra.gmra.mrb[20].mxu1 %vm1370_vm3, %v8839_v49 }
0x148b   : > { %v12763_v63 = vpop.f32.mrb[217].mxu1  ;;  %12952 = vmatpush3.bf16.msra.mxu1 %v9152_v61  ;;  %12953 = vmatprep.mubr.msk.bf16.mxu1 %vm13935_vm2, %v18274_v7 }
0x148c   : > { %v7407_v34 = vpop.f32.mrb[218].mxu1  ;;  %12963 = vmatprep.subr.bf16.mxu1 %v18274_v7 }
0x148d   : > { %v12764_v47 = vpop.f32.mrb[219].mxu1  ;;  %12936 = vmatmul.mubr.msk.bf16.vlgmr.msra.gmra.mrb[16].mxu0 %vm1370_vm3, %v8789_v18 }
0x148e   : > { %12946 = vmatpush3.bf16.xpose.msra.mxu0 %v8896_v15  ;;  %12947 = vmatprep.mubr.msk.bf16.mxu0 %vm13935_vm2, %v18274_v7 }
0x148f   : > { %12957 = vmatprep.subr.bf16.mxu0 %v18274_v7 }
0x1492   : > { %v17085_v29 = vpop.f32.mrb[216].mxu0 }
0x1493   : > { %v8130_v9 = vpack.c.bf16 %v17085_v29, %v17074_v16  ;;  %v12769_v57 = vpop.f32.mrb[217].mxu0 }
0x1494   : > { %v7455_v42 = vpop.f32.mrb[218].mxu0 }
0x1495   : > { %v12770_v36 = vpop.f32.mrb[219].mxu0  ;;  %12948 = vmatmul.mubr.msk.bf16.vlgmr.msra.gmra.mrb[20].mxu0 %vm1370_vm3, %v8889_v52 }
0x1496   : > { %12958 = vmatpush3.bf16.msra.mxu0 %v9200_v37  ;;  %12959 = vmatprep.mubr.msk.bf16.mxu0 %vm13935_vm2, %v18274_v7 }
0x1497   : > { %12969 = vmatprep.subr.bf16.mxu0 %v18274_v7 }
0x149c   : > { %v17094_v32 = vpop.f32.mrb[220].mxu1 }
0x149d   : > { %v12775_v33 = vpop.f32.mrb[221].mxu1 }
0x149e   : > { %v7503_v26 = vpop.f32.mrb[222].mxu1 }
0x149f   : > { %v12776_v6 = vpop.f32.mrb[223].mxu1 }
0x14a4   : > { %v17096_v31 = vpop.f32.mrb[220].mxu0  ;;  %v17098_v17 = vpop.f32.mrb[224].mxu1 }
0x14a5   : > { %v8131_v51 = vpack.c.bf16 %v17096_v31, %v17094_v32  ;;  %v12781_v43 = vpop.f32.mrb[221].mxu0  ;;  %v12787_v11 = vpop.f32.mrb[225].mxu1 }
0x14a6   : > { %v7551_v20 = vpop.f32.mrb[222].mxu0  ;;  %v7599_v24 = vpop.f32.mrb[226].mxu1 }
0x14a7   : > { %v12782_v39 = vpop.f32.mrb[223].mxu0  ;;  %v12788_v28 = vpop.f32.mrb[227].mxu1 }
0x14ac   : > { %v17102_v25 = vpop.f32.mrb[224].mxu0  ;;  %v17104_v54 = vpop.f32.mrb[228].mxu1 }
0x14ad   : > { %v12793_v58 = vpop.f32.mrb[225].mxu0  ;;  %v12799_v45 = vpop.f32.mrb[229].mxu1 }
0x14ae   : > { %v7647_v55 = vpop.f32.mrb[226].mxu0  ;;  %v7695_v8 = vpop.f32.mrb[230].mxu1 }
0x14af   : > { %v12794_v27 = vpop.f32.mrb[227].mxu0  ;;  %v12800_v60 = vpop.f32.mrb[231].mxu1 }
0x14b4   : > { %v17108_v13 = vpop.f32.mrb[228].mxu0  ;;  %v17110_v41 = vpop.f32.mrb[232].mxu1 }
0x14b5   : > { %v12805_v18 = vpop.f32.mrb[229].mxu0  ;;  %v12811_v21 = vpop.f32.mrb[233].mxu1 }
0x14b6   : > { %v7743_v35 = vpop.f32.mrb[230].mxu0  ;;  %v7791_v3 = vpop.f32.mrb[234].mxu1 }
0x14b7   : > { %v12806_v49 = vpop.f32.mrb[231].mxu0  ;;  %v12812_v19 = vpop.f32.mrb[235].mxu1 }
0x14bc   : > { %v17114_v4 = vpop.f32.mrb[232].mxu0  ;;  %v17116_v61 = vpop.f32.mrb[236].mxu1 }
0x14bd   : > { %v12817_v52 = vpop.f32.mrb[233].mxu0  ;;  %v12823_v34 = vpop.f32.mrb[237].mxu1  ;;  %v18309_v16 = vpack.c.bf16 %v17114_v4, %v17110_v41 }
0x14be   : > { %v7839_v15 = vpop.f32.mrb[234].mxu0  ;;  %v7887_v47 = vpop.f32.mrb[238].mxu1 }
0x14bf   : > { %v12818_v5 = vpop.f32.mrb[235].mxu0  ;;  %v12824_v57 = vpop.f32.mrb[239].mxu1 }
0x14e9   : > { %v17120_v42 = vpop.f32.mrb[240].mxu1 }
0x14ea   : > { %v12835_v37 = vpop.f32.mrb[241].mxu1 }
0x14eb   : > { %v7983_v36 = vpop.f32.mrb[242].mxu1 }
0x14ec   : > { %v12836_v33 = vpop.f32.mrb[243].mxu1 }
0x14ef   : > { %v17122_v26 = vpop.f32.mrb[236].mxu0 }
0x14f0   : > { %v12829_v43 = vpop.f32.mrb[237].mxu0  ;;  %v18310_v29 = vpack.c.bf16 %v17122_v26, %v17116_v61 }
0x14f1   : > { %v17126_v11 = vpop.f32.mrb[244].mxu1  ;;  %v7935_v20 = vpop.f32.mrb[238].mxu0 }
0x14f2   : > { %v12847_v24 = vpop.f32.mrb[245].mxu1  ;;  %v12830_v39 = vpop.f32.mrb[239].mxu0 }
0x14f3   : > { %v8079_v28 = vpop.f32.mrb[246].mxu1 }
0x14f4   : > { %v12848_v58 = vpop.f32.mrb[247].mxu1 }
0x14f7   : > { %v17128_v45 = vpop.f32.mrb[240].mxu0 }
0x14f8   : > { %v12841_v8 = vpop.f32.mrb[241].mxu0 }
0x14f9   : > { %v8031_v27 = vpop.f32.mrb[242].mxu0 }
0x14fa   : > { %v12842_v60 = vpop.f32.mrb[243].mxu0 }
0x1525   : > { %v8182_v18 = vpop.f32.mrb[248].mxu1 }
0x1526   : > { %v17134_v21 = vsel %vm946_vm5, %v8182_v18, -1e+30  ;;  %v12859_v35 = vpop.f32.mrb[249].mxu1 }
0x1527   : > { %v8954_v3 = vsel %vm2170_vm6, %v17134_v21, -inf  ;;  %v8185_v49 = vpop.f32.mrb[250].mxu1 }
0x1528   : > { %8955 = vmax.xlane.f32.xlu0 %v8954_v3  ;;  %v17138_v19 = vpop.f32.mrb[244].mxu0  ;;  %v12860_v52 = vpop.f32.mrb[251].mxu1 }
0x1529   : > { %v12853_v15 = vpop.f32.mrb[245].mxu0  ;;  %v18312_v32 = vpack.c.bf16 %v17138_v19, %v17126_v11 }
0x152a   : > { %v8127_v47 = vpop.f32.mrb[246].mxu0 }
0x152b   : > { %v12854_v5 = vpop.f32.mrb[247].mxu0 }
0x152d   : > { %v8282_v57 = vpop.f32.mrb[252].mxu1 }
0x152e   : > { %v17144_v37 = vsel %vm946_vm5, %v8282_v57, -1e+30  ;;  %v12871_v36 = vpop.f32.mrb[253].mxu1 }
0x152f   : > { %v8960_v33 = vsel %vm2170_vm6, %v17144_v37, -inf  ;;  %v8285_v43 = vpop.f32.mrb[254].mxu1 }
0x1530   : > { %8961 = vmax.xlane.f32.xlu0 %v8960_v33  ;;  %v8232_v20 = vpop.f32.mrb[248].mxu0  ;;  %v12872_v24 = vpop.f32.mrb[255].mxu1 }
0x1531   : > { %v17150_v39 = vsel %vm946_vm5, %v8232_v20, -1e+30  ;;  %v12865_v28 = vpop.f32.mrb[249].mxu0 }
0x1532   : > { %v8957_v58 = vsel %vm2170_vm6, %v17150_v39, -inf  ;;  %v8235_v8 = vpop.f32.mrb[250].mxu0 }
0x1533   : > { %8958 = vmax.xlane.f32.xlu1 %v8957_v58  ;;  %v12866_v27 = vpop.f32.mrb[251].mxu0 }
0x1535   : > { %v8382_v60 = vpop.f32.mrb[0].mxu1 }
0x1536   : > { %v12883_v18 = vpop.f32.mrb[1].mxu1  ;;  %v17162_v57 = vsel %vm946_vm5, %v8382_v60, -1e+30 }
0x1537   : > { %v8385_v35 = vpop.f32.mrb[2].mxu1  ;;  %v8966_v43 = vsel %vm2170_vm6, %v17162_v57, -inf }
0x1538   : > { %v8332_v3 = vpop.f32.mrb[252].mxu0  ;;  %v12884_v49 = vpop.f32.mrb[3].mxu1 }
0x1539   : > { %v17156_v52 = vsel %vm946_vm5, %v8332_v3, -1e+30  ;;  %v12877_v15 = vpop.f32.mrb[253].mxu0 }
0x153a   : > { %v8963_v47 = vsel %vm2170_vm6, %v17156_v52, -inf  ;;  %v8335_v5 = vpop.f32.mrb[254].mxu0 }
0x153b   : > { %8964 = vmax.xlane.f32.xlu0 %v8963_v47  ;;  %v12878_v36 = vpop.f32.mrb[255].mxu0 }
0x153d   : > { %v8482_v33 = vpop.f32.mrb[4].mxu1 }
0x153e   : > { %v12895_v20 = vpop.f32.mrb[5].mxu1  ;;  %v17168_v24 = vsel %vm946_vm5, %v8482_v33, -1e+30 }
0x153f   : > { %v8485_v28 = vpop.f32.mrb[6].mxu1  ;;  %8967 = vmax.xlane.f32.xlu0 %v8966_v43  ;;  %v8972_v18 = vsel %vm2170_vm6, %v17168_v24, -inf }
0x1540   : > { %v8432_v58 = vpop.f32.mrb[0].mxu0  ;;  %v12896_v8 = vpop.f32.mrb[7].mxu1 }
0x1541   : > { %v17172_v27 = vsel %vm946_vm5, %v8432_v58, -1e+30  ;;  %v12889_v60 = vpop.f32.mrb[1].mxu0 }
0x1542   : > { %v8969_v35 = vsel %vm2170_vm6, %v17172_v27, -inf  ;;  %v8435_v3 = vpop.f32.mrb[2].mxu0 }
0x1543   : > { %8973 = vmax.xlane.f32.xlu0 %v8972_v18  ;;  %8970 = vmax.xlane.f32.xlu1 %v8969_v35  ;;  %v12890_v49 = vpop.f32.mrb[3].mxu0 }
0x1545   : > { %v8582_v15 = vpop.f32.mrb[8].mxu1 }
0x1546   : > { %v17180_v47 = vsel %vm946_vm5, %v8582_v15, -1e+30  ;;  %v12907_v5 = vpop.f32.mrb[9].mxu1 }
0x1547   : > { %v8978_v36 = vsel %vm2170_vm6, %v17180_v47, -inf  ;;  %v8585_v33 = vpop.f32.mrb[10].mxu1 }
0x1548   : > { %v12908_v43 = vpop.f32.mrb[11].mxu1  ;;  %8979 = vmax.xlane.f32.xlu0 %v8978_v36  ;;  %v8532_v20 = vpop.f32.mrb[4].mxu0 }
0x1549   : > { %v17186_v28 = vsel %vm946_vm5, %v8532_v20, -1e+30  ;;  %v12901_v58 = vpop.f32.mrb[5].mxu0 }
0x154a   : > { %v8975_v8 = vsel %vm2170_vm6, %v17186_v28, -inf  ;;  %v8535_v60 = vpop.f32.mrb[6].mxu0 }
0x154b   : > { %8976 = vmax.xlane.f32.xlu1 %v8975_v8  ;;  %v12902_v18 = vpop.f32.mrb[7].mxu0 }
0x154d   : > { %v8682_v35 = vpop.f32.mrb[12].mxu1 }
0x154e   : > { %v17192_v3 = vsel %vm946_vm5, %v8682_v35, -1e+30  ;;  %v12919_v49 = vpop.f32.mrb[13].mxu1 }
0x154f   : > { %v8984_v15 = vsel %vm2170_vm6, %v17192_v3, -inf  ;;  %v8685_v5 = vpop.f32.mrb[14].mxu1 }
0x1550   : > { %v12920_v36 = vpop.f32.mrb[15].mxu1  ;;  %8985 = vmax.xlane.f32.xlu0 %v8984_v15  ;;  %v8632_v33 = vpop.f32.mrb[8].mxu0 }
0x1551   : > { %v17198_v43 = vsel %vm946_vm5, %v8632_v33, -1e+30  ;;  %v12913_v20 = vpop.f32.mrb[9].mxu0 }
0x1552   : > { %v8981_v58 = vsel %vm2170_vm6, %v17198_v43, -inf  ;;  %v8635_v8 = vpop.f32.mrb[10].mxu0 }
0x1553   : > { %8982 = vmax.xlane.f32.xlu1 %v8981_v58  ;;  %v12914_v60 = vpop.f32.mrb[11].mxu0 }
0x1555   : > { %v8782_v18 = vpop.f32.mrb[16].mxu1 }
0x1556   : > { %v17204_v35 = vsel %vm946_vm5, %v8782_v18, -1e+30  ;;  %v12931_v49 = vpop.f32.mrb[17].mxu1 }
0x1557   : > { %v8990_v15 = vsel %vm2170_vm6, %v17204_v35, -inf  ;;  %v8785_v5 = vpop.f32.mrb[18].mxu1 }
0x1558   : > { %v12932_v36 = vpop.f32.mrb[19].mxu1  ;;  %8991 = vmax.xlane.f32.xlu0 %v8990_v15  ;;  %v8732_v33 = vpop.f32.mrb[12].mxu0 }
0x1559   : > { %v17210_v20 = vsel %vm946_vm5, %v8732_v33, -1e+30  ;;  %v12925_v8 = vpop.f32.mrb[13].mxu0 }
0x155a   : > { %v8987_v58 = vsel %vm2170_vm6, %v17210_v20, -inf  ;;  %v8735_v60 = vpop.f32.mrb[14].mxu0 }
0x155b   : > { %8988 = vmax.xlane.f32.xlu1 %v8987_v58  ;;  %v12926_v18 = vpop.f32.mrb[15].mxu0 }
0x155d   : > { %v8882_v34 = vpop.f32.mrb[20].mxu1 }
0x155e   : > { %v17216_v49 = vsel %vm946_vm5, %v8882_v34, -1e+30  ;;  %v12943_v5 = vpop.f32.mrb[21].mxu1 }
0x155f   : > { %v8996_v15 = vsel %vm2170_vm6, %v17216_v49, -inf  ;;  %v8885_v36 = vpop.f32.mrb[22].mxu1 }
0x1560   : > { %v12944_v55 = vpop.f32.mrb[23].mxu1  ;;  %8997 = vmax.xlane.f32.xlu0 %v8996_v15  ;;  %v8832_v33 = vpop.f32.mrb[16].mxu0 }
0x1561   : > { %v17222_v8 = vsel %vm946_vm5, %v8832_v33, -1e+30  ;;  %v12937_v60 = vpop.f32.mrb[17].mxu0  ;;  %v17244_v15 = vpop.permute.xlu1 %9290 }
0x1562   : > { %v8993_v58 = vsel %vm2170_vm6, %v17222_v8, -inf  ;;  %v8835_v18 = vpop.f32.mrb[18].mxu0 }
0x1563   : > { %8994 = vmax.xlane.f32.xlu1 %v8993_v58  ;;  %v12938_v34 = vpop.f32.mrb[19].mxu0 }
0x1565   : > { %v17248_v36 = vpop.permute.xlu1 %9386 }
0x1568   : > { %v8932_v6 = vpop.f32.mrb[20].mxu0 }
0x1569   : > { %v12949_v5 = vpop.f32.mrb[21].mxu0  ;;  %v17236_v55 = vsel %vm946_vm5, %v8932_v6, -1e+30  ;;  %v17251_v6 = vpop.permute.xlu1 %9482 }
0x156a   : > { %v8935_v63 = vpop.f32.mrb[22].mxu0 }
0x156b   : > { %v12950_v22 = vpop.f32.mrb[23].mxu0  ;;  %v8999_v63 = vsel %vm2170_vm6, %v17236_v55, -inf }
0x156c   : > { %v17240_v22 = vpop.permute.xlu0 %9242 }
0x1574   : > { %9578 = vrot.lane.b32.xlu1 %v16461_v44, %s18306_s16  ;;  %v17242_v44 = vpop.permute.xlu0 %9338 }
0x1576   : > { %9530 = vrot.lane.b32.xlu0 %v16457_v10, %s18306_s16 }
0x1578   : > { %9626 = vrot.lane.b32.xlu1 %v16465_v59, %s18306_s16  ;;  %v17246_v10 = vpop.permute.xlu0 %9434 }
0x157c   : > { %9674 = vrot.lane.b32.xlu1 %v16469_v56, %s18306_s16 }
0x15a0   : > { %9000 = vmax.xlane.f32.xlu1 %v8999_v63 }
0x15b5   : > { %v8956_v59 = vpop.xlane.xlu0 %8955 }
0x15b6   : > { %v9002_v56 = vsub.f32 %v17134_v21, %v8956_v59 }
0x15b8   : > { %v9018_v1 = vmul.f32 1.442695, %v9002_v56 }
0x15ba   : > { %13659 = vpow2.f32 %v9018_v1 }
0x15bd   : > { %v8962_v33 = vpop.xlane.xlu0 %8961 }
0x15be   : > { %v9004_v60 = vsub.f32 %v17144_v37, %v8962_v33 }
0x15c0   : > { %v9022_v58 = vmul.f32 1.442695, %v9004_v60  ;;  %v8959_v18 = vpop.xlane.xlu1 %8958 }
0x15c1   : > { %v9003_v34 = vsub.f32 %v17150_v39, %v8959_v18 }
0x15c2   : > { %13661 = vpow2.f32 %v9022_v58 }
0x15c3   : > { %v9020_v5 = vmul.f32 1.442695, %v9003_v34 }
0x15c4   : > { %v17255_v63 = vpop.eup %13659 }
0x15c5   : > { %13663 = vpow2.f32 %v9020_v5  ;;  %v9050_v46 = vsel %vm2170_vm6, %v17255_v63, 0.0 }
0x15c6   : > { %9051 = vadd.xlane.f32.xlu0 %v9050_v46 }
0x15c8   : > { %v8965_v21 = vpop.xlane.xlu0 %8964 }
0x15c9   : > { %v9005_v59 = vsub.f32 %v17156_v52, %v8965_v21 }
0x15cb   : > { %v9024_v56 = vmul.f32 1.442695, %v9005_v59 }
0x15cc   : > { %v17260_v1 = vpop.eup %13661  ;;  %v8968_v37 = vpop.xlane.xlu0 %8967 }
0x15cd   : > { %13665 = vpow2.f32 %v9024_v56  ;;  %v9006_v33 = vsub.f32 %v17162_v57, %v8968_v37  ;;  %v9056_v39 = vsel %vm2170_vm6, %v17260_v1, 0.0 }
0x15ce   : > { %9057 = vadd.xlane.f32.xlu0 %v9056_v39 }
0x15cf   : > { %v17265_v60 = vpop.eup %13663  ;;  %v9026_v58 = vmul.f32 1.442695, %v9006_v33 }
0x15d0   : > { %v8974_v18 = vpop.xlane.xlu0 %8973  ;;  %v8971_v34 = vpop.xlane.xlu1 %8970  ;;  %v9053_v46 = vsel %vm2170_vm6, %v17265_v60, 0.0 }
0x15d1   : > { %13667 = vpow2.f32 %v9026_v58  ;;  %v9008_v52 = vsub.f32 %v17168_v24, %v8974_v18  ;;  %v9007_v5 = vsub.f32 %v17172_v27, %v8971_v34  ;;  %9054 = vadd.xlane.f32.xlu1 %v9053_v46 }
0x15d3   : > { %v9030_v21 = vmul.f32 1.442695, %v9008_v52  ;;  %v9028_v57 = vmul.f32 1.442695, %v9007_v5 }
0x15d5   : > { %13669 = vpow2.f32 %v9030_v21  ;;  %v8980_v59 = vpop.xlane.xlu0 %8979 }
0x15d6   : > { %13671 = vpow2.f32 %v9028_v57  ;;  %v9010_v37 = vsub.f32 %v17180_v47, %v8980_v59 }
0x15d7   : > { %v17271_v56 = vpop.eup %13665 }
0x15d8   : > { %v8977_v33 = vpop.xlane.xlu1 %8976  ;;  %v9059_v39 = vsel %vm2170_vm6, %v17271_v56, 0.0  ;;  %v9034_v27 = vmul.f32 1.442695, %v9010_v37 }
0x15d9   : > { %v9009_v58 = vsub.f32 %v17186_v28, %v8977_v33  ;;  %9060 = vadd.xlane.f32.xlu1 %v9059_v39 }
0x15db   : > { %v17277_v24 = vpop.eup %13667  ;;  %v9032_v18 = vmul.f32 1.442695, %v9009_v58 }
0x15dc   : > { %v9062_v34 = vsel %vm2170_vm6, %v17277_v24, 0.0 }
0x15dd   : > { %13673 = vpow2.f32 %v9032_v18  ;;  %9063 = vadd.xlane.f32.xlu0 %v9062_v34  ;;  %v8986_v46 = vpop.xlane.xlu0 %8985 }
0x15de   : > { %v9012_v52 = vsub.f32 %v17192_v3, %v8986_v46  ;;  %13675 = vpow2.f32 %v9034_v27 }
0x15df   : > { %v17282_v47 = vpop.eup %13669 }
0x15e0   : > { %v17284_v5 = vpop.eup %13671  ;;  %v9038_v21 = vmul.f32 1.442695, %v9012_v52  ;;  %v8983_v28 = vpop.xlane.xlu1 %8982  ;;  %v9068_v57 = vsel %vm2170_vm6, %v17282_v47, 0.0 }
0x15e1   : > { %v9011_v59 = vsub.f32 %v17198_v43, %v8983_v28  ;;  %9069 = vadd.xlane.f32.xlu0 %v9068_v57  ;;  %v9065_v37 = vsel %vm2170_vm6, %v17284_v5, 0.0 }
0x15e2   : > { %9066 = vadd.xlane.f32.xlu1 %v9065_v37  ;;  %13677 = vpow2.f32 %v9038_v21 }
0x15e3   : > { %v9036_v33 = vmul.f32 1.442695, %v9011_v59 }
0x15e5   : > { %13679 = vpow2.f32 %v9036_v33  ;;  %v8992_v59 = vpop.xlane.xlu0 %8991 }
0x15e6   : > { %v9014_v37 = vsub.f32 %v17204_v35, %v8992_v59 }
0x15e7   : > { %v17291_v3 = vpop.eup %13673 }
0x15e8   : > { %v8989_v39 = vpop.xlane.xlu1 %8988  ;;  %v9071_v58 = vsel %vm2170_vm6, %v17291_v3, 0.0  ;;  %v17295_v27 = vpop.eup %13675 }
0x15e9   : > { %v9013_v18 = vsub.f32 %v17210_v20, %v8989_v39  ;;  %9072 = vadd.xlane.f32.xlu1 %v9071_v58  ;;  %v9074_v34 = vsel %vm2170_vm6, %v17295_v27, 0.0  ;;  %v9042_v39 = vmul.f32 1.442695, %v9014_v37 }
0x15eb   : > { %v9040_v43 = vmul.f32 1.442695, %v9013_v18 }
0x15ec   : > { %v17300_v46 = vpop.eup %13677 }
0x15ed   : > { %13681 = vpow2.f32 %v9040_v43  ;;  %9075 = vadd.xlane.f32.xlu1 %v9074_v34  ;;  %v9080_v21 = vsel %vm2170_vm6, %v17300_v46, 0.0  ;;  %v8998_v33 = vpop.xlane.xlu0 %8997 }
0x15ee   : > { %v9016_v58 = vsub.f32 %v17216_v49, %v8998_v33  ;;  %13683 = vpow2.f32 %v9042_v39 }
0x15ef   : > { %v17302_v52 = vpop.eup %13679 }
0x15f0   : > { %v9077_v28 = vsel %vm2170_vm6, %v17302_v52, 0.0  ;;  %v8995_v18 = vpop.xlane.xlu1 %8994  ;;  %v9046_v43 = vmul.f32 1.442695, %v9016_v58 }
0x15f1   : > { %9081 = vadd.xlane.f32.xlu1 %v9080_v21  ;;  %9078 = vadd.xlane.f32.xlu0 %v9077_v28  ;;  %v9015_v34 = vsub.f32 %v17222_v8, %v8995_v18 }
0x15f2   : > { %13685 = vpow2.f32 %v9046_v43 }
0x15f3   : > { %v9044_v21 = vmul.f32 1.442695, %v9015_v34  ;;  %v17344_v34 = vpop.permute.xlu0 %9530 }
0x15f4   : > { %v17319_v28 = vpop.permute.xlu1 %9578 }
0x15f5   : > { %13687 = vpow2.f32 %v9044_v21 }
0x15f7   : > { %v17308_v20 = vpop.eup %13681 }
0x15f8   : > { %v9083_v57 = vsel %vm2170_vm6, %v17308_v20, 0.0 }
0x15f9   : > { %9084 = vadd.xlane.f32.xlu0 %v9083_v57  ;;  %v17323_v57 = vpop.permute.xlu1 %9626 }
0x15fd   : > { %v17329_v49 = vpop.permute.xlu1 %9674 }
0x1602   : > { %9770 = vrot.lane.b32.xlu1 %v16477_v62, %s18306_s16  ;;  %v17321_v62 = vpop.eup %13683 }
0x1603   : > { %v17327_v35 = vpop.eup %13685 }
0x1604   : > { %v9092_v8 = vsel %vm2170_vm6, %v17327_v35, 0.0  ;;  %v17333_v59 = vpop.eup %13687 }
0x1605   : > { %v9089_v33 = vsel %vm2170_vm6, %v17333_v59, 0.0 }
0x160f   : > { %9722 = vrot.lane.b32.xlu0 %v16473_v48, %s18306_s16  ;;  %v9086_v48 = vsel %vm2170_vm6, %v17321_v62, 0.0 }
0x1626   : > { %9087 = vadd.xlane.f32.xlu1 %v9086_v48 }
0x162a   : > { %9093 = vadd.xlane.f32.xlu1 %v9092_v8 }
0x162d   : > { %v9001_v37 = vpop.xlane.xlu1 %9000 }
0x162e   : > { %v9017_v39 = vsub.f32 %v17236_v55, %v9001_v37  ;;  %9090 = vadd.xlane.f32.xlu0 %v9089_v33  ;;  %v9248_v33 = vsel %vm2368_vm4, %v17240_v22, 0  ;;  %v9344_v22 = vsel %vm2368_vm4, %v17242_v44, 0 }
0x1630   : > { %v9048_v58 = vmul.f32 1.442695, %v9017_v39 }
0x1632   : > { %13689 = vpow2.f32 %v9048_v58 }
0x163b   : > { %9866 = vrot.lane.b32.xlu1 %v16485_v40, %s18306_s16 }
0x163c   : > { %v17340_v18 = vpop.eup %13689 }
0x163d   : > { %v9095_v43 = vsel %vm2170_vm6, %v17340_v18, 0.0 }
0x163e   : > { %9096 = vadd.xlane.f32.xlu0 %v9095_v43 }
0x1653   : > { %v9052_v21 = vpop.xlane.xlu0 %9051 }
0x1654   : > { %13691 = vrcp.f32 %v9052_v21  ;;  %9818 = vrot.lane.b32.xlu0 %v16481_v50, %s18306_s16  ;;  %s11371_s16 = scalar_lea.sflag [#allocation4], %s14108_s22 }
0x165b   : > { %v9058_v55 = vpop.xlane.xlu0 %9057 }
0x165c   : > { %13693 = vrcp.f32 %v9058_v55 }
0x165e   : > { %v13692_v48 = vpop.eup %13691  ;;  %v9055_v8 = vpop.xlane.xlu1 %9054 }
0x165f   : > { %v9114_v37 = vmul.f32 %v13692_v48, %v17255_v63  ;;  %13695 = vrcp.f32 %v9055_v8 }
0x1661   : > { %v9130_v40 = vpack.c.bf16 %v9114_v37, %v9114_v37 }
0x1663   : > { %12954 = vmatmul.mubr.msk.bf16.vlgmr.msra.gmra.mrb[24].mxu1 %vm2170_vm6, %v9130_v40 }
0x1664   : > { %12964 = vmatpush3.bf16.msra.mxu1 %v9248_v33  ;;  %12965 = vmatprep.mubr.msk.bf16.mxu1 %vm13935_vm2, %v18274_v7 }
0x1665   : > { %12975 = vmatprep.subr.bf16.mxu1 %v18274_v7 }
0x1666   : > { %v13694_v50 = vpop.eup %13693  ;;  %v9061_v39 = vpop.xlane.xlu1 %9060 }
0x1667   : > { %v9116_v58 = vmul.f32 %v13694_v50, %v17260_v1  ;;  %13697 = vrcp.f32 %v9061_v39  ;;  %v9296_v1 = vsel %vm2368_vm4, %v17244_v15, 0  ;;  %v9392_v15 = vsel %vm2368_vm4, %v17248_v36, 0 }
0x1669   : > { %v13696_v43 = vpop.eup %13695  ;;  %v9132_v63 = vpack.c.bf16 %v9116_v58, %v9116_v58 }
0x166a   : > { %v9115_v21 = vmul.f32 %v13696_v43, %v17265_v60  ;;  %v9064_v55 = vpop.xlane.xlu0 %9063 }
0x166b   : > { %13699 = vrcp.f32 %v9064_v55  ;;  %12966 = vmatmul.mubr.msk.bf16.vlgmr.msra.gmra.mrb[28].mxu1 %vm2170_vm6, %v9132_v63  ;;  %v9440_v63 = vsel %vm2368_vm4, %v17246_v10, 0  ;;  %v9488_v10 = vsel %vm2368_vm4, %v17251_v6, 0 }
0x166c   : > { %v9131_v48 = vpack.c.bf16 %v9115_v21, %v9115_v21  ;;  %12976 = vmatpush3.bf16.msra.mxu1 %v9344_v22  ;;  %12977 = vmatprep.mubr.msk.bf16.mxu1 %vm13935_vm2, %v18274_v7 }
0x166d   : > { %12987 = vmatprep.subr.bf16.mxu1 %v18274_v7 }
0x166e   : > { %v9070_v8 = vpop.xlane.xlu0 %9069  ;;  %12960 = vmatmul.mubr.msk.bf16.vlgmr.msra.gmra.mrb[24].mxu0 %vm2170_vm6, %v9131_v48 }
0x166f   : > { %13701 = vrcp.f32 %v9070_v8  ;;  %12970 = vmatpush3.bf16.msra.mxu0 %v9296_v1  ;;  %v9067_v60 = vpop.xlane.xlu1 %9066  ;;  %12971 = vmatprep.mubr.msk.bf16.mxu0 %vm13935_vm2, %v18274_v7 }
0x1670   : > { %13703 = vrcp.f32 %v9067_v60  ;;  %12981 = vmatprep.subr.bf16.mxu0 %v18274_v7 }
0x1671   : > { %v13698_v44 = vpop.eup %13697 }
0x1672   : > { %v9117_v37 = vmul.f32 %v13698_v44, %v17271_v56 }
0x1674   : > { %v9133_v40 = vpack.c.bf16 %v9117_v37, %v9117_v37 }
0x1675   : > { %v13700_v33 = vpop.eup %13699 }
0x1676   : > { %v9118_v50 = vmul.f32 %v13700_v33, %v17277_v24  ;;  %12972 = vmatmul.mubr.msk.bf16.vlgmr.msra.gmra.mrb[28].mxu0 %vm2170_vm6, %v9133_v40  ;;  %v9073_v39 = vpop.xlane.xlu1 %9072  ;;  %v9584_v40 = vsel %vm2368_vm4, %v17319_v28, 0 }
0x1677   : > { %12982 = vmatpush3.bf16.msra.mxu0 %v9392_v15  ;;  %13705 = vrcp.f32 %v9073_v39  ;;  %12983 = vmatprep.mubr.msk.bf16.mxu0 %vm13935_vm2, %v18274_v7  ;;  %v9632_v15 = vsel %vm2368_vm4, %v17323_v57, 0  ;;  %v9680_v39 = vsel %vm2368_vm4, %v17329_v49, 0 }
0x1678   : > { %v9134_v58 = vpack.c.bf16 %v9118_v50, %v9118_v50  ;;  %12993 = vmatprep.subr.bf16.mxu0 %v18274_v7 }
0x1679   : > { %v13702_v43 = vpop.eup %13701 }
0x167a   : > { %v13704_v56 = vpop.eup %13703  ;;  %12978 = vmatmul.mubr.msk.bf16.vlgmr.msra.gmra.mrb[32].mxu1 %vm2170_vm6, %v9134_v58  ;;  %v9076_v36 = vpop.xlane.xlu1 %9075  ;;  %v9120_v21 = vmul.f32 %v13702_v43, %v17282_v47  ;;  %v9536_v47 = vsel %vm2368_vm4, %v17344_v34, 0 }
0x167b   : > { %v9119_v24 = vmul.f32 %v13704_v56, %v17284_v5  ;;  %12988 = vmatpush3.bf16.msra.mxu1 %v9440_v63  ;;  %13707 = vrcp.f32 %v9076_v36  ;;  %12989 = vmatprep.mubr.msk.bf16.mxu1 %vm13935_vm2, %v18274_v7 }
0x167c   : > { %12999 = vmatprep.subr.bf16.mxu1 %v18274_v7  ;;  %v9136_v1 = vpack.c.bf16 %v9120_v21, %v9120_v21 }
0x167d   : > { %v9135_v55 = vpack.c.bf16 %v9119_v24, %v9119_v24 }
0x167e   : > { %v9079_v22 = vpop.xlane.xlu0 %9078  ;;  %v9082_v48 = vpop.xlane.xlu1 %9081 }
0x167f   : > { %13709 = vrcp.f32 %v9079_v22  ;;  %12984 = vmatmul.mubr.msk.bf16.vlgmr.msra.gmra.mrb[32].mxu0 %vm2170_vm6, %v9135_v55 }
0x1680   : > { %12994 = vmatpush3.bf16.msra.mxu0 %v9488_v10  ;;  %13711 = vrcp.f32 %v9082_v48  ;;  %12995 = vmatprep.mubr.msk.bf16.mxu0 %vm13935_vm2, %v18274_v7 }
0x1681   : > { %v13706_v5 = vpop.eup %13705  ;;  %13005 = vmatprep.subr.bf16.mxu0 %v18274_v7 }
0x1682   : > { %v9121_v8 = vmul.f32 %v13706_v5, %v17291_v3  ;;  %12990 = vmatmul.mubr.msk.bf16.vlgmr.msra.gmra.mrb[36].mxu1 %vm2170_vm6, %v9136_v1  ;;  %v9771_v49 = vpop.permute.xlu1 %9770 }
0x1683   : > { %13000 = vmatpush3.bf16.msra.mxu1 %v9536_v47  ;;  %13001 = vmatprep.mubr.msk.bf16.mxu1 %vm13935_vm2, %v18274_v7  ;;  %v9776_v63 = vsel %vm2368_vm4, %v9771_v49, 0 }
0x1684   : > { %v9137_v6 = vpack.c.bf16 %v9121_v8, %v9121_v8  ;;  %13011 = vmatprep.subr.bf16.mxu1 %v18274_v7 }
0x1685   : > { %v13708_v60 = vpop.eup %13707 }
0x1686   : > { %v9122_v44 = vmul.f32 %v13708_v60, %v17295_v27  ;;  %v9085_v37 = vpop.xlane.xlu0 %9084  ;;  %v13261_v60 = vld [vmem:[%s18213_s6 + $0x18] sm:$0xff]  }
0x1687   : > { %13713 = vrcp.f32 %v9085_v37  ;;  %12996 = vmatmul.mubr.msk.bf16.vlgmr.msra.gmra.mrb[36].mxu0 %vm2170_vm6, %v9137_v6 }
0x1688   : > { %v9138_v3 = vpack.c.bf16 %v9122_v44, %v9122_v44  ;;  %13006 = vmatpush3.bf16.msra.mxu0 %v9584_v40  ;;  %13007 = vmatprep.mubr.msk.bf16.mxu0 %vm13935_vm2, %v18274_v7 }
0x1689   : > { %v13710_v34 = vpop.eup %13709  ;;  %13017 = vmatprep.subr.bf16.mxu0 %v18274_v7 }
0x168a   : > { %v13712_v33 = vpop.eup %13711  ;;  %v9123_v27 = vmul.f32 %v13710_v34, %v17302_v52  ;;  %13002 = vmatmul.mubr.msk.bf16.vlgmr.msra.gmra.mrb[40].mxu1 %vm2170_vm6, %v9138_v3  ;;  %v9723_v58 = vpop.permute.xlu0 %9722 }
0x168b   : > { %13012 = vmatpush3.bf16.msra.mxu1 %v9632_v15  ;;  %13013 = vmatprep.mubr.msk.bf16.mxu1 %vm13935_vm2, %v18274_v7  ;;  %v9124_v50 = vmul.f32 %v13712_v33, %v17300_v46  ;;  %v9728_v46 = vsel %vm2368_vm4, %v9723_v58, 0 }
0x168c   : > { %v9139_v28 = vpack.c.bf16 %v9123_v27, %v9123_v27  ;;  %13023 = vmatprep.subr.bf16.mxu1 %v18274_v7 }
0x168d   : > { %v9140_v57 = vpack.c.bf16 %v9124_v50, %v9124_v50 }
0x168f   : > { %13008 = vmatmul.mubr.msk.bf16.vlgmr.msra.gmra.mrb[40].mxu0 %vm2170_vm6, %v9139_v28 }
0x1690   : > { %13018 = vmatpush3.bf16.msra.mxu0 %v9680_v39  ;;  %13019 = vmatprep.mubr.msk.bf16.mxu0 %vm13935_vm2, %v18274_v7 }
0x1691   : > { %v13714_v52 = vpop.eup %13713  ;;  %13029 = vmatprep.subr.bf16.mxu0 %v18274_v7 }
0x1692   : > { %v9125_v43 = vmul.f32 %v13714_v52, %v17308_v20  ;;  %13014 = vmatmul.mubr.msk.bf16.vlgmr.msra.gmra.mrb[44].mxu1 %vm2170_vm6, %v9140_v57 }
0x1693   : > { %13024 = vmatpush3.bf16.msra.mxu1 %v9728_v46  ;;  %13025 = vmatprep.mubr.msk.bf16.mxu1 %vm13935_vm2, %v18274_v7 }
0x1694   : > { %v9141_v56 = vpack.c.bf16 %v9125_v43, %v9125_v43  ;;  %13035 = vmatprep.subr.bf16.mxu1 %v18274_v7 }
0x1697   : > { %13020 = vmatmul.mubr.msk.bf16.vlgmr.msra.gmra.mrb[44].mxu0 %vm2170_vm6, %v9141_v56 }
0x1698   : > { %13030 = vmatpush3.bf16.msra.mxu0 %v9776_v63  ;;  %13031 = vmatprep.mubr.msk.bf16.mxu0 %vm13935_vm2, %v18274_v7 }
0x1699   : > { %13041 = vmatprep.subr.bf16.mxu0 %v18274_v7 }
0x16b3   : > { %v9088_v20 = vpop.xlane.xlu1 %9087 }
0x16b4   : > { %13715 = vrcp.f32 %v9088_v20 }
0x16b7   : > { %v9094_v21 = vpop.xlane.xlu1 %9093 }
0x16bb   : > { %v9091_v36 = vpop.xlane.xlu0 %9090  ;;  %v9867_v1 = vpop.permute.xlu1 %9866 }
0x16bc   : > { %13717 = vrcp.f32 %v9091_v36  ;;  %v9872_v8 = vsel %vm2368_vm4, %v9867_v1, 0 }
0x16bd   : > { %13719 = vrcp.f32 %v9094_v21 }
0x16be   : > { %v13716_v24 = vpop.eup %13715 }
0x16bf   : > { %v9126_v55 = vmul.f32 %v13716_v24, %v17321_v62 }
0x16c1   : > { %v9142_v22 = vpack.c.bf16 %v9126_v55, %v9126_v55 }
0x16c3   : > { %13026 = vmatmul.mubr.msk.bf16.vlgmr.msra.gmra.mrb[48].mxu1 %vm2170_vm6, %v9142_v22 }
0x16c4   : > { %13037 = vmatprep.mubr.msk.bf16.mxu1 %vm13935_vm2, %v18274_v7 }
0x16c6   : > { %v13718_v48 = vpop.eup %13717 }
0x16c7   : > { %v9127_v10 = vmul.f32 %v13718_v48, %v17333_v59  ;;  %v13720_v47 = vpop.eup %13719 }
0x16c8   : > { %v9128_v62 = vmul.f32 %v13720_v47, %v17327_v35  ;;  %v13262_v35 = vld [vmem:[%s18213_s6 + $0x10] sm:$0xff]  }
0x16c9   : > { %v9143_v5 = vpack.c.bf16 %v9127_v10, %v9127_v10 }
0x16ca   : > { %v9144_v37 = vpack.c.bf16 %v9128_v62, %v9128_v62 }
0x16cb   : > { %v9097_v6 = vpop.xlane.xlu0 %9096  ;;  %13032 = vmatmul.mubr.msk.bf16.vlgmr.msra.gmra.mrb[48].mxu0 %vm2170_vm6, %v9143_v5 }
0x16cc   : > { %13721 = vrcp.f32 %v9097_v6  ;;  %13042 = vmatpush3.bf16.msra.mxu0 %v9872_v8  ;;  %13043 = vmatprep.mubr.msk.bf16.mxu0 %vm13935_vm2, %v18274_v7 }
0x16cf   : > { %v9819_v59 = vpop.permute.xlu0 %9818 }
0x16d0   : > { %v9824_v44 = vsel %vm2368_vm4, %v9819_v59, 0 }
0x16d1   : > { %13036 = vmatpush3.bf16.msra.mxu1 %v9824_v44 }
0x16d2   : > { %13047 = vmatprep.subr.bf16.mxu1 %v13261_v60 }
0x16d4   : > { %13038 = vmatmul.mubr.msk.bf16.vlgmr.msra.gmra.mrb[52].mxu1 %vm2170_vm6, %v9144_v37 }
0x16d5   : > { %13048 = vmatpush3.bf16.msra.mxu1 %v13261_v60 }
0x16d6   : > { %v13722_v40 = vpop.eup %13721  ;;  %13065 = vmatprep.subr.bf16.mxu1 %v13262_v35 }
0x16d7   : > { %v9129_v3 = vmul.f32 %v13722_v40, %v17340_v18 }
0x16d9   : > { %v9145_v34 = vpack.c.bf16 %v9129_v3, %v9129_v3 }
0x16db   : > { %13044 = vmatmul.mubr.msk.bf16.vlgmr.msra.gmra.mrb[52].mxu0 %vm2170_vm6, %v9145_v34 }
0x1736   : > { %v9188_v33 = vpop.f32.mrb[24].mxu1 }
0x1737   : > { %v12955_v15 = vpop.f32.mrb[25].mxu1 }
0x1738   : > { %v9191_v27 = vpop.f32.mrb[26].mxu1 }
0x1739   : > { %v12956_v28 = vpop.f32.mrb[27].mxu1 }
0x173e   : > { %v9284_v50 = vpop.f32.mrb[28].mxu1 }
0x173f   : > { %v12967_v39 = vpop.f32.mrb[29].mxu1 }
0x1740   : > { %v9287_v58 = vpop.f32.mrb[30].mxu1 }
0x1741   : > { %v9236_v57 = vpop.f32.mrb[24].mxu0  ;;  %v12968_v52 = vpop.f32.mrb[31].mxu1 }
0x1742   : > { %v9914_v43 = vpack.c.bf16 %v9236_v57, %v9188_v33  ;;  %v12961_v46 = vpop.f32.mrb[25].mxu0 }
0x1743   : > { %v9239_v18 = vpop.f32.mrb[26].mxu0 }
0x1744   : > { %v12962_v49 = vpop.f32.mrb[27].mxu0  ;;  %13049 = vmatprep.mubr.msk.bf16.mxu1 %vm1370_vm3, %v9914_v43 }
0x1749   : > { %v9332_v56 = vpop.f32.mrb[28].mxu0 }
0x174a   : > { %v9915_v63 = vpack.c.bf16 %v9332_v56, %v9284_v50  ;;  %v12973_v20 = vpop.f32.mrb[29].mxu0 }
0x174b   : > { %v9335_v36 = vpop.f32.mrb[30].mxu0 }
0x174c   : > { %v12974_v24 = vpop.f32.mrb[31].mxu0  ;;  %13050 = vmatmul.mubr.msk.bf16.vlgmr.msra.gmra.mrb[56].mxu1 %vm1370_vm3, %v9915_v63 }
0x174d   : > { %v9380_v21 = vpop.f32.mrb[32].mxu1  ;;  %13066 = vmatpush3.bf16.msra.mxu1 %v13262_v35 }
0x174e   : > { %v12979_v55 = vpop.f32.mrb[33].mxu1  ;;  %13135 = vmatprep.subr.bf16.mxu1 %v18274_v7 }
0x174f   : > { %v9383_v22 = vpop.f32.mrb[34].mxu1 }
0x1750   : > { %v12980_v48 = vpop.f32.mrb[35].mxu1 }
0x1752   : > { %v9428_v10 = vpop.f32.mrb[32].mxu0 }
0x1753   : > { %v9916_v1 = vpack.c.bf16 %v9428_v10, %v9380_v21  ;;  %v12985_v5 = vpop.f32.mrb[33].mxu0 }
0x1754   : > { %v9431_v47 = vpop.f32.mrb[34].mxu0 }
0x1755   : > { %v12986_v8 = vpop.f32.mrb[35].mxu0  ;;  %13053 = vmatprep.mubr.msk.bf16.mxu1 %vm1370_vm3, %v9916_v1  ;;  %v9476_v6 = vpop.f32.mrb[36].mxu1 }
0x1756   : > { %v12991_v62 = vpop.f32.mrb[37].mxu1 }
0x1757   : > { %v9479_v60 = vpop.f32.mrb[38].mxu1 }
0x1758   : > { %v12992_v59 = vpop.f32.mrb[39].mxu1 }
0x175a   : > { %v9524_v44 = vpop.f32.mrb[36].mxu0 }
0x175b   : > { %v9917_v37 = vpack.c.bf16 %v9524_v44, %v9476_v6  ;;  %v12997_v40 = vpop.f32.mrb[37].mxu0 }
0x175c   : > { %v9527_v3 = vpop.f32.mrb[38].mxu0 }
0x175d   : > { %v12998_v34 = vpop.f32.mrb[39].mxu0  ;;  %13054 = vmatmul.mubr.msk.bf16.gmra.mrb[60].mxu1 %vm1370_vm3, %v9917_v37  ;;  %v9572_v35 = vpop.f32.mrb[40].mxu1 }
0x175e   : > { %v13003_v33 = vpop.f32.mrb[41].mxu1  ;;  %v18307_v34 = vpack.c.bf16 %v17102_v25, %v17098_v17  ;;  %v17496_v17 = vld [vmem:[%s18210_s3 + $0x8] sm:$0xff] }
0x175f   : > { %v9575_v15 = vpop.f32.mrb[42].mxu1 }
0x1760   : > { %v13004_v27 = vpop.f32.mrb[43].mxu1 }
0x1762   : > { %v9620_v28 = vpop.f32.mrb[40].mxu0 }
0x1763   : > { %v9918_v50 = vpack.c.bf16 %v9620_v28, %v9572_v35  ;;  %v13009_v39 = vpop.f32.mrb[41].mxu0  ;;  %v18308_v35 = vpack.c.bf16 %v17108_v13, %v17104_v54 }
0x1764   : > { %v9623_v58 = vpop.f32.mrb[42].mxu0 }
0x1765   : > { %v13010_v57 = vpop.f32.mrb[43].mxu0  ;;  %13057 = vmatprep.mubr.msk.bf16.mxu1 %vm1370_vm3, %v9918_v50  ;;  %v9668_v52 = vpop.f32.mrb[44].mxu1 }
0x1766   : > { %v13015_v43 = vpop.f32.mrb[45].mxu1  ;;  %v18314_v57 = vld [vmem:[#allocation10_spill] sm:$0xff] }
0x1767   : > { %v9671_v46 = vpop.f32.mrb[46].mxu1 }
0x1768   : > { %v13016_v18 = vpop.f32.mrb[47].mxu1 }
0x176a   : > { %v9716_v49 = vpop.f32.mrb[44].mxu0 }
0x176b   : > { %v9919_v56 = vpack.c.bf16 %v9716_v49, %v9668_v52  ;;  %v13021_v63 = vpop.f32.mrb[45].mxu0 }
0x176c   : > { %v9719_v20 = vpop.f32.mrb[46].mxu0  ;;  %v18315_v63 = vld [vmem:[#allocation11_spill] sm:$0xff] }
0x176d   : > { %v13022_v36 = vpop.f32.mrb[47].mxu0  ;;  %13058 = vmatmul.mubr.msk.bf16.gmra.mrb[64].mxu1 %vm1370_vm3, %v9919_v56 }
0x1796   : > { %v9764_v24 = vpop.f32.mrb[48].mxu1 }
0x1797   : > { %v13027_v21 = vpop.f32.mrb[49].mxu1 }
0x1798   : > { %v9767_v55 = vpop.f32.mrb[50].mxu1 }
0x1799   : > { %v13028_v22 = vpop.f32.mrb[51].mxu1  ;;  %v18316_v55 = vld [vmem:[#allocation13_spill] sm:$0xff] }
0x179e   : > { %v9812_v48 = vpop.f32.mrb[48].mxu0 }
0x179f   : > { %v9920_v10 = vpack.c.bf16 %v9812_v48, %v9764_v24  ;;  %v13033_v1 = vpop.f32.mrb[49].mxu0  ;;  %v18317_v48 = vld [vmem:[#allocation15_spill] sm:$0xff] }
0x17a0   : > { %v9815_v5 = vpop.f32.mrb[50].mxu0 }
0x17a1   : > { %v13034_v47 = vpop.f32.mrb[51].mxu0  ;;  %13061 = vmatprep.mubr.msk.bf16.mxu1 %vm1370_vm3, %v9920_v10  ;;  %v18318_v5 = vld [vmem:[#allocation12_spill] sm:$0xff] }
0x17a7   : > { %v9860_v8 = vpop.f32.mrb[52].mxu1 }
0x17a8   : > { %v13039_v6 = vpop.f32.mrb[53].mxu1 }
0x17a9   : > { %v9863_v62 = vpop.f32.mrb[54].mxu1 }
0x17aa   : > { %v13040_v60 = vpop.f32.mrb[55].mxu1 }
0x17ae   : > { %v9908_v59 = vpop.f32.mrb[52].mxu0 }
0x17af   : > { %v9921_v44 = vpack.c.bf16 %v9908_v59, %v9860_v8  ;;  %v13045_v37 = vpop.f32.mrb[53].mxu0 }
0x17b0   : > { %v9911_v40 = vpop.f32.mrb[54].mxu0 }
0x17b1   : > { %v13046_v3 = vpop.f32.mrb[55].mxu0  ;;  %13062 = vmatmul.mubr.msk.bf16.gmra.mrb[68].mxu1 %vm1370_vm3, %v9921_v44 }
0x17b2   : > { %13067 = vmatprep.mubr.msk.bf16.mxu1 %vm1370_vm3, %v8130_v9  ;;  %v18311_v9 = vpack.c.bf16 %v17128_v45, %v17120_v42  ;;  %v18319_v3 = vld [vmem:[#allocation14_spill] sm:$0xff] }
0x17b9   : > { %13068 = vmatmul.mubr.msk.bf16.vlgmr.msra.gmra.mrb[56].mxu1 %vm1370_vm3, %v8131_v51  ;;  %v18313_v51 = vsub.s32 6, %v14376_v30 }
0x17ba   : > { %13071 = vmatprep.mubr.msk.bf16.mxu1 %vm1370_vm3, %v18307_v34 }
0x17bb   : > { %v17501_v25 = vrot.slane %v17496_v17, %v18313_v51 }
0x17c1   : > { %13072 = vmatmul.mubr.msk.bf16.gmra.mrb[60].mxu1 %vm1370_vm3, %v18308_v35 }
0x17c2   : > { %13075 = vmatprep.mubr.msk.bf16.mxu1 %vm1370_vm3, %v18309_v16 }
0x17c9   : > { %13076 = vmatmul.mubr.msk.bf16.gmra.mrb[64].mxu1 %vm1370_vm3, %v18310_v29 }
0x17ca   : > { %13079 = vmatprep.mubr.msk.bf16.mxu1 %vm1370_vm3, %v18311_v9  ;;  %v18320_v9 = vld [vmem:[#allocation17_spill] sm:$0xff] }
0x17d1   : > { %13080 = vmatmul.mubr.msk.bf16.gmra.mrb[68].mxu1 %vm1370_vm3, %v18312_v32 }
0x17d2   : > { %13139 = vmatprep.mubr.msk.bf16.mxu1 %vm13935_vm2, %v18274_v7 }
0x188c   : > { %v13069_v31 = vpop.f32.mrb[56].mxu1 }
0x188d   : > { %v10113_v54 = vpop.f32.mrb[57].mxu1  ;;  %v10178_v13 = vadd.f32 %v13069_v31, %v16163_v12  ;;  %v18321_v31 = vld [vmem:[#allocation19_spill] sm:$0xff] }
0x188e   : > { %v10176_v41 = vadd.f32 %v10113_v54, %v16158_v14  ;;  %v13070_v4 = vpop.f32.mrb[58].mxu1 }
0x188f   : > { %v10116_v61 = vpop.f32.mrb[59].mxu1  ;;  %v17510_v11 = vadd.f32 %v17501_v25, %v10178_v13  ;;  %v10179_v45 = vadd.f32 %v13070_v4, %v16171_v23  ;;  %v18322_v13 = vld [vmem:[#allocation16_spill] sm:$0xff] }
0x1890   : > { %v17506_v42 = vadd.f32 %v17501_v25, %v10176_v41  ;;  %v10177_v26 = vadd.f32 %v10116_v61, %v16166_v53 }
0x1891   : > { %v17521_v53 = vadd.f32 %v17501_v25, %v10179_v45  ;;  %v10218_v23 = vsel %vm694_vm1, %v17510_v11, 0.0 }
0x1892   : > { %v17514_v19 = vadd.f32 %v17501_v25, %v10177_v26  ;;  %v10212_v12 = vsel %vm694_vm1, %v17506_v42, 0.0 }
0x1893   : > { %10213 = vadd.xlane.f32.xlu0 %v10212_v12 }
0x1894   : > { %v13073_v14 = vpop.f32.mrb[60].mxu1  ;;  %v10215_v33 = vsel %vm694_vm1, %v17514_v19, 0.0 }
0x1895   : > { %10216 = vadd.xlane.f32.xlu1 %v10215_v33  ;;  %v10129_v15 = vpop.f32.mrb[61].mxu1  ;;  %v10182_v52 = vadd.f32 %v13073_v14, %v18314_v57 }
0x1896   : > { %v10180_v27 = vadd.f32 %v10129_v15, %v16182_v38  ;;  %v13074_v28 = vpop.f32.mrb[62].mxu1  ;;  %v10221_v38 = vsel %vm694_vm1, %v17521_v53, 0.0 }
0x1897   : > { %10219 = vadd.xlane.f32.xlu0 %v10218_v23  ;;  %v10132_v50 = vpop.f32.mrb[63].mxu1  ;;  %v10183_v39 = vadd.f32 %v13074_v28, %v16195_v2  ;;  %v17543_v56 = vadd.f32 %v17501_v25, %v10182_v52 }
0x1898   : > { %v10181_v58 = vadd.f32 %v10132_v50, %v16190_v0  ;;  %v17530_v43 = vadd.f32 %v17501_v25, %v10180_v27 }
0x1899   : > { %v17538_v18 = vadd.f32 %v17501_v25, %v10183_v39  ;;  %v10230_v62 = vsel %vm694_vm1, %v17543_v56, 0.0 }
0x189a   : > { %v17533_v46 = vadd.f32 %v17501_v25, %v10181_v58  ;;  %v10224_v24 = vsel %vm694_vm1, %v17530_v43, 0.0 }
0x189b   : > { %10222 = vadd.xlane.f32.xlu0 %v10221_v38  ;;  %v10233_v1 = vsel %vm694_vm1, %v17538_v18, 0.0 }
0x189c   : > { %v13077_v49 = vpop.f32.mrb[64].mxu1  ;;  %v10227_v2 = vsel %vm694_vm1, %v17533_v46, 0.0 }
0x189d   : > { %10228 = vadd.xlane.f32.xlu1 %v10227_v2  ;;  %v10145_v0 = vpop.f32.mrb[65].mxu1  ;;  %v10186_v47 = vadd.f32 %v13077_v49, %v18318_v5 }
0x189e   : > { %v10184_v20 = vadd.f32 %v10145_v0, %v18315_v63  ;;  %v13078_v36 = vpop.f32.mrb[66].mxu1 }
0x189f   : > { %10225 = vadd.xlane.f32.xlu0 %v10224_v24  ;;  %v10148_v21 = vpop.f32.mrb[67].mxu1  ;;  %v10187_v22 = vadd.f32 %v13078_v36, %v18316_v55  ;;  %v17567_v40 = vadd.f32 %v17501_v25, %v10186_v47 }
0x18a0   : > { %v10185_v10 = vadd.f32 %v10148_v21, %v18317_v48  ;;  %v17554_v8 = vadd.f32 %v17501_v25, %v10184_v20 }
0x18a1   : > { %10234 = vadd.xlane.f32.xlu1 %v10233_v1  ;;  %v17562_v60 = vadd.f32 %v17501_v25, %v10187_v22  ;;  %v10242_v26 = vsel %vm694_vm1, %v17567_v40, 0.0 }
0x18a2   : > { %v17557_v6 = vadd.f32 %v17501_v25, %v10185_v10  ;;  %v10236_v16 = vsel %vm694_vm1, %v17554_v8, 0.0 }
0x18a3   : > { %10231 = vadd.xlane.f32.xlu0 %v10230_v62  ;;  %v10245_v54 = vsel %vm694_vm1, %v17562_v60, 0.0 }
0x18a4   : > { %v13081_v59 = vpop.f32.mrb[68].mxu1  ;;  %v10239_v44 = vsel %vm694_vm1, %v17557_v6, 0.0 }
0x18a5   : > { %10240 = vadd.xlane.f32.xlu1 %v10239_v44  ;;  %v10161_v37 = vpop.f32.mrb[69].mxu1  ;;  %v10190_v41 = vadd.f32 %v13081_v59, %v18322_v13 }
0x18a6   : > { %v10188_v34 = vadd.f32 %v10161_v37, %v18319_v3  ;;  %v13082_v35 = vpop.f32.mrb[70].mxu1 }
0x18a7   : > { %10237 = vadd.xlane.f32.xlu0 %v10236_v16  ;;  %v10164_v29 = vpop.f32.mrb[71].mxu1  ;;  %v10191_v32 = vadd.f32 %v13082_v35, %v18320_v9  ;;  %v17591_v14 = vadd.f32 %v17501_v25, %v10190_v41 }
0x18a8   : > { %v10189_v51 = vadd.f32 %v10164_v29, %v18321_v31  ;;  %v17578_v4 = vadd.f32 %v17501_v25, %v10188_v34 }
0x18a9   : > { %10246 = vadd.xlane.f32.xlu1 %v10245_v54  ;;  %v17586_v45 = vadd.f32 %v17501_v25, %v10191_v32  ;;  %v10254_v27 = vsel %vm694_vm1, %v17591_v14, 0.0 }
0x18aa   : > { %v17581_v61 = vadd.f32 %v17501_v25, %v10189_v51  ;;  %v10248_v33 = vsel %vm694_vm1, %v17578_v4, 0.0 }
0x18ab   : > { %10243 = vadd.xlane.f32.xlu0 %v10242_v26  ;;  %v10257_v15 = vsel %vm694_vm1, %v17586_v45, 0.0 }
0x18ac   : > { %v10251_v12 = vsel %vm694_vm1, %v17581_v61, 0.0 }
0x18ad   : > { %10252 = vadd.xlane.f32.xlu1 %v10251_v12 }
0x18af   : > { %10249 = vadd.xlane.f32.xlu0 %v10248_v33 }
0x18b1   : > { %10258 = vadd.xlane.f32.xlu1 %v10257_v15 }
0x18b3   : > { %10255 = vadd.xlane.f32.xlu0 %v10254_v27 }
0x1920   : > { %v10214_v28 = vpop.xlane.xlu0 %10213 }
0x1921   : > { %v10260_v23 = vmul.f32 0.03125, %v10214_v28 }
0x1922   : > { %v10217_v50 = vpop.xlane.xlu1 %10216 }
0x1923   : > { %v17600_v39 = vsub.f32 %v17506_v42, %v10260_v23  ;;  %v10261_v25 = vmul.f32 0.03125, %v10217_v50 }
0x1924   : > { %v10220_v58 = vpop.xlane.xlu0 %10219 }
0x1925   : > { %v17603_v57 = vsub.f32 %v17514_v19, %v10261_v25  ;;  %v10262_v52 = vmul.f32 0.03125, %v10220_v58  ;;  %v10292_v38 = vmul.f32 %v17600_v39, %v17600_v39 }
0x1927   : > { %v17608_v49 = vsub.f32 %v17510_v11, %v10262_v52  ;;  %v10308_v2 = vsel %vm694_vm1, %v10292_v38, 0.0  ;;  %v10293_v0 = vmul.f32 %v17603_v57, %v17603_v57 }
0x1928   : > { %v10223_v63 = vpop.xlane.xlu0 %10222  ;;  %10309 = vadd.xlane.f32.xlu0 %v10308_v2 }
0x1929   : > { %v10263_v20 = vmul.f32 0.03125, %v10223_v63  ;;  %v10311_v36 = vsel %vm694_vm1, %v10293_v0, 0.0  ;;  %v10294_v24 = vmul.f32 %v17608_v49, %v17608_v49 }
0x192a   : > { %v10229_v21 = vpop.xlane.xlu1 %10228  ;;  %10312 = vadd.xlane.f32.xlu1 %v10311_v36 }
0x192b   : > { %v17617_v55 = vsub.f32 %v17521_v53, %v10263_v20  ;;  %v10265_v22 = vmul.f32 0.03125, %v10229_v21  ;;  %v10314_v48 = vsel %vm694_vm1, %v10294_v24, 0.0 }
0x192c   : > { %v10226_v10 = vpop.xlane.xlu0 %10225  ;;  %10315 = vadd.xlane.f32.xlu0 %v10314_v48 }
0x192d   : > { %v17621_v1 = vsub.f32 %v17533_v46, %v10265_v22  ;;  %v10264_v5 = vmul.f32 0.03125, %v10226_v10  ;;  %v10295_v47 = vmul.f32 %v17617_v55, %v17617_v55 }
0x192e   : > { %v10235_v62 = vpop.xlane.xlu1 %10234 }
0x192f   : > { %v17626_v59 = vsub.f32 %v17530_v43, %v10264_v5  ;;  %v10267_v44 = vmul.f32 0.03125, %v10235_v62  ;;  %v10317_v37 = vsel %vm694_vm1, %v10295_v47, 0.0  ;;  %v10297_v3 = vmul.f32 %v17621_v1, %v17621_v1 }
0x1930   : > { %v10232_v34 = vpop.xlane.xlu0 %10231  ;;  %10318 = vadd.xlane.f32.xlu1 %v10317_v37 }
0x1931   : > { %v17632_v35 = vsub.f32 %v17538_v18, %v10267_v44  ;;  %v10266_v16 = vmul.f32 0.03125, %v10232_v34  ;;  %v10296_v29 = vmul.f32 %v17626_v59, %v17626_v59  ;;  %v10323_v32 = vsel %vm694_vm1, %v10297_v3, 0.0 }
0x1932   : > { %v10241_v9 = vpop.xlane.xlu1 %10240 }
0x1933   : > { %v17638_v31 = vsub.f32 %v17543_v56, %v10266_v16  ;;  %v10269_v51 = vmul.f32 0.03125, %v10241_v9  ;;  %v10320_v54 = vsel %vm694_vm1, %v10296_v29, 0.0  ;;  %v10299_v13 = vmul.f32 %v17632_v35, %v17632_v35 }
0x1934   : > { %v10238_v41 = vpop.xlane.xlu0 %10237  ;;  %10321 = vadd.xlane.f32.xlu0 %v10320_v54  ;;  %10324 = vadd.xlane.f32.xlu1 %v10323_v32 }
0x1935   : > { %v17644_v26 = vsub.f32 %v17557_v6, %v10269_v51  ;;  %v10268_v12 = vmul.f32 0.03125, %v10238_v41  ;;  %v10298_v33 = vmul.f32 %v17638_v31, %v17638_v31  ;;  %v10329_v27 = vsel %vm694_vm1, %v10299_v13, 0.0 }
0x1936   : > { %v10247_v15 = vpop.xlane.xlu1 %10246 }
0x1937   : > { %v17650_v28 = vsub.f32 %v17554_v8, %v10268_v12  ;;  %v10271_v23 = vmul.f32 0.03125, %v10247_v15  ;;  %v10326_v50 = vsel %vm694_vm1, %v10298_v33, 0.0  ;;  %v10301_v25 = vmul.f32 %v17644_v26, %v17644_v26 }
0x1938   : > { %v10244_v58 = vpop.xlane.xlu0 %10243  ;;  %10327 = vadd.xlane.f32.xlu0 %v10326_v50  ;;  %10330 = vadd.xlane.f32.xlu1 %v10329_v27  ;;  %v13263_v27 = vld [vmem:[%s18214_s7 + $0x10] sm:$0xff]  }
0x1939   : > { %v17656_v52 = vsub.f32 %v17562_v60, %v10271_v23  ;;  %v10270_v38 = vmul.f32 0.03125, %v10244_v58  ;;  %v10300_v2 = vmul.f32 %v17650_v28, %v17650_v28  ;;  %v10335_v63 = vsel %vm694_vm1, %v10301_v25, 0.0  ;;  %13083 = vmatprep.subr.bf16.mxu0 %v13263_v27  ;;  %v13264_v23 = vld [vmem:[%s18214_s7 + $0x18] sm:$0xff]  }
0x193a   : > { %v10253_v0 = vpop.xlane.xlu1 %10252  ;;  %13084 = vmatpush3.bf16.msra.mxu0 %v13263_v27 }
0x193b   : > { %v17662_v20 = vsub.f32 %v17567_v40, %v10270_v38  ;;  %v10273_v36 = vmul.f32 0.03125, %v10253_v0  ;;  %v10332_v24 = vsel %vm694_vm1, %v10300_v2, 0.0  ;;  %v10303_v21 = vmul.f32 %v17656_v52, %v17656_v52  ;;  %13085 = vmatprep.subr.bf16.mxu0 %v13264_v23 }
0x193c   : > { %10333 = vadd.xlane.f32.xlu0 %v10332_v24  ;;  %v10250_v22 = vpop.xlane.xlu0 %10249  ;;  %10336 = vadd.xlane.f32.xlu1 %v10335_v63 }
0x193d   : > { %v17668_v48 = vsub.f32 %v17581_v61, %v10273_v36  ;;  %v10272_v10 = vmul.f32 0.03125, %v10250_v22  ;;  %v10302_v5 = vmul.f32 %v17662_v20, %v17662_v20  ;;  %v10341_v62 = vsel %vm694_vm1, %v10303_v21, 0.0 }
0x193e   : > { %v10259_v47 = vpop.xlane.xlu1 %10258  ;;  %13086 = vmatpush3.bf16.msra.mxu0 %v13264_v23 }
0x193f   : > { %v17674_v44 = vsub.f32 %v17578_v4, %v10272_v10  ;;  %v10275_v37 = vmul.f32 0.03125, %v10259_v47  ;;  %v10338_v3 = vsel %vm694_vm1, %v10302_v5, 0.0  ;;  %v10305_v34 = vmul.f32 %v17668_v48, %v17668_v48 }
0x1940   : > { %10339 = vadd.xlane.f32.xlu0 %v10338_v3  ;;  %v10256_v16 = vpop.xlane.xlu0 %10255  ;;  %10342 = vadd.xlane.f32.xlu1 %v10341_v62  ;;  %v18323_v3 = vsub.s32 4, %v14376_v30 }
0x1941   : > { %v17680_v29 = vsub.f32 %v17586_v45, %v10275_v37  ;;  %v10274_v9 = vmul.f32 0.03125, %v10256_v16  ;;  %v10304_v32 = vmul.f32 %v17674_v44, %v17674_v44  ;;  %v10347_v13 = vsel %vm694_vm1, %v10305_v34, 0.0 }
0x1942   : > { %v17704_v34 = vrot.slane %v17496_v17, %v18323_v3 }
0x1943   : > { %v17685_v51 = vsub.f32 %v17591_v14, %v10274_v9  ;;  %v10344_v54 = vsel %vm694_vm1, %v10304_v32, 0.0  ;;  %v10307_v41 = vmul.f32 %v17680_v29, %v17680_v29 }
0x1944   : > { %10345 = vadd.xlane.f32.xlu0 %v10344_v54  ;;  %10348 = vadd.xlane.f32.xlu1 %v10347_v13  ;;  %v18324_v54 = vsub.s32 5, %v14376_v30 }
0x1945   : > { %v10306_v12 = vmul.f32 %v17685_v51, %v17685_v51  ;;  %v10353_v15 = vsel %vm694_vm1, %v10307_v41, 0.0 }
0x1946   : > { %v17709_v13 = vrot.slane %v17496_v17, %v18324_v54 }
0x1947   : > { %v10350_v33 = vsel %vm694_vm1, %v10306_v12, 0.0 }
0x1948   : > { %10351 = vadd.xlane.f32.xlu0 %v10350_v33  ;;  %10354 = vadd.xlane.f32.xlu1 %v10353_v15 }
0x19b5   : > { %v10310_v50 = vpop.xlane.xlu0 %10309 }
0x19b6   : > { %v10356_v25 = vmul.f32 0.03125, %v10310_v50 }
0x19b7   : > { %v10313_v58 = vpop.xlane.xlu1 %10312 }
0x19b8   : > { %v10372_v38 = vadd.f32 1e-05, %v10356_v25  ;;  %v10357_v2 = vmul.f32 0.03125, %v10313_v58 }
0x19b9   : > { %v10316_v0 = vpop.xlane.xlu0 %10315 }
0x19ba   : > { %13723 = vrsqrt.f32 %v10372_v38  ;;  %v10373_v63 = vadd.f32 1e-05, %v10357_v2  ;;  %v10358_v36 = vmul.f32 0.03125, %v10316_v0 }
0x19bc   : > { %13725 = vrsqrt.f32 %v10373_v63  ;;  %v10374_v24 = vadd.f32 1e-05, %v10358_v36 }
0x19bd   : > { %v10319_v21 = vpop.xlane.xlu1 %10318 }
0x19be   : > { %13727 = vrsqrt.f32 %v10374_v24  ;;  %v10359_v22 = vmul.f32 0.03125, %v10319_v21 }
0x19c0   : > { %v10375_v10 = vadd.f32 1e-05, %v10359_v22 }
0x19c1   : > { %v10322_v5 = vpop.xlane.xlu0 %10321  ;;  %v10325_v47 = vpop.xlane.xlu1 %10324 }
0x19c2   : > { %13729 = vrsqrt.f32 %v10375_v10  ;;  %v10360_v62 = vmul.f32 0.03125, %v10322_v5  ;;  %v10361_v37 = vmul.f32 0.03125, %v10325_v47 }
0x19c4   : > { %v13724_v16 = vpop.eup %13723  ;;  %v10376_v9 = vadd.f32 1e-05, %v10360_v62  ;;  %v10377_v32 = vadd.f32 1e-05, %v10361_v37 }
0x19c5   : > { %v10404_v41 = vmul.f32 %v13724_v16, %v17600_v39  ;;  %v10328_v12 = vpop.xlane.xlu0 %10327  ;;  %v10331_v33 = vpop.xlane.xlu1 %10330 }
0x19c6   : > { %v13726_v15 = vpop.eup %13725  ;;  %13731 = vrsqrt.f32 %v10376_v9  ;;  %v10362_v27 = vmul.f32 0.03125, %v10328_v12  ;;  %v10363_v23 = vmul.f32 0.03125, %v10331_v33 }
0x19c7   : > { %v10405_v50 = vmul.f32 %v13726_v15, %v17603_v57  ;;  %13733 = vrsqrt.f32 %v10377_v32  ;;  %v10424_v25 = vmul.f32 %v17704_v34, %v10404_v41 }
0x19c8   : > { %v13728_v58 = vpop.eup %13727  ;;  %v10378_v38 = vadd.f32 1e-05, %v10362_v27  ;;  %v10379_v2 = vadd.f32 1e-05, %v10363_v23 }
0x19c9   : > { %v10406_v0 = vmul.f32 %v13728_v58, %v17608_v49  ;;  %v10334_v17 = vpop.xlane.xlu0 %10333  ;;  %v10337_v63 = vpop.xlane.xlu1 %10336  ;;  %v10425_v39 = vmul.f32 %v17704_v34, %v10405_v50  ;;  %v10444_v36 = vadd.f32 %v17709_v13, %v10424_v25 }
0x19ca   : > { %13735 = vrsqrt.f32 %v10378_v38  ;;  %v10364_v24 = vmul.f32 0.03125, %v10334_v17  ;;  %v10365_v21 = vmul.f32 0.03125, %v10337_v63 }
0x19cb   : > { %v10426_v22 = vmul.f32 %v17704_v34, %v10406_v0  ;;  %13737 = vrsqrt.f32 %v10379_v2  ;;  %v10445_v57 = vadd.f32 %v17709_v13, %v10425_v39 }
0x19cc   : > { %v13730_v10 = vpop.eup %13729  ;;  %v10380_v5 = vadd.f32 1e-05, %v10364_v24  ;;  %v10381_v47 = vadd.f32 1e-05, %v10365_v21 }
0x19cd   : > { %v10446_v62 = vadd.f32 %v17709_v13, %v10426_v22  ;;  %v10407_v49 = vmul.f32 %v13730_v10, %v17617_v55  ;;  %v10340_v37 = vpop.xlane.xlu0 %10339  ;;  %v10343_v3 = vpop.xlane.xlu1 %10342  ;;  %v10465_v16 = vpack.c.bf16 %v10445_v57, %v10444_v36 }
0x19ce   : > { %13739 = vrsqrt.f32 %v10380_v5  ;;  %v10366_v9 = vmul.f32 0.03125, %v10340_v37  ;;  %v10367_v32 = vmul.f32 0.03125, %v10343_v3 }
0x19cf   : > { %v10427_v54 = vmul.f32 %v17704_v34, %v10407_v49  ;;  %13741 = vrsqrt.f32 %v10381_v47  ;;  %13087 = vmatprep.mubr.msk.bf16.mxu0 %vm694_vm1, %v10465_v16 }
0x19d0   : > { %v13732_v41 = vpop.eup %13731  ;;  %v10382_v12 = vadd.f32 1e-05, %v10366_v9  ;;  %v10383_v33 = vadd.f32 1e-05, %v10367_v32 }
0x19d1   : > { %v13734_v15 = vpop.eup %13733  ;;  %v10447_v27 = vadd.f32 %v17709_v13, %v10427_v54  ;;  %v10408_v23 = vmul.f32 %v13732_v41, %v17626_v59  ;;  %v10346_v55 = vpop.xlane.xlu0 %10345 }
0x19d2   : > { %v10349_v50 = vpop.xlane.xlu1 %10348  ;;  %v10409_v25 = vmul.f32 %v13734_v15, %v17621_v1  ;;  %13743 = vrsqrt.f32 %v10382_v12  ;;  %v10368_v58 = vmul.f32 0.03125, %v10346_v55 }
0x19d3   : > { %v10369_v38 = vmul.f32 0.03125, %v10349_v50  ;;  %v10466_v2 = vpack.c.bf16 %v10447_v27, %v10446_v62  ;;  %13745 = vrsqrt.f32 %v10383_v33  ;;  %v10428_v0 = vmul.f32 %v17704_v34, %v10408_v23 }
0x19d4   : > { %v13736_v17 = vpop.eup %13735  ;;  %v10384_v63 = vadd.f32 1e-05, %v10368_v58  ;;  %v10429_v36 = vmul.f32 %v17704_v34, %v10409_v25 }
0x19d5   : > { %v10385_v39 = vadd.f32 1e-05, %v10369_v38  ;;  %v13738_v24 = vpop.eup %13737  ;;  %v10410_v21 = vmul.f32 %v13736_v17, %v17638_v31  ;;  %v10352_v59 = vpop.xlane.xlu0 %10351  ;;  %13088 = vmatmul.mubr.msk.bf16.vlgmr.msra.gmra.mrb[56].mxu0 %vm694_vm1, %v10466_v2  ;;  %v10448_v1 = vadd.f32 %v17709_v13, %v10428_v0 }
0x19d6   : > { %v10355_v22 = vpop.xlane.xlu1 %10354  ;;  %v10411_v57 = vmul.f32 %v13738_v24, %v17632_v35  ;;  %13747 = vrsqrt.f32 %v10384_v63  ;;  %v10370_v10 = vmul.f32 0.03125, %v10352_v59  ;;  %v10449_v62 = vadd.f32 %v17709_v13, %v10429_v36 }
0x19d7   : > { %v10371_v5 = vmul.f32 0.03125, %v10355_v22  ;;  %v10430_v47 = vmul.f32 %v17704_v34, %v10410_v21  ;;  %13749 = vrsqrt.f32 %v10385_v39 }
0x19d8   : > { %v13740_v49 = vpop.eup %13739  ;;  %v10431_v37 = vmul.f32 %v17704_v34, %v10411_v57  ;;  %v10386_v31 = vadd.f32 1e-05, %v10370_v10  ;;  %v10467_v54 = vpack.c.bf16 %v10449_v62, %v10448_v1 }
0x19d9   : > { %v10387_v3 = vadd.f32 1e-05, %v10371_v5  ;;  %v13742_v16 = vpop.eup %13741  ;;  %v10450_v9 = vadd.f32 %v17709_v13, %v10430_v47  ;;  %v10412_v32 = vmul.f32 %v13740_v49, %v17650_v28  ;;  %v13268_v49 = vld [vmem:[%s18216_s9 + $0x58] sm:$0xff]  }
0x19da   : > { %v10451_v35 = vadd.f32 %v17709_v13, %v10431_v37  ;;  %v10413_v41 = vmul.f32 %v13742_v16, %v17644_v26  ;;  %13751 = vrsqrt.f32 %v10386_v31  ;;  %13091 = vmatprep.mubr.msk.bf16.mxu0 %vm694_vm1, %v10467_v54  ;;  %v13269_v37 = vld [vmem:[%s18216_s9 + $0x60] sm:$0xff]   ;;  %v13270_v31 = vld [vmem:[%s18216_s9 + $0x68] sm:$0xff]   ;;  %v13272_v16 = vld [vmem:[%s18216_s9 + $0x78] sm:$0xff]  }
0x19db   : > { %13753 = vrsqrt.f32 %v10387_v3  ;;  %v10432_v12 = vmul.f32 %v17704_v34, %v10412_v32  ;;  %v13271_v3 = vld [vmem:[%s18216_s9 + $0x70] sm:$0xff]  }
0x19dc   : > { %v13744_v33 = vpop.eup %13743  ;;  %v10468_v15 = vpack.c.bf16 %v10451_v35, %v10450_v9  ;;  %v10433_v27 = vmul.f32 %v17704_v34, %v10413_v41  ;;  %v17794_v9 = vld [vmem:[%s18215_s8 + $0x1] ss:$0 sm:$0xff] }
0x19dd   : > { %v13746_v23 = vpop.eup %13745  ;;  %v10414_v55 = vmul.f32 %v13744_v33, %v17662_v20  ;;  %v10452_v28 = vadd.f32 %v17709_v13, %v10432_v12 }
0x19de   : > { %v10415_v50 = vmul.f32 %v13746_v23, %v17656_v52  ;;  %13092 = vmatmul.mubr.msk.bf16.gmra.mrb[60].mxu0 %vm694_vm1, %v10468_v15  ;;  %v10453_v26 = vadd.f32 %v17709_v13, %v10433_v27 }
0x19df   : > { %v10434_v25 = vmul.f32 %v17704_v34, %v10414_v55 }
0x19e0   : > { %v13748_v58 = vpop.eup %13747  ;;  %v10435_v38 = vmul.f32 %v17704_v34, %v10415_v50  ;;  %v10469_v2 = vpack.c.bf16 %v10453_v26, %v10452_v28 }
0x19e1   : > { %v13750_v0 = vpop.eup %13749  ;;  %v10454_v17 = vadd.f32 %v17709_v13, %v10434_v25  ;;  %v10416_v63 = vmul.f32 %v13748_v58, %v17674_v44 }
0x19e2   : > { %v10455_v20 = vadd.f32 %v17709_v13, %v10435_v38  ;;  %v10417_v39 = vmul.f32 %v13750_v0, %v17668_v48  ;;  %13095 = vmatprep.mubr.msk.bf16.mxu0 %vm694_vm1, %v10469_v2 }
0x19e3   : > { %v10436_v52 = vmul.f32 %v17704_v34, %v10416_v63 }
0x19e4   : > { %v13752_v36 = vpop.eup %13751  ;;  %v10470_v24 = vpack.c.bf16 %v10455_v20, %v10454_v17  ;;  %v10437_v21 = vmul.f32 %v17704_v34, %v10417_v39 }
0x19e5   : > { %v13754_v59 = vpop.eup %13753  ;;  %v10418_v22 = vmul.f32 %v13752_v36, %v17685_v51  ;;  %v10456_v1 = vadd.f32 %v17709_v13, %v10436_v52 }
0x19e6   : > { %v10419_v57 = vmul.f32 %v13754_v59, %v17680_v29  ;;  %13096 = vmatmul.mubr.msk.bf16.gmra.mrb[64].mxu0 %vm694_vm1, %v10470_v24  ;;  %v10457_v44 = vadd.f32 %v17709_v13, %v10437_v21  ;;  %v13265_v29 = vld [vmem:[%s18216_s9 + $0x40] sm:$0xff]  }
0x19e7   : > { %v10438_v48 = vmul.f32 %v17704_v34, %v10418_v22  ;;  %13103 = vmatprep.subr.bf16.mxu0 %v13265_v29 }
0x19e8   : > { %v10439_v10 = vmul.f32 %v17704_v34, %v10419_v57  ;;  %v10471_v5 = vpack.c.bf16 %v10457_v44, %v10456_v1  ;;  %13104 = vmatpush3.bf16.msra.mxu0 %v13265_v29  ;;  %v13266_v34 = vld [vmem:[%s18216_s9 + $0x48] sm:$0xff]  }
0x19e9   : > { %v10458_v47 = vadd.f32 %v17709_v13, %v10438_v48  ;;  %13105 = vmatprep.subr.bf16.mxu0 %v13266_v34 }
0x19ea   : > { %v10459_v62 = vadd.f32 %v17709_v13, %v10439_v10  ;;  %13099 = vmatprep.mubr.msk.bf16.mxu0 %vm694_vm1, %v10471_v5  ;;  %v13267_v13 = vld [vmem:[%s18216_s9 + $0x50] sm:$0xff]  }
0x19ec   : > { %v10472_v51 = vpack.c.bf16 %v10459_v62, %v10458_v47  ;;  %13106 = vmatpush3.bf16.msra.mxu0 %v13266_v34 }
0x19ed   : > { %13107 = vmatprep.subr.bf16.mxu0 %v13267_v13 }
0x19ee   : > { %13100 = vmatmul.mubr.msk.bf16.gmra.mrb[68].mxu0 %vm694_vm1, %v10472_v51 }
0x19f0   : > { %13108 = vmatpush3.bf16.msra.mxu0 %v13267_v13 }
0x19f1   : > { %13109 = vmatprep.subr.bf16.mxu0 %v13268_v49 }
0x19f4   : > { %13110 = vmatpush3.bf16.msra.mxu0 %v13268_v49 }
0x19f5   : > { %13111 = vmatprep.subr.bf16.mxu0 %v13269_v37 }
0x19f8   : > { %13112 = vmatpush3.bf16.msra.mxu0 %v13269_v37 }
0x19f9   : > { %13113 = vmatprep.subr.bf16.mxu0 %v13270_v31 }
0x19fc   : > { %13114 = vmatpush3.bf16.msra.mxu0 %v13270_v31 }
0x19fd   : > { %13115 = vmatprep.subr.bf16.mxu0 %v13271_v3 }
0x1a00   : > { %13116 = vmatpush3.bf16.msra.mxu0 %v13271_v3 }
0x1a01   : > { %13117 = vmatprep.subr.bf16.mxu0 %v13272_v16 }
0x1a04   : > { %13118 = vmatpush3.bf16.msra.mxu0 %v13272_v16 }
0x1aa8   : > { %v13089_v32 = vpop.f32.mrb[56].mxu0 }
0x1aa9   : > { %v17797_v54 = vadd.f32 %v13089_v32, %v17794_v9  ;;  %v10551_v35 = vpop.f32.mrb[57].mxu0 }
0x1aaa   : > { %v17800_v41 = vadd.f32 %v17794_v9, %v10551_v35  ;;  %v13090_v12 = vpop.f32.mrb[58].mxu0 }
0x1aab   : > { %v11735_v33 = vmul.f32 -1.702, %v17797_v54  ;;  %v17804_v15 = vadd.f32 %v13090_v12, %v17794_v9  ;;  %v10554_v27 = vpop.f32.mrb[59].mxu0 }
0x1aac   : > { %v11733_v23 = vmul.f32 -1.702, %v17800_v41  ;;  %v17808_v55 = vadd.f32 %v17794_v9, %v10554_v27 }
0x1aad   : > { %v10650_v28 = vmul.f32 1.442695, %v11735_v33  ;;  %v11736_v50 = vmul.f32 -1.702, %v17804_v15 }
0x1aae   : > { %v10646_v26 = vmul.f32 1.442695, %v11733_v23  ;;  %v11734_v25 = vmul.f32 -1.702, %v17808_v55 }
0x1aaf   : > { %13755 = vpow2.f32 %v10650_v28  ;;  %v10652_v58 = vmul.f32 1.442695, %v11736_v50 }
0x1ab0   : > { %13757 = vpow2.f32 %v10646_v26  ;;  %v10648_v38 = vmul.f32 1.442695, %v11734_v25 }
0x1ab1   : > { %13759 = vpow2.f32 %v10652_v58  ;;  %v13093_v2 = vpop.f32.mrb[60].mxu0 }
0x1ab2   : > { %13761 = vpow2.f32 %v10648_v38  ;;  %v17813_v0 = vadd.f32 %v13093_v2, %v17794_v9  ;;  %v10567_v17 = vpop.f32.mrb[61].mxu0 }
0x1ab3   : > { %v17816_v63 = vadd.f32 %v17794_v9, %v10567_v17  ;;  %v13094_v20 = vpop.f32.mrb[62].mxu0 }
0x1ab4   : > { %v11739_v39 = vmul.f32 -1.702, %v17813_v0  ;;  %v17820_v52 = vadd.f32 %v13094_v20, %v17794_v9  ;;  %v10570_v36 = vpop.f32.mrb[63].mxu0 }
0x1ab5   : > { %v11737_v24 = vmul.f32 -1.702, %v17816_v63  ;;  %v17824_v21 = vadd.f32 %v17794_v9, %v10570_v36 }
0x1ab6   : > { %v10658_v59 = vmul.f32 1.442695, %v11739_v39  ;;  %v11740_v22 = vmul.f32 -1.702, %v17820_v52 }
0x1ab7   : > { %v10654_v1 = vmul.f32 1.442695, %v11737_v24  ;;  %v11738_v57 = vmul.f32 -1.702, %v17824_v21 }
0x1ab8   : > { %13763 = vpow2.f32 %v10658_v59  ;;  %v10660_v44 = vmul.f32 1.442695, %v11740_v22 }
0x1ab9   : > { %v13756_v48 = vpop.eup %13755  ;;  %13765 = vpow2.f32 %v10654_v1  ;;  %v10656_v10 = vmul.f32 1.442695, %v11738_v57  ;;  %v13097_v5 = vpop.f32.mrb[64].mxu0 }
0x1aba   : > { %v13758_v47 = vpop.eup %13757  ;;  %v10680_v62 = vadd.f32 1.0, %v13756_v48  ;;  %13767 = vpow2.f32 %v10660_v44  ;;  %v17829_v51 = vadd.f32 %v13097_v5, %v17794_v9  ;;  %v10583_v29 = vpop.f32.mrb[65].mxu0 }
0x1abb   : > { %v13760_v34 = vpop.eup %13759  ;;  %v10678_v13 = vadd.f32 1.0, %v13758_v47  ;;  %13769 = vpow2.f32 %v10656_v10  ;;  %v17832_v49 = vadd.f32 %v17794_v9, %v10583_v29  ;;  %v13098_v37 = vpop.f32.mrb[66].mxu0 }
0x1abc   : > { %v13762_v31 = vpop.eup %13761  ;;  %13771 = vrcp.f32 %v10680_v62  ;;  %v10681_v3 = vadd.f32 1.0, %v13760_v34  ;;  %v11743_v16 = vmul.f32 -1.702, %v17829_v51  ;;  %v17836_v32 = vadd.f32 %v13098_v37, %v17794_v9  ;;  %v10586_v35 = vpop.f32.mrb[67].mxu0 }
0x1abd   : > { %13773 = vrcp.f32 %v10678_v13  ;;  %v10679_v12 = vadd.f32 1.0, %v13762_v31  ;;  %v11741_v33 = vmul.f32 -1.702, %v17832_v49  ;;  %v17840_v27 = vadd.f32 %v17794_v9, %v10586_v35 }
0x1abe   : > { %13775 = vrcp.f32 %v10681_v3  ;;  %v10666_v23 = vmul.f32 1.442695, %v11743_v16  ;;  %v11744_v28 = vmul.f32 -1.702, %v17836_v32 }
0x1abf   : > { %13777 = vrcp.f32 %v10679_v12  ;;  %v10662_v50 = vmul.f32 1.442695, %v11741_v33  ;;  %v11742_v26 = vmul.f32 -1.702, %v17840_v27 }
0x1ac0   : > { %13779 = vpow2.f32 %v10666_v23  ;;  %v10668_v25 = vmul.f32 1.442695, %v11744_v28 }
0x1ac1   : > { %13781 = vpow2.f32 %v10662_v50  ;;  %v10664_v58 = vmul.f32 1.442695, %v11742_v26  ;;  %v13101_v38 = vpop.f32.mrb[68].mxu0 }
0x1ac2   : > { %v13764_v2 = vpop.eup %13763  ;;  %13783 = vpow2.f32 %v10668_v25  ;;  %v17845_v17 = vadd.f32 %v13101_v38, %v17794_v9  ;;  %v10599_v20 = vpop.f32.mrb[69].mxu0 }
0x1ac3   : > { %v13766_v39 = vpop.eup %13765  ;;  %v10684_v36 = vadd.f32 1.0, %v13764_v2  ;;  %13785 = vpow2.f32 %v10664_v58  ;;  %v17848_v24 = vadd.f32 %v17794_v9, %v10599_v20  ;;  %v13102_v59 = vpop.f32.mrb[70].mxu0 }
0x1ac4   : > { %v13768_v22 = vpop.eup %13767  ;;  %v10682_v1 = vadd.f32 1.0, %v13766_v39  ;;  %v11747_v57 = vmul.f32 -1.702, %v17845_v17  ;;  %v17852_v44 = vadd.f32 %v13102_v59, %v17794_v9  ;;  %v10602_v48 = vpop.f32.mrb[71].mxu0 }
0x1ac5   : > { %v13770_v10 = vpop.eup %13769  ;;  %13787 = vrcp.f32 %v10684_v36  ;;  %v10685_v5 = vadd.f32 1.0, %v13768_v22  ;;  %v11745_v47 = vmul.f32 -1.702, %v17848_v24  ;;  %v17856_v62 = vadd.f32 %v17794_v9, %v10602_v48 }
0x1ac6   : > { %v13772_v29 = vpop.eup %13771  ;;  %13789 = vrcp.f32 %v10682_v1  ;;  %v10683_v34 = vadd.f32 1.0, %v13770_v10  ;;  %v10674_v13 = vmul.f32 1.442695, %v11747_v57  ;;  %v11748_v37 = vmul.f32 -1.702, %v17852_v44 }
0x1ac7   : > { %v13774_v31 = vpop.eup %13773  ;;  %13791 = vrcp.f32 %v10685_v5  ;;  %v10670_v3 = vmul.f32 1.442695, %v11745_v47  ;;  %v11746_v16 = vmul.f32 -1.702, %v17856_v62  ;;  %v10728_v23 = vmul.f32 %v13772_v29, %v17797_v54 }
0x1ac8   : > { %v13776_v35 = vpop.eup %13775  ;;  %13793 = vrcp.f32 %v10683_v34  ;;  %v10676_v12 = vmul.f32 1.442695, %v11748_v37  ;;  %v10726_v26 = vmul.f32 %v13774_v31, %v17800_v41 }
0x1ac9   : > { %v13778_v33 = vpop.eup %13777  ;;  %v10729_v9 = vmul.f32 %v13776_v35, %v17804_v15  ;;  %13795 = vpow2.f32 %v10674_v13  ;;  %v10672_v28 = vmul.f32 1.442695, %v11746_v16 }
0x1aca   : > { %v13780_v50 = vpop.eup %13779  ;;  %v10727_v25 = vmul.f32 %v13778_v33, %v17808_v55  ;;  %13797 = vpow2.f32 %v10670_v3 }
0x1acb   : > { %v13782_v58 = vpop.eup %13781  ;;  %v10760_v38 = vpack.c.bf16 %v10729_v9, %v10728_v23  ;;  %v10688_v2 = vadd.f32 1.0, %v13780_v50  ;;  %13799 = vpow2.f32 %v10676_v12 }
0x1acc   : > { %v13784_v20 = vpop.eup %13783  ;;  %v10686_v39 = vadd.f32 1.0, %v13782_v58  ;;  %13801 = vpow2.f32 %v10672_v28  ;;  %v10759_v36 = vpack.c.bf16 %v10727_v25, %v10726_v26 }
0x1acd   : > { %v13786_v59 = vpop.eup %13785  ;;  %13803 = vrcp.f32 %v10688_v2  ;;  %v10689_v54 = vadd.f32 1.0, %v13784_v20 }
0x1ace   : > { %13805 = vrcp.f32 %v10686_v39  ;;  %v10687_v15 = vadd.f32 1.0, %v13786_v59  ;;  %13119 = vmatprep.mubr.bf16.mxu0 %v10759_v36 }
0x1acf   : > { %v13788_v22 = vpop.eup %13787  ;;  %13807 = vrcp.f32 %v10689_v54  ;;  %13120 = vmatmul.mubr.bf16.vlgmr.msra.gmra.mrb[72].mxu0 %v10760_v38 }
0x1ad0   : > { %v13790_v41 = vpop.eup %13789  ;;  %13809 = vrcp.f32 %v10687_v15  ;;  %v10732_v57 = vmul.f32 %v13788_v22, %v17813_v0  ;;  %v13830_v22 = vld [vmem:[%s18210_s3 + $0x8] sm:$0xff] }
0x1ad1   : > { %v13792_v55 = vpop.eup %13791  ;;  %v10730_v5 = vmul.f32 %v13790_v41, %v17816_v63 }
0x1ad2   : > { %v13794_v1 = vpop.eup %13793  ;;  %v10733_v48 = vmul.f32 %v13792_v55, %v17820_v52 }
0x1ad3   : > { %v13796_v10 = vpop.eup %13795  ;;  %v10731_v47 = vmul.f32 %v13794_v1, %v17824_v21 }
0x1ad4   : > { %v13798_v29 = vpop.eup %13797  ;;  %v10762_v34 = vpack.c.bf16 %v10733_v48, %v10732_v57  ;;  %v10692_v13 = vadd.f32 1.0, %v13796_v10 }
0x1ad5   : > { %v13800_v37 = vpop.eup %13799  ;;  %v10690_v31 = vadd.f32 1.0, %v13798_v29  ;;  %v10761_v3 = vpack.c.bf16 %v10731_v47, %v10730_v5 }
0x1ad6   : > { %v13802_v16 = vpop.eup %13801  ;;  %13811 = vrcp.f32 %v10692_v13  ;;  %v10693_v35 = vadd.f32 1.0, %v13800_v37 }
0x1ad7   : > { %v13804_v12 = vpop.eup %13803  ;;  %13813 = vrcp.f32 %v10690_v31  ;;  %v10691_v33 = vadd.f32 1.0, %v13802_v16  ;;  %13123 = vmatprep.mubr.bf16.mxu0 %v10761_v3 }
0x1ad8   : > { %v13806_v0 = vpop.eup %13805  ;;  %13815 = vrcp.f32 %v10693_v35  ;;  %13124 = vmatmul.mubr.bf16.gmra.mrb[76].mxu0 %v10762_v34  ;;  %v10736_v21 = vmul.f32 %v13804_v12, %v17829_v51 }
0x1ad9   : > { %v13808_v52 = vpop.eup %13807  ;;  %13817 = vrcp.f32 %v10691_v33  ;;  %v10734_v9 = vmul.f32 %v13806_v0, %v17832_v49 }
0x1ada   : > { %v13810_v63 = vpop.eup %13809  ;;  %v10737_v23 = vmul.f32 %v13808_v52, %v17836_v32 }
0x1adb   : > { %v10735_v28 = vmul.f32 %v13810_v63, %v17840_v27 }
0x1adc   : > { %v10764_v50 = vpack.c.bf16 %v10737_v23, %v10736_v21 }
0x1add   : > { %v10763_v26 = vpack.c.bf16 %v10735_v28, %v10734_v9 }
0x1adf   : > { %13127 = vmatprep.mubr.bf16.mxu0 %v10763_v26 }
0x1ae0   : > { %v13812_v25 = vpop.eup %13811  ;;  %13128 = vmatmul.mubr.bf16.gmra.mrb[80].mxu0 %v10764_v50 }
0x1ae1   : > { %v13814_v58 = vpop.eup %13813  ;;  %v10740_v20 = vmul.f32 %v13812_v25, %v17845_v17  ;;  %v18325_v17 = vsub.s32 7, %v14376_v30 }
0x1ae2   : > { %v13816_v38 = vpop.eup %13815  ;;  %v10738_v51 = vmul.f32 %v13814_v58, %v17848_v24 }
0x1ae3   : > { %v13818_v2 = vpop.eup %13817  ;;  %v10741_v39 = vmul.f32 %v13816_v38, %v17852_v44  ;;  %v17882_v44 = vrot.slane %v13830_v22, %v18325_v17 }
0x1ae4   : > { %v10739_v32 = vmul.f32 %v13818_v2, %v17856_v62 }
0x1ae5   : > { %v10766_v36 = vpack.c.bf16 %v10741_v39, %v10740_v20 }
0x1ae6   : > { %v10765_v49 = vpack.c.bf16 %v10739_v32, %v10738_v51 }
0x1ae8   : > { %13131 = vmatprep.mubr.bf16.mxu0 %v10765_v49 }
0x1ae9   : > { %13132 = vmatmul.mubr.bf16.gmra.mrb[84].mxu0 %v10766_v36 }
0x1ba2   : > { %v13121_v27 = vpop.f32.mrb[72].mxu0 }
0x1ba3   : > { %v10849_v59 = vpop.f32.mrb[73].mxu0  ;;  %v10914_v15 = vadd.f32 %v13121_v27, %v17510_v11 }
0x1ba4   : > { %v13122_v54 = vpop.f32.mrb[74].mxu0  ;;  %v10912_v62 = vadd.f32 %v10849_v59, %v17506_v42 }
0x1ba5   : > { %v10852_v24 = vpop.f32.mrb[75].mxu0  ;;  %v10915_v55 = vadd.f32 %v13122_v54, %v17521_v53  ;;  %v17891_v11 = vadd.f32 %v17882_v44, %v10914_v15 }
0x1ba6   : > { %v10913_v41 = vadd.f32 %v10852_v24, %v17514_v19  ;;  %v17894_v57 = vadd.f32 %v17882_v44, %v10912_v62 }
0x1ba7   : > { %v17898_v5 = vadd.f32 %v17882_v44, %v10915_v55  ;;  %v10967_v47 = vrot.slane %v17891_v11, 6 }
0x1ba8   : > { %v17888_v1 = vadd.f32 %v17882_v44, %v10913_v41 }
0x1ba9   : > { %v10970_v35 = vrot.slane %v17898_v5, 5 }
0x1baa   : > { %v10964_v48 = vrot.slane %v17888_v1, 7 }
0x1bab   : > { %v13125_v10 = vpop.f32.mrb[76].mxu0 }
0x1bac   : > { %v10966_v42 = vsel %vm10965_vm7, %v10964_v48, %v17894_v57  ;;  %v10918_v19 = vadd.f32 %v13125_v10, %v17543_v56  ;;  %v10865_v53 = vpop.f32.mrb[77].mxu0 }
0x1bad   : > { %v10916_v29 = vadd.f32 %v10865_v53, %v17530_v43  ;;  %v13126_v34 = vpop.f32.mrb[78].mxu0  ;;  %v10969_v31 = vsel %vm10968_vm8, %v10967_v47, %v10966_v42 }
0x1bae   : > { %v10919_v13 = vadd.f32 %v13126_v34, %v17538_v18  ;;  %v10868_v37 = vpop.f32.mrb[79].mxu0  ;;  %v17913_v56 = vadd.f32 %v17882_v44, %v10918_v19  ;;  %v10972_v33 = vsel %vm10971_vm9, %v10970_v35, %v10969_v31 }
0x1baf   : > { %v17908_v3 = vadd.f32 %v17882_v44, %v10916_v29  ;;  %v10917_v16 = vadd.f32 %v10868_v37, %v17533_v46 }
0x1bb0   : > { %v17917_v12 = vadd.f32 %v17882_v44, %v10919_v13  ;;  %v10979_v63 = vrot.slane %v17913_v56, 2 }
0x1bb1   : > { %v10973_v43 = vrot.slane %v17908_v3, 4  ;;  %v17920_v18 = vadd.f32 %v17882_v44, %v10917_v16 }
0x1bb2   : > { %v10982_v23 = vrot.slane %v17917_v12, 1 }
0x1bb3   : > { %v10975_v0 = vsel %vm10974_vm10, %v10973_v43, %v10972_v33  ;;  %v10976_v46 = vrot.slane %v17920_v18, 3  ;;  %v13129_v52 = vpop.f32.mrb[80].mxu0 }
0x1bb4   : > { %v10881_v21 = vpop.f32.mrb[81].mxu0  ;;  %v10922_v50 = vadd.f32 %v13129_v52, %v17567_v40 }
0x1bb5   : > { %v13130_v9 = vpop.f32.mrb[82].mxu0  ;;  %v10978_v28 = vsel %vm10977_vm11, %v10976_v46, %v10975_v0  ;;  %v10920_v58 = vadd.f32 %v10881_v21, %v17554_v8 }
0x1bb6   : > { %v10884_v26 = vpop.f32.mrb[83].mxu0  ;;  %v10981_v25 = vsel %vm10980_vm12, %v10979_v63, %v10978_v28  ;;  %v10923_v39 = vadd.f32 %v13130_v9, %v17562_v60  ;;  %v17939_v32 = vadd.f32 %v17882_v44, %v10922_v50 }
0x1bb7   : > { %v10921_v38 = vadd.f32 %v10884_v26, %v17557_v6  ;;  %v10984_v2 = vsel %vm10983_vm13, %v10982_v23, %v10981_v25  ;;  %v17942_v40 = vadd.f32 %v17882_v44, %v10920_v58 }
0x1bb8   : > { %v11001_v20 = vsel %vm694_vm1, %v10984_v2, 0.0  ;;  %v17946_v6 = vadd.f32 %v17882_v44, %v10923_v39  ;;  %v10987_v59 = vrot.slane %v17939_v32, 6 }
0x1bb9   : > { %v17936_v51 = vadd.f32 %v17882_v44, %v10921_v38  ;;  %11002 = vadd.xlane.f32.xlu0 %v11001_v20 }
0x1bba   : > { %v10989_v55 = vrot.slane %v17946_v6, 5 }
0x1bbb   : > { %v10985_v8 = vrot.slane %v17936_v51, 7 }
0x1bbc   : > { %v13133_v36 = vpop.f32.mrb[84].mxu0 }
0x1bbd   : > { %v10986_v49 = vsel %vm10965_vm7, %v10985_v8, %v17942_v40  ;;  %v10926_v60 = vadd.f32 %v13133_v36, %v17591_v14  ;;  %v10897_v27 = vpop.f32.mrb[85].mxu0 }
0x1bbe   : > { %v10924_v54 = vadd.f32 %v10897_v27, %v17578_v4  ;;  %v13134_v15 = vpop.f32.mrb[86].mxu0  ;;  %v10988_v24 = vsel %vm10968_vm8, %v10987_v59, %v10986_v49 }
0x1bbf   : > { %v10927_v22 = vadd.f32 %v13134_v15, %v17586_v45  ;;  %v10900_v17 = vpop.f32.mrb[87].mxu0  ;;  %v17961_v14 = vadd.f32 %v17882_v44, %v10926_v60  ;;  %v10990_v10 = vsel %vm10971_vm9, %v10989_v55, %v10988_v24 }
0x1bc0   : > { %v17956_v62 = vadd.f32 %v17882_v44, %v10924_v54  ;;  %v10925_v41 = vadd.f32 %v10900_v17, %v17581_v61 }
0x1bc1   : > { %v17965_v4 = vadd.f32 %v17882_v44, %v10927_v22  ;;  %v10995_v61 = vrot.slane %v17961_v14, 2 }
0x1bc2   : > { %v10991_v48 = vrot.slane %v17956_v62, 4  ;;  %v17968_v45 = vadd.f32 %v17882_v44, %v10925_v41 }
0x1bc3   : > { %v10997_v53 = vrot.slane %v17965_v4, 1 }
0x1bc4   : > { %v10992_v42 = vsel %vm10974_vm10, %v10991_v48, %v10990_v10  ;;  %v10993_v19 = vrot.slane %v17968_v45, 3 }
0x1bc6   : > { %v10994_v47 = vsel %vm10977_vm11, %v10993_v19, %v10992_v42 }
0x1bc7   : > { %v10996_v29 = vsel %vm10980_vm12, %v10995_v61, %v10994_v47 }
0x1bc8   : > { %v10998_v34 = vsel %vm10983_vm13, %v10997_v53, %v10996_v29 }
0x1bc9   : > { %v11004_v13 = vsel %vm694_vm1, %v10998_v34, 0.0 }
0x1bca   : > { %11005 = vadd.xlane.f32.xlu1 %v11004_v13 }
0x1c46   : > { %v11003_v44 = vpop.xlane.xlu0 %11002 }
0x1c47   : > { %v11007_v37 = vmul.f32 0.03125, %v11003_v44 }
0x1c49   : > { %v11011_v31 = vrot.slane %v11007_v37, 1  ;;  %v11012_v16 = vrot.slane %v11007_v37, 2  ;;  %v11013_v35 = vrot.slane %v11007_v37, 3  ;;  %v11014_v43 = vrot.slane %v11007_v37, 4 }
0x1c4a   : > { %v11015_v33 = vrot.slane %v11007_v37, 5  ;;  %v11016_v0 = vrot.slane %v11007_v37, 6  ;;  %v11017_v46 = vrot.slane %v11007_v37, 7  ;;  %v17980_v52 = vsub.f32 %v17894_v57, %v11007_v37 }
0x1c4b   : > { %v17983_v63 = vsub.f32 %v17888_v1, %v11011_v31  ;;  %v17986_v21 = vsub.f32 %v17891_v11, %v11012_v16  ;;  %v17989_v23 = vsub.f32 %v17898_v5, %v11013_v35  ;;  %v17992_v9 = vsub.f32 %v17908_v3, %v11014_v43 }
0x1c4c   : > { %v17995_v28 = vsub.f32 %v17920_v18, %v11015_v33  ;;  %v17998_v50 = vsub.f32 %v17913_v56, %v11016_v0  ;;  %v18001_v57 = vsub.f32 %v17917_v12, %v11017_v46  ;;  %v11057_v18 = vmul.f32 %v17980_v52, %v17980_v52 }
0x1c4d   : > { %v11058_v1 = vmul.f32 %v17983_v63, %v17983_v63  ;;  %v11059_v11 = vmul.f32 %v17986_v21, %v17986_v21  ;;  %v11060_v5 = vmul.f32 %v17989_v23, %v17989_v23  ;;  %v11061_v3 = vmul.f32 %v17992_v9, %v17992_v9 }
0x1c4e   : > { %v11062_v56 = vmul.f32 %v17995_v28, %v17995_v28  ;;  %v11063_v25 = vmul.f32 %v17998_v50, %v17998_v50  ;;  %v11064_v58 = vmul.f32 %v18001_v57, %v18001_v57 }
0x1c4f   : > { %v11089_v12 = vrot.slane %v11058_v1, 7  ;;  %v11091_v26 = vrot.slane %v11059_v11, 6  ;;  %v11093_v2 = vrot.slane %v11060_v5, 5  ;;  %v11095_v39 = vrot.slane %v11061_v3, 4 }
0x1c50   : > { %v11097_v36 = vrot.slane %v11062_v56, 3  ;;  %v11099_v60 = vrot.slane %v11063_v25, 2  ;;  %v11101_v59 = vrot.slane %v11064_v58, 1  ;;  %v13273_v58 = vld [vmem:[%s18217_s10] sm:$0xff]  }
0x1c51   : > { %v11090_v38 = vsel %vm10965_vm7, %v11089_v12, %v11057_v18  ;;  %13136 = vmatpush3.bf16.msra.mxu1 %v13273_v58 }
0x1c52   : > { %v11092_v20 = vsel %vm10968_vm8, %v11091_v26, %v11090_v38  ;;  %v13274_v38 = vld [vmem:[%s18217_s10 + $0x8] sm:$0xff]   ;;  %13137 = vmatprep.subr.bf16.mxu1 %v18274_v7 }
0x1c53   : > { %v11094_v8 = vsel %vm10971_vm9, %v11093_v2, %v11092_v20 }
0x1c54   : > { %v11096_v49 = vsel %vm10974_vm10, %v11095_v39, %v11094_v8 }
0x1c55   : > { %v11098_v27 = vsel %vm10977_vm11, %v11097_v36, %v11096_v49  ;;  %13138 = vmatpush3.bf16.msra.mxu1 %v13274_v38  ;;  %v13831_v36 = vld [vmem:[%s18210_s3] sm:$0xff]  ;;  %v18326_v49 = vsub.s32 2, %v14376_v30 }
0x1c56   : > { %v11100_v54 = vsel %vm10980_vm12, %v11099_v60, %v11098_v27  ;;  %v18327_v27 = vsub.s32 3, %v14376_v30 }
0x1c57   : > { %v11006_v15 = vpop.xlane.xlu1 %11005  ;;  %v11102_v22 = vsel %vm10983_vm13, %v11101_v59, %v11100_v54  ;;  %v18087_v60 = vrot.slane %v13831_v36, %v18326_v49 }
0x1c58   : > { %v11008_v17 = vmul.f32 0.03125, %v11006_v15  ;;  %v11119_v24 = vsel %vm694_vm1, %v11102_v22, 0.0  ;;  %v18091_v59 = vrot.slane %v13831_v36, %v18327_v27 }
0x1c59   : > { %11120 = vadd.xlane.f32.xlu0 %v11119_v24 }
0x1c5a   : > { %v11018_v41 = vrot.slane %v11008_v17, 1  ;;  %v11019_v55 = vrot.slane %v11008_v17, 2  ;;  %v11020_v48 = vrot.slane %v11008_v17, 3  ;;  %v11021_v10 = vrot.slane %v11008_v17, 4 }
0x1c5b   : > { %v11022_v42 = vrot.slane %v11008_v17, 5  ;;  %v11023_v19 = vrot.slane %v11008_v17, 6  ;;  %v11024_v61 = vrot.slane %v11008_v17, 7  ;;  %v18028_v53 = vsub.f32 %v17942_v40, %v11008_v17 }
0x1c5c   : > { %v18031_v47 = vsub.f32 %v17936_v51, %v11018_v41  ;;  %v18034_v29 = vsub.f32 %v17939_v32, %v11019_v55  ;;  %v18037_v34 = vsub.f32 %v17946_v6, %v11020_v48  ;;  %v18040_v13 = vsub.f32 %v17956_v62, %v11021_v10 }
0x1c5d   : > { %v18043_v44 = vsub.f32 %v17968_v45, %v11022_v42  ;;  %v18046_v37 = vsub.f32 %v17961_v14, %v11023_v19  ;;  %v18049_v40 = vsub.f32 %v17965_v4, %v11024_v61  ;;  %v11065_v45 = vmul.f32 %v18028_v53, %v18028_v53 }
0x1c5e   : > { %v11066_v51 = vmul.f32 %v18031_v47, %v18031_v47  ;;  %v11067_v32 = vmul.f32 %v18034_v29, %v18034_v29  ;;  %v11068_v6 = vmul.f32 %v18037_v34, %v18037_v34  ;;  %v11069_v62 = vmul.f32 %v18040_v13, %v18040_v13 }
0x1c5f   : > { %v11070_v14 = vmul.f32 %v18043_v44, %v18043_v44  ;;  %v11071_v16 = vmul.f32 %v18046_v37, %v18046_v37  ;;  %v11072_v35 = vmul.f32 %v18049_v40, %v18049_v40 }
0x1c60   : > { %v11103_v4 = vrot.slane %v11066_v51, 7  ;;  %v11105_v31 = vrot.slane %v11067_v32, 6  ;;  %v11107_v33 = vrot.slane %v11068_v6, 5  ;;  %v11109_v46 = vrot.slane %v11069_v62, 4 }
0x1c61   : > { %v11111_v11 = vrot.slane %v11070_v14, 3  ;;  %v11113_v3 = vrot.slane %v11071_v16, 2  ;;  %v11115_v56 = vrot.slane %v11072_v35, 1 }
0x1c62   : > { %v11104_v43 = vsel %vm10965_vm7, %v11103_v4, %v11065_v45 }
0x1c63   : > { %v11106_v0 = vsel %vm10968_vm8, %v11105_v31, %v11104_v43 }
0x1c64   : > { %v11108_v1 = vsel %vm10971_vm9, %v11107_v33, %v11106_v0 }
0x1c65   : > { %v11110_v5 = vsel %vm10974_vm10, %v11109_v46, %v11108_v1 }
0x1c66   : > { %v11112_v18 = vsel %vm10977_vm11, %v11111_v11, %v11110_v5 }
0x1c67   : > { %v11114_v12 = vsel %vm10980_vm12, %v11113_v3, %v11112_v18 }
0x1c68   : > { %v11116_v26 = vsel %vm10983_vm13, %v11115_v56, %v11114_v12 }
0x1c69   : > { %v11122_v25 = vsel %vm694_vm1, %v11116_v26, 0.0 }
0x1c6a   : > { %11123 = vadd.xlane.f32.xlu1 %v11122_v25 }
0x1ce6   : > { %v11121_v2 = vpop.xlane.xlu0 %11120 }
0x1ce7   : > { %v11125_v20 = vmul.f32 0.03125, %v11121_v2 }
0x1ce9   : > { %v11127_v39 = vadd.f32 1e-05, %v11125_v20 }
0x1ceb   : > { %13819 = vrsqrt.f32 %v11127_v39 }
0x1cf5   : > { %v13820_v8 = vpop.eup %13819 }
0x1cf6   : > { %v11133_v54 = vrot.slane %v13820_v8, 1  ;;  %v11134_v7 = vrot.slane %v13820_v8, 2  ;;  %v11135_v15 = vrot.slane %v13820_v8, 3  ;;  %v11136_v22 = vrot.slane %v13820_v8, 4 }
0x1cf7   : > { %v11124_v17 = vpop.xlane.xlu1 %11123  ;;  %v11137_v24 = vrot.slane %v13820_v8, 5  ;;  %v11138_v41 = vrot.slane %v13820_v8, 6  ;;  %v11139_v55 = vrot.slane %v13820_v8, 7  ;;  %v11163_v48 = vmul.f32 %v13820_v8, %v17980_v52 }
0x1cf8   : > { %v11126_v10 = vmul.f32 0.03125, %v11124_v17  ;;  %v11164_v42 = vmul.f32 %v11133_v54, %v17983_v63  ;;  %v11165_v19 = vmul.f32 %v11134_v7, %v17986_v21  ;;  %v11166_v61 = vmul.f32 %v11135_v15, %v17989_v23 }
0x1cf9   : > { %v11167_v30 = vmul.f32 %v11136_v22, %v17992_v9  ;;  %v11168_v51 = vmul.f32 %v11137_v24, %v17995_v28  ;;  %v11169_v32 = vmul.f32 %v11138_v41, %v17998_v50  ;;  %v11170_v6 = vmul.f32 %v11139_v55, %v18001_v57 }
0x1cfa   : > { %v11128_v62 = vadd.f32 1e-05, %v11126_v10  ;;  %v11183_v45 = vmul.f32 %v18087_v60, %v11163_v48  ;;  %v11184_v52 = vmul.f32 %v18087_v60, %v11164_v42  ;;  %v11185_v14 = vmul.f32 %v18087_v60, %v11165_v19 }
0x1cfb   : > { %v11186_v63 = vmul.f32 %v18087_v60, %v11166_v61  ;;  %v11187_v21 = vmul.f32 %v18087_v60, %v11167_v30  ;;  %v11188_v23 = vmul.f32 %v18087_v60, %v11168_v51  ;;  %v11189_v9 = vmul.f32 %v18087_v60, %v11169_v32 }
0x1cfc   : > { %13821 = vrsqrt.f32 %v11128_v62  ;;  %v11190_v28 = vmul.f32 %v18087_v60, %v11170_v6  ;;  %v11203_v50 = vadd.f32 %v18091_v59, %v11183_v45  ;;  %v11204_v57 = vadd.f32 %v18091_v59, %v11184_v52 }
0x1cfd   : > { %v11205_v4 = vadd.f32 %v18091_v59, %v11185_v14  ;;  %v11206_v31 = vadd.f32 %v18091_v59, %v11186_v63  ;;  %v11207_v16 = vadd.f32 %v18091_v59, %v11187_v21  ;;  %v11208_v35 = vadd.f32 %v18091_v59, %v11188_v23 }
0x1cfe   : > { %v11209_v43 = vadd.f32 %v18091_v59, %v11189_v9  ;;  %v11210_v33 = vadd.f32 %v18091_v59, %v11190_v28  ;;  %v11223_v0 = vpack.c.bf16 %v11203_v50, %v11203_v50  ;;  %v11224_v46 = vpack.c.bf16 %v11204_v57, %v11204_v57 }
0x1cff   : > { %v11225_v1 = vpack.c.bf16 %v11205_v4, %v11205_v4  ;;  %v11226_v11 = vpack.c.bf16 %v11206_v31, %v11206_v31  ;;  %v11227_v5 = vpack.c.bf16 %v11207_v16, %v11207_v16  ;;  %v11228_v18 = vpack.c.bf16 %v11208_v35, %v11208_v35 }
0x1d00   : > { %v11256_v3 = vunpack.c.l.b16 %v11224_v46  ;;  %v11229_v56 = vpack.c.bf16 %v11209_v43, %v11209_v43  ;;  %v11230_v25 = vpack.c.bf16 %v11210_v33, %v11210_v33  ;;  %v11255_v58 = vunpack.c.l.b16 %v11223_v0 }
0x1d01   : > { %v11257_v12 = vunpack.c.l.b16 %v11225_v1  ;;  %v11258_v26 = vunpack.c.l.b16 %v11226_v11  ;;  %v11259_v38 = vunpack.c.l.b16 %v11227_v5  ;;  %v11260_v36 = vunpack.c.l.b16 %v11228_v18 }
0x1d02   : > { %v11271_v2 = vrot.slane %v11256_v3, 7  ;;  %v11261_v54 = vunpack.c.l.b16 %v11229_v56  ;;  %v11262_v7 = vunpack.c.l.b16 %v11230_v25 }
0x1d03   : > { %v11273_v20 = vrot.slane %v11257_v12, 6  ;;  %v11275_v8 = vrot.slane %v11258_v26, 5  ;;  %v11277_v22 = vrot.slane %v11259_v38, 4  ;;  %v11279_v33 = vrot.slane %v11260_v36, 3 }
0x1d04   : > { %v11272_v39 = vsel %vm10965_vm7, %v11271_v2, %v11255_v58  ;;  %v11281_v0 = vrot.slane %v11261_v54, 2  ;;  %v11283_v12 = vrot.slane %v11262_v7, 1 }
0x1d05   : > { %v11274_v49 = vsel %vm10968_vm8, %v11273_v20, %v11272_v39 }
0x1d06   : > { %v13822_v27 = vpop.eup %13821  ;;  %v11276_v15 = vsel %vm10971_vm9, %v11275_v8, %v11274_v49 }
0x1d07   : > { %v11140_v17 = vrot.slane %v13822_v27, 1  ;;  %v11141_v24 = vrot.slane %v13822_v27, 2  ;;  %v11142_v41 = vrot.slane %v13822_v27, 3  ;;  %v11143_v55 = vrot.slane %v13822_v27, 4 }
0x1d08   : > { %v11144_v48 = vrot.slane %v13822_v27, 5  ;;  %v11145_v10 = vrot.slane %v13822_v27, 6  ;;  %v11146_v42 = vrot.slane %v13822_v27, 7  ;;  %v11171_v19 = vmul.f32 %v13822_v27, %v18028_v53 }
0x1d09   : > { %v11172_v61 = vmul.f32 %v11140_v17, %v18031_v47  ;;  %v11173_v30 = vmul.f32 %v11141_v24, %v18034_v29  ;;  %v11174_v51 = vmul.f32 %v11142_v41, %v18037_v34  ;;  %v11175_v32 = vmul.f32 %v11143_v55, %v18040_v13 }
0x1d0a   : > { %v11176_v6 = vmul.f32 %v11144_v48, %v18043_v44  ;;  %v11177_v62 = vmul.f32 %v11145_v10, %v18046_v37  ;;  %v11178_v45 = vmul.f32 %v11146_v42, %v18049_v40  ;;  %v11191_v52 = vmul.f32 %v18087_v60, %v11171_v19 }
0x1d0b   : > { %v11192_v14 = vmul.f32 %v18087_v60, %v11172_v61  ;;  %v11193_v53 = vmul.f32 %v18087_v60, %v11173_v30  ;;  %v11194_v47 = vmul.f32 %v18087_v60, %v11174_v51  ;;  %v11195_v29 = vmul.f32 %v18087_v60, %v11175_v32 }
0x1d0c   : > { %v11196_v34 = vmul.f32 %v18087_v60, %v11176_v6  ;;  %v11197_v13 = vmul.f32 %v18087_v60, %v11177_v62  ;;  %v11198_v44 = vmul.f32 %v18087_v60, %v11178_v45  ;;  %v11211_v37 = vadd.f32 %v18091_v59, %v11191_v52 }
0x1d0d   : > { %v11212_v40 = vadd.f32 %v18091_v59, %v11192_v14  ;;  %v11213_v63 = vadd.f32 %v18091_v59, %v11193_v53  ;;  %v11214_v21 = vadd.f32 %v18091_v59, %v11194_v47  ;;  %v11215_v23 = vadd.f32 %v18091_v59, %v11195_v29 }
0x1d0e   : > { %v11216_v9 = vadd.f32 %v18091_v59, %v11196_v34  ;;  %v11217_v28 = vadd.f32 %v18091_v59, %v11197_v13  ;;  %v11218_v50 = vadd.f32 %v18091_v59, %v11198_v44  ;;  %v11231_v57 = vpack.c.bf16 %v11211_v37, %v11211_v37 }
0x1d0f   : > { %v11232_v4 = vpack.c.bf16 %v11212_v40, %v11212_v40  ;;  %v11233_v31 = vpack.c.bf16 %v11213_v63, %v11213_v63  ;;  %v11234_v60 = vpack.c.bf16 %v11214_v21, %v11214_v21  ;;  %v11235_v16 = vpack.c.bf16 %v11215_v23, %v11215_v23 }
0x1d10   : > { %v11236_v35 = vpack.c.bf16 %v11216_v9, %v11216_v9  ;;  %v11237_v43 = vpack.c.bf16 %v11217_v28, %v11217_v28  ;;  %v11238_v46 = vpack.c.bf16 %v11218_v50, %v11218_v50  ;;  %v11263_v3 = vunpack.c.l.b16 %v11231_v57 }
0x1d11   : > { %v11264_v1 = vunpack.c.l.b16 %v11232_v4  ;;  %v11265_v11 = vunpack.c.l.b16 %v11233_v31  ;;  %v11266_v5 = vunpack.c.l.b16 %v11234_v60  ;;  %v11267_v18 = vunpack.c.l.b16 %v11235_v16 }
0x1d12   : > { %v11278_v56 = vsel %vm10974_vm10, %v11277_v22, %v11276_v15  ;;  %v11268_v26 = vunpack.c.l.b16 %v11236_v35  ;;  %v11269_v38 = vunpack.c.l.b16 %v11237_v43  ;;  %v11270_v20 = vunpack.c.l.b16 %v11238_v46 }
0x1d13   : > { %v11280_v59 = vsel %vm10977_vm11, %v11279_v33, %v11278_v56  ;;  %v11285_v25 = vrot.slane %v11264_v1, 7  ;;  %v11287_v58 = vrot.slane %v11265_v11, 6  ;;  %v11289_v36 = vrot.slane %v11266_v5, 5 }
0x1d14   : > { %v11282_v2 = vsel %vm10980_vm12, %v11281_v0, %v11280_v59  ;;  %v11291_v27 = vrot.slane %v11267_v18, 4  ;;  %v11293_v7 = vrot.slane %v11268_v26, 3  ;;  %v11295_v22 = vrot.slane %v11269_v38, 2 }
0x1d15   : > { %v11284_v39 = vsel %vm10983_vm13, %v11283_v12, %v11282_v2  ;;  %v11286_v8 = vsel %vm10965_vm7, %v11285_v25, %v11263_v3  ;;  %v11297_v24 = vrot.slane %v11270_v20, 1 }
0x1d16   : > { %v11288_v49 = vsel %vm10968_vm8, %v11287_v58, %v11286_v8 }
0x1d17   : > { %v11290_v54 = vsel %vm10971_vm9, %v11289_v36, %v11288_v49 }
0x1d18   : > { %v11292_v15 = vsel %vm10974_vm10, %v11291_v27, %v11290_v54 }
0x1d19   : > { %v11294_v17 = vsel %vm10977_vm11, %v11293_v7, %v11292_v15 }
0x1d1a   : > { %v11296_v41 = vsel %vm10980_vm12, %v11295_v22, %v11294_v17 }
0x1d1b   : > { %v11298_v55 = vsel %vm10983_vm13, %v11297_v24, %v11296_v41 }
0x1d1c   : > { %v11299_v48 = vpack.c.b16 %v11298_v55, %v11284_v39 }
0x1d1e   : > { %13140 = vmatmul.mubr.msk.bf16.vlgmr.msra.gmra.mrb[72].mxu1 %vm694_vm1, %v11299_v48 }
0x1df1   : > { %v11349_v10 = vpop.f32.mrb[72].mxu1 }
0x1df2   : > { %v11356_v42 = vmul.f32 %v11349_v10, %v11349_v10  ;;  %v13141_v19 = vpop.f32.mrb[73].mxu1 }
0x1df3   : > { %v11352_v61 = vpop.f32.mrb[74].mxu1 }
0x1df4   : > { %v11357_v30 = vmul.f32 %v11352_v61, %v11352_v61  ;;  %11358 = vadd.xlane.f32.xlu0 %v11356_v42  ;;  %v13142_v51 = vpop.f32.mrb[75].mxu1 }
0x1df6   : > { %11360 = vadd.xlane.f32.xlu1 %v11357_v30 }
0x1e81   : > { %v11359_v32 = vpop.xlane.xlu0 %11358 }
0x1e82   : > { %v11362_v6 = vadd.f32 1e-12, %v11359_v32 }
0x1e83   : > { %v11361_v62 = vpop.xlane.xlu1 %11360 }
0x1e84   : > { %13823 = vrsqrt.f32 %v11362_v6  ;;  %v11363_v45 = vadd.f32 1e-12, %v11361_v62 }
0x1e86   : > { %13825 = vrsqrt.f32 %v11363_v45 }
0x1e8e   : > { %v13824_v52 = vpop.eup %13823 }
0x1e8f   : > { %v11366_v14 = vmul.f32 %v13824_v52, %v11349_v10 }
0x1e90   : > { %v13826_v53 = vpop.eup %13825 }
0x1e91   : > { %v11367_v47 = vmul.f32 %v13826_v53, %v11352_v61  ;;  %11368 = vst [vmem:[%s405_s27] sm:$0xff] %v11366_v14 }
0x1e93   : > { %11369 = vst [vmem:[%s405_s27 + $0x8] sm:$0xff] %v11367_v47 }
0x1e94   : > { %13875 = shalt.err (!%p13872_p2)
}
0x1e95   : > { %s13876_s26 = scalar_lea.hbm %s18161_s25, 256  ;;  %s13880_s14 = scalar_lea.hbm %s18218_s11, 512 }
0x1e96   : > { %p13877_p4 = scmp.ne.s32.totalorder %s18161_s25, %s13876_s26  ;;  %p13881_p9 = scmp.lt.u32.totalorder %s18161_s25, %s18218_s11 }
0x1e97   : > { %p13882_p1 = scmp.lt.u32.totalorder %s13880_s14, %s13876_s26  ;;  %p13884_p6 = scmp.lt.u32.totalorder %s13876_s26, %s18161_s25 }
0x1e98   : > { %p13878_p5 = pnand %p13877_p4, %p18328_p11 }
0x1e99   : > { %p13883_p3 = por %p13882_p1, %p13881_p9 }
0x1e9a   : > { %p13879_p7 = pneg %p13878_p5 }
0x1e9b   : > { %p13885_p12 = por %p13884_p6, %p13883_p3 }
0x1e9d   : > { %p13886_p13 = pnand %p13885_p12, %p13879_p7 }
0x1e9f   : > { %13889 = shalt.err (!%p13886_p13)
}
0x1ea0   : > { %s13942_s21 = smov 128   ;;  %s13943_s13 = smov 8  }
0x1ea1   : > { %13177 = dma.vmem_to_hbm [thread:$0]  (%p18328_p11), %s18163_s28, 256, %s18161_s25, %s11371_s16, %s13942_s21, %s13942_s21, %s13943_s13  }
0x1ea2 PF: > { %s11399_s19 = sand.u32 1, %s13916_s17   ;;  %p18329_p8 = scmp.ne.s32.totalorder %s18261_s30, 0 }
0x1ea3   : > { %p18330_p10 = scmp.ge.s32.totalorder %s13928_s20, 2  ;;  %s11400_s26 = scalar_lea.sflag [#allocation4], %s11399_s19 }
0x1ea5   : > { %p13184_p0 = pnand %p18330_p10, %p18329_p8 }
0x1ea7   : > { %13911 = dma.done.wait (!%p13184_p0), %s11400_s26, 256  }
0x1ea8   : > { %13913 = vsyncadd (!%p13184_p0), %s11400_s26, 4294967040  ;;  %s18331_s24 = sld [smem:[#allocation8_spill]]  ;;  %s18332_s19 = sld [smem:[#allocation9_spill]] }
0x1ea9   : > { %p24_p2 = scmp.ge.s32.totalorder %s14029_s23, 4   ;;  %s18333_s17 = smov %s13920_s18 }
0x1eaa   : > { %s18335_s20 = smov %s14029_s23 }
0x1eab   :  { %26 = sbr.rel (!%p24_p2) target bundleno = 5 (0x5), region = 115 }
0x1eae   : > { %s18334_s18 = smov %s18331_s24 }
0x1eb2   :  { %11405 = vsyncpa [#allocation3], 1 }
0x1eb3   :  { %11407 = vsyncpa [#allocation3 + $0x1], 1 }
0x1eb4   :  { %11408 = vsyncpa [#allocation4], 1 }
0x1eb5   :  { %11410 = vsyncpa [#allocation4 + $0x1], 1 }

</bundles_post_ra>
